<compile_context>
chip_gen: v7x
topology: tpu7x:2x2x1
jax: 0.10.0
libtpu: 0.0.40
codegen_flags: <defaults>
</compile_context>

<pallas_src>
import functools

import jax
import jax.numpy as jnp
from jax import lax
from jax.experimental import pallas as pl
from jax.experimental.pallas import tpu as pltpu

EPS = 1e-5


# ---------------------------------------------------------------------------
# Conv3x3(pad=1) + folded BN + ReLU + MaxPool2x2 -- TRANSPOSED orientation
# (layers 1-2: weights are the MXU LHS, spatial width is the lane dim).
# Activations are kept in "NHCW" (N, H, C, W) layout for these layers.
# ---------------------------------------------------------------------------
def _conv_t_kernel(x_ref, w_ref, s_ref, b_ref, o_ref, *, hp, cout):
    # x_ref : (2*hp+2, 4*cin, W/2) bf16   padded, column-folded input image
    # w_ref : (3, 2*cout, 4*cin)   bf16   pair-expanded taps (one LHS per ky)
    # s_ref : (2*cout, 1)          f32    folded BN scale (per output channel)
    # b_ref : (2*cout, 1)          f32    folded BN bias (includes conv bias)
    # o_ref : (hp, cout, W/2)      bf16   pooled output rows (NHCW)
    w0 = w_ref[0]
    w1 = w_ref[1]
    w2 = w_ref[2]
    scale = s_ref[...]
    bias = b_ref[...]

    def row_body(j, carry):
        r0 = pl.multiple_of(2 * j, 2)

        def conv_row(r):
            acc = jnp.dot(w0, x_ref[r], preferred_element_type=jnp.float32)
            acc = acc + jnp.dot(w1, x_ref[r + 1], preferred_element_type=jnp.float32)
            acc = acc + jnp.dot(w2, x_ref[r + 2], preferred_element_type=jnp.float32)
            return acc * scale + bias                       # (2*cout, W/2) f32

        # row-pair max, ReLU, then column-pair max over the sublane halves.
        y = jnp.maximum(jnp.maximum(conv_row(r0), conv_row(r0 + 1)), 0.0)
        o_ref[j] = jnp.maximum(y[:cout], y[cout:]).astype(o_ref.dtype)
        return carry

    lax.fori_loop(0, hp, row_body, 0)


def conv_t_bn_relu_pool(a, w_t, scale_c, bias_c):
    """a: (N, H, Cin, W) bf16 'NHCW'.  Returns (N, H//2, Cout, W//2) bf16 pooled."""
    n, h, cin, w = a.shape
    cout2 = w_t.shape[1]
    cout = cout2 // 2
    kdim = 4 * cin
    assert h % 2 == 0 and w % 2 == 0
    hp, wh = h // 2, w // 2
    # XLA staging (bf16 glue): pad H/W by 1 and fold the 4 padded columns of every
    # pooled pair onto the contraction dim: xs[n,r,k*cin+c,w2] = pad(a)[n,r,c,2*w2+k].
    xp = jnp.pad(a, ((0, 0), (1, 1), (0, 0), (1, 1)))
    xs = jnp.concatenate([xp[:, :, :, k:k + w:2] for k in range(4)], axis=2)

    kern = functools.partial(_conv_t_kernel, hp=hp, cout=cout)
    return pl.pallas_call(
        kern,
        out_shape=jax.ShapeDtypeStruct((n, hp, cout, wh), jnp.bfloat16),
        grid=(n,),
        in_specs=[
            pl.BlockSpec((None, h + 2, kdim, wh), lambda i: (i, 0, 0, 0)),
            pl.BlockSpec((3, cout2, kdim), lambda i: (0, 0, 0)),
            pl.BlockSpec((cout2, 1), lambda i: (0, 0)),
            pl.BlockSpec((cout2, 1), lambda i: (0, 0)),
        ],
        out_specs=pl.BlockSpec((None, hp, cout, wh), lambda i: (i, 0, 0, 0)),
        compiler_params=pltpu.CompilerParams(dimension_semantics=("parallel",)),
    )(xs, w_t, scale_c, bias_c)


# ---------------------------------------------------------------------------
# Conv3x3(pad=1) + folded BN + ReLU + MaxPool2x2 -- activations-LHS orientation
# (layers 3-4, NHWC).  Width-pad junk columns are dropped in the epilogue store.
# ---------------------------------------------------------------------------
def _conv_kernel(x_ref, w_ref, s_ref, b_ref, o_ref, *, hp, wh, vw, kdim, cout):
    # x_ref : (2*hp+2, wh, kdim) bf16  folded + padded input (kdim = 4*cin)
    # w_ref : (3, kdim, 2*cout)  bf16  pair-expanded taps
    # s_ref : (1, 2*cout)        f32
    # b_ref : (1, 2*cout)        f32
    # o_ref : (hp, vw, cout)     bf16  pooled output rows (valid columns only)
    w0 = w_ref[0]
    w1 = w_ref[1]
    w2 = w_ref[2]
    scale = s_ref[...]
    bias = b_ref[...]

    def row_body(j, carry):
        r0 = pl.multiple_of(2 * j, 2)
        x0 = x_ref[pl.ds(r0, 2)].reshape(2 * wh, kdim)
        x1 = x_ref[pl.ds(r0 + 1, 2)].reshape(2 * wh, kdim)
        x2 = x_ref[pl.ds(r0 + 2, 2)].reshape(2 * wh, kdim)
        acc = jnp.dot(x0, w0, preferred_element_type=jnp.float32)
        acc = acc + jnp.dot(x1, w1, preferred_element_type=jnp.float32)
        acc = acc + jnp.dot(x2, w2, preferred_element_type=jnp.float32)
        y = jnp.maximum(acc * scale + bias, 0.0)             # (2*wh, 2*cout) f32
        yh = jnp.maximum(y[:wh], y[wh:])                     # row-pair max
        yp = jnp.maximum(yh[:, :cout], yh[:, cout:])         # column-pair max
        o_ref[j] = yp[:vw].astype(o_ref.dtype)               # drop width-pad junk
        return carry

    lax.fori_loop(0, hp, row_body, 0)


def conv_bn_relu_pool(a, w2, scale2, bias2):
    """a: (N, H, W, Cin) bf16 NHWC.  Returns (N, H//2, W//2, Cout) bf16 (valid cols)."""
    n, h, w, cin = a.shape
    cout2 = w2.shape[-1]
    cout = cout2 // 2
    kdim = 4 * cin
    wp = ((w + 31) // 32) * 32      # keeps wh a multiple of 16 (bf16 sublane tile)
    wh = wp // 2
    vw = w // 2
    hp = h // 2
    xp = jnp.pad(a, ((0, 0), (1, 1), (1, 1 + wp - w), (0, 0)))
    xf = jnp.concatenate([xp[:, :, k:k + wp:2, :] for k in range(4)], axis=-1)

    kern = functools.partial(_conv_kernel, hp=hp, wh=wh, vw=vw, kdim=kdim, cout=cout)
    return pl.pallas_call(
        kern,
        out_shape=jax.ShapeDtypeStruct((n, hp, vw, cout), jnp.bfloat16),
        grid=(n,),
        in_specs=[
            pl.BlockSpec((None, h + 2, wh, kdim), lambda i: (i, 0, 0, 0)),
            pl.BlockSpec((3, kdim, cout2), lambda i: (0, 0, 0)),
            pl.BlockSpec((1, cout2), lambda i: (0, 0)),
            pl.BlockSpec((1, cout2), lambda i: (0, 0)),
        ],
        out_specs=pl.BlockSpec((None, hp, vw, cout), lambda i: (i, 0, 0, 0)),
        compiler_params=pltpu.CompilerParams(dimension_semantics=("parallel",)),
    )(xf, w2, scale2, bias2)


# ---------------------------------------------------------------------------
# fc1: K-tiled bf16 matmul streaming the 25 MB weight, accumulating directly
# into the resident f32 output block; 512 output cols split over a parallel axis
# (tn=256 keeps both v7x TensorCores busy; tk=6272 -> 8 total grid steps).
# ---------------------------------------------------------------------------
def _fc1_kernel(x_ref, w_ref, b_ref, o_ref):
    k = pl.program_id(1)

    @pl.when(k == 0)
    def _():
        o_ref[...] = jnp.zeros_like(o_ref)

    o_ref[...] += jnp.dot(x_ref[...], w_ref[...], preferred_element_type=jnp.float32)

    @pl.when(k == pl.num_programs(1) - 1)
    def _():
        o_ref[...] = jnp.maximum(o_ref[...] + b_ref[...], 0.0)


def fc1_matmul(x, w, b, *, tk=6272, tn=256):
    m, kdim = x.shape
    kdim2, nout = w.shape
    assert kdim == kdim2 and kdim % tk == 0 and nout % tn == 0
    return pl.pallas_call(
        _fc1_kernel,
        out_shape=jax.ShapeDtypeStruct((m, nout), jnp.float32),
        grid=(nout // tn, kdim // tk),
        in_specs=[
            pl.BlockSpec((m, tk), lambda nb, kb: (0, kb)),
            pl.BlockSpec((tk, tn), lambda nb, kb: (kb, nb)),
            pl.BlockSpec((1, tn), lambda nb, kb: (0, nb)),
        ],
        out_specs=pl.BlockSpec((m, tn), lambda nb, kb: (0, nb)),
        compiler_params=pltpu.CompilerParams(
            dimension_semantics=("parallel", "arbitrary")),
    )(x, w, b.reshape(1, nout))


# ---------------------------------------------------------------------------
# fc2 + fc3 fused (tiny).
# ---------------------------------------------------------------------------
def _fc23_kernel(x_ref, w2_ref, b2_ref, w3_ref, b3_ref, o_ref):
    h = jnp.dot(x_ref[...].astype(jnp.bfloat16), w2_ref[...],
                preferred_element_type=jnp.float32)
    h = jnp.maximum(h + b2_ref[...], 0.0)
    o_ref[...] = jnp.dot(h.astype(jnp.bfloat16), w3_ref[...],
                         preferred_element_type=jnp.float32) + b3_ref[...]


def fc23_matmul(x, w2, b2, w3, b3):
    m, k2 = x.shape
    nh = w2.shape[1]
    nout = w3.shape[1]
    return pl.pallas_call(
        _fc23_kernel,
        out_shape=jax.ShapeDtypeStruct((m, nout), jnp.float32),
        grid=(1,),
        in_specs=[
            pl.BlockSpec((m, k2), lambda i: (0, 0)),
            pl.BlockSpec((k2, nh), lambda i: (0, 0)),
            pl.BlockSpec((1, nh), lambda i: (0, 0)),
            pl.BlockSpec((nh, nout), lambda i: (0, 0)),
            pl.BlockSpec((1, nout), lambda i: (0, 0)),
        ],
        out_specs=pl.BlockSpec((m, nout), lambda i: (0, 0)),
    )(x, w2, b2.reshape(1, nh), w3, b3.reshape(1, nout))


# ---------------------------------------------------------------------------
# Parameters: raw (PyTorch-like, f32) and kernel-ready (bf16, folded, permuted).
# ---------------------------------------------------------------------------
def init_params(key):
    conv_specs = [(3, 16), (16, 32), (32, 64), (64, 128)]
    fc_specs = [(128 * 14 * 14, 512), (512, 256), (256, 29)]
    keys = jax.random.split(key, 4 * 6 + 3 * 2)
    ki = 0
    raw = {"convs": [], "fcs": []}
    for cin, cout in conv_specs:
        kw, kb, kg, kbe, km, kv = keys[ki:ki + 6]
        ki += 6
        bound = 1.0 / jnp.sqrt(cin * 9.0)
        w = jax.random.uniform(kw, (3, 3, cin, cout), jnp.float32, -bound, bound)  # HWIO
        cb = jax.random.uniform(kb, (cout,), jnp.float32, -bound, bound)
        gamma = jax.random.uniform(kg, (cout,), jnp.float32, 0.5, 1.5)
        beta = jax.random.uniform(kbe, (cout,), jnp.float32, -0.1, 0.1)
        mean = jax.random.uniform(km, (cout,), jnp.float32, -0.1, 0.1)
        var = jax.random.uniform(kv, (cout,), jnp.float32, 0.5, 1.5)
        raw["convs"].append((w, cb, gamma, beta, mean, var))
    for fin, fout in fc_specs:
        kw, kb = keys[ki:ki + 2]
        ki += 2
        bound = 1.0 / jnp.sqrt(float(fin))
        w = jax.random.uniform(kw, (fin, fout), jnp.float32, -bound, bound)
        b = jax.random.uniform(kb, (fout,), jnp.float32, -bound, bound)
        raw["fcs"].append((w, b))
    return raw


def prepare_params(raw):
    """One-time transforms to kernel layouts/dtypes: bf16 weights, pair-expanded conv
    taps, folded BN; layers 1-2 transposed (weights-as-LHS); fc1 rows permuted from
    the PyTorch (C,H,W) flatten order to the NHWC (H,W,C) flatten order."""
    convs = []
    for li, (w, cb, gamma, beta, mean, var) in enumerate(raw["convs"]):
        cin, cout = w.shape[2], w.shape[3]
        scale = gamma * lax.rsqrt(var + EPS)            # folded BN scale
        bias = beta + (cb - mean) * scale               # folded BN bias (+ conv bias)
        # Pair expansion: W2[ky, kxp*cin + c, dw*cout + co] = W[ky, kxp - dw, c, co]
        w2 = jnp.zeros((3, 4, cin, 2, cout), jnp.float32)
        for dw in range(2):
            for kx in range(3):
                w2 = w2.at[:, kx + dw, :, dw, :].set(w[:, kx])
        w2 = w2.reshape(3, 4 * cin, 2 * cout)
        s2 = jnp.concatenate([scale, scale])
        b2 = jnp.concatenate([bias, bias])
        if li < 2:      # transposed orientation: weights are the MXU LHS
            convs.append((jnp.transpose(w2, (0, 2, 1)).astype(jnp.bfloat16),
                          s2.reshape(2 * cout, 1), b2.reshape(2 * cout, 1)))
        else:           # activations-LHS orientation
            convs.append((w2.astype(jnp.bfloat16),
                          s2.reshape(1, 2 * cout), b2.reshape(1, 2 * cout)))
    (w1, b1), (w2f, b2f), (w3f, b3f) = raw["fcs"]
    w1p = w1.reshape(128, 14, 14, 512).transpose(1, 2, 0, 3).reshape(128 * 14 * 14, 512)
    fcs = [(w1p.astype(jnp.bfloat16), b1),
           (w2f.astype(jnp.bfloat16), b2f),
           (w3f.astype(jnp.bfloat16), b3f)]
    return {"convs": convs, "fcs": fcs}


# ---------------------------------------------------------------------------
# Full forward pass (Pallas) and a pure-JAX reference with matching precision.
# ---------------------------------------------------------------------------
@jax.jit
def simpsons_net2_forward(x_nchw, params):
    # Layers 1-2: transposed orientation, activations kept in NHCW bf16.
    a = jnp.transpose(x_nchw, (0, 2, 1, 3)).astype(jnp.bfloat16)    # NCHW -> NHCW
    for li in range(2):
        wt, st, bt = params["convs"][li]
        a = conv_t_bn_relu_pool(a, wt, st, bt)
    # Layers 3-4: activations-LHS orientation, NHWC bf16 (junk cols dropped in-kernel).
    a = jnp.transpose(a, (0, 1, 3, 2))                               # NHCW -> NHWC
    for li in range(2, 4):
        w2, s2, b2 = params["convs"][li]
        a = conv_bn_relu_pool(a, w2, s2, b2)
    n = a.shape[0]
    a = a.reshape(n, -1)                        # NHWC flatten (fc1 rows pre-permuted)
    (w1, b1), (wf2, bf2), (wf3, bf3) = params["fcs"]
    # TODO(synk): Dropout(0.25) is identity in eval mode; no RNG masking applied.
    h1 = fc1_matmul(a, w1, b1)                  # (n, 512) f32, ReLU fused
    return fc23_matmul(h1, wf2, bf2, wf3, bf3)  # (n, 29) f32


def reference_forward(x_nchw, raw):
    """Pure-JAX reference using the same bf16-operand / f32-accumulation precision."""
    a = jnp.transpose(x_nchw, (0, 2, 3, 1)).astype(jnp.bfloat16)
    for (w, cb, gamma, beta, mean, var) in raw["convs"]:
        z = lax.conv_general_dilated(
            a, w.astype(jnp.bfloat16), (1, 1), ((1, 1), (1, 1)),
            dimension_numbers=("NHWC", "HWIO", "NHWC"),
            preferred_element_type=jnp.float32)
        z = (z + cb - mean) * (gamma * lax.rsqrt(var + EPS)) + beta
        z = jnp.maximum(z, 0.0)
        n, h, wdim, c = z.shape
        z = jnp.max(z.reshape(n, h // 2, 2, wdim // 2, 2, c), axis=(2, 4))
        a = z.astype(jnp.bfloat16)
    n = a.shape[0]
    flat = jnp.transpose(a, (0, 3, 1, 2)).reshape(n, -1)     # PyTorch (C,H,W) flatten
    (w1, b1), (w2, b2), (w3, b3) = raw["fcs"]
    h1 = jnp.dot(flat, w1.astype(jnp.bfloat16), preferred_element_type=jnp.float32) + b1
    h1 = jnp.maximum(h1, 0.0)
    h2 = jnp.dot(h1.astype(jnp.bfloat16), w2.astype(jnp.bfloat16),
                 preferred_element_type=jnp.float32) + b2
    h2 = jnp.maximum(h2, 0.0)
    return jnp.dot(h2.astype(jnp.bfloat16), w3.astype(jnp.bfloat16),
                   preferred_element_type=jnp.float32) + b3


if __name__ == "__main__":
    key = jax.random.PRNGKey(0)
    kp, kx = jax.random.split(key)
    raw = init_params(kp)
    params = prepare_params(raw)
    # 224x224 input is forced by fc1's 128*14*14 flatten; batch kept small (2).
    x = jax.random.normal(kx, (2, 3, 224, 224), dtype=jnp.float32)   # NCHW like PyTorch

    out = jax.block_until_ready(simpsons_net2_forward(x, params))
    assert out.shape == (2, 29)
    assert bool(jnp.all(jnp.isfinite(out)))

    ref = jax.block_until_ready(jax.jit(reference_forward)(x, raw))
    max_err = float(jnp.max(jnp.abs(out - ref)))
    assert jnp.allclose(out, ref, rtol=2e-2, atol=2e-3), max_err

    print("KERNEL_OK")
</pallas_src>

<mosaic_0001>
module attributes {stable_mosaic.version = 11 : i64} {
  func.func @_conv_t_kernel(%arg0: i32, %arg1: memref<1x226x12x112xbf16, #tpu.memory_space<vmem>>, %arg2: memref<3x32x12xbf16, #tpu.memory_space<vmem>>, %arg3: memref<32x1xf32, #tpu.memory_space<vmem>>, %arg4: memref<32x1xf32, #tpu.memory_space<vmem>>, %arg5: memref<1x112x16x112xbf16, #tpu.memory_space<vmem>>) attributes {dimension_semantics = [#tpu.dimension_semantics<parallel>], iteration_bounds = array<i64: 2>, scalar_prefetch = 0 : i64, scratch_operands = 0 : i64, tpu.core_type = #tpu.core_type<tc>, window_params = [{transform_indices = @transform_0, window_bounds = array<i64: 1, 226, 12, 112>}, {pipeline_mode = #tpu.pipeline_mode<synchronous>, transform_indices = @transform_1, window_bounds = array<i64: 3, 32, 12>}, {pipeline_mode = #tpu.pipeline_mode<synchronous>, transform_indices = @transform_2, window_bounds = array<i64: 32, 1>}, {pipeline_mode = #tpu.pipeline_mode<synchronous>, transform_indices = @transform_3, window_bounds = array<i64: 32, 1>}, {transform_indices = @transform_4, window_bounds = array<i64: 1, 112, 16, 112>}]} {
    %c0 = arith.constant 0 : index
    %c0_0 = arith.constant 0 : index
    %c0_1 = arith.constant 0 : index
    %0 = vector.load %arg2[%c0, %c0_0, %c0_1] : memref<3x32x12xbf16, #tpu.memory_space<vmem>>, vector<1x32x12xbf16>
    %1 = vector.shape_cast %0 : vector<1x32x12xbf16> to vector<32x12xbf16>
    %c1 = arith.constant 1 : index
    %c0_2 = arith.constant 0 : index
    %c0_3 = arith.constant 0 : index
    %2 = vector.load %arg2[%c1, %c0_2, %c0_3] : memref<3x32x12xbf16, #tpu.memory_space<vmem>>, vector<1x32x12xbf16>
    %3 = vector.shape_cast %2 : vector<1x32x12xbf16> to vector<32x12xbf16>
    %c2 = arith.constant 2 : index
    %c0_4 = arith.constant 0 : index
    %c0_5 = arith.constant 0 : index
    %4 = vector.load %arg2[%c2, %c0_4, %c0_5] : memref<3x32x12xbf16, #tpu.memory_space<vmem>>, vector<1x32x12xbf16>
    %5 = vector.shape_cast %4 : vector<1x32x12xbf16> to vector<32x12xbf16>
    %c0_6 = arith.constant 0 : index
    %c0_7 = arith.constant 0 : index
    %6 = vector.load %arg3[%c0_6, %c0_7] : memref<32x1xf32, #tpu.memory_space<vmem>>, vector<32x1xf32>
    %c0_8 = arith.constant 0 : index
    %c0_9 = arith.constant 0 : index
    %7 = vector.load %arg4[%c0_8, %c0_9] : memref<32x1xf32, #tpu.memory_space<vmem>>, vector<32x1xf32>
    %c0_i32 = arith.constant 0 : i32
    %c112_i32 = arith.constant 112 : i32
    %8 = arith.addi %c0_i32, %c112_i32 : i32
    %c1_i32 = arith.constant 1 : i32
    scf.for %arg6 = %c0_i32 to %8 step %c1_i32  : i32 {
      %c2_i32 = arith.constant 2 : i32
      %9 = arith.muli %c2_i32, %arg6 : i32
      %10 = tpu.assume_multiple %9, 2 : i32
      %c0_11 = arith.constant 0 : index
      %11 = arith.index_cast %10 : i32 to index
      %c0_12 = arith.constant 0 : index
      %c0_13 = arith.constant 0 : index
      %12 = vector.load %arg1[%c0_11, %11, %c0_12, %c0_13] : memref<1x226x12x112xbf16, #tpu.memory_space<vmem>>, vector<1x1x12x112xbf16>
      %13 = vector.shape_cast %12 : vector<1x1x12x112xbf16> to vector<12x112xbf16>
      %cst = arith.constant dense<0.000000e+00> : vector<32x112xf32>
      %14 = tpu.matmul %1, %13, %cst {dimension_numbers = #tpu.dot_dimension_numbers<[1], [0], [0], [1], [0, 0, 1, 1], [], []>} : vector<32x12xbf16>, vector<12x112xbf16>, vector<32x112xf32> -> vector<32x112xf32>
      %c1_i32_14 = arith.constant 1 : i32
      %15 = arith.addi %10, %c1_i32_14 : i32
      %c0_15 = arith.constant 0 : index
      %16 = arith.index_cast %15 : i32 to index
      %c0_16 = arith.constant 0 : index
      %c0_17 = arith.constant 0 : index
      %17 = vector.load %arg1[%c0_15, %16, %c0_16, %c0_17] : memref<1x226x12x112xbf16, #tpu.memory_space<vmem>>, vector<1x1x12x112xbf16>
      %18 = vector.shape_cast %17 : vector<1x1x12x112xbf16> to vector<12x112xbf16>
      %cst_18 = arith.constant dense<0.000000e+00> : vector<32x112xf32>
      %19 = tpu.matmul %3, %18, %cst_18 {dimension_numbers = #tpu.dot_dimension_numbers<[1], [0], [0], [1], [0, 0, 1, 1], [], []>} : vector<32x12xbf16>, vector<12x112xbf16>, vector<32x112xf32> -> vector<32x112xf32>
      %20 = arith.addf %14, %19 : vector<32x112xf32>
      %c2_i32_19 = arith.constant 2 : i32
      %21 = arith.addi %10, %c2_i32_19 : i32
      %c0_20 = arith.constant 0 : index
      %22 = arith.index_cast %21 : i32 to index
      %c0_21 = arith.constant 0 : index
      %c0_22 = arith.constant 0 : index
      %23 = vector.load %arg1[%c0_20, %22, %c0_21, %c0_22] : memref<1x226x12x112xbf16, #tpu.memory_space<vmem>>, vector<1x1x12x112xbf16>
      %24 = vector.shape_cast %23 : vector<1x1x12x112xbf16> to vector<12x112xbf16>
      %cst_23 = arith.constant dense<0.000000e+00> : vector<32x112xf32>
      %25 = tpu.matmul %5, %24, %cst_23 {dimension_numbers = #tpu.dot_dimension_numbers<[1], [0], [0], [1], [0, 0, 1, 1], [], []>} : vector<32x12xbf16>, vector<12x112xbf16>, vector<32x112xf32> -> vector<32x112xf32>
      %26 = arith.addf %20, %25 : vector<32x112xf32>
      %27 = vector.broadcast %6 : vector<32x1xf32> to vector<32x112xf32>
      %28 = arith.mulf %26, %27 : vector<32x112xf32>
      %29 = vector.broadcast %7 : vector<32x1xf32> to vector<32x112xf32>
      %30 = arith.addf %28, %29 : vector<32x112xf32>
      %c1_i32_24 = arith.constant 1 : i32
      %31 = arith.addi %10, %c1_i32_24 : i32
      %c0_25 = arith.constant 0 : index
      %32 = arith.index_cast %31 : i32 to index
      %c0_26 = arith.constant 0 : index
      %c0_27 = arith.constant 0 : index
      %33 = vector.load %arg1[%c0_25, %32, %c0_26, %c0_27] : memref<1x226x12x112xbf16, #tpu.memory_space<vmem>>, vector<1x1x12x112xbf16>
      %34 = vector.shape_cast %33 : vector<1x1x12x112xbf16> to vector<12x112xbf16>
      %cst_28 = arith.constant dense<0.000000e+00> : vector<32x112xf32>
      %35 = tpu.matmul %1, %34, %cst_28 {dimension_numbers = #tpu.dot_dimension_numbers<[1], [0], [0], [1], [0, 0, 1, 1], [], []>} : vector<32x12xbf16>, vector<12x112xbf16>, vector<32x112xf32> -> vector<32x112xf32>
      %c1_i32_29 = arith.constant 1 : i32
      %36 = arith.addi %31, %c1_i32_29 : i32
      %c0_30 = arith.constant 0 : index
      %37 = arith.index_cast %36 : i32 to index
      %c0_31 = arith.constant 0 : index
      %c0_32 = arith.constant 0 : index
      %38 = vector.load %arg1[%c0_30, %37, %c0_31, %c0_32] : memref<1x226x12x112xbf16, #tpu.memory_space<vmem>>, vector<1x1x12x112xbf16>
      %39 = vector.shape_cast %38 : vector<1x1x12x112xbf16> to vector<12x112xbf16>
      %cst_33 = arith.constant dense<0.000000e+00> : vector<32x112xf32>
      %40 = tpu.matmul %3, %39, %cst_33 {dimension_numbers = #tpu.dot_dimension_numbers<[1], [0], [0], [1], [0, 0, 1, 1], [], []>} : vector<32x12xbf16>, vector<12x112xbf16>, vector<32x112xf32> -> vector<32x112xf32>
      %41 = arith.addf %35, %40 : vector<32x112xf32>
      %c2_i32_34 = arith.constant 2 : i32
      %42 = arith.addi %31, %c2_i32_34 : i32
      %c0_35 = arith.constant 0 : index
      %43 = arith.index_cast %42 : i32 to index
      %c0_36 = arith.constant 0 : index
      %c0_37 = arith.constant 0 : index
      %44 = vector.load %arg1[%c0_35, %43, %c0_36, %c0_37] : memref<1x226x12x112xbf16, #tpu.memory_space<vmem>>, vector<1x1x12x112xbf16>
      %45 = vector.shape_cast %44 : vector<1x1x12x112xbf16> to vector<12x112xbf16>
      %cst_38 = arith.constant dense<0.000000e+00> : vector<32x112xf32>
      %46 = tpu.matmul %5, %45, %cst_38 {dimension_numbers = #tpu.dot_dimension_numbers<[1], [0], [0], [1], [0, 0, 1, 1], [], []>} : vector<32x12xbf16>, vector<12x112xbf16>, vector<32x112xf32> -> vector<32x112xf32>
      %47 = arith.addf %41, %46 : vector<32x112xf32>
      %48 = vector.broadcast %6 : vector<32x1xf32> to vector<32x112xf32>
      %49 = arith.mulf %47, %48 : vector<32x112xf32>
      %50 = vector.broadcast %7 : vector<32x1xf32> to vector<32x112xf32>
      %51 = arith.addf %49, %50 : vector<32x112xf32>
      %52 = arith.maximumf %30, %51 : vector<32x112xf32>
      %cst_39 = arith.constant 0.000000e+00 : f32
      %53 = vector.broadcast %cst_39 : f32 to vector<32x112xf32>
      %54 = arith.maximumf %52, %53 : vector<32x112xf32>
      %55 = vector.extract_strided_slice %54 {offsets = [0, 0], sizes = [16, 112], strides = [1, 1]} : vector<32x112xf32> to vector<16x112xf32>
      %56 = vector.extract_strided_slice %54 {offsets = [16, 0], sizes = [16, 112], strides = [1, 1]} : vector<32x112xf32> to vector<16x112xf32>
      %57 = arith.maximumf %55, %56 : vector<16x112xf32>
      %58 = arith.truncf %57 : vector<16x112xf32> to vector<16x112xbf16>
      %c0_40 = arith.constant 0 : index
      %59 = arith.index_cast %arg6 : i32 to index
      %c0_41 = arith.constant 0 : index
      %c0_42 = arith.constant 0 : index
      %60 = vector.load %arg5[%c0_40, %59, %c0_41, %c0_42] : memref<1x112x16x112xbf16, #tpu.memory_space<vmem>>, vector<1x1x16x112xbf16>
      %61 = vector.shape_cast %60 : vector<1x1x16x112xbf16> to vector<16x112xbf16>
      %62 = vector.shape_cast %58 : vector<16x112xbf16> to vector<1x1x16x112xbf16>
      tpu.vector_store %arg5[%c0_40, %59, %c0_41, %c0_42], %62 {strides = array<i32>} : memref<1x112x16x112xbf16, #tpu.memory_space<vmem>>, vector<1x1x16x112xbf16>,
    }
    %c112_i32_10 = arith.constant 112 : i32
    return
  }
  func.func @transform_0(%arg0: i32) -> (i32, i32, i32, i32) {
    %c0_i32 = arith.constant 0 : i32
    %c0_i32_0 = arith.constant 0 : i32
    %c0_i32_1 = arith.constant 0 : i32
    %c0_i32_2 = arith.constant 0 : i32
    return %arg0, %c0_i32, %c0_i32_0, %c0_i32_1 : i32, i32, i32, i32
  }
  func.func @transform_1(%arg0: i32) -> (i32, i32, i32) {
    %c0_i32 = arith.constant 0 : i32
    %c0_i32_0 = arith.constant 0 : i32
    %c0_i32_1 = arith.constant 0 : i32
    %c0_i32_2 = arith.constant 0 : i32
    return %c0_i32, %c0_i32_0, %c0_i32_1 : i32, i32, i32
  }
  func.func @transform_2(%arg0: i32) -> (i32, i32) {
    %c0_i32 = arith.constant 0 : i32
    %c0_i32_0 = arith.constant 0 : i32
    %c0_i32_1 = arith.constant 0 : i32
    return %c0_i32, %c0_i32_0 : i32, i32
  }
  func.func @transform_3(%arg0: i32) -> (i32, i32) {
    %c0_i32 = arith.constant 0 : i32
    %c0_i32_0 = arith.constant 0 : i32
    %c0_i32_1 = arith.constant 0 : i32
    return %c0_i32, %c0_i32_0 : i32, i32
  }
  func.func @transform_4(%arg0: i32) -> (i32, i32, i32, i32) {
    %c0_i32 = arith.constant 0 : i32
    %c0_i32_0 = arith.constant 0 : i32
    %c0_i32_1 = arith.constant 0 : i32
    %c0_i32_2 = arith.constant 0 : i32
    return %arg0, %c0_i32, %c0_i32_0, %c0_i32_1 : i32, i32, i32, i32
  }
}

module attributes {stable_mosaic.version = 11 : i64} {
  func.func @_conv_t_kernel(%arg0: i32, %arg1: memref<1x114x64x56xbf16, #tpu.memory_space<vmem>>, %arg2: memref<3x64x64xbf16, #tpu.memory_space<vmem>>, %arg3: memref<64x1xf32, #tpu.memory_space<vmem>>, %arg4: memref<64x1xf32, #tpu.memory_space<vmem>>, %arg5: memref<1x56x32x56xbf16, #tpu.memory_space<vmem>>) attributes {dimension_semantics = [#tpu.dimension_semantics<parallel>], iteration_bounds = array<i64: 2>, scalar_prefetch = 0 : i64, scratch_operands = 0 : i64, tpu.core_type = #tpu.core_type<tc>, window_params = [{transform_indices = @transform_0, window_bounds = array<i64: 1, 114, 64, 56>}, {pipeline_mode = #tpu.pipeline_mode<synchronous>, transform_indices = @transform_1, window_bounds = array<i64: 3, 64, 64>}, {pipeline_mode = #tpu.pipeline_mode<synchronous>, transform_indices = @transform_2, window_bounds = array<i64: 64, 1>}, {pipeline_mode = #tpu.pipeline_mode<synchronous>, transform_indices = @transform_3, window_bounds = array<i64: 64, 1>}, {transform_indices = @transform_4, window_bounds = array<i64: 1, 56, 32, 56>}]} {
    %c0 = arith.constant 0 : index
    %c0_0 = arith.constant 0 : index
    %c0_1 = arith.constant 0 : index
    %0 = vector.load %arg2[%c0, %c0_0, %c0_1] : memref<3x64x64xbf16, #tpu.memory_space<vmem>>, vector<1x64x64xbf16>
    %1 = vector.shape_cast %0 : vector<1x64x64xbf16> to vector<64x64xbf16>
    %c1 = arith.constant 1 : index
    %c0_2 = arith.constant 0 : index
    %c0_3 = arith.constant 0 : index
    %2 = vector.load %arg2[%c1, %c0_2, %c0_3] : memref<3x64x64xbf16, #tpu.memory_space<vmem>>, vector<1x64x64xbf16>
    %3 = vector.shape_cast %2 : vector<1x64x64xbf16> to vector<64x64xbf16>
    %c2 = arith.constant 2 : index
    %c0_4 = arith.constant 0 : index
    %c0_5 = arith.constant 0 : index
    %4 = vector.load %arg2[%c2, %c0_4, %c0_5] : memref<3x64x64xbf16, #tpu.memory_space<vmem>>, vector<1x64x64xbf16>
    %5 = vector.shape_cast %4 : vector<1x64x64xbf16> to vector<64x64xbf16>
    %c0_6 = arith.constant 0 : index
    %c0_7 = arith.constant 0 : index
    %6 = vector.load %arg3[%c0_6, %c0_7] : memref<64x1xf32, #tpu.memory_space<vmem>>, vector<64x1xf32>
    %c0_8 = arith.constant 0 : index
    %c0_9 = arith.constant 0 : index
    %7 = vector.load %arg4[%c0_8, %c0_9] : memref<64x1xf32, #tpu.memory_space<vmem>>, vector<64x1xf32>
    %c0_i32 = arith.constant 0 : i32
    %c56_i32 = arith.constant 56 : i32
    %8 = arith.addi %c0_i32, %c56_i32 : i32
    %c1_i32 = arith.constant 1 : i32
    scf.for %arg6 = %c0_i32 to %8 step %c1_i32  : i32 {
      %c2_i32 = arith.constant 2 : i32
      %9 = arith.muli %c2_i32, %arg6 : i32
      %10 = tpu.assume_multiple %9, 2 : i32
      %c0_11 = arith.constant 0 : index
      %11 = arith.index_cast %10 : i32 to index
      %c0_12 = arith.constant 0 : index
      %c0_13 = arith.constant 0 : index
      %12 = vector.load %arg1[%c0_11, %11, %c0_12, %c0_13] : memref<1x114x64x56xbf16, #tpu.memory_space<vmem>>, vector<1x1x64x56xbf16>
      %13 = vector.shape_cast %12 : vector<1x1x64x56xbf16> to vector<64x56xbf16>
      %cst = arith.constant dense<0.000000e+00> : vector<64x56xf32>
      %14 = tpu.matmul %1, %13, %cst {dimension_numbers = #tpu.dot_dimension_numbers<[1], [0], [0], [1], [0, 0, 1, 1], [], []>} : vector<64x64xbf16>, vector<64x56xbf16>, vector<64x56xf32> -> vector<64x56xf32>
      %c1_i32_14 = arith.constant 1 : i32
      %15 = arith.addi %10, %c1_i32_14 : i32
      %c0_15 = arith.constant 0 : index
      %16 = arith.index_cast %15 : i32 to index
      %c0_16 = arith.constant 0 : index
      %c0_17 = arith.constant 0 : index
      %17 = vector.load %arg1[%c0_15, %16, %c0_16, %c0_17] : memref<1x114x64x56xbf16, #tpu.memory_space<vmem>>, vector<1x1x64x56xbf16>
      %18 = vector.shape_cast %17 : vector<1x1x64x56xbf16> to vector<64x56xbf16>
      %cst_18 = arith.constant dense<0.000000e+00> : vector<64x56xf32>
      %19 = tpu.matmul %3, %18, %cst_18 {dimension_numbers = #tpu.dot_dimension_numbers<[1], [0], [0], [1], [0, 0, 1, 1], [], []>} : vector<64x64xbf16>, vector<64x56xbf16>, vector<64x56xf32> -> vector<64x56xf32>
      %20 = arith.addf %14, %19 : vector<64x56xf32>
      %c2_i32_19 = arith.constant 2 : i32
      %21 = arith.addi %10, %c2_i32_19 : i32
      %c0_20 = arith.constant 0 : index
      %22 = arith.index_cast %21 : i32 to index
      %c0_21 = arith.constant 0 : index
      %c0_22 = arith.constant 0 : index
      %23 = vector.load %arg1[%c0_20, %22, %c0_21, %c0_22] : memref<1x114x64x56xbf16, #tpu.memory_space<vmem>>, vector<1x1x64x56xbf16>
      %24 = vector.shape_cast %23 : vector<1x1x64x56xbf16> to vector<64x56xbf16>
      %cst_23 = arith.constant dense<0.000000e+00> : vector<64x56xf32>
      %25 = tpu.matmul %5, %24, %cst_23 {dimension_numbers = #tpu.dot_dimension_numbers<[1], [0], [0], [1], [0, 0, 1, 1], [], []>} : vector<64x64xbf16>, vector<64x56xbf16>, vector<64x56xf32> -> vector<64x56xf32>
      %26 = arith.addf %20, %25 : vector<64x56xf32>
      %27 = vector.broadcast %6 : vector<64x1xf32> to vector<64x56xf32>
      %28 = arith.mulf %26, %27 : vector<64x56xf32>
      %29 = vector.broadcast %7 : vector<64x1xf32> to vector<64x56xf32>
      %30 = arith.addf %28, %29 : vector<64x56xf32>
      %c1_i32_24 = arith.constant 1 : i32
      %31 = arith.addi %10, %c1_i32_24 : i32
      %c0_25 = arith.constant 0 : index
      %32 = arith.index_cast %31 : i32 to index
      %c0_26 = arith.constant 0 : index
      %c0_27 = arith.constant 0 : index
      %33 = vector.load %arg1[%c0_25, %32, %c0_26, %c0_27] : memref<1x114x64x56xbf16, #tpu.memory_space<vmem>>, vector<1x1x64x56xbf16>
      %34 = vector.shape_cast %33 : vector<1x1x64x56xbf16> to vector<64x56xbf16>
      %cst_28 = arith.constant dense<0.000000e+00> : vector<64x56xf32>
      %35 = tpu.matmul %1, %34, %cst_28 {dimension_numbers = #tpu.dot_dimension_numbers<[1], [0], [0], [1], [0, 0, 1, 1], [], []>} : vector<64x64xbf16>, vector<64x56xbf16>, vector<64x56xf32> -> vector<64x56xf32>
      %c1_i32_29 = arith.constant 1 : i32
      %36 = arith.addi %31, %c1_i32_29 : i32
      %c0_30 = arith.constant 0 : index
      %37 = arith.index_cast %36 : i32 to index
      %c0_31 = arith.constant 0 : index
      %c0_32 = arith.constant 0 : index
      %38 = vector.load %arg1[%c0_30, %37, %c0_31, %c0_32] : memref<1x114x64x56xbf16, #tpu.memory_space<vmem>>, vector<1x1x64x56xbf16>
      %39 = vector.shape_cast %38 : vector<1x1x64x56xbf16> to vector<64x56xbf16>
      %cst_33 = arith.constant dense<0.000000e+00> : vector<64x56xf32>
      %40 = tpu.matmul %3, %39, %cst_33 {dimension_numbers = #tpu.dot_dimension_numbers<[1], [0], [0], [1], [0, 0, 1, 1], [], []>} : vector<64x64xbf16>, vector<64x56xbf16>, vector<64x56xf32> -> vector<64x56xf32>
      %41 = arith.addf %35, %40 : vector<64x56xf32>
      %c2_i32_34 = arith.constant 2 : i32
      %42 = arith.addi %31, %c2_i32_34 : i32
      %c0_35 = arith.constant 0 : index
      %43 = arith.index_cast %42 : i32 to index
      %c0_36 = arith.constant 0 : index
      %c0_37 = arith.constant 0 : index
      %44 = vector.load %arg1[%c0_35, %43, %c0_36, %c0_37] : memref<1x114x64x56xbf16, #tpu.memory_space<vmem>>, vector<1x1x64x56xbf16>
      %45 = vector.shape_cast %44 : vector<1x1x64x56xbf16> to vector<64x56xbf16>
      %cst_38 = arith.constant dense<0.000000e+00> : vector<64x56xf32>
      %46 = tpu.matmul %5, %45, %cst_38 {dimension_numbers = #tpu.dot_dimension_numbers<[1], [0], [0], [1], [0, 0, 1, 1], [], []>} : vector<64x64xbf16>, vector<64x56xbf16>, vector<64x56xf32> -> vector<64x56xf32>
      %47 = arith.addf %41, %46 : vector<64x56xf32>
      %48 = vector.broadcast %6 : vector<64x1xf32> to vector<64x56xf32>
      %49 = arith.mulf %47, %48 : vector<64x56xf32>
      %50 = vector.broadcast %7 : vector<64x1xf32> to vector<64x56xf32>
      %51 = arith.addf %49, %50 : vector<64x56xf32>
      %52 = arith.maximumf %30, %51 : vector<64x56xf32>
      %cst_39 = arith.constant 0.000000e+00 : f32
      %53 = vector.broadcast %cst_39 : f32 to vector<64x56xf32>
      %54 = arith.maximumf %52, %53 : vector<64x56xf32>
      %55 = vector.extract_strided_slice %54 {offsets = [0, 0], sizes = [32, 56], strides = [1, 1]} : vector<64x56xf32> to vector<32x56xf32>
      %56 = vector.extract_strided_slice %54 {offsets = [32, 0], sizes = [32, 56], strides = [1, 1]} : vector<64x56xf32> to vector<32x56xf32>
      %57 = arith.maximumf %55, %56 : vector<32x56xf32>
      %58 = arith.truncf %57 : vector<32x56xf32> to vector<32x56xbf16>
      %c0_40 = arith.constant 0 : index
      %59 = arith.index_cast %arg6 : i32 to index
      %c0_41 = arith.constant 0 : index
      %c0_42 = arith.constant 0 : index
      %60 = vector.load %arg5[%c0_40, %59, %c0_41, %c0_42] : memref<1x56x32x56xbf16, #tpu.memory_space<vmem>>, vector<1x1x32x56xbf16>
      %61 = vector.shape_cast %60 : vector<1x1x32x56xbf16> to vector<32x56xbf16>
      %62 = vector.shape_cast %58 : vector<32x56xbf16> to vector<1x1x32x56xbf16>
      tpu.vector_store %arg5[%c0_40, %59, %c0_41, %c0_42], %62 {strides = array<i32>} : memref<1x56x32x56xbf16, #tpu.memory_space<vmem>>, vector<1x1x32x56xbf16>,
    }
    %c56_i32_10 = arith.constant 56 : i32
    return
  }
  func.func @transform_0(%arg0: i32) -> (i32, i32, i32, i32) {
    %c0_i32 = arith.constant 0 : i32
    %c0_i32_0 = arith.constant 0 : i32
    %c0_i32_1 = arith.constant 0 : i32
    %c0_i32_2 = arith.constant 0 : i32
    return %arg0, %c0_i32, %c0_i32_0, %c0_i32_1 : i32, i32, i32, i32
  }
  func.func @transform_1(%arg0: i32) -> (i32, i32, i32) {
    %c0_i32 = arith.constant 0 : i32
    %c0_i32_0 = arith.constant 0 : i32
    %c0_i32_1 = arith.constant 0 : i32
    %c0_i32_2 = arith.constant 0 : i32
    return %c0_i32, %c0_i32_0, %c0_i32_1 : i32, i32, i32
  }
  func.func @transform_2(%arg0: i32) -> (i32, i32) {
    %c0_i32 = arith.constant 0 : i32
    %c0_i32_0 = arith.constant 0 : i32
    %c0_i32_1 = arith.constant 0 : i32
    return %c0_i32, %c0_i32_0 : i32, i32
  }
  func.func @transform_3(%arg0: i32) -> (i32, i32) {
    %c0_i32 = arith.constant 0 : i32
    %c0_i32_0 = arith.constant 0 : i32
    %c0_i32_1 = arith.constant 0 : i32
    return %c0_i32, %c0_i32_0 : i32, i32
  }
  func.func @transform_4(%arg0: i32) -> (i32, i32, i32, i32) {
    %c0_i32 = arith.constant 0 : i32
    %c0_i32_0 = arith.constant 0 : i32
    %c0_i32_1 = arith.constant 0 : i32
    %c0_i32_2 = arith.constant 0 : i32
    return %arg0, %c0_i32, %c0_i32_0, %c0_i32_1 : i32, i32, i32, i32
  }
}

module attributes {stable_mosaic.version = 11 : i64} {
  func.func @_conv_kernel(%arg0: i32, %arg1: memref<1x58x32x128xbf16, #tpu.memory_space<vmem>>, %arg2: memref<3x128x128xbf16, #tpu.memory_space<vmem>>, %arg3: memref<1x128xf32, #tpu.memory_space<vmem>>, %arg4: memref<1x128xf32, #tpu.memory_space<vmem>>, %arg5: memref<1x28x28x64xbf16, #tpu.memory_space<vmem>>) attributes {dimension_semantics = [#tpu.dimension_semantics<parallel>], iteration_bounds = array<i64: 2>, scalar_prefetch = 0 : i64, scratch_operands = 0 : i64, tpu.core_type = #tpu.core_type<tc>, window_params = [{transform_indices = @transform_0, window_bounds = array<i64: 1, 58, 32, 128>}, {pipeline_mode = #tpu.pipeline_mode<synchronous>, transform_indices = @transform_1, window_bounds = array<i64: 3, 128, 128>}, {pipeline_mode = #tpu.pipeline_mode<synchronous>, transform_indices = @transform_2, window_bounds = array<i64: 1, 128>}, {pipeline_mode = #tpu.pipeline_mode<synchronous>, transform_indices = @transform_3, window_bounds = array<i64: 1, 128>}, {transform_indices = @transform_4, window_bounds = array<i64: 1, 28, 28, 64>}]} {
    %c0 = arith.constant 0 : index
    %c0_0 = arith.constant 0 : index
    %c0_1 = arith.constant 0 : index
    %0 = vector.load %arg2[%c0, %c0_0, %c0_1] : memref<3x128x128xbf16, #tpu.memory_space<vmem>>, vector<1x128x128xbf16>
    %1 = vector.shape_cast %0 : vector<1x128x128xbf16> to vector<128x128xbf16>
    %c1 = arith.constant 1 : index
    %c0_2 = arith.constant 0 : index
    %c0_3 = arith.constant 0 : index
    %2 = vector.load %arg2[%c1, %c0_2, %c0_3] : memref<3x128x128xbf16, #tpu.memory_space<vmem>>, vector<1x128x128xbf16>
    %3 = vector.shape_cast %2 : vector<1x128x128xbf16> to vector<128x128xbf16>
    %c2 = arith.constant 2 : index
    %c0_4 = arith.constant 0 : index
    %c0_5 = arith.constant 0 : index
    %4 = vector.load %arg2[%c2, %c0_4, %c0_5] : memref<3x128x128xbf16, #tpu.memory_space<vmem>>, vector<1x128x128xbf16>
    %5 = vector.shape_cast %4 : vector<1x128x128xbf16> to vector<128x128xbf16>
    %c0_6 = arith.constant 0 : index
    %c0_7 = arith.constant 0 : index
    %6 = vector.load %arg3[%c0_6, %c0_7] : memref<1x128xf32, #tpu.memory_space<vmem>>, vector<1x128xf32>
    %c0_8 = arith.constant 0 : index
    %c0_9 = arith.constant 0 : index
    %7 = vector.load %arg4[%c0_8, %c0_9] : memref<1x128xf32, #tpu.memory_space<vmem>>, vector<1x128xf32>
    %c0_i32 = arith.constant 0 : i32
    %c28_i32 = arith.constant 28 : i32
    %8 = arith.addi %c0_i32, %c28_i32 : i32
    %c1_i32 = arith.constant 1 : i32
    scf.for %arg6 = %c0_i32 to %8 step %c1_i32  : i32 {
      %c2_i32 = arith.constant 2 : i32
      %9 = arith.muli %c2_i32, %arg6 : i32
      %10 = tpu.assume_multiple %9, 2 : i32
      %c0_11 = arith.constant 0 : index
      %11 = arith.index_cast %10 : i32 to index
      %c0_12 = arith.constant 0 : index
      %c0_13 = arith.constant 0 : index
      %12 = vector.load %arg1[%c0_11, %11, %c0_12, %c0_13] : memref<1x58x32x128xbf16, #tpu.memory_space<vmem>>, vector<1x2x32x128xbf16>
      %13 = vector.shape_cast %12 : vector<1x2x32x128xbf16> to vector<2x32x128xbf16>
      %14 = vector.shape_cast %13 : vector<2x32x128xbf16> to vector<64x128xbf16>
      %c1_i32_14 = arith.constant 1 : i32
      %15 = arith.addi %10, %c1_i32_14 : i32
      %c0_15 = arith.constant 0 : index
      %16 = arith.index_cast %15 : i32 to index
      %c0_16 = arith.constant 0 : index
      %c0_17 = arith.constant 0 : index
      %17 = vector.load %arg1[%c0_15, %16, %c0_16, %c0_17] : memref<1x58x32x128xbf16, #tpu.memory_space<vmem>>, vector<1x2x32x128xbf16>
      %18 = vector.shape_cast %17 : vector<1x2x32x128xbf16> to vector<2x32x128xbf16>
      %19 = vector.shape_cast %18 : vector<2x32x128xbf16> to vector<64x128xbf16>
      %c2_i32_18 = arith.constant 2 : i32
      %20 = arith.addi %10, %c2_i32_18 : i32
      %c0_19 = arith.constant 0 : index
      %21 = arith.index_cast %20 : i32 to index
      %c0_20 = arith.constant 0 : index
      %c0_21 = arith.constant 0 : index
      %22 = vector.load %arg1[%c0_19, %21, %c0_20, %c0_21] : memref<1x58x32x128xbf16, #tpu.memory_space<vmem>>, vector<1x2x32x128xbf16>
      %23 = vector.shape_cast %22 : vector<1x2x32x128xbf16> to vector<2x32x128xbf16>
      %24 = vector.shape_cast %23 : vector<2x32x128xbf16> to vector<64x128xbf16>
      %cst = arith.constant dense<0.000000e+00> : vector<64x128xf32>
      %25 = tpu.matmul %14, %1, %cst {dimension_numbers = #tpu.dot_dimension_numbers<[1], [0], [0], [1], [0, 0, 1, 1], [], []>} : vector<64x128xbf16>, vector<128x128xbf16>, vector<64x128xf32> -> vector<64x128xf32>
      %cst_22 = arith.constant dense<0.000000e+00> : vector<64x128xf32>
      %26 = tpu.matmul %19, %3, %cst_22 {dimension_numbers = #tpu.dot_dimension_numbers<[1], [0], [0], [1], [0, 0, 1, 1], [], []>} : vector<64x128xbf16>, vector<128x128xbf16>, vector<64x128xf32> -> vector<64x128xf32>
      %27 = arith.addf %25, %26 : vector<64x128xf32>
      %cst_23 = arith.constant dense<0.000000e+00> : vector<64x128xf32>
      %28 = tpu.matmul %24, %5, %cst_23 {dimension_numbers = #tpu.dot_dimension_numbers<[1], [0], [0], [1], [0, 0, 1, 1], [], []>} : vector<64x128xbf16>, vector<128x128xbf16>, vector<64x128xf32> -> vector<64x128xf32>
      %29 = arith.addf %27, %28 : vector<64x128xf32>
      %30 = vector.broadcast %6 : vector<1x128xf32> to vector<64x128xf32>
      %31 = arith.mulf %29, %30 : vector<64x128xf32>
      %32 = vector.broadcast %7 : vector<1x128xf32> to vector<64x128xf32>
      %33 = arith.addf %31, %32 : vector<64x128xf32>
      %cst_24 = arith.constant 0.000000e+00 : f32
      %34 = vector.broadcast %cst_24 : f32 to vector<64x128xf32>
      %35 = arith.maximumf %33, %34 : vector<64x128xf32>
      %36 = vector.extract_strided_slice %35 {offsets = [0, 0], sizes = [32, 128], strides = [1, 1]} : vector<64x128xf32> to vector<32x128xf32>
      %37 = vector.extract_strided_slice %35 {offsets = [32, 0], sizes = [32, 128], strides = [1, 1]} : vector<64x128xf32> to vector<32x128xf32>
      %38 = arith.maximumf %36, %37 : vector<32x128xf32>
      %39 = vector.extract_strided_slice %38 {offsets = [0, 0], sizes = [32, 64], strides = [1, 1]} : vector<32x128xf32> to vector<32x64xf32>
      %40 = vector.extract_strided_slice %38 {offsets = [0, 64], sizes = [32, 64], strides = [1, 1]} : vector<32x128xf32> to vector<32x64xf32>
      %41 = arith.maximumf %39, %40 : vector<32x64xf32>
      %42 = vector.extract_strided_slice %41 {offsets = [0, 0], sizes = [28, 64], strides = [1, 1]} : vector<32x64xf32> to vector<28x64xf32>
      %43 = arith.truncf %42 : vector<28x64xf32> to vector<28x64xbf16>
      %c0_25 = arith.constant 0 : index
      %44 = arith.index_cast %arg6 : i32 to index
      %c0_26 = arith.constant 0 : index
      %c0_27 = arith.constant 0 : index
      %45 = vector.load %arg5[%c0_25, %44, %c0_26, %c0_27] : memref<1x28x28x64xbf16, #tpu.memory_space<vmem>>, vector<1x1x28x64xbf16>
      %46 = vector.shape_cast %45 : vector<1x1x28x64xbf16> to vector<28x64xbf16>
      %47 = vector.shape_cast %43 : vector<28x64xbf16> to vector<1x1x28x64xbf16>
      tpu.vector_store %arg5[%c0_25, %44, %c0_26, %c0_27], %47 {strides = array<i32>} : memref<1x28x28x64xbf16, #tpu.memory_space<vmem>>, vector<1x1x28x64xbf16>,
    }
    %c28_i32_10 = arith.constant 28 : i32
    return
  }
  func.func @transform_0(%arg0: i32) -> (i32, i32, i32, i32) {
    %c0_i32 = arith.constant 0 : i32
    %c0_i32_0 = arith.constant 0 : i32
    %c0_i32_1 = arith.constant 0 : i32
    %c0_i32_2 = arith.constant 0 : i32
    return %arg0, %c0_i32, %c0_i32_0, %c0_i32_1 : i32, i32, i32, i32
  }
  func.func @transform_1(%arg0: i32) -> (i32, i32, i32) {
    %c0_i32 = arith.constant 0 : i32
    %c0_i32_0 = arith.constant 0 : i32
    %c0_i32_1 = arith.constant 0 : i32
    %c0_i32_2 = arith.constant 0 : i32
    return %c0_i32, %c0_i32_0, %c0_i32_1 : i32, i32, i32
  }
  func.func @transform_2(%arg0: i32) -> (i32, i32) {
    %c0_i32 = arith.constant 0 : i32
    %c0_i32_0 = arith.constant 0 : i32
    %c0_i32_1 = arith.constant 0 : i32
    return %c0_i32, %c0_i32_0 : i32, i32
  }
  func.func @transform_3(%arg0: i32) -> (i32, i32) {
    %c0_i32 = arith.constant 0 : i32
    %c0_i32_0 = arith.constant 0 : i32
    %c0_i32_1 = arith.constant 0 : i32
    return %c0_i32, %c0_i32_0 : i32, i32
  }
  func.func @transform_4(%arg0: i32) -> (i32, i32, i32, i32) {
    %c0_i32 = arith.constant 0 : i32
    %c0_i32_0 = arith.constant 0 : i32
    %c0_i32_1 = arith.constant 0 : i32
    %c0_i32_2 = arith.constant 0 : i32
    return %arg0, %c0_i32, %c0_i32_0, %c0_i32_1 : i32, i32, i32, i32
  }
}

module attributes {stable_mosaic.version = 11 : i64} {
  func.func @_conv_kernel(%arg0: i32, %arg1: memref<1x30x16x256xbf16, #tpu.memory_space<vmem>>, %arg2: memref<3x256x256xbf16, #tpu.memory_space<vmem>>, %arg3: memref<1x256xf32, #tpu.memory_space<vmem>>, %arg4: memref<1x256xf32, #tpu.memory_space<vmem>>, %arg5: memref<1x14x14x128xbf16, #tpu.memory_space<vmem>>) attributes {dimension_semantics = [#tpu.dimension_semantics<parallel>], iteration_bounds = array<i64: 2>, scalar_prefetch = 0 : i64, scratch_operands = 0 : i64, tpu.core_type = #tpu.core_type<tc>, window_params = [{transform_indices = @transform_0, window_bounds = array<i64: 1, 30, 16, 256>}, {pipeline_mode = #tpu.pipeline_mode<synchronous>, transform_indices = @transform_1, window_bounds = array<i64: 3, 256, 256>}, {pipeline_mode = #tpu.pipeline_mode<synchronous>, transform_indices = @transform_2, window_bounds = array<i64: 1, 256>}, {pipeline_mode = #tpu.pipeline_mode<synchronous>, transform_indices = @transform_3, window_bounds = array<i64: 1, 256>}, {transform_indices = @transform_4, window_bounds = array<i64: 1, 14, 14, 128>}]} {
    %c0 = arith.constant 0 : index
    %c0_0 = arith.constant 0 : index
    %c0_1 = arith.constant 0 : index
    %0 = vector.load %arg2[%c0, %c0_0, %c0_1] : memref<3x256x256xbf16, #tpu.memory_space<vmem>>, vector<1x256x256xbf16>
    %1 = vector.shape_cast %0 : vector<1x256x256xbf16> to vector<256x256xbf16>
    %c1 = arith.constant 1 : index
    %c0_2 = arith.constant 0 : index
    %c0_3 = arith.constant 0 : index
    %2 = vector.load %arg2[%c1, %c0_2, %c0_3] : memref<3x256x256xbf16, #tpu.memory_space<vmem>>, vector<1x256x256xbf16>
    %3 = vector.shape_cast %2 : vector<1x256x256xbf16> to vector<256x256xbf16>
    %c2 = arith.constant 2 : index
    %c0_4 = arith.constant 0 : index
    %c0_5 = arith.constant 0 : index
    %4 = vector.load %arg2[%c2, %c0_4, %c0_5] : memref<3x256x256xbf16, #tpu.memory_space<vmem>>, vector<1x256x256xbf16>
    %5 = vector.shape_cast %4 : vector<1x256x256xbf16> to vector<256x256xbf16>
    %c0_6 = arith.constant 0 : index
    %c0_7 = arith.constant 0 : index
    %6 = vector.load %arg3[%c0_6, %c0_7] : memref<1x256xf32, #tpu.memory_space<vmem>>, vector<1x256xf32>
    %c0_8 = arith.constant 0 : index
    %c0_9 = arith.constant 0 : index
    %7 = vector.load %arg4[%c0_8, %c0_9] : memref<1x256xf32, #tpu.memory_space<vmem>>, vector<1x256xf32>
    %c0_i32 = arith.constant 0 : i32
    %c14_i32 = arith.constant 14 : i32
    %8 = arith.addi %c0_i32, %c14_i32 : i32
    %c1_i32 = arith.constant 1 : i32
    scf.for %arg6 = %c0_i32 to %8 step %c1_i32  : i32 {
      %c2_i32 = arith.constant 2 : i32
      %9 = arith.muli %c2_i32, %arg6 : i32
      %10 = tpu.assume_multiple %9, 2 : i32
      %c0_11 = arith.constant 0 : index
      %11 = arith.index_cast %10 : i32 to index
      %c0_12 = arith.constant 0 : index
      %c0_13 = arith.constant 0 : index
      %12 = vector.load %arg1[%c0_11, %11, %c0_12, %c0_13] : memref<1x30x16x256xbf16, #tpu.memory_space<vmem>>, vector<1x2x16x256xbf16>
      %13 = vector.shape_cast %12 : vector<1x2x16x256xbf16> to vector<2x16x256xbf16>
      %14 = vector.shape_cast %13 : vector<2x16x256xbf16> to vector<32x256xbf16>
      %c1_i32_14 = arith.constant 1 : i32
      %15 = arith.addi %10, %c1_i32_14 : i32
      %c0_15 = arith.constant 0 : index
      %16 = arith.index_cast %15 : i32 to index
      %c0_16 = arith.constant 0 : index
      %c0_17 = arith.constant 0 : index
      %17 = vector.load %arg1[%c0_15, %16, %c0_16, %c0_17] : memref<1x30x16x256xbf16, #tpu.memory_space<vmem>>, vector<1x2x16x256xbf16>
      %18 = vector.shape_cast %17 : vector<1x2x16x256xbf16> to vector<2x16x256xbf16>
      %19 = vector.shape_cast %18 : vector<2x16x256xbf16> to vector<32x256xbf16>
      %c2_i32_18 = arith.constant 2 : i32
      %20 = arith.addi %10, %c2_i32_18 : i32
      %c0_19 = arith.constant 0 : index
      %21 = arith.index_cast %20 : i32 to index
      %c0_20 = arith.constant 0 : index
      %c0_21 = arith.constant 0 : index
      %22 = vector.load %arg1[%c0_19, %21, %c0_20, %c0_21] : memref<1x30x16x256xbf16, #tpu.memory_space<vmem>>, vector<1x2x16x256xbf16>
      %23 = vector.shape_cast %22 : vector<1x2x16x256xbf16> to vector<2x16x256xbf16>
      %24 = vector.shape_cast %23 : vector<2x16x256xbf16> to vector<32x256xbf16>
      %cst = arith.constant dense<0.000000e+00> : vector<32x256xf32>
      %25 = tpu.matmul %14, %1, %cst {dimension_numbers = #tpu.dot_dimension_numbers<[1], [0], [0], [1], [0, 0, 1, 1], [], []>} : vector<32x256xbf16>, vector<256x256xbf16>, vector<32x256xf32> -> vector<32x256xf32>
      %cst_22 = arith.constant dense<0.000000e+00> : vector<32x256xf32>
      %26 = tpu.matmul %19, %3, %cst_22 {dimension_numbers = #tpu.dot_dimension_numbers<[1], [0], [0], [1], [0, 0, 1, 1], [], []>} : vector<32x256xbf16>, vector<256x256xbf16>, vector<32x256xf32> -> vector<32x256xf32>
      %27 = arith.addf %25, %26 : vector<32x256xf32>
      %cst_23 = arith.constant dense<0.000000e+00> : vector<32x256xf32>
      %28 = tpu.matmul %24, %5, %cst_23 {dimension_numbers = #tpu.dot_dimension_numbers<[1], [0], [0], [1], [0, 0, 1, 1], [], []>} : vector<32x256xbf16>, vector<256x256xbf16>, vector<32x256xf32> -> vector<32x256xf32>
      %29 = arith.addf %27, %28 : vector<32x256xf32>
      %30 = vector.broadcast %6 : vector<1x256xf32> to vector<32x256xf32>
      %31 = arith.mulf %29, %30 : vector<32x256xf32>
      %32 = vector.broadcast %7 : vector<1x256xf32> to vector<32x256xf32>
      %33 = arith.addf %31, %32 : vector<32x256xf32>
      %cst_24 = arith.constant 0.000000e+00 : f32
      %34 = vector.broadcast %cst_24 : f32 to vector<32x256xf32>
      %35 = arith.maximumf %33, %34 : vector<32x256xf32>
      %36 = vector.extract_strided_slice %35 {offsets = [0, 0], sizes = [16, 256], strides = [1, 1]} : vector<32x256xf32> to vector<16x256xf32>
      %37 = vector.extract_strided_slice %35 {offsets = [16, 0], sizes = [16, 256], strides = [1, 1]} : vector<32x256xf32> to vector<16x256xf32>
      %38 = arith.maximumf %36, %37 : vector<16x256xf32>
      %39 = vector.extract_strided_slice %38 {offsets = [0, 0], sizes = [16, 128], strides = [1, 1]} : vector<16x256xf32> to vector<16x128xf32>
      %40 = vector.extract_strided_slice %38 {offsets = [0, 128], sizes = [16, 128], strides = [1, 1]} : vector<16x256xf32> to vector<16x128xf32>
      %41 = arith.maximumf %39, %40 : vector<16x128xf32>
      %42 = vector.extract_strided_slice %41 {offsets = [0, 0], sizes = [14, 128], strides = [1, 1]} : vector<16x128xf32> to vector<14x128xf32>
      %43 = arith.truncf %42 : vector<14x128xf32> to vector<14x128xbf16>
      %c0_25 = arith.constant 0 : index
      %44 = arith.index_cast %arg6 : i32 to index
      %c0_26 = arith.constant 0 : index
      %c0_27 = arith.constant 0 : index
      %45 = vector.load %arg5[%c0_25, %44, %c0_26, %c0_27] : memref<1x14x14x128xbf16, #tpu.memory_space<vmem>>, vector<1x1x14x128xbf16>
      %46 = vector.shape_cast %45 : vector<1x1x14x128xbf16> to vector<14x128xbf16>
      %47 = vector.shape_cast %43 : vector<14x128xbf16> to vector<1x1x14x128xbf16>
      tpu.vector_store %arg5[%c0_25, %44, %c0_26, %c0_27], %47 {strides = array<i32>} : memref<1x14x14x128xbf16, #tpu.memory_space<vmem>>, vector<1x1x14x128xbf16>,
    }
    %c14_i32_10 = arith.constant 14 : i32
    return
  }
  func.func @transform_0(%arg0: i32) -> (i32, i32, i32, i32) {
    %c0_i32 = arith.constant 0 : i32
    %c0_i32_0 = arith.constant 0 : i32
    %c0_i32_1 = arith.constant 0 : i32
    %c0_i32_2 = arith.constant 0 : i32
    return %arg0, %c0_i32, %c0_i32_0, %c0_i32_1 : i32, i32, i32, i32
  }
  func.func @transform_1(%arg0: i32) -> (i32, i32, i32) {
    %c0_i32 = arith.constant 0 : i32
    %c0_i32_0 = arith.constant 0 : i32
    %c0_i32_1 = arith.constant 0 : i32
    %c0_i32_2 = arith.constant 0 : i32
    return %c0_i32, %c0_i32_0, %c0_i32_1 : i32, i32, i32
  }
  func.func @transform_2(%arg0: i32) -> (i32, i32) {
    %c0_i32 = arith.constant 0 : i32
    %c0_i32_0 = arith.constant 0 : i32
    %c0_i32_1 = arith.constant 0 : i32
    return %c0_i32, %c0_i32_0 : i32, i32
  }
  func.func @transform_3(%arg0: i32) -> (i32, i32) {
    %c0_i32 = arith.constant 0 : i32
    %c0_i32_0 = arith.constant 0 : i32
    %c0_i32_1 = arith.constant 0 : i32
    return %c0_i32, %c0_i32_0 : i32, i32
  }
  func.func @transform_4(%arg0: i32) -> (i32, i32, i32, i32) {
    %c0_i32 = arith.constant 0 : i32
    %c0_i32_0 = arith.constant 0 : i32
    %c0_i32_1 = arith.constant 0 : i32
    %c0_i32_2 = arith.constant 0 : i32
    return %arg0, %c0_i32, %c0_i32_0, %c0_i32_1 : i32, i32, i32, i32
  }
}

module attributes {stable_mosaic.version = 11 : i64} {
  func.func @_fc1_kernel(%arg0: i32, %arg1: i32, %arg2: memref<2x6272xbf16, #tpu.memory_space<vmem>>, %arg3: memref<6272x256xbf16, #tpu.memory_space<vmem>>, %arg4: memref<1x256xf32, #tpu.memory_space<vmem>>, %arg5: memref<2x256xf32, #tpu.memory_space<vmem>>) attributes {dimension_semantics = [#tpu.dimension_semantics<parallel>, #tpu.dimension_semantics<arbitrary>], iteration_bounds = array<i64: 2, 4>, scalar_prefetch = 0 : i64, scratch_operands = 0 : i64, tpu.core_type = #tpu.core_type<tc>, window_params = [{transform_indices = @transform_0, window_bounds = array<i64: 2, 6272>}, {transform_indices = @transform_1, window_bounds = array<i64: 6272, 256>}, {transform_indices = @transform_2, window_bounds = array<i64: 1, 256>}, {transform_indices = @transform_3, window_bounds = array<i64: 2, 256>}]} {
    %c0_i32 = arith.constant 0 : i32
    %0 = arith.cmpi eq, %arg1, %c0_i32 : i32
    %1 = arith.extui %0 : i1 to i32
    %c0_i32_0 = arith.constant 0 : i32
    %2 = arith.cmpi ne, %1, %c0_i32_0 : i32
    scf.if %2 {
      %cst_9 = arith.constant 0.000000e+00 : f32
      %12 = vector.broadcast %cst_9 : f32 to vector<2x256xf32>
      %c0_10 = arith.constant 0 : index
      %c0_11 = arith.constant 0 : index
      %13 = vector.load %arg5[%c0_10, %c0_11] : memref<2x256xf32, #tpu.memory_space<vmem>>, vector<2x256xf32>
      tpu.vector_store %arg5[%c0_10, %c0_11], %12 {strides = array<i32>} : memref<2x256xf32, #tpu.memory_space<vmem>>, vector<2x256xf32>,
    } else {
    }
    %c0 = arith.constant 0 : index
    %c0_1 = arith.constant 0 : index
    %3 = vector.load %arg5[%c0, %c0_1] : memref<2x256xf32, #tpu.memory_space<vmem>>, vector<2x256xf32>
    %c0_2 = arith.constant 0 : index
    %c0_3 = arith.constant 0 : index
    %4 = vector.load %arg2[%c0_2, %c0_3] : memref<2x6272xbf16, #tpu.memory_space<vmem>>, vector<2x6272xbf16>
    %c0_4 = arith.constant 0 : index
    %c0_5 = arith.constant 0 : index
    %5 = vector.load %arg3[%c0_4, %c0_5] : memref<6272x256xbf16, #tpu.memory_space<vmem>>, vector<6272x256xbf16>
    %cst = arith.constant dense<0.000000e+00> : vector<2x256xf32>
    %6 = tpu.matmul %4, %5, %cst {dimension_numbers = #tpu.dot_dimension_numbers<[1], [0], [0], [1], [0, 0, 1, 1], [], []>} : vector<2x6272xbf16>, vector<6272x256xbf16>, vector<2x256xf32> -> vector<2x256xf32>
    %7 = arith.addf %3, %6 : vector<2x256xf32>
    %c0_6 = arith.constant 0 : index
    %c0_7 = arith.constant 0 : index
    %8 = vector.load %arg5[%c0_6, %c0_7] : memref<2x256xf32, #tpu.memory_space<vmem>>, vector<2x256xf32>
    tpu.vector_store %arg5[%c0_6, %c0_7], %7 {strides = array<i32>} : memref<2x256xf32, #tpu.memory_space<vmem>>, vector<2x256xf32>,
    %c3_i32 = arith.constant 3 : i32
    %9 = arith.cmpi eq, %arg1, %c3_i32 : i32
    %10 = arith.extui %9 : i1 to i32
    %c0_i32_8 = arith.constant 0 : i32
    %11 = arith.cmpi ne, %10, %c0_i32_8 : i32
    scf.if %11 {
      %c0_9 = arith.constant 0 : index
      %c0_10 = arith.constant 0 : index
      %12 = vector.load %arg5[%c0_9, %c0_10] : memref<2x256xf32, #tpu.memory_space<vmem>>, vector<2x256xf32>
      %c0_11 = arith.constant 0 : index
      %c0_12 = arith.constant 0 : index
      %13 = vector.load %arg4[%c0_11, %c0_12] : memref<1x256xf32, #tpu.memory_space<vmem>>, vector<1x256xf32>
      %14 = vector.broadcast %13 : vector<1x256xf32> to vector<2x256xf32>
      %15 = arith.addf %12, %14 : vector<2x256xf32>
      %cst_13 = arith.constant 0.000000e+00 : f32
      %16 = vector.broadcast %cst_13 : f32 to vector<2x256xf32>
      %17 = arith.maximumf %15, %16 : vector<2x256xf32>
      %c0_14 = arith.constant 0 : index
      %c0_15 = arith.constant 0 : index
      %18 = vector.load %arg5[%c0_14, %c0_15] : memref<2x256xf32, #tpu.memory_space<vmem>>, vector<2x256xf32>
      tpu.vector_store %arg5[%c0_14, %c0_15], %17 {strides = array<i32>} : memref<2x256xf32, #tpu.memory_space<vmem>>, vector<2x256xf32>,
    } else {
    }
    return
  }
  func.func @transform_0(%arg0: i32, %arg1: i32) -> (i32, i32) {
    %c0_i32 = arith.constant 0 : i32
    %c0_i32_0 = arith.constant 0 : i32
    return %c0_i32, %arg1 : i32, i32
  }
  func.func @transform_1(%arg0: i32, %arg1: i32) -> (i32, i32) {
    %c0_i32 = arith.constant 0 : i32
    return %arg1, %arg0 : i32, i32
  }
  func.func @transform_2(%arg0: i32, %arg1: i32) -> (i32, i32) {
    %c0_i32 = arith.constant 0 : i32
    %c0_i32_0 = arith.constant 0 : i32
    return %c0_i32, %arg0 : i32, i32
  }
  func.func @transform_3(%arg0: i32, %arg1: i32) -> (i32, i32) {
    %c0_i32 = arith.constant 0 : i32
    %c0_i32_0 = arith.constant 0 : i32
    return %c0_i32, %arg0 : i32, i32
  }
}

module attributes {stable_mosaic.version = 11 : i64} {
  func.func @_fc23_kernel(%arg0: i32, %arg1: memref<2x512xf32, #tpu.memory_space<vmem>>, %arg2: memref<512x256xbf16, #tpu.memory_space<vmem>>, %arg3: memref<1x256xf32, #tpu.memory_space<vmem>>, %arg4: memref<256x29xbf16, #tpu.memory_space<vmem>>, %arg5: memref<1x29xf32, #tpu.memory_space<vmem>>, %arg6: memref<2x29xf32, #tpu.memory_space<vmem>>) attributes {dimension_semantics = [#tpu.dimension_semantics<arbitrary>], iteration_bounds = array<i64: 1>, scalar_prefetch = 0 : i64, scratch_operands = 0 : i64, tpu.core_type = #tpu.core_type<tc>, window_params = [{pipeline_mode = #tpu.pipeline_mode<synchronous>, transform_indices = @transform_0, window_bounds = array<i64: 2, 512>}, {pipeline_mode = #tpu.pipeline_mode<synchronous>, transform_indices = @transform_1, window_bounds = array<i64: 512, 256>}, {pipeline_mode = #tpu.pipeline_mode<synchronous>, transform_indices = @transform_2, window_bounds = array<i64: 1, 256>}, {pipeline_mode = #tpu.pipeline_mode<synchronous>, transform_indices = @transform_3, window_bounds = array<i64: 256, 29>}, {pipeline_mode = #tpu.pipeline_mode<synchronous>, transform_indices = @transform_4, window_bounds = array<i64: 1, 29>}, {pipeline_mode = #tpu.pipeline_mode<synchronous>, transform_indices = @transform_5, window_bounds = array<i64: 2, 29>}]} {
    %c0 = arith.constant 0 : index
    %c0_0 = arith.constant 0 : index
    %0 = vector.load %arg1[%c0, %c0_0] : memref<2x512xf32, #tpu.memory_space<vmem>>, vector<2x512xf32>
    %1 = arith.truncf %0 : vector<2x512xf32> to vector<2x512xbf16>
    %c0_1 = arith.constant 0 : index
    %c0_2 = arith.constant 0 : index
    %2 = vector.load %arg2[%c0_1, %c0_2] : memref<512x256xbf16, #tpu.memory_space<vmem>>, vector<512x256xbf16>
    %cst = arith.constant dense<0.000000e+00> : vector<2x256xf32>
    %3 = tpu.matmul %1, %2, %cst {dimension_numbers = #tpu.dot_dimension_numbers<[1], [0], [0], [1], [0, 0, 1, 1], [], []>} : vector<2x512xbf16>, vector<512x256xbf16>, vector<2x256xf32> -> vector<2x256xf32>
    %c0_3 = arith.constant 0 : index
    %c0_4 = arith.constant 0 : index
    %4 = vector.load %arg3[%c0_3, %c0_4] : memref<1x256xf32, #tpu.memory_space<vmem>>, vector<1x256xf32>
    %5 = vector.broadcast %4 : vector<1x256xf32> to vector<2x256xf32>
    %6 = arith.addf %3, %5 : vector<2x256xf32>
    %cst_5 = arith.constant 0.000000e+00 : f32
    %7 = vector.broadcast %cst_5 : f32 to vector<2x256xf32>
    %8 = arith.maximumf %6, %7 : vector<2x256xf32>
    %9 = arith.truncf %8 : vector<2x256xf32> to vector<2x256xbf16>
    %c0_6 = arith.constant 0 : index
    %c0_7 = arith.constant 0 : index
    %10 = vector.load %arg4[%c0_6, %c0_7] : memref<256x29xbf16, #tpu.memory_space<vmem>>, vector<256x29xbf16>
    %cst_8 = arith.constant dense<0.000000e+00> : vector<2x29xf32>
    %11 = tpu.matmul %9, %10, %cst_8 {dimension_numbers = #tpu.dot_dimension_numbers<[1], [0], [0], [1], [0, 0, 1, 1], [], []>} : vector<2x256xbf16>, vector<256x29xbf16>, vector<2x29xf32> -> vector<2x29xf32>
    %c0_9 = arith.constant 0 : index
    %c0_10 = arith.constant 0 : index
    %12 = vector.load %arg5[%c0_9, %c0_10] : memref<1x29xf32, #tpu.memory_space<vmem>>, vector<1x29xf32>
    %13 = vector.broadcast %12 : vector<1x29xf32> to vector<2x29xf32>
    %14 = arith.addf %11, %13 : vector<2x29xf32>
    %c0_11 = arith.constant 0 : index
    %c0_12 = arith.constant 0 : index
    %15 = vector.load %arg6[%c0_11, %c0_12] : memref<2x29xf32, #tpu.memory_space<vmem>>, vector<2x29xf32>
    tpu.vector_store %arg6[%c0_11, %c0_12], %14 {strides = array<i32>} : memref<2x29xf32, #tpu.memory_space<vmem>>, vector<2x29xf32>,
    return
  }
  func.func @transform_0(%arg0: i32) -> (i32, i32) {
    %c0_i32 = arith.constant 0 : i32
    %c0_i32_0 = arith.constant 0 : i32
    %c0_i32_1 = arith.constant 0 : i32
    return %c0_i32, %c0_i32_0 : i32, i32
  }
  func.func @transform_1(%arg0: i32) -> (i32, i32) {
    %c0_i32 = arith.constant 0 : i32
    %c0_i32_0 = arith.constant 0 : i32
    %c0_i32_1 = arith.constant 0 : i32
    return %c0_i32, %c0_i32_0 : i32, i32
  }
  func.func @transform_2(%arg0: i32) -> (i32, i32) {
    %c0_i32 = arith.constant 0 : i32
    %c0_i32_0 = arith.constant 0 : i32
    %c0_i32_1 = arith.constant 0 : i32
    return %c0_i32, %c0_i32_0 : i32, i32
  }
  func.func @transform_3(%arg0: i32) -> (i32, i32) {
    %c0_i32 = arith.constant 0 : i32
    %c0_i32_0 = arith.constant 0 : i32
    %c0_i32_1 = arith.constant 0 : i32
    return %c0_i32, %c0_i32_0 : i32, i32
  }
  func.func @transform_4(%arg0: i32) -> (i32, i32) {
    %c0_i32 = arith.constant 0 : i32
    %c0_i32_0 = arith.constant 0 : i32
    %c0_i32_1 = arith.constant 0 : i32
    return %c0_i32, %c0_i32_0 : i32, i32
  }
  func.func @transform_5(%arg0: i32) -> (i32, i32) {
    %c0_i32 = arith.constant 0 : i32
    %c0_i32_0 = arith.constant 0 : i32
    %c0_i32_1 = arith.constant 0 : i32
    return %c0_i32, %c0_i32_0 : i32, i32
  }
}

</mosaic_0001>

<bundles_post_ra>
// kernel: simpsons_net2_forward.6
= control target key start
LH: loop header
LB: loop body
LE: loop exit
PB: predicated region body
PF: predicated region fallthrough
CT: control target
= control target key end

     0   :  { %s998_s15 = smov 0   ;;  %s1173_s0 = inlined_call_operand.vmem [shape: bf16[2,226,12,112], index: 0, kind: input, shape index: {}]   ;;  %s1174_s1 = inlined_call_operand.vmem [shape: bf16[3,32,12], index: 1, kind: input, shape index: {}]   ;;  %s1175_s2 = inlined_call_operand.vmem [shape: f32[32,1], index: 2, kind: input, shape index: {}]   ;;  %s1176_s3 = inlined_call_operand.vmem [shape: f32[32,1], index: 3, kind: input, shape index: {}]   ;;  %s1177_s4 = inlined_call_operand.vmem [shape: bf16[2,112,16,112], index: 4, kind: output, shape index: {}]  }
   0x1 LB: > { %s790_s16 = sadd.s32 4294967295, %s966_s15   ;;  %p794_p0 = scmp.ge.s32.totalorder %s966_s15, 1  ;;  %s966_s15 = sphi %s998_s15, %s14_s15  }
   0x2   : > { %p162_p1 = scmp.lt.s32.totalorder %s966_s15, 3 }
   0x4   : > { %p163_p2 = pnand %p794_p0, %p162_p1 }
   0x5   : > { %p188_p3 = scmp.lt.s32.totalorder (!%p163_p2), %s790_s16, 1  ;;  %v1009_v0 = vld [vmem:[%s1174_s1] sm:$0xf] (!%p163_p2)  ;;  %v1014_v1 = vld [vmem:[%s1174_s1 + $0x4] sm:$0xf] (!%p163_p2)  ;;  %v1049_v8 = vld [vmem:[%s1175_s2 + $0x8] sm:$0xff] (!%p163_p2) }
   0x6   : > { %166 = sbr.rel (%p163_p2) target bundleno = 278 (0x116), region = 36  ;;  %v1019_v2 = vld [vmem:[%s1175_s2] sm:$0xff] (!%p163_p2)  ;;  %v1024_v3 = vld [vmem:[%s1174_s1 + $0x8] sm:$0xf] (!%p163_p2)  ;;  %v1029_v4 = vld [vmem:[%s1174_s1 + $0xc] sm:$0xf] (!%p163_p2) }
   0x7   : > { %v1034_v5 = vld [vmem:[%s1174_s1 + $0x10] sm:$0xf] (!%p163_p2)  ;;  %v1039_v6 = vld [vmem:[%s1174_s1 + $0x14] sm:$0xf] (!%p163_p2)  ;;  %v1044_v7 = vld [vmem:[%s1174_s1 + $0x18] sm:$0xf] (!%p163_p2) }
   0x8   : > { %v1054_v9 = vld [vmem:[%s1174_s1 + $0x1c] sm:$0xf] (!%p163_p2)  ;;  %v1059_v10 = vld [vmem:[%s1174_s1 + $0x20] sm:$0xf] (!%p163_p2)  ;;  %v1064_v11 = vld [vmem:[%s1174_s1 + $0x24] sm:$0xf] (!%p163_p2) }
   0x9   : > { %v1069_v12 = vld [vmem:[%s1174_s1 + $0x28] sm:$0xf] (!%p163_p2)  ;;  %v1074_v13 = vld [vmem:[%s1174_s1 + $0x2c] sm:$0xf] (!%p163_p2)  ;;  %v1079_v14 = vld [vmem:[%s1175_s2 + $0x10] sm:$0xff] (!%p163_p2)  ;;  %s1116_s14 = smov (!%p163_p2), 0  }
   0xa   : > { %v1084_v15 = vld [vmem:[%s1175_s2 + $0x18] sm:$0xff] (!%p163_p2)  ;;  %v1089_v16 = vld [vmem:[%s1176_s3] sm:$0xff] (!%p163_p2)  ;;  %v1094_v17 = vld [vmem:[%s1176_s3 + $0x8] sm:$0xff] (!%p163_p2) }
   0xb   : > { %v1104_v18 = vld [vmem:[%s1176_s3 + $0x10] sm:$0xff] (!%p163_p2)  ;;  %v1109_v19 = vld [vmem:[%s1176_s3 + $0x18] sm:$0xff] (!%p163_p2) }
   0xd   : > { %s1179_s16 = smov (!%p188_p3, %s790_s16), 1 }
   0xe   : > { %s931_s17 = smul.u32 1808, %s1179_s16 }
   0xf   : > { %s932_s24 = smul.u32 896, %s1179_s16 }
  0x10   : > { %s1099_s7 = scalar_lea.vmem %s1173_s0, %s931_s17 }
  0x11   : > { %s1114_s13 = scalar_lea.vmem %s1177_s4, %s932_s24 }
  0x12 LB: >> { %v812_v20 = vcombine.low %v1034_v5, %v1039_v6  ;;  %vm254_vm0 = vcmask 97280   ;;  %s848_s17 = sshll.u32 %s970_s14, 4  ;;  %vm261_vm1 = vcmask 1045504   ;;  %v972_v21 = vmov 0   ;;  %s854_s19 = sshll.u32 %s970_s14, 3  ;;  %s970_s14 = sphi %s1116_s14, %s226_s14  }
  0x13   : >> { %s230_s18 = scalar_lea.vmem %s1099_s7, %s848_s17  ;;  %951 = vset.pattern.permute.xlu1 %v972_v21  ;;  %950 = vset.pattern.permute.xlu0 %v972_v21  ;;  %v813_v25 = vcombine.low %v1044_v7, %v1054_v9  ;;  %v817_v28 = vcombine.low %v1009_v0, %v1014_v1  ;;  %v818_v31 = vcombine.low %v1024_v3, %v1029_v4  ;;  %s710_s20 = scalar_lea.vmem %s1114_s13, %s854_s19  ;;  %vm711_vm2 = vcmask 912384  }
  0x14   : >> { %875 = vmatprep.mubr.msk.bf16.mxu0 %vm254_vm0, %v812_v20  ;;  %893 = vmatprep.mubr.msk.bf16.mxu1 %vm254_vm0, %v812_v20  ;;  %v952_v22 = vld [vmem:[%s230_s18 + $0x8] sm:$0x3f]   ;;  %v953_v23 = vld [vmem:[%s230_s18 + $0x10] sm:$0x3f]   ;;  %v954_v27 = vld [vmem:[%s230_s18] sm:$0x3f]   ;;  %v826_v32 = vcombine.low %v1059_v10, %v1064_v11  ;;  %v827_v34 = vcombine.low %v1069_v12, %v1074_v13 }
  0x15   : >> { %482 = vperm.xlu1 %951, %v1079_v14   ;;  %472 = vperm.xlu0 %950, %v1019_v2   ;;  %v263_v24 = vsel %vm261_vm1, %v952_v22, 0  ;;  %v415_v26 = vsel %vm261_vm1, %v953_v23, 0  ;;  %v336_v29 = vsel %vm261_vm1, %v954_v27, 0  ;;  %v955_v30 = vld [vmem:[%s230_s18 + $0x18] sm:$0x3f]   ;;  %s226_s14 = sadd.s32 1, %s970_s14  }
  0x16   : >> { %925 = vmatprep.subr.msk.bf16.mxu0 %vm261_vm1, %v952_v22  ;;  %928 = vmatprep.subr.msk.bf16.mxu1 %vm261_vm1, %v953_v23  ;;  %v628_v33 = vsel %vm261_vm1, %v955_v30, 0  ;;  %p223_p4 = scmp.ge.s32.totalorder %s226_s14, 112  }
  0x17   : >> { %874 = vmatpush3.bf16.msra.mxu0 %v263_v24  ;;  %892 = vmatpush3.bf16.msra.mxu1 %v415_v26 }
  0x18   : >> { %926 = vmatprep.subr.msk.bf16.mxu0 %vm261_vm1, %v954_v27  ;;  %929 = vmatprep.subr.msk.bf16.mxu1 %vm261_vm1, %v952_v22 }
  0x19   : >> { %487 = vperm.xlu1 %951, %v1084_v15   ;;  %477 = vperm.xlu0 %950, %v1049_v8  }
  0x1a   : >> { %876 = vmatmul.mubr.msk.bf16.vlgmr.msra.gmra.mrb[0].mxu0 %vm254_vm0, %v813_v25  ;;  %894 = vmatmul.mubr.msk.bf16.vlgmr.msra.gmra.mrb[0].mxu1 %vm254_vm0, %v813_v25 }
  0x1b   : >> { %880 = vmatpush3.bf16.msra.mxu0 %v336_v29  ;;  %898 = vmatpush3.bf16.msra.mxu1 %v263_v24 }
  0x1c   : >> { %881 = vmatprep.mubr.msk.bf16.mxu0 %vm254_vm0, %v817_v28  ;;  %899 = vmatprep.mubr.msk.bf16.mxu1 %vm254_vm0, %v817_v28 }
  0x1d   : >> { %927 = vmatprep.subr.msk.bf16.mxu0 %vm261_vm1, %v953_v23  ;;  %930 = vmatprep.subr.msk.bf16.mxu1 %vm261_vm1, %v955_v30 }
  0x1e   : >> { %501 = vperm.xlu1 %951, %v1094_v17   ;;  %496 = vperm.xlu0 %950, %v1089_v16  }
  0x22   : >> { %511 = vperm.xlu1 %951, %v1109_v19   ;;  %506 = vperm.xlu0 %950, %v1104_v18  }
  0x26   : >> { %882 = vmatmul.mubr.msk.bf16.vlgmr.msra.gmra.mrb[0].mxu0 %vm254_vm0, %v818_v31  ;;  %900 = vmatmul.mubr.msk.bf16.vlgmr.msra.gmra.mrb[0].mxu1 %vm254_vm0, %v818_v31 }
  0x27   : >> { %886 = vmatpush3.bf16.msra.mxu0 %v415_v26  ;;  %904 = vmatpush3.bf16.msra.mxu1 %v628_v33 }
  0x28   : >> { %887 = vmatprep.mubr.msk.bf16.mxu0 %vm254_vm0, %v826_v32  ;;  %905 = vmatprep.mubr.msk.bf16.mxu1 %vm254_vm0, %v826_v32 }
  0x32   : >> { %888 = vmatmul.mubr.msk.bf16.vlgmr.msra.gmra.mrb[0].mxu0 %vm254_vm0, %v827_v34  ;;  %906 = vmatmul.mubr.msk.bf16.vlgmr.msra.gmra.mrb[0].mxu1 %vm254_vm0, %v827_v34 }
  0x94   : >> { %v473_v35 = vpop.permute.xlu0 %472  ;;  %v483_v36 = vpop.permute.xlu1 %482 }
  0x98   : >> { %v478_v37 = vpop.permute.xlu0 %477  ;;  %v488_v38 = vpop.permute.xlu1 %487 }
  0x9d   : >> { %v497_v39 = vpop.permute.xlu0 %496  ;;  %v502_v40 = vpop.permute.xlu1 %501 }
  0xa1   : >> { %v507_v41 = vpop.permute.xlu0 %506  ;;  %v512_v55 = vpop.permute.xlu1 %511 }
 0x105   : >> { %v889_v42 = vpop.f32.mrb[0].mxu0  ;;  %v907_v44 = vpop.f32.mrb[0].mxu1 }
 0x106   : >> { %v492_v43 = vmul.f32 %v889_v42, %v483_v36  ;;  %v451_v45 = vpop.f32.mrb[1].mxu0  ;;  %v685_v46 = vmul.f32 %v907_v44, %v483_v36  ;;  %v664_v48 = vpop.f32.mrb[1].mxu1 }
 0x107   : >> { %v490_v47 = vmul.f32 %v473_v35, %v451_v45  ;;  %v890_v49 = vpop.f32.mrb[2].mxu0  ;;  %v683_v51 = vmul.f32 %v664_v48, %v473_v35  ;;  %v908_v53 = vpop.f32.mrb[2].mxu1 }
 0x108   : >> { %v516_v50 = vadd.f32 %v507_v41, %v492_v43  ;;  %v493_v52 = vmul.f32 %v890_v49, %v488_v38  ;;  %v454_v54 = vpop.f32.mrb[3].mxu0  ;;  %v689_v56 = vadd.f32 %v685_v46, %v507_v41  ;;  %v686_v58 = vmul.f32 %v908_v53, %v488_v38  ;;  %v667_v60 = vpop.f32.mrb[3].mxu1 }
 0x109   : >> { %v514_v57 = vadd.f32 %v497_v39, %v490_v47  ;;  %v491_v59 = vmul.f32 %v478_v37, %v454_v54  ;;  %v687_v61 = vadd.f32 %v683_v51, %v497_v39  ;;  %v684_v63 = vmul.f32 %v667_v60, %v478_v37 }
 0x10a   : >> { %v517_v62 = vadd.f32 %v512_v55, %v493_v52  ;;  %v693_v20 = vmax.f32 %v516_v50, %v689_v56  ;;  %v690_v21 = vadd.f32 %v686_v58, %v512_v55 }
 0x10b   : >> { %v515_v22 = vadd.f32 %v502_v40, %v491_v59  ;;  %v691_v23 = vmax.f32 %v514_v57, %v687_v61  ;;  %v688_v24 = vadd.f32 %v684_v63, %v502_v40 }
 0x10c   : >> { %v697_v25 = vmax.f32 %v693_v20, 0.0  ;;  %v694_v26 = vmax.f32 %v517_v62, %v690_v21 }
 0x10d   : >> { %v695_v27 = vmax.f32 %v691_v23, 0.0  ;;  %v692_v28 = vmax.f32 %v515_v22, %v688_v24 }
 0x10e   : >> { %v698_v29 = vmax.f32 %v694_v26, 0.0 }
 0x10f   : >> { %v699_v30 = vmax.f32 %v695_v27, %v697_v25  ;;  %v696_v31 = vmax.f32 %v692_v28, 0.0  ;;  %225 = sbr.rel (!%p223_p4) target bundleno = 18 (0x12), region = 80 }
 0x111   : >> { %v852_v32 = vpack.c.bf16 %v699_v30, %v699_v30  ;;  %v700_v33 = vmax.f32 %v696_v31, %v698_v29 }
 0x113   : >> { %712 = vst.msk [vmem:[%s710_s20] sm:$0xf] %vm711_vm2, %v852_v32  ;;  %v853_v34 = vpack.c.bf16 %v700_v33, %v700_v33 }
 0x115   : >> { %713 = vst.msk [vmem:[%s710_s20 + $0x4] sm:$0xf] %vm711_vm2, %v853_v34 }
 0x116 PF: > { %s14_s15 = sadd.s32 1, %s966_s15  }
 0x117   : > { %p11_p5 = scmp.ge.s32.totalorder %s14_s15, 4  }
 0x119   :  { %13 = sbr.rel (!%p11_p5) target bundleno = 1 (0x1), region = 91 }

// kernel: simpsons_net2_forward.7
= control target key start
LH: loop header
LB: loop body
LE: loop exit
PB: predicated region body
PF: predicated region fallthrough
CT: control target
= control target key end

     0   :  { %s1507_s15 = smov 0   ;;  %s1846_s0 = inlined_call_operand.vmem [shape: bf16[2,114,64,56], index: 0, kind: input, shape index: {}]   ;;  %s1847_s1 = inlined_call_operand.vmem [shape: bf16[3,64,64], index: 1, kind: input, shape index: {}]   ;;  %s1848_s2 = inlined_call_operand.vmem [shape: f32[64,1], index: 2, kind: input, shape index: {}]   ;;  %s1849_s3 = inlined_call_operand.vmem [shape: f32[64,1], index: 3, kind: input, shape index: {}]   ;;  %s1850_s4 = inlined_call_operand.vmem [shape: bf16[2,56,32,56], index: 4, kind: output, shape index: {}]  }
   0x1 LB: > { %s1126_s16 = sadd.s32 4294967295, %s1475_s15   ;;  %p1130_p0 = scmp.ge.s32.totalorder %s1475_s15, 1  ;;  %s1475_s15 = sphi %s1507_s15, %s14_s15  }
   0x2   : > { %p162_p1 = scmp.lt.s32.totalorder %s1475_s15, 3 }
   0x4   : > { %p163_p2 = pnand %p1130_p0, %p162_p1 }
   0x5   : > { %p188_p3 = scmp.lt.s32.totalorder (!%p163_p2), %s1126_s16, 1  ;;  %v1518_v0 = vld [vmem:[%s1847_s1] sm:$0xf] (!%p163_p2)  ;;  %v1523_v1 = vld [vmem:[%s1847_s1 + $0x4] sm:$0xf] (!%p163_p2)  ;;  %v1558_v8 = vld [vmem:[%s1848_s2 + $0x8] sm:$0xff] (!%p163_p2) }
   0x6   : > { %166 = sbr.rel (%p163_p2) target bundleno = 310 (0x136), region = 36  ;;  %1851 = vst [vmem:[#allocation2_spill] sm:$0xff] (!%p163_p2), %v1518_v0  ;;  %1852 = vst [vmem:[#allocation3_spill] sm:$0xff] (!%p163_p2), %v1523_v1  ;;  %v1528_v2 = vld [vmem:[%s1848_s2] sm:$0xff] (!%p163_p2)  ;;  %v1533_v3 = vld [vmem:[%s1847_s1 + $0x8] sm:$0xf] (!%p163_p2) }
   0x7   : > { %1853 = vst [vmem:[#allocation4_spill] sm:$0xff] (!%p163_p2), %v1528_v2  ;;  %1854 = vst [vmem:[#allocation5_spill] sm:$0xff] (!%p163_p2), %v1533_v3  ;;  %v1538_v4 = vld [vmem:[%s1847_s1 + $0xc] sm:$0xf] (!%p163_p2)  ;;  %v1543_v5 = vld [vmem:[%s1847_s1 + $0x10] sm:$0xf] (!%p163_p2) }
   0x8   : > { %1855 = vst [vmem:[#allocation6_spill] sm:$0xff] (!%p163_p2), %v1538_v4  ;;  %1856 = vst [vmem:[#allocation7_spill] sm:$0xff] (!%p163_p2), %v1543_v5  ;;  %v1548_v6 = vld [vmem:[%s1847_s1 + $0x14] sm:$0xf] (!%p163_p2)  ;;  %v1553_v7 = vld [vmem:[%s1847_s1 + $0x18] sm:$0xf] (!%p163_p2) }
   0x9   : > { %1857 = vst [vmem:[#allocation8_spill] sm:$0xff] (!%p163_p2), %v1548_v6  ;;  %1858 = vst [vmem:[#allocation9_spill] sm:$0xff] (!%p163_p2), %v1553_v7  ;;  %v1563_v9 = vld [vmem:[%s1847_s1 + $0x1c] sm:$0xf] (!%p163_p2)  ;;  %v1568_v10 = vld [vmem:[%s1847_s1 + $0x20] sm:$0xf] (!%p163_p2) }
   0xa   : > { %1859 = vst [vmem:[#allocation10_spill] sm:$0xff] (!%p163_p2), %v1558_v8  ;;  %1860 = vst [vmem:[#allocation11_spill] sm:$0xff] (!%p163_p2), %v1563_v9  ;;  %v1573_v11 = vld [vmem:[%s1847_s1 + $0x24] sm:$0xf] (!%p163_p2)  ;;  %v1578_v12 = vld [vmem:[%s1847_s1 + $0x28] sm:$0xf] (!%p163_p2) }
   0xb   : > { %1861 = vst [vmem:[#allocation12_spill] sm:$0xff] (!%p163_p2), %v1568_v10  ;;  %1862 = vst [vmem:[#allocation13_spill] sm:$0xff] (!%p163_p2), %v1573_v11  ;;  %v1583_v13 = vld [vmem:[%s1847_s1 + $0x2c] sm:$0xf] (!%p163_p2)  ;;  %v1588_v14 = vld [vmem:[%s1848_s2 + $0x10] sm:$0xff] (!%p163_p2) }
   0xc   : > { %1863 = vst [vmem:[#allocation14_spill] sm:$0xff] (!%p163_p2), %v1578_v12  ;;  %1864 = vst [vmem:[#allocation15_spill] sm:$0xff] (!%p163_p2), %v1583_v13  ;;  %v1593_v15 = vld [vmem:[%s1847_s1 + $0x30] sm:$0xf] (!%p163_p2)  ;;  %v1598_v16 = vld [vmem:[%s1847_s1 + $0x34] sm:$0xf] (!%p163_p2) }
   0xd   : > { %s1880_s16 = smov (!%p188_p3, %s1126_s16), 1  ;;  %v1603_v17 = vld [vmem:[%s1848_s2 + $0x18] sm:$0xff]  ;;  %v1623_v20 = vld [vmem:[%s1847_s1 + $0x40] sm:$0xf]  ;;  %v1633_v21 = vld [vmem:[%s1847_s1 + $0x44] sm:$0xf] }
   0xe   : > { %s1428_s17 = smul.u32 3648, %s1880_s16  ;;  %v1613_v18 = vld [vmem:[%s1847_s1 + $0x38] sm:$0xf]  ;;  %v1618_v19 = vld [vmem:[%s1847_s1 + $0x3c] sm:$0xf]  ;;  %v1668_v28 = vld [vmem:[%s1848_s2 + $0x20] sm:$0xff] }
   0xf   : > { %s1429_s24 = smul.u32 896, %s1880_s16  ;;  %v1638_v22 = vld [vmem:[%s1847_s1 + $0x48] sm:$0xf]  ;;  %v1643_v23 = vld [vmem:[%s1847_s1 + $0x4c] sm:$0xf]  ;;  %v1678_v30 = vld [vmem:[%s1848_s2 + $0x30] sm:$0xff] }
  0x10   : > { %s1608_s7 = scalar_lea.vmem %s1846_s0, %s1428_s17  ;;  %v1648_v24 = vld [vmem:[%s1847_s1 + $0x50] sm:$0xf]  ;;  %v1653_v25 = vld [vmem:[%s1847_s1 + $0x54] sm:$0xf]  ;;  %v1658_v26 = vld [vmem:[%s1847_s1 + $0x58] sm:$0xf] }
  0x11   : > { %s1628_s17 = scalar_lea.vmem %s1850_s4, %s1429_s24  ;;  %v1663_v27 = vld [vmem:[%s1847_s1 + $0x5c] sm:$0xf]  ;;  %v1673_v29 = vld [vmem:[%s1848_s2 + $0x28] sm:$0xff]  ;;  %v1688_v32 = vld [vmem:[%s1849_s3] sm:$0xff]  ;;  %s1725_s16 = smov 0  }
  0x12   : > { %v1683_v31 = vld [vmem:[%s1848_s2 + $0x38] sm:$0xff]  ;;  %v1693_v33 = vld [vmem:[%s1849_s3 + $0x8] sm:$0xff]  ;;  %v1698_v34 = vld [vmem:[%s1849_s3 + $0x10] sm:$0xff] }
  0x13   : > { %v1703_v35 = vld [vmem:[%s1849_s3 + $0x18] sm:$0xff]  ;;  %v1708_v36 = vld [vmem:[%s1849_s3 + $0x20] sm:$0xff]  ;;  %v1713_v37 = vld [vmem:[%s1849_s3 + $0x28] sm:$0xff] }
  0x14   : > { %v1718_v38 = vld [vmem:[%s1849_s3 + $0x30] sm:$0xff]  ;;  %v1723_v39 = vld [vmem:[%s1849_s3 + $0x38] sm:$0xff] }
  0x15 LB: >> { %v1865_v11 = vld [vmem:[#allocation13_spill] sm:$0xff]  ;;  %v1866_v10 = vld [vmem:[#allocation12_spill] sm:$0xff]  ;;  %vm315_vm0 = vcmask 523264   ;;  %s1243_s8 = sshll.u32 %s1479_s16, 6  ;;  %v1481_v41 = vmov 0   ;;  %v1868_v8 = vld [vmem:[#allocation10_spill] sm:$0xff]  ;;  %v1164_v53 = vcombine.low %v1593_v15, %v1598_v16  ;;  %v1165_v55 = vcombine.low %v1613_v18, %v1618_v19  ;;  %s1479_s16 = sphi %s1725_s16, %s246_s16  }
  0x16   : >> { %v1162_v40 = vcombine.low %v1866_v10, %v1865_v11  ;;  %s1736_s9 = scalar_lea.vmem %s1608_s7, %s1243_s8  ;;  %1448 = vset.pattern.permute.xlu1 %v1481_v41  ;;  %1447 = vset.pattern.permute.xlu0 %v1481_v41  ;;  %v1867_v2 = vld [vmem:[#allocation4_spill] sm:$0xff]  ;;  %v1869_v13 = vld [vmem:[#allocation15_spill] sm:$0xff]  ;;  %v1870_v12 = vld [vmem:[#allocation14_spill] sm:$0xff]  ;;  %v1196_v41 = vcombine.low %v1623_v20, %v1633_v21  ;;  %s1251_s10 = sshll.u32 %s1479_s16, 4  ;;  %vm1045_vm1 = vcmask 453632  }
  0x17   : >> { %v1449_v42 = vld [vmem:[%s1736_s9 + $0x20] sm:$0xff]   ;;  %667 = vperm.xlu1 %1448, %v1588_v14   ;;  %657 = vperm.xlu0 %1447, %v1867_v2   ;;  %v1451_v44 = vld [vmem:[%s1736_s9 + $0x28] sm:$0xff]   ;;  %v1453_v46 = vld [vmem:[%s1736_s9 + $0x30] sm:$0xff]   ;;  %v1163_v51 = vcombine.low %v1870_v12, %v1869_v13  ;;  %s1044_s11 = scalar_lea.vmem %s1628_s17, %s1251_s10  ;;  %s246_s16 = sadd.s32 1, %s1479_s16  }
  0x18   : >> { %1308 = vmatprep.mubr.msk.bf16.mxu0 %vm315_vm0, %v1162_v40  ;;  %1356 = vmatprep.mubr.msk.bf16.mxu1 %vm315_vm0, %v1162_v40  ;;  %v1742_v43 = vld [vmem:[%s1736_s9 + $0x40] sm:$0xff]   ;;  %v1747_v45 = vld [vmem:[%s1736_s9 + $0x48] sm:$0xff]   ;;  %v1753_v47 = vld [vmem:[%s1736_s9 + $0x50] sm:$0xff]   ;;  %p243_p4 = scmp.ge.s32.totalorder %s246_s16, 56  }
  0x19   : >> { %1300 = vmatprep.subr.bf16.mxu0 %v1449_v42  ;;  %1348 = vmatprep.subr.bf16.mxu1 %v1742_v43  ;;  %v1455_v48 = vld [vmem:[%s1736_s9 + $0x38] sm:$0xff]   ;;  %v1457_v50 = vld [vmem:[%s1736_s9] sm:$0xff]   ;;  %v1458_v52 = vld [vmem:[%s1736_s9 + $0x8] sm:$0xff]  }
  0x1a   : >> { %1301 = vmatpush3.bf16.msra.mxu0 %v1449_v42  ;;  %1349 = vmatpush3.bf16.msra.mxu1 %v1742_v43  ;;  %v1761_v49 = vld [vmem:[%s1736_s9 + $0x58] sm:$0xff]   ;;  %v1459_v54 = vld [vmem:[%s1736_s9 + $0x10] sm:$0xff]   ;;  %v1871_v1 = vld [vmem:[#allocation3_spill] sm:$0xff] }
  0x1b   : >> { %1302 = vmatprep.subr.bf16.mxu0 %v1451_v44  ;;  %1350 = vmatprep.subr.bf16.mxu1 %v1747_v45  ;;  %v1460_v56 = vld [vmem:[%s1736_s9 + $0x18] sm:$0xff]   ;;  %v1872_v0 = vld [vmem:[#allocation2_spill] sm:$0xff]  ;;  %v1462_v60 = vld [vmem:[%s1736_s9 + $0x68] sm:$0xff]  }
  0x1c   : >> { %672 = vperm.xlu1 %1448, %v1603_v17   ;;  %662 = vperm.xlu0 %1447, %v1868_v8   ;;  %v1174_v57 = vcombine.low %v1872_v0, %v1871_v1  ;;  %v1461_v58 = vld [vmem:[%s1736_s9 + $0x60] sm:$0xff]   ;;  %v1874_v3 = vld [vmem:[#allocation5_spill] sm:$0xff]  ;;  %v1875_v6 = vld [vmem:[#allocation8_spill] sm:$0xff] }
  0x1d   : >> { %v1873_v4 = vld [vmem:[#allocation6_spill] sm:$0xff]  ;;  %v1876_v5 = vld [vmem:[#allocation7_spill] sm:$0xff]  ;;  %v1463_v62 = vld [vmem:[%s1736_s9 + $0x70] sm:$0xff]  }
  0x1e   : >> { %1303 = vmatpush3.bf16.msra.mxu0 %v1451_v44  ;;  %1351 = vmatpush3.bf16.msra.mxu1 %v1747_v45  ;;  %v1175_v59 = vcombine.low %v1874_v3, %v1873_v4  ;;  %v1176_v61 = vcombine.low %v1876_v5, %v1875_v6  ;;  %v1877_v9 = vld [vmem:[#allocation11_spill] sm:$0xff]  ;;  %v1878_v7 = vld [vmem:[#allocation9_spill] sm:$0xff] }
  0x1f   : >> { %1304 = vmatprep.subr.bf16.mxu0 %v1453_v46  ;;  %1352 = vmatprep.subr.bf16.mxu1 %v1753_v47  ;;  %v1177_v63 = vcombine.low %v1878_v7, %v1877_v9  ;;  %v1464_v40 = vld [vmem:[%s1736_s9 + $0x78] sm:$0xff]  }
  0x20   : >> { %682 = vperm.xlu1 %1448, %v1673_v29   ;;  %677 = vperm.xlu0 %1447, %v1668_v28  }
  0x22   : >> { %1305 = vmatpush3.bf16.msra.mxu0 %v1453_v46  ;;  %1353 = vmatpush3.bf16.msra.mxu1 %v1753_v47 }
  0x23   : >> { %1306 = vmatprep.subr.bf16.mxu0 %v1455_v48  ;;  %1354 = vmatprep.subr.bf16.mxu1 %v1761_v49 }
  0x24   : >> { %692 = vperm.xlu1 %1448, %v1683_v31   ;;  %687 = vperm.xlu0 %1447, %v1678_v30  }
  0x26   : >> { %1307 = vmatpush3.bf16.msra.mxu0 %v1455_v48  ;;  %1355 = vmatpush3.bf16.msra.mxu1 %v1761_v49 }
  0x27   : >> { %1316 = vmatprep.subr.bf16.mxu0 %v1457_v50  ;;  %1364 = vmatprep.subr.bf16.mxu1 %v1449_v42 }
  0x28   : >> { %710 = vperm.xlu1 %1448, %v1693_v33   ;;  %705 = vperm.xlu0 %1447, %v1688_v32  }
  0x29   : >> { %1309 = vmatmul.mubr.msk.bf16.vlgmr.msra.gmra.mrb[0].mxu0 %vm315_vm0, %v1163_v51  ;;  %1357 = vmatmul.mubr.msk.bf16.vlgmr.msra.gmra.mrb[0].mxu1 %vm315_vm0, %v1163_v51 }
  0x2a   : >> { %1317 = vmatpush3.bf16.msra.mxu0 %v1457_v50  ;;  %1365 = vmatpush3.bf16.msra.mxu1 %v1449_v42  ;;  %v1197_v42 = vcombine.low %v1638_v22, %v1643_v23 }
  0x2b   : >> { %1318 = vmatprep.subr.bf16.mxu0 %v1458_v52  ;;  %1366 = vmatprep.subr.bf16.mxu1 %v1451_v44 }
  0x2c   : >> { %1312 = vmatprep.mubr.msk.bf16.mxu0 %vm315_vm0, %v1164_v53  ;;  %1360 = vmatprep.mubr.msk.bf16.mxu1 %vm315_vm0, %v1164_v53 }
  0x2d   : >> { %720 = vperm.xlu1 %1448, %v1703_v35   ;;  %715 = vperm.xlu0 %1447, %v1698_v34  }
  0x2e   : >> { %1319 = vmatpush3.bf16.msra.mxu0 %v1458_v52  ;;  %1367 = vmatpush3.bf16.msra.mxu1 %v1451_v44  ;;  %v1199_v44 = vcombine.low %v1658_v26, %v1663_v27 }
  0x2f   : >> { %1320 = vmatprep.subr.bf16.mxu0 %v1459_v54  ;;  %1368 = vmatprep.subr.bf16.mxu1 %v1453_v46 }
  0x31   : >> { %1313 = vmatmul.mubr.msk.bf16.gmra.mrb[4].mxu0 %vm315_vm0, %v1165_v55  ;;  %730 = vperm.xlu1 %1448, %v1713_v37  }
  0x32   : >> { %1361 = vmatmul.mubr.msk.bf16.gmra.mrb[4].mxu1 %vm315_vm0, %v1165_v55  ;;  %1321 = vmatpush3.bf16.msra.mxu0 %v1459_v54 }
  0x33   : >> { %1369 = vmatpush3.bf16.msra.mxu1 %v1453_v46  ;;  %1322 = vmatprep.subr.bf16.mxu0 %v1460_v56 }
  0x34   : >> { %1370 = vmatprep.subr.bf16.mxu1 %v1455_v48  ;;  %1324 = vmatprep.mubr.msk.bf16.mxu0 %vm315_vm0, %v1174_v57 }
  0x35   : >> { %1372 = vmatprep.mubr.msk.bf16.mxu1 %vm315_vm0, %v1174_v57  ;;  %725 = vperm.xlu0 %1447, %v1708_v36  }
  0x36   : >> { %1323 = vmatpush3.bf16.msra.mxu0 %v1460_v56  ;;  %740 = vperm.xlu1 %1448, %v1723_v39  }
  0x37   : >> { %1371 = vmatpush3.bf16.msra.mxu1 %v1455_v48  ;;  %1332 = vmatprep.subr.bf16.mxu0 %v1742_v43 }
  0x38   : >> { %1380 = vmatprep.subr.bf16.mxu1 %v1461_v58 }
  0x39   : >> { %1325 = vmatmul.mubr.msk.bf16.vlgmr.msra.gmra.mrb[0].mxu0 %vm315_vm0, %v1175_v59  ;;  %735 = vperm.xlu0 %1447, %v1718_v38  }
  0x3a   : >> { %1373 = vmatmul.mubr.msk.bf16.vlgmr.msra.gmra.mrb[0].mxu1 %vm315_vm0, %v1175_v59  ;;  %1333 = vmatpush3.bf16.msra.mxu0 %v1742_v43  ;;  %v1198_v43 = vcombine.low %v1648_v24, %v1653_v25 }
  0x3b   : >> { %1381 = vmatpush3.bf16.msra.mxu1 %v1461_v58  ;;  %1334 = vmatprep.subr.bf16.mxu0 %v1747_v45 }
  0x3c   : >> { %1382 = vmatprep.subr.bf16.mxu1 %v1462_v60  ;;  %1328 = vmatprep.mubr.msk.bf16.mxu0 %vm315_vm0, %v1176_v61 }
  0x3d   : >> { %1376 = vmatprep.mubr.msk.bf16.mxu1 %vm315_vm0, %v1176_v61 }
  0x3e   : >> { %1335 = vmatpush3.bf16.msra.mxu0 %v1747_v45 }
  0x3f   : >> { %1383 = vmatpush3.bf16.msra.mxu1 %v1462_v60  ;;  %1336 = vmatprep.subr.bf16.mxu0 %v1753_v47 }
  0x40   : >> { %1384 = vmatprep.subr.bf16.mxu1 %v1463_v62 }
  0x41   : >> { %1329 = vmatmul.mubr.msk.bf16.gmra.mrb[4].mxu0 %vm315_vm0, %v1177_v63 }
  0x42   : >> { %1377 = vmatmul.mubr.msk.bf16.gmra.mrb[4].mxu1 %vm315_vm0, %v1177_v63  ;;  %1337 = vmatpush3.bf16.msra.mxu0 %v1753_v47 }
  0x43   : >> { %1385 = vmatpush3.bf16.msra.mxu1 %v1463_v62  ;;  %1338 = vmatprep.subr.bf16.mxu0 %v1761_v49 }
  0x44   : >> { %1386 = vmatprep.subr.bf16.mxu1 %v1464_v40  ;;  %1340 = vmatprep.mubr.msk.bf16.mxu0 %vm315_vm0, %v1196_v41 }
  0x45   : >> { %1388 = vmatprep.mubr.msk.bf16.mxu1 %vm315_vm0, %v1196_v41 }
  0x46   : >> { %1339 = vmatpush3.bf16.msra.mxu0 %v1761_v49 }
  0x47   : >> { %1387 = vmatpush3.bf16.msra.mxu1 %v1464_v40 }
  0x49   : >> { %1341 = vmatmul.mubr.msk.bf16.vlgmr.msra.gmra.mrb[0].mxu0 %vm315_vm0, %v1197_v42 }
  0x4a   : >> { %1389 = vmatmul.mubr.msk.bf16.vlgmr.msra.gmra.mrb[0].mxu1 %vm315_vm0, %v1197_v42  ;;  %1344 = vmatprep.mubr.msk.bf16.mxu0 %vm315_vm0, %v1198_v43 }
  0x4b   : >> { %1392 = vmatprep.mubr.msk.bf16.mxu1 %vm315_vm0, %v1198_v43 }
  0x51   : >> { %1345 = vmatmul.mubr.msk.bf16.gmra.mrb[4].mxu0 %vm315_vm0, %v1199_v44 }
  0x52   : >> { %1393 = vmatmul.mubr.msk.bf16.gmra.mrb[4].mxu1 %vm315_vm0, %v1199_v44 }
  0x96   : >> { %v658_v45 = vpop.permute.xlu0 %657  ;;  %v668_v46 = vpop.permute.xlu1 %667 }
  0x9b   : >> { %v663_v47 = vpop.permute.xlu0 %662  ;;  %v673_v48 = vpop.permute.xlu1 %672 }
  0x9f   : >> { %v678_v49 = vpop.permute.xlu0 %677  ;;  %v683_v50 = vpop.permute.xlu1 %682 }
  0xa3   : >> { %v688_v51 = vpop.permute.xlu0 %687  ;;  %v693_v52 = vpop.permute.xlu1 %692 }
  0xa7   : >> { %v706_v53 = vpop.permute.xlu0 %705  ;;  %v711_v54 = vpop.permute.xlu1 %710 }
  0xac   : >> { %v716_v55 = vpop.permute.xlu0 %715  ;;  %v721_v56 = vpop.permute.xlu1 %720 }
  0xb4   : >> { %v726_v57 = vpop.permute.xlu0 %725 }
  0xb8   : >> { %v736_v12 = vpop.permute.xlu0 %735 }
 0x11c   : >> { %v1342_v58 = vpop.f32.mrb[0].mxu0 }
 0x11d   : >> { %v697_v59 = vmul.f32 %v1342_v58, %v668_v46  ;;  %v1390_v60 = vpop.f32.mrb[0].mxu1  ;;  %v616_v61 = vpop.f32.mrb[1].mxu0 }
 0x11e   : >> { %v992_v62 = vmul.f32 %v1390_v60, %v668_v46  ;;  %v695_v63 = vmul.f32 %v658_v45, %v616_v61  ;;  %v951_v40 = vpop.f32.mrb[1].mxu1  ;;  %v1343_v41 = vpop.f32.mrb[2].mxu0 }
 0x11f   : >> { %v745_v42 = vadd.f32 %v716_v55, %v697_v59  ;;  %v990_v43 = vmul.f32 %v951_v40, %v658_v45  ;;  %v698_v44 = vmul.f32 %v1343_v41, %v673_v48  ;;  %v1391_v0 = vpop.f32.mrb[2].mxu1  ;;  %v619_v1 = vpop.f32.mrb[3].mxu0 }
 0x120   : >> { %v1000_v2 = vadd.f32 %v992_v62, %v716_v55  ;;  %v743_v3 = vadd.f32 %v706_v53, %v695_v63  ;;  %v993_v4 = vmul.f32 %v1391_v0, %v673_v48  ;;  %v696_v5 = vmul.f32 %v663_v47, %v619_v1  ;;  %v954_v6 = vpop.f32.mrb[3].mxu1  ;;  %v731_v58 = vpop.permute.xlu1 %730 }
 0x121   : >> { %v998_v7 = vadd.f32 %v990_v43, %v706_v53  ;;  %v746_v8 = vadd.f32 %v721_v56, %v698_v44  ;;  %v991_v9 = vmul.f32 %v954_v6, %v663_v47 }
 0x122   : >> { %v1008_v10 = vmax.f32 %v745_v42, %v1000_v2  ;;  %v1001_v11 = vadd.f32 %v993_v4, %v721_v56  ;;  %v744_v46 = vadd.f32 %v711_v54, %v696_v5 }
 0x123   : >> { %v1006_v60 = vmax.f32 %v743_v3, %v998_v7  ;;  %v999_v61 = vadd.f32 %v991_v9, %v711_v54 }
 0x124   : >> { %v1009_v59 = vmax.f32 %v746_v8, %v1001_v11  ;;  %v1346_v45 = vpop.f32.mrb[4].mxu0  ;;  %v741_v4 = vpop.permute.xlu1 %740 }
 0x125   : >> { %v1007_v40 = vmax.f32 %v744_v46, %v999_v61  ;;  %v701_v41 = vmul.f32 %v1346_v45, %v688_v51  ;;  %v1394_v13 = vpop.f32.mrb[4].mxu1  ;;  %v632_v55 = vpop.f32.mrb[5].mxu0  ;;  %v1014_v45 = vmax.f32 %v1006_v60, 0.0 }
 0x126   : >> { %v996_v62 = vmul.f32 %v1394_v13, %v688_v51  ;;  %v699_v0 = vmul.f32 %v678_v49, %v632_v55  ;;  %v967_v1 = vpop.f32.mrb[5].mxu1  ;;  %v1347_v48 = vpop.f32.mrb[6].mxu0  ;;  %v1017_v55 = vmax.f32 %v1009_v59, 0.0 }
 0x127   : >> { %v749_v53 = vadd.f32 %v736_v12, %v701_v41  ;;  %v994_v63 = vmul.f32 %v967_v1, %v678_v49  ;;  %v702_v6 = vmul.f32 %v1347_v48, %v693_v52  ;;  %v1395_v47 = vpop.f32.mrb[6].mxu1  ;;  %v635_v2 = vpop.f32.mrb[7].mxu0  ;;  %v1016_v49 = vmax.f32 %v1008_v10, 0.0 }
 0x128   : >> { %v1004_v3 = vadd.f32 %v996_v62, %v736_v12  ;;  %v747_v5 = vadd.f32 %v726_v57, %v699_v0  ;;  %v997_v7 = vmul.f32 %v1395_v47, %v693_v52  ;;  %v700_v8 = vmul.f32 %v683_v50, %v635_v2  ;;  %v970_v9 = vpop.f32.mrb[7].mxu1 }
 0x129   : >> { %v1002_v11 = vadd.f32 %v994_v63, %v726_v57  ;;  %v750_v54 = vadd.f32 %v741_v4, %v702_v6  ;;  %v995_v56 = vmul.f32 %v970_v9, %v683_v50  ;;  %v1015_v0 = vmax.f32 %v1007_v40, 0.0 }
 0x12a   : >> { %v1012_v42 = vmax.f32 %v749_v53, %v1004_v3  ;;  %v1005_v13 = vadd.f32 %v997_v7, %v741_v4  ;;  %v748_v51 = vadd.f32 %v731_v58, %v700_v8 }
 0x12b   : >> { %v1010_v43 = vmax.f32 %v747_v5, %v1002_v11  ;;  %v1003_v44 = vadd.f32 %v995_v56, %v731_v58 }
 0x12c   : >> { %v1020_v46 = vmax.f32 %v1012_v42, 0.0  ;;  %v1013_v61 = vmax.f32 %v750_v54, %v1005_v13 }
 0x12d   : >> { %v1018_v41 = vmax.f32 %v1010_v43, 0.0  ;;  %v1011_v12 = vmax.f32 %v748_v51, %v1003_v44 }
 0x12e   : >> { %v1024_v52 = vmax.f32 %v1016_v49, %v1020_v46  ;;  %v1021_v62 = vmax.f32 %v1013_v61, 0.0 }
 0x12f   : >> { %v1022_v50 = vmax.f32 %v1014_v45, %v1018_v41  ;;  %v1019_v57 = vmax.f32 %v1011_v12, 0.0  ;;  %245 = sbr.rel (!%p243_p4) target bundleno = 21 (0x15), region = 80 }
 0x130   : >> { %v1249_v1 = vpack.c.bf16 %v1024_v52, %v1024_v52  ;;  %v1025_v48 = vmax.f32 %v1017_v55, %v1021_v62 }
 0x131   : >> { %v1247_v53 = vpack.c.bf16 %v1022_v50, %v1022_v50  ;;  %v1023_v63 = vmax.f32 %v1015_v0, %v1019_v57 }
 0x132   : >> { %1048 = vst.msk [vmem:[%s1044_s11 + $0x8] sm:$0xf] %vm1045_vm1, %v1249_v1  ;;  %v1250_v10 = vpack.c.bf16 %v1025_v48, %v1025_v48 }
 0x133   : >> { %1046 = vst.msk [vmem:[%s1044_s11] sm:$0xf] %vm1045_vm1, %v1247_v53  ;;  %v1248_v58 = vpack.c.bf16 %v1023_v63, %v1023_v63 }
 0x134   : >> { %1049 = vst.msk [vmem:[%s1044_s11 + $0xc] sm:$0xf] %vm1045_vm1, %v1250_v10 }
 0x135   : >> { %1047 = vst.msk [vmem:[%s1044_s11 + $0x4] sm:$0xf] %vm1045_vm1, %v1248_v58 }
 0x136 PF: > { %s14_s15 = sadd.s32 1, %s1475_s15  }
 0x137   : > { %p11_p5 = scmp.ge.s32.totalorder %s14_s15, 4  }
 0x139   :  { %13 = sbr.rel (!%p11_p5) target bundleno = 1 (0x1), region = 91 }

// kernel: simpsons_net2_forward.8
= control target key start
LH: loop header
LB: loop body
LE: loop exit
PB: predicated region body
PF: predicated region fallthrough
CT: control target
= control target key end

     0   :  { %s1209_s15 = smov 0   ;;  %s1570_s0 = inlined_call_operand.vmem [shape: bf16[2,58,32,128], index: 0, kind: input, shape index: {}]   ;;  %s1571_s1 = inlined_call_operand.vmem [shape: bf16[3,128,128], index: 1, kind: input, shape index: {}]   ;;  %s1572_s2 = inlined_call_operand.vmem [shape: f32[1,128], index: 2, kind: input, shape index: {}]   ;;  %s1573_s3 = inlined_call_operand.vmem [shape: f32[1,128], index: 3, kind: input, shape index: {}]   ;;  %s1574_s4 = inlined_call_operand.vmem [shape: bf16[2,28,28,64], index: 4, kind: output, shape index: {}]  }
   0x1 LB: > { %s869_s16 = sadd.s32 4294967295, %s1177_s15   ;;  %p873_p0 = scmp.ge.s32.totalorder %s1177_s15, 1  ;;  %s1177_s15 = sphi %s1209_s15, %s14_s15  }
   0x2   : > { %p162_p1 = scmp.lt.s32.totalorder %s1177_s15, 3 }
   0x4   : > { %p163_p2 = pnand %p873_p0, %p162_p1 }
   0x5   : > { %p188_p3 = scmp.lt.s32.totalorder (!%p163_p2), %s869_s16, 1  ;;  %v1220_v0 = vld [vmem:[%s1571_s1] sm:$0xf] (!%p163_p2)  ;;  %v1225_v1 = vld [vmem:[%s1571_s1 + $0x4] sm:$0xf] (!%p163_p2)  ;;  %s1477_s30 = smov (!%p163_p2), 0  }
   0x6   : > { %166 = sbr.rel (%p163_p2) target bundleno = 448 (0x1c0), region = 36  ;;  %1575 = vst [vmem:[#allocation2_spill] sm:$0xff] (!%p163_p2), %v1220_v0  ;;  %1576 = vst [vmem:[#allocation3_spill] sm:$0xff] (!%p163_p2), %v1225_v1  ;;  %v1230_v2 = vld [vmem:[%s1571_s1 + $0x8] sm:$0xf] (!%p163_p2) }
   0x7   : > { %1577 = vst [vmem:[#allocation4_spill] sm:$0xff] (!%p163_p2), %v1230_v2  ;;  %v1235_v3 = vld [vmem:[%s1571_s1 + $0xc] sm:$0xf] (!%p163_p2)  ;;  %v1240_v4 = vld [vmem:[%s1571_s1 + $0x10] sm:$0xf] (!%p163_p2) }
   0x8   : > { %1578 = vst [vmem:[#allocation5_spill] sm:$0xff] (!%p163_p2), %v1235_v3  ;;  %1579 = vst [vmem:[#allocation6_spill] sm:$0xff] (!%p163_p2), %v1240_v4  ;;  %v1245_v5 = vld [vmem:[%s1571_s1 + $0x14] sm:$0xf] (!%p163_p2)  ;;  %v1250_v6 = vld [vmem:[%s1571_s1 + $0x18] sm:$0xf] (!%p163_p2) }
   0x9   : > { %1580 = vst [vmem:[#allocation7_spill] sm:$0xff] (!%p163_p2), %v1245_v5  ;;  %1581 = vst [vmem:[#allocation8_spill] sm:$0xff] (!%p163_p2), %v1250_v6  ;;  %v1255_v7 = vld [vmem:[%s1571_s1 + $0x1c] sm:$0xf] (!%p163_p2)  ;;  %v1260_v8 = vld [vmem:[%s1571_s1 + $0x20] sm:$0xf] (!%p163_p2) }
   0xa   : > { %1582 = vst [vmem:[#allocation9_spill] sm:$0xff] (!%p163_p2), %v1255_v7  ;;  %1583 = vst [vmem:[#allocation10_spill] sm:$0xff] (!%p163_p2), %v1260_v8  ;;  %v1265_v9 = vld [vmem:[%s1571_s1 + $0x24] sm:$0xf] (!%p163_p2)  ;;  %v1270_v10 = vld [vmem:[%s1571_s1 + $0x28] sm:$0xf] (!%p163_p2) }
   0xb   : > { %1584 = vst [vmem:[#allocation11_spill] sm:$0xff] (!%p163_p2), %v1265_v9  ;;  %1585 = vst [vmem:[#allocation12_spill] sm:$0xff] (!%p163_p2), %v1270_v10  ;;  %v1275_v11 = vld [vmem:[%s1571_s1 + $0x2c] sm:$0xf] (!%p163_p2)  ;;  %v1280_v12 = vld [vmem:[%s1571_s1 + $0x30] sm:$0xf] (!%p163_p2) }
   0xc   : > { %1586 = vst [vmem:[#allocation13_spill] sm:$0xff] (!%p163_p2), %v1275_v11  ;;  %v1285_v13 = vld [vmem:[%s1571_s1 + $0x34] sm:$0xf] (!%p163_p2)  ;;  %v1295_v14 = vld [vmem:[%s1571_s1 + $0x38] sm:$0xf] (!%p163_p2) }
   0xd   : > { %s1600_s16 = smov (!%p188_p3, %s869_s16), 1  ;;  %v1300_v15 = vld [vmem:[%s1571_s1 + $0x3c] sm:$0xf]  ;;  %v1305_v16 = vld [vmem:[%s1571_s1 + $0x40] sm:$0xf] }
   0xe   : > { %s1126_s11 = smul.u32 928, %s1600_s16  ;;  %v1315_v17 = vld [vmem:[%s1571_s1 + $0x44] sm:$0xf]  ;;  %v1320_v18 = vld [vmem:[%s1571_s1 + $0x48] sm:$0xf] }
   0xf   : > { %s1127_s18 = smul.u32 448, %s1600_s16  ;;  %v1325_v19 = vld [vmem:[%s1571_s1 + $0x4c] sm:$0xf]  ;;  %v1330_v20 = vld [vmem:[%s1571_s1 + $0x50] sm:$0xf] }
  0x10   : > { %s1290_s25 = scalar_lea.vmem %s1570_s0, %s1126_s11  ;;  %v1335_v21 = vld [vmem:[%s1571_s1 + $0x54] sm:$0xf]  ;;  %v1340_v22 = vld [vmem:[%s1571_s1 + $0x58] sm:$0xf]  ;;  %v1345_v23 = vld [vmem:[%s1571_s1 + $0x5c] sm:$0xf] }
  0x11   : > { %s1310_s7 = scalar_lea.vmem %s1574_s4, %s1127_s18  ;;  %v1350_v24 = vld [vmem:[%s1571_s1 + $0x60] sm:$0xf]  ;;  %v1355_v25 = vld [vmem:[%s1571_s1 + $0x64] sm:$0xf]  ;;  %v1360_v26 = vld [vmem:[%s1571_s1 + $0x68] sm:$0xf] }
  0x12   : > { %v1365_v27 = vld [vmem:[%s1571_s1 + $0x6c] sm:$0xf]  ;;  %v1370_v28 = vld [vmem:[%s1571_s1 + $0x70] sm:$0xf]  ;;  %v1375_v29 = vld [vmem:[%s1571_s1 + $0x74] sm:$0xf] }
  0x13   : > { %v1380_v30 = vld [vmem:[%s1571_s1 + $0x78] sm:$0xf]  ;;  %v1385_v31 = vld [vmem:[%s1571_s1 + $0x7c] sm:$0xf]  ;;  %v1390_v32 = vld [vmem:[%s1571_s1 + $0x80] sm:$0xf] }
  0x14   : > { %v1395_v33 = vld [vmem:[%s1571_s1 + $0x84] sm:$0xf]  ;;  %v1400_v34 = vld [vmem:[%s1571_s1 + $0x88] sm:$0xf]  ;;  %v1405_v35 = vld [vmem:[%s1571_s1 + $0x8c] sm:$0xf] }
  0x15   : > { %v1410_v36 = vld [vmem:[%s1571_s1 + $0x90] sm:$0xf]  ;;  %v1415_v37 = vld [vmem:[%s1571_s1 + $0x94] sm:$0xf]  ;;  %v1420_v38 = vld [vmem:[%s1571_s1 + $0x98] sm:$0xf] }
  0x16   : > { %v1425_v39 = vld [vmem:[%s1571_s1 + $0x9c] sm:$0xf]  ;;  %v1430_v40 = vld [vmem:[%s1571_s1 + $0xa0] sm:$0xf]  ;;  %v1435_v41 = vld [vmem:[%s1571_s1 + $0xa4] sm:$0xf] }
  0x17   : > { %v1440_v42 = vld [vmem:[%s1571_s1 + $0xa8] sm:$0xf]  ;;  %v1445_v43 = vld [vmem:[%s1571_s1 + $0xac] sm:$0xf]  ;;  %v1450_v44 = vld [vmem:[%s1571_s1 + $0xb0] sm:$0xf] }
  0x18   : > { %v1455_v45 = vld [vmem:[%s1571_s1 + $0xb4] sm:$0xf]  ;;  %v1460_v46 = vld [vmem:[%s1571_s1 + $0xb8] sm:$0xf]  ;;  %v1465_v47 = vld [vmem:[%s1571_s1 + $0xbc] sm:$0xf] }
  0x19   : > { %v1470_v48 = vld [vmem:[%s1572_s2] ss:$0 sm:$0xff] }
  0x1a   : > { %v1475_v49 = vld [vmem:[%s1573_s3] ss:$0 sm:$0xff] }
  0x1b LB: >> { %v935_v50 = vcombine.low %v1305_v16, %v1315_v17  ;;  %v1587_v1 = vld [vmem:[#allocation3_spill] sm:$0xff]  ;;  %v1588_v0 = vld [vmem:[#allocation2_spill] sm:$0xff]  ;;  %v936_v52 = vcombine.low %v1320_v18, %v1325_v19  ;;  %v1589_v3 = vld [vmem:[#allocation5_spill] sm:$0xff]  ;;  %s978_s5 = sshll.u32 %s1181_s30, 5  ;;  %v937_v54 = vcombine.low %v1330_v20, %v1335_v21  ;;  %v938_v58 = vcombine.low %v1340_v22, %v1345_v23  ;;  %s1183_s8 = smov 64   ;;  %s1181_s30 = sphi %s1477_s30, %s256_s30  }
  0x1c   : >> { %v947_v51 = vcombine.low %v1588_v0, %v1587_v1  ;;  %v1590_v2 = vld [vmem:[#allocation4_spill] sm:$0xff]  ;;  %s1492_s6 = scalar_lea.vmem %s1290_s25, %s978_s5  ;;  %v1591_v5 = vld [vmem:[#allocation7_spill] sm:$0xff]  ;;  %v1592_v4 = vld [vmem:[#allocation6_spill] sm:$0xff]  ;;  %v939_v60 = vcombine.low %v1350_v24, %v1355_v25  ;;  %v940_v62 = vcombine.low %v1360_v26, %v1365_v27  ;;  %s985_s9 = sshll.u32 %s1181_s30, 4  ;;  %vm791_vm0 = vcmask 519168  }
  0x1d   : >> { %v948_v53 = vcombine.low %v1590_v2, %v1589_v3  ;;  %1022 = vmatprep.subr.bf16.mxu1 %v935_v50  ;;  %v949_v55 = vcombine.low %v1592_v4, %v1591_v5  ;;  %v1155_v56 = vld [vmem:[%s1492_s6 + $0x10] sm:$0xff]   ;;  %v1157_v57 = vld [vmem:[%s1492_s6] sm:$0xff]   ;;  %v1593_v7 = vld [vmem:[#allocation9_spill] sm:$0xff]  ;;  %s790_s10 = scalar_lea.vmem %s1310_s7, %s985_s9  ;;  %vm795_vm1 = vcmask 517120   ;;  %s256_s30 = sadd.s32 1, %s1181_s30  }
  0x1e   : >> { %1046 = vmatprep.subr.bf16.mxu0 %v947_v51  ;;  %1023 = vmatpush3.bf16.msra.mxu1 %v935_v50  ;;  %v1594_v6 = vld [vmem:[#allocation8_spill] sm:$0xff]  ;;  %v1595_v9 = vld [vmem:[#allocation11_spill] sm:$0xff]  ;;  %v1596_v8 = vld [vmem:[#allocation10_spill] sm:$0xff]  ;;  %v941_v50 = vcombine.low %v1370_v28, %v1375_v29  ;;  %p253_p4 = scmp.ge.s32.totalorder %s256_s30, 28  }
  0x1f   : >> { %1047 = vmatpush3.bf16.msra.mxu0 %v947_v51  ;;  %1024 = vmatprep.subr.bf16.mxu1 %v936_v52  ;;  %v950_v59 = vcombine.low %v1594_v6, %v1593_v7  ;;  %v951_v61 = vcombine.low %v1596_v8, %v1595_v9  ;;  %v1597_v11 = vld [vmem:[#allocation13_spill] sm:$0xff]  ;;  %v1598_v10 = vld [vmem:[#allocation12_spill] sm:$0xff]  ;;  %v953_v51 = vcombine.low %v1280_v12, %v1285_v13 }
  0x20   : >> { %1048 = vmatprep.subr.bf16.mxu0 %v948_v53  ;;  %1038 = vmatprep.mubr.bf16.mxu1 %v1155_v56  ;;  %v952_v63 = vcombine.low %v1598_v10, %v1597_v11  ;;  %v1158_v56 = vld [vmem:[%s1492_s6 + $0x8] sm:$0xff]  }
  0x21   : >> { %1062 = vmatprep.mubr.bf16.mxu0 %v1157_v57  ;;  %v960_v57 = vcombine.low %v1400_v34, %v1405_v35 }
  0x22   : >> { %1025 = vmatpush3.bf16.msra.mxu1 %v936_v52  ;;  %v942_v52 = vcombine.low %v1380_v30, %v1385_v31 }
  0x23   : >> { %1049 = vmatpush3.bf16.msra.mxu0 %v948_v53  ;;  %1026 = vmatprep.subr.bf16.mxu1 %v937_v54  ;;  %v954_v53 = vcombine.low %v1295_v14, %v1300_v15 }
  0x24   : >> { %1050 = vmatprep.subr.bf16.mxu0 %v949_v55 }
  0x26   : >> { %1027 = vmatpush3.bf16.msra.mxu1 %v937_v54  ;;  %v959_v54 = vcombine.low %v1390_v32, %v1395_v33 }
  0x27   : >> { %1051 = vmatpush3.bf16.msra.mxu0 %v949_v55  ;;  %1028 = vmatprep.subr.bf16.mxu1 %v938_v58  ;;  %v1156_v55 = vld [vmem:[%s1492_s6 + $0x18] sm:$0xff]  }
  0x28   : >> { %1052 = vmatprep.subr.bf16.mxu0 %v950_v59 }
  0x2a   : >> { %1029 = vmatpush3.bf16.msra.mxu1 %v938_v58  ;;  %v1159_v58 = vld [vmem:[%s1492_s6 + $0x20] sm:$0xff]  }
  0x2b   : >> { %1053 = vmatpush3.bf16.msra.mxu0 %v950_v59  ;;  %1030 = vmatprep.subr.bf16.mxu1 %v939_v60  ;;  %v1160_v59 = vld [vmem:[%s1492_s6 + $0x10] sm:$0xff]  }
  0x2c   : >> { %1054 = vmatprep.subr.bf16.mxu0 %v951_v61 }
  0x2e   : >> { %1031 = vmatpush3.bf16.msra.mxu1 %v939_v60  ;;  %v961_v60 = vcombine.low %v1410_v36, %v1415_v37 }
  0x2f   : >> { %1055 = vmatpush3.bf16.msra.mxu0 %v951_v61  ;;  %1032 = vmatprep.subr.bf16.mxu1 %v940_v62  ;;  %v1161_v61 = vld [vmem:[%s1492_s6 + $0x28] sm:$0xff]  }
  0x30   : >> { %1056 = vmatprep.subr.bf16.mxu0 %v952_v63 }
  0x32   : >> { %1033 = vmatpush3.bf16.msra.mxu1 %v940_v62  ;;  %v1162_v62 = vld [vmem:[%s1492_s6 + $0x18] sm:$0xff]  }
  0x33   : >> { %1057 = vmatpush3.bf16.msra.mxu0 %v952_v63  ;;  %1034 = vmatprep.subr.bf16.mxu1 %v941_v50  ;;  %v962_v63 = vcombine.low %v1420_v38, %v1425_v39 }
  0x34   : >> { %1058 = vmatprep.subr.bf16.mxu0 %v953_v51 }
  0x36   : >> { %1035 = vmatpush3.bf16.msra.mxu1 %v941_v50  ;;  %v1163_v50 = vld [vmem:[%s1492_s6 + $0x20] sm:$0xff]  }
  0x37   : >> { %1059 = vmatpush3.bf16.msra.mxu0 %v953_v51  ;;  %1036 = vmatprep.subr.bf16.mxu1 %v942_v52  ;;  %v1164_v51 = vld [vmem:[%s1492_s6 + $0x30] sm:$0xff]  }
  0x38   : >> { %1060 = vmatprep.subr.bf16.mxu0 %v954_v53 }
  0x3a   : >> { %1037 = vmatpush3.bf16.msra.mxu1 %v942_v52  ;;  %v963_v52 = vcombine.low %v1430_v40, %v1435_v41 }
  0x3b   : >> { %1061 = vmatpush3.bf16.msra.mxu0 %v954_v53  ;;  %1094 = vmatprep.subr.bf16.mxu1 %v959_v54  ;;  %v964_v53 = vcombine.low %v1440_v42, %v1445_v43 }
  0x3c   : >> { %1070 = vmatprep.subr.bf16.mxu0 %v959_v54 }
  0x3d   : >> { %1039 = vmatmul.mubr.bf16.vlgmr.msra.gmra.mrb[0].mxu1 %v1156_v55  ;;  %v966_v55 = vcombine.low %v1460_v46, %v1465_v47 }
  0x3e   : >> { %1063 = vmatmul.mubr.bf16.vlgmr.msra.gmra.mrb[0].mxu0 %v1158_v56  ;;  %1102 = vmatpush3.bf16.msra.mxu1 %v959_v54  ;;  %v1165_v56 = vld [vmem:[%s1492_s6 + $0x28] sm:$0xff]  }
  0x3f   : >> { %1071 = vmatpush3.bf16.msra.mxu0 %v959_v54  ;;  %1095 = vmatprep.subr.bf16.mxu1 %v960_v57  ;;  %v965_v54 = vcombine.low %v1450_v44, %v1455_v45 }
  0x40   : >> { %1072 = vmatprep.subr.bf16.mxu0 %v960_v57  ;;  %1042 = vmatprep.mubr.bf16.mxu1 %v1159_v58 }
  0x41   : >> { %1066 = vmatprep.mubr.bf16.mxu0 %v1160_v59 }
  0x42   : >> { %1103 = vmatpush3.bf16.msra.mxu1 %v960_v57 }
  0x43   : >> { %1073 = vmatpush3.bf16.msra.mxu0 %v960_v57  ;;  %1096 = vmatprep.subr.bf16.mxu1 %v961_v60  ;;  %v1166_v57 = vld [vmem:[%s1492_s6 + $0x38] sm:$0xff]  }
  0x44   : >> { %1074 = vmatprep.subr.bf16.mxu0 %v961_v60 }
  0x45   : >> { %1043 = vmatmul.mubr.bf16.gmra.mrb[4].mxu1 %v1161_v61 }
  0x46   : >> { %1067 = vmatmul.mubr.bf16.gmra.mrb[4].mxu0 %v1162_v62  ;;  %1104 = vmatpush3.bf16.msra.mxu1 %v961_v60 }
  0x47   : >> { %1075 = vmatpush3.bf16.msra.mxu0 %v961_v60  ;;  %1097 = vmatprep.subr.bf16.mxu1 %v962_v63 }
  0x48   : >> { %1076 = vmatprep.subr.bf16.mxu0 %v962_v63  ;;  %1086 = vmatprep.mubr.bf16.mxu0 %v1163_v50 }
  0x49   : >> { %1090 = vmatprep.mubr.bf16.mxu1 %v1164_v51 }
  0x4a   : >> { %1105 = vmatpush3.bf16.msra.mxu1 %v962_v63 }
  0x4b   : >> { %1077 = vmatpush3.bf16.msra.mxu0 %v962_v63  ;;  %1098 = vmatprep.subr.bf16.mxu1 %v963_v52 }
  0x4c   : >> { %1078 = vmatprep.subr.bf16.mxu0 %v963_v52 }
  0x4e   : >> { %1106 = vmatpush3.bf16.msra.mxu1 %v963_v52 }
  0x4f   : >> { %1079 = vmatpush3.bf16.msra.mxu0 %v963_v52  ;;  %1099 = vmatprep.subr.bf16.mxu1 %v964_v53 }
  0x50   : >> { %1080 = vmatprep.subr.bf16.mxu0 %v964_v53 }
  0x52   : >> { %1107 = vmatpush3.bf16.msra.mxu1 %v964_v53 }
  0x53   : >> { %1081 = vmatpush3.bf16.msra.mxu0 %v964_v53  ;;  %1100 = vmatprep.subr.bf16.mxu1 %v965_v54 }
  0x54   : >> { %1082 = vmatprep.subr.bf16.mxu0 %v965_v54 }
  0x56   : >> { %1108 = vmatpush3.bf16.msra.mxu1 %v965_v54 }
  0x57   : >> { %1083 = vmatpush3.bf16.msra.mxu0 %v965_v54  ;;  %1101 = vmatprep.subr.bf16.mxu1 %v966_v55 }
  0x58   : >> { %1084 = vmatprep.subr.bf16.mxu0 %v966_v55 }
  0x5a   : >> { %1109 = vmatpush3.bf16.msra.mxu1 %v966_v55 }
  0x5b   : >> { %1085 = vmatpush3.bf16.msra.mxu0 %v966_v55 }
  0x5d   : >> { %1091 = vmatmul.mubr.bf16.vlgmr.msra.gmra.mrb[8].mxu1 %v1166_v57 }
  0x5e   : >> { %1087 = vmatmul.mubr.bf16.vlgmr.msra.gmra.mrb[0].mxu0 %v1165_v56 }
 0x110   : >> { %v1040_v58 = vpop.f32.mrb[0].mxu1 }
 0x111   : >> { %v399_v59 = vpop.f32.mrb[1].mxu1 }
 0x112   : >> { %v1041_v60 = vpop.f32.mrb[2].mxu1 }
 0x113   : >> { %v402_v61 = vpop.f32.mrb[3].mxu1 }
 0x118   : >> { %v1044_v62 = vpop.f32.mrb[4].mxu1 }
 0x119   : >> { %v1068_v63 = vpop.f32.mrb[4].mxu0  ;;  %v415_v51 = vpop.f32.mrb[5].mxu1 }
 0x11a   : >> { %v561_v50 = vadd.f32 %v1068_v63, %v1044_v62  ;;  %v552_v52 = vpop.f32.mrb[5].mxu0  ;;  %v1045_v0 = vpop.f32.mrb[6].mxu1 }
 0x11b   : >> { %v553_v53 = vadd.f32 %v552_v52, %v415_v51  ;;  %v1069_v54 = vpop.f32.mrb[6].mxu0  ;;  %v418_v2 = vpop.f32.mrb[7].mxu1 }
 0x11c   : >> { %v564_v1 = vadd.f32 %v1069_v54, %v1045_v0  ;;  %v555_v3 = vpop.f32.mrb[7].mxu0 }
 0x11d   : >> { %v556_v4 = vadd.f32 %v555_v3, %v418_v2 }
 0x130   : >> { %v1092_v55 = vpop.f32.mrb[8].mxu1 }
 0x131   : >> { %v1088_v5 = vpop.f32.mrb[0].mxu0  ;;  %v710_v57 = vadd.f32 %v1092_v55, %v561_v50  ;;  %v689_v7 = vpop.f32.mrb[9].mxu1 }
 0x132   : >> { %v1110_v56 = vadd.f32 %v1088_v5, %v1040_v58  ;;  %v673_v6 = vpop.f32.mrb[1].mxu0  ;;  %v708_v9 = vadd.f32 %v689_v7, %v553_v53  ;;  %v1093_v11 = vpop.f32.mrb[10].mxu1 }
 0x133   : >> { %v1111_v8 = vadd.f32 %v673_v6, %v399_v59  ;;  %v1089_v10 = vpop.f32.mrb[2].mxu0  ;;  %v724_v63 = vmul.f32 %v1470_v48, %v710_v57  ;;  %v711_v52 = vadd.f32 %v1093_v11, %v564_v1  ;;  %v692_v54 = vpop.f32.mrb[11].mxu1 }
 0x134   : >> { %v720_v62 = vmul.f32 %v1110_v56, %v1470_v48  ;;  %v1112_v51 = vadd.f32 %v1089_v10, %v1041_v60  ;;  %v676_v0 = vpop.f32.mrb[3].mxu0  ;;  %v722_v3 = vmul.f32 %v1470_v48, %v708_v9  ;;  %v709_v58 = vadd.f32 %v692_v54, %v556_v4 }
 0x135   : >> { %v718_v2 = vmul.f32 %v1111_v8, %v1470_v48  ;;  %v1113_v5 = vadd.f32 %v676_v0, %v402_v61  ;;  %v738_v6 = vadd.f32 %v1475_v49, %v724_v63  ;;  %v725_v59 = vmul.f32 %v1470_v48, %v711_v52 }
 0x136   : >> { %v734_v50 = vadd.f32 %v1475_v49, %v720_v62  ;;  %v721_v7 = vmul.f32 %v1112_v51, %v1470_v48  ;;  %v736_v1 = vadd.f32 %v1475_v49, %v722_v3  ;;  %v723_v8 = vmul.f32 %v1470_v48, %v709_v58 }
 0x137   : >> { %v732_v53 = vadd.f32 %v1475_v49, %v718_v2  ;;  %v719_v10 = vmul.f32 %v1113_v5, %v1470_v48  ;;  %v746_v9 = vmax.f32 %v738_v6, 0.0  ;;  %v739_v60 = vadd.f32 %v1475_v49, %v725_v59 }
 0x138   : >> { %v742_v11 = vmax.f32 %v734_v50, 0.0  ;;  %v735_v4 = vadd.f32 %v1475_v49, %v721_v7  ;;  %v744_v55 = vmax.f32 %v736_v1, 0.0  ;;  %v737_v57 = vadd.f32 %v1475_v49, %v723_v8 }
 0x139   : >> { %v740_v61 = vmax.f32 %v732_v53, 0.0  ;;  %v733_v56 = vadd.f32 %v1475_v49, %v719_v10  ;;  %v747_v51 = vmax.f32 %v739_v60, 0.0 }
 0x13a   : >> { %v750_v62 = vmax.f32 %v742_v11, %v746_v9  ;;  %v743_v63 = vmax.f32 %v735_v4, 0.0  ;;  %v745_v0 = vmax.f32 %v737_v57, 0.0 }
 0x13b   : >> { %v741_v52 = vmax.f32 %v733_v56, 0.0  ;;  %v748_v54 = vmax.f32 %v740_v61, %v744_v55 }
 0x13c   : >> { %v751_v2 = vmax.f32 %v743_v63, %v747_v51 }
 0x13d   : >> { %v749_v3 = vmax.f32 %v741_v52, %v745_v0 }
 0x13e   : >> { %v1150_v58 = vpack.i.bf16 %v751_v2, %v750_v62 }
 0x13f   : >> { %v1145_v5 = vpack.i.bf16 %v749_v3, %v748_v54 }
 0x141   : >> { %1146 = vrot.lane.b32.xlu0 %v1145_v5, %s1183_s8 }
 0x145   : >> { %1151 = vrot.lane.b32.xlu0 %v1150_v58, %s1183_s8 }
 0x1b3   : >> { %v1147_v50 = vpop.permute.xlu0 %1146 }
 0x1b4   : >> { %v1149_v6 = vunpack.i.h.bf16 %v1147_v50  ;;  %v1148_v7 = vunpack.i.l.bf16 %v1147_v50 }
 0x1b6   : >> { %v769_v59 = vmax.f32 %v749_v3, %v1149_v6  ;;  %v768_v53 = vmax.f32 %v748_v54, %v1148_v7 }
 0x1b7   : >> { %v1152_v1 = vpop.permute.xlu0 %1151 }
 0x1b8   : >> { %v982_v10 = vpack.c.bf16 %v769_v59, %v769_v59  ;;  %v981_v8 = vpack.c.bf16 %v768_v53, %v768_v53  ;;  %v1154_v11 = vunpack.i.h.bf16 %v1152_v1  ;;  %v1153_v9 = vunpack.i.l.bf16 %v1152_v1 }
 0x1b9   : > { %255 = sbr.rel (!%p253_p4) target bundleno = 27 (0x1b), region = 79 }
 0x1ba   : >> { %793 = vst.msk [vmem:[%s790_s10 + $0x4] sm:$0xf] %vm791_vm0, %v982_v10  ;;  %792 = vst.msk [vmem:[%s790_s10] sm:$0xf] %vm791_vm0, %v981_v8  ;;  %v771_v4 = vmax.f32 %v751_v2, %v1154_v11  ;;  %v770_v60 = vmax.f32 %v750_v62, %v1153_v9 }
 0x1bc   : >> { %v984_v61 = vpack.c.bf16 %v771_v4, %v771_v4  ;;  %v983_v55 = vpack.c.bf16 %v770_v60, %v770_v60 }
 0x1be   : >> { %796 = vst.msk [vmem:[%s790_s10 + $0xc] sm:$0x3] %vm795_vm1, %v984_v61 }
 0x1bf   : >> { %794 = vst.msk [vmem:[%s790_s10 + $0x8] sm:$0xf] %vm791_vm0, %v983_v55 }
 0x1c0 PF: > { %s14_s15 = sadd.s32 1, %s1177_s15  }
 0x1c1   : > { %p11_p5 = scmp.ge.s32.totalorder %s14_s15, 4  }
 0x1c3   :  { %13 = sbr.rel (!%p11_p5) target bundleno = 1 (0x1), region = 90 }

// kernel: simpsons_net2_forward.9
= control target key start
LH: loop header
LB: loop body
LE: loop exit
PB: predicated region body
PF: predicated region fallthrough
CT: control target
= control target key end

     0   :  { %s1496_s15 = smov 0   ;;  %s2233_s0 = inlined_call_operand.vmem [shape: bf16[2,30,16,256], index: 0, kind: input, shape index: {}]   ;;  %s2234_s1 = inlined_call_operand.vmem [shape: bf16[3,256,256], index: 1, kind: input, shape index: {}]   ;;  %s2235_s2 = inlined_call_operand.vmem [shape: f32[1,256], index: 2, kind: input, shape index: {}]   ;;  %s2236_s3 = inlined_call_operand.vmem [shape: f32[1,256], index: 3, kind: input, shape index: {}]   ;;  %s2237_s4 = inlined_call_operand.vmem [shape: bf16[2,14,14,128], index: 4, kind: output, shape index: {}]  }
   0x1 LB: > { %s1171_s16 = sadd.s32 4294967295, %s1465_s15   ;;  %p1175_p0 = scmp.ge.s32.totalorder %s1465_s15, 1  ;;  %s1465_s15 = sphi %s1496_s15, %s14_s15  }
   0x2   : > { %p162_p1 = scmp.lt.s32.totalorder %s1465_s15, 3 }
   0x4   : > { %p163_p2 = pnand %p1175_p0, %p162_p1 }
   0x5   : > { %p188_p3 = scmp.lt.s32.totalorder (!%p163_p2), %s1171_s16, 1  ;;  %v1507_v0 = vld [vmem:[%s2234_s1] sm:$0xff] (!%p163_p2)  ;;  %v1512_v1 = vld [vmem:[%s2234_s1 + $0x8] sm:$0xff] (!%p163_p2)  ;;  %v1517_v2 = vld [vmem:[%s2234_s1 + $0x10] sm:$0xff] (!%p163_p2)  ;;  %s2004_s8 = smov (!%p163_p2), 0  }
   0x6   : > { %166 = sbr.rel (%p163_p2) target bundleno = 422 (0x1a6), region = 36  ;;  %2346 = vst [vmem:[#allocation2_spill] sm:$0xff] (!%p163_p2), %v1507_v0  ;;  %2347 = vst [vmem:[#allocation3_spill] sm:$0xff] (!%p163_p2), %v1512_v1  ;;  %v1522_v3 = vld [vmem:[%s2234_s1 + $0x18] sm:$0xff] (!%p163_p2)  ;;  %v1527_v4 = vld [vmem:[%s2234_s1 + $0x20] sm:$0xff] (!%p163_p2) }
   0x7   : > { %2348 = vst [vmem:[#allocation4_spill] sm:$0xff] (!%p163_p2), %v1517_v2  ;;  %2349 = vst [vmem:[#allocation5_spill] sm:$0xff] (!%p163_p2), %v1522_v3  ;;  %v1532_v5 = vld [vmem:[%s2234_s1 + $0x28] sm:$0xff] (!%p163_p2)  ;;  %v1537_v6 = vld [vmem:[%s2234_s1 + $0x30] sm:$0xff] (!%p163_p2) }
   0x8   : > { %2350 = vst [vmem:[#allocation6_spill] sm:$0xff] (!%p163_p2), %v1527_v4  ;;  %2351 = vst [vmem:[#allocation7_spill] sm:$0xff] (!%p163_p2), %v1532_v5  ;;  %v1542_v7 = vld [vmem:[%s2234_s1 + $0x38] sm:$0xff] (!%p163_p2)  ;;  %v1547_v8 = vld [vmem:[%s2234_s1 + $0x40] sm:$0xff] (!%p163_p2) }
   0x9   : > { %2352 = vst [vmem:[#allocation8_spill] sm:$0xff] (!%p163_p2), %v1537_v6  ;;  %2353 = vst [vmem:[#allocation9_spill] sm:$0xff] (!%p163_p2), %v1542_v7  ;;  %v1552_v9 = vld [vmem:[%s2234_s1 + $0x48] sm:$0xff] (!%p163_p2)  ;;  %v1557_v10 = vld [vmem:[%s2234_s1 + $0x50] sm:$0xff] (!%p163_p2) }
   0xa   : > { %2354 = vst [vmem:[#allocation10_spill] sm:$0xff] (!%p163_p2), %v1547_v8  ;;  %2355 = vst [vmem:[#allocation11_spill] sm:$0xff] (!%p163_p2), %v1552_v9  ;;  %v1562_v11 = vld [vmem:[%s2234_s1 + $0x58] sm:$0xff] (!%p163_p2)  ;;  %v1567_v12 = vld [vmem:[%s2234_s1 + $0x60] sm:$0xff] (!%p163_p2) }
   0xb   : > { %2356 = vst [vmem:[#allocation12_spill] sm:$0xff] (!%p163_p2), %v1557_v10  ;;  %2357 = vst [vmem:[#allocation13_spill] sm:$0xff] (!%p163_p2), %v1562_v11  ;;  %v1572_v13 = vld [vmem:[%s2234_s1 + $0x68] sm:$0xff] (!%p163_p2)  ;;  %v1577_v14 = vld [vmem:[%s2234_s1 + $0x70] sm:$0xff] (!%p163_p2) }
   0xc   : > { %2358 = vst [vmem:[#allocation14_spill] sm:$0xff] (!%p163_p2), %v1567_v12  ;;  %2359 = vst [vmem:[#allocation15_spill] sm:$0xff] (!%p163_p2), %v1572_v13  ;;  %v1582_v15 = vld [vmem:[%s2234_s1 + $0x78] sm:$0xff] (!%p163_p2)  ;;  %v1587_v16 = vld [vmem:[%s2234_s1 + $0x80] sm:$0xff] (!%p163_p2) }
   0xd   : > { %s2489_s16 = smov (!%p188_p3, %s1171_s16), 1  ;;  %2360 = vst [vmem:[#allocation16_spill] sm:$0xff] %v1577_v14  ;;  %2361 = vst [vmem:[#allocation17_spill] sm:$0xff] %v1582_v15  ;;  %v1592_v17 = vld [vmem:[%s2234_s1 + $0x88] sm:$0xff]  ;;  %v1602_v18 = vld [vmem:[%s2234_s1 + $0x90] sm:$0xff] }
   0xe   : > { %s1425_s17 = smul.u32 480, %s2489_s16  ;;  %2362 = vst [vmem:[#allocation18_spill] sm:$0xff] %v1587_v16  ;;  %2363 = vst [vmem:[#allocation19_spill] sm:$0xff] %v1592_v17  ;;  %v1607_v19 = vld [vmem:[%s2234_s1 + $0x98] sm:$0xff]  ;;  %v1612_v20 = vld [vmem:[%s2234_s1 + $0xa0] sm:$0xff] }
   0xf   : > { %s1426_s24 = smul.u32 112, %s2489_s16  ;;  %2364 = vst [vmem:[#allocation20_spill] sm:$0xff] %v1602_v18  ;;  %2365 = vst [vmem:[#allocation21_spill] sm:$0xff] %v1607_v19  ;;  %v1622_v21 = vld [vmem:[%s2234_s1 + $0xa8] sm:$0xff]  ;;  %v1627_v22 = vld [vmem:[%s2234_s1 + $0xb0] sm:$0xff] }
  0x10   : > { %s1597_s7 = scalar_lea.vmem %s2233_s0, %s1425_s17  ;;  %2366 = vst [vmem:[#allocation22_spill] sm:$0xff] %v1612_v20  ;;  %2367 = vst [vmem:[#allocation23_spill] sm:$0xff] %v1622_v21  ;;  %v1632_v23 = vld [vmem:[%s2234_s1 + $0xb8] sm:$0xff]  ;;  %v1637_v24 = vld [vmem:[%s2234_s1 + $0xc0] sm:$0xff] }
  0x11   : > { %s1617_s17 = scalar_lea.vmem %s2237_s4, %s1426_s24  ;;  %2368 = vst [vmem:[#allocation24_spill] sm:$0xff] %v1627_v22  ;;  %2369 = vst [vmem:[#allocation25_spill] sm:$0xff] %v1632_v23  ;;  %v1642_v25 = vld [vmem:[%s2234_s1 + $0xc8] sm:$0xff]  ;;  %v1647_v26 = vld [vmem:[%s2234_s1 + $0xd0] sm:$0xff] }
  0x12   : > { %2370 = vst [vmem:[#allocation26_spill] sm:$0xff] %v1637_v24  ;;  %2371 = vst [vmem:[#allocation27_spill] sm:$0xff] %v1642_v25  ;;  %v1652_v27 = vld [vmem:[%s2234_s1 + $0xd8] sm:$0xff]  ;;  %v1657_v28 = vld [vmem:[%s2234_s1 + $0xe0] sm:$0xff] }
  0x13   : > { %2372 = vst [vmem:[#allocation28_spill] sm:$0xff] %v1647_v26  ;;  %2373 = vst [vmem:[#allocation29_spill] sm:$0xff] %v1652_v27  ;;  %v1662_v29 = vld [vmem:[%s2234_s1 + $0xe8] sm:$0xff]  ;;  %v1667_v30 = vld [vmem:[%s2234_s1 + $0xf0] sm:$0xff] }
  0x14   : > { %2374 = vst [vmem:[#allocation30_spill] sm:$0xff] %v1657_v28  ;;  %2375 = vst [vmem:[#allocation31_spill] sm:$0xff] %v1662_v29  ;;  %v1672_v31 = vld [vmem:[%s2234_s1 + $0xf8] sm:$0xff]  ;;  %v1677_v32 = vld [vmem:[%s2234_s1 + $0x100] sm:$0xff] }
  0x15   : > { %2376 = vst [vmem:[#allocation32_spill] sm:$0xff] %v1667_v30  ;;  %2377 = vst [vmem:[#allocation33_spill] sm:$0xff] %v1672_v31  ;;  %v1682_v33 = vld [vmem:[%s2234_s1 + $0x108] sm:$0xff]  ;;  %v1687_v34 = vld [vmem:[%s2234_s1 + $0x110] sm:$0xff] }
  0x16   : > { %2378 = vst [vmem:[#allocation34_spill] sm:$0xff] %v1677_v32  ;;  %2379 = vst [vmem:[#allocation35_spill] sm:$0xff] %v1682_v33  ;;  %v1692_v35 = vld [vmem:[%s2234_s1 + $0x118] sm:$0xff]  ;;  %v1697_v36 = vld [vmem:[%s2234_s1 + $0x120] sm:$0xff] }
  0x17   : > { %v1702_v37 = vld [vmem:[%s2234_s1 + $0x128] sm:$0xff]  ;;  %v1707_v38 = vld [vmem:[%s2234_s1 + $0x130] sm:$0xff]  ;;  %v1712_v39 = vld [vmem:[%s2234_s1 + $0x138] sm:$0xff] }
  0x18   : > { %v1717_v40 = vld [vmem:[%s2234_s1 + $0x140] sm:$0xff]  ;;  %v1722_v41 = vld [vmem:[%s2234_s1 + $0x148] sm:$0xff]  ;;  %v1727_v42 = vld [vmem:[%s2234_s1 + $0x150] sm:$0xff] }
  0x19   : > { %v1732_v43 = vld [vmem:[%s2234_s1 + $0x158] sm:$0xff]  ;;  %v1737_v44 = vld [vmem:[%s2234_s1 + $0x160] sm:$0xff]  ;;  %v1742_v45 = vld [vmem:[%s2234_s1 + $0x168] sm:$0xff] }
  0x1a   : > { %v1747_v46 = vld [vmem:[%s2234_s1 + $0x170] sm:$0xff]  ;;  %v1752_v47 = vld [vmem:[%s2234_s1 + $0x178] sm:$0xff]  ;;  %v1757_v48 = vld [vmem:[%s2234_s1 + $0x180] sm:$0xff] }
  0x1b   : > { %v1762_v49 = vld [vmem:[%s2234_s1 + $0x188] sm:$0xff]  ;;  %v1767_v50 = vld [vmem:[%s2234_s1 + $0x190] sm:$0xff]  ;;  %v1772_v51 = vld [vmem:[%s2234_s1 + $0x198] sm:$0xff] }
  0x1c   : > { %v1777_v52 = vld [vmem:[%s2234_s1 + $0x1a0] sm:$0xff]  ;;  %v1782_v53 = vld [vmem:[%s2234_s1 + $0x1a8] sm:$0xff]  ;;  %v1787_v54 = vld [vmem:[%s2234_s1 + $0x1b0] sm:$0xff] }
  0x1d   : > { %v1792_v55 = vld [vmem:[%s2234_s1 + $0x1b8] sm:$0xff]  ;;  %v1797_v56 = vld [vmem:[%s2234_s1 + $0x1c0] sm:$0xff]  ;;  %v1802_v57 = vld [vmem:[%s2234_s1 + $0x1c8] sm:$0xff] }
  0x1e   : > { %v1807_v58 = vld [vmem:[%s2234_s1 + $0x1d0] sm:$0xff]  ;;  %v1812_v59 = vld [vmem:[%s2234_s1 + $0x1d8] sm:$0xff]  ;;  %v1817_v60 = vld [vmem:[%s2234_s1 + $0x1e0] sm:$0xff] }
  0x1f   : > { %2380 = vst [vmem:[#allocation36_spill] sm:$0xff] %v1817_v60  ;;  %v1822_v61 = vld [vmem:[%s2234_s1 + $0x1e8] sm:$0xff]  ;;  %v1827_v62 = vld [vmem:[%s2234_s1 + $0x1f0] sm:$0xff]  ;;  %v1832_v63 = vld [vmem:[%s2234_s1 + $0x1f8] sm:$0xff] }
  0x20   : > { %2381 = vst [vmem:[#allocation37_spill] sm:$0xff] %v1827_v62  ;;  %2382 = vst [vmem:[#allocation38_spill] sm:$0xff] %v1832_v63  ;;  %v1837_v30 = vld [vmem:[%s2234_s1 + $0x200] sm:$0xff]  ;;  %v1842_v31 = vld [vmem:[%s2234_s1 + $0x208] sm:$0xff] }
  0x21   : > { %2383 = vst [vmem:[#allocation39_spill] sm:$0xff] %v1837_v30  ;;  %2384 = vst [vmem:[#allocation40_spill] sm:$0xff] %v1842_v31  ;;  %v1847_v28 = vld [vmem:[%s2234_s1 + $0x210] sm:$0xff]  ;;  %v1852_v62 = vld [vmem:[%s2234_s1 + $0x218] sm:$0xff] }
  0x22   : > { %2385 = vst [vmem:[#allocation41_spill] sm:$0xff] %v1847_v28  ;;  %2386 = vst [vmem:[#allocation42_spill] sm:$0xff] %v1852_v62  ;;  %v1857_v63 = vld [vmem:[%s2234_s1 + $0x220] sm:$0xff]  ;;  %v1862_v30 = vld [vmem:[%s2234_s1 + $0x228] sm:$0xff] }
  0x23   : > { %2387 = vst [vmem:[#allocation43_spill] sm:$0xff] %v1857_v63  ;;  %2388 = vst [vmem:[#allocation44_spill] sm:$0xff] %v1862_v30  ;;  %v1867_v31 = vld [vmem:[%s2234_s1 + $0x230] sm:$0xff]  ;;  %v1872_v28 = vld [vmem:[%s2234_s1 + $0x238] sm:$0xff] }
  0x24   : > { %2389 = vst [vmem:[#allocation45_spill] sm:$0xff] %v1867_v31  ;;  %2390 = vst [vmem:[#allocation46_spill] sm:$0xff] %v1872_v28  ;;  %v1877_v62 = vld [vmem:[%s2234_s1 + $0x240] sm:$0xff]  ;;  %v1882_v63 = vld [vmem:[%s2234_s1 + $0x248] sm:$0xff] }
  0x25   : > { %2391 = vst [vmem:[#allocation47_spill] sm:$0xff] %v1877_v62  ;;  %2392 = vst [vmem:[#allocation48_spill] sm:$0xff] %v1882_v63  ;;  %v1887_v30 = vld [vmem:[%s2234_s1 + $0x250] sm:$0xff]  ;;  %v1892_v31 = vld [vmem:[%s2234_s1 + $0x258] sm:$0xff] }
  0x26   : > { %2393 = vst [vmem:[#allocation49_spill] sm:$0xff] %v1887_v30  ;;  %2394 = vst [vmem:[#allocation50_spill] sm:$0xff] %v1892_v31  ;;  %v1897_v28 = vld [vmem:[%s2234_s1 + $0x260] sm:$0xff]  ;;  %v1902_v62 = vld [vmem:[%s2234_s1 + $0x268] sm:$0xff] }
  0x27   : > { %2395 = vst [vmem:[#allocation51_spill] sm:$0xff] %v1897_v28  ;;  %2396 = vst [vmem:[#allocation52_spill] sm:$0xff] %v1902_v62  ;;  %v1907_v63 = vld [vmem:[%s2234_s1 + $0x270] sm:$0xff]  ;;  %v1912_v30 = vld [vmem:[%s2234_s1 + $0x278] sm:$0xff] }
  0x28   : > { %2397 = vst [vmem:[#allocation53_spill] sm:$0xff] %v1907_v63  ;;  %2398 = vst [vmem:[#allocation54_spill] sm:$0xff] %v1912_v30  ;;  %v1917_v31 = vld [vmem:[%s2234_s1 + $0x280] sm:$0xff]  ;;  %v1922_v28 = vld [vmem:[%s2234_s1 + $0x288] sm:$0xff] }
  0x29   : > { %2399 = vst [vmem:[#allocation55_spill] sm:$0xff] %v1917_v31  ;;  %2400 = vst [vmem:[#allocation56_spill] sm:$0xff] %v1922_v28  ;;  %v1927_v62 = vld [vmem:[%s2234_s1 + $0x290] sm:$0xff]  ;;  %v1932_v63 = vld [vmem:[%s2234_s1 + $0x298] sm:$0xff] }
  0x2a   : > { %2401 = vst [vmem:[#allocation57_spill] sm:$0xff] %v1927_v62  ;;  %2402 = vst [vmem:[#allocation58_spill] sm:$0xff] %v1932_v63  ;;  %v1937_v30 = vld [vmem:[%s2234_s1 + $0x2a0] sm:$0xff]  ;;  %v1942_v31 = vld [vmem:[%s2234_s1 + $0x2a8] sm:$0xff] }
  0x2b   : > { %2403 = vst [vmem:[#allocation59_spill] sm:$0xff] %v1937_v30  ;;  %2404 = vst [vmem:[#allocation60_spill] sm:$0xff] %v1942_v31  ;;  %v1947_v28 = vld [vmem:[%s2234_s1 + $0x2b0] sm:$0xff]  ;;  %v1952_v62 = vld [vmem:[%s2234_s1 + $0x2b8] sm:$0xff] }
  0x2c   : > { %2405 = vst [vmem:[#allocation61_spill] sm:$0xff] %v1947_v28  ;;  %2406 = vst [vmem:[#allocation62_spill] sm:$0xff] %v1952_v62  ;;  %v1957_v63 = vld [vmem:[%s2234_s1 + $0x2c0] sm:$0xff]  ;;  %v1962_v30 = vld [vmem:[%s2234_s1 + $0x2c8] sm:$0xff] }
  0x2d   : > { %2407 = vst [vmem:[#allocation63_spill] sm:$0xff] %v1957_v63  ;;  %2408 = vst [vmem:[#allocation64_spill] sm:$0xff] %v1962_v30  ;;  %v1967_v31 = vld [vmem:[%s2234_s1 + $0x2d0] sm:$0xff]  ;;  %v1972_v28 = vld [vmem:[%s2234_s1 + $0x2d8] sm:$0xff] }
  0x2e   : > { %2409 = vst [vmem:[#allocation65_spill] sm:$0xff] %v1967_v31  ;;  %2410 = vst [vmem:[#allocation66_spill] sm:$0xff] %v1972_v28  ;;  %v1977_v62 = vld [vmem:[%s2234_s1 + $0x2e0] sm:$0xff]  ;;  %v1982_v63 = vld [vmem:[%s2234_s1 + $0x2e8] sm:$0xff] }
  0x2f   : > { %2411 = vst [vmem:[#allocation67_spill] sm:$0xff] %v1977_v62  ;;  %2412 = vst [vmem:[#allocation68_spill] sm:$0xff] %v1982_v63  ;;  %v1987_v30 = vld [vmem:[%s2234_s1 + $0x2f0] sm:$0xff]  ;;  %v1992_v31 = vld [vmem:[%s2234_s1 + $0x2f8] sm:$0xff] }
  0x30   : > { %2413 = vst [vmem:[#allocation69_spill] sm:$0xff] %v1987_v30  ;;  %2414 = vst [vmem:[#allocation70_spill] sm:$0xff] %v1992_v31  ;;  %v1997_v28 = vld [vmem:[%s2235_s2] sm:$0x3] }
  0x31   : > { %2415 = vst [vmem:[#allocation71_spill] sm:$0xff] %v1997_v28  ;;  %v2002_v62 = vld [vmem:[%s2236_s3] sm:$0x3] }
  0x32   : > { %2416 = vst [vmem:[#allocation72_spill] sm:$0xff] %v2002_v62 }
  0x33 LB: >> { %v2417_v33 = vld [vmem:[#allocation35_spill] sm:$0xff]  ;;  %v2418_v27 = vld [vmem:[#allocation29_spill] sm:$0xff]  ;;  %v2419_v26 = vld [vmem:[#allocation28_spill] sm:$0xff]  ;;  %v1264_v63 = vcombine.high %v1687_v34, %v1692_v35  ;;  %s1371_s9 = sshll.u32 %s1469_s8, 5  ;;  %v1263_v60 = vcombine.low %v1687_v34, %v1692_v35  ;;  %s1376_s11 = sshll.u32 %s1469_s8, 3  ;;  %s1469_s8 = sphi %s2004_s8, %s303_s8  }
  0x34   : >> { %v2420_v25 = vld [vmem:[#allocation27_spill] sm:$0xff]  ;;  %v2421_v24 = vld [vmem:[#allocation26_spill] sm:$0xff]  ;;  %v2422_v23 = vld [vmem:[#allocation25_spill] sm:$0xff]  ;;  %s2027_s10 = scalar_lea.vmem %s1597_s7, %s1371_s9  ;;  %s1096_s12 = scalar_lea.vmem %s1617_s17, %s1376_s11 }
  0x35   : >> { %v2423_v22 = vld [vmem:[#allocation24_spill] sm:$0xff]  ;;  %v2424_v21 = vld [vmem:[#allocation23_spill] sm:$0xff]  ;;  %v2425_v20 = vld [vmem:[#allocation22_spill] sm:$0xff]  ;;  %s303_s8 = sadd.s32 1, %s1469_s8  }
  0x36   : >> { %v2426_v19 = vld [vmem:[#allocation21_spill] sm:$0xff]  ;;  %v2427_v18 = vld [vmem:[#allocation20_spill] sm:$0xff]  ;;  %v2428_v17 = vld [vmem:[#allocation19_spill] sm:$0xff]  ;;  %p300_p4 = scmp.ge.s32.totalorder %s303_s8, 14  }
  0x37   : >> { %v2429_v16 = vld [vmem:[#allocation18_spill] sm:$0xff]  ;;  %v2430_v15 = vld [vmem:[#allocation17_spill] sm:$0xff]  ;;  %v2431_v14 = vld [vmem:[#allocation16_spill] sm:$0xff] }
  0x38   : >> { %v2432_v13 = vld [vmem:[#allocation15_spill] sm:$0xff]  ;;  %v2433_v12 = vld [vmem:[#allocation14_spill] sm:$0xff]  ;;  %v2434_v11 = vld [vmem:[#allocation13_spill] sm:$0xff] }
  0x39   : >> { %v2435_v10 = vld [vmem:[#allocation12_spill] sm:$0xff]  ;;  %v2436_v9 = vld [vmem:[#allocation11_spill] sm:$0xff]  ;;  %v2437_v8 = vld [vmem:[#allocation10_spill] sm:$0xff] }
  0x3a   : >> { %v2438_v7 = vld [vmem:[#allocation9_spill] sm:$0xff]  ;;  %v2439_v6 = vld [vmem:[#allocation8_spill] sm:$0xff]  ;;  %v2440_v5 = vld [vmem:[#allocation7_spill] sm:$0xff] }
  0x3b   : >> { %v2441_v4 = vld [vmem:[#allocation6_spill] sm:$0xff]  ;;  %v2442_v3 = vld [vmem:[#allocation5_spill] sm:$0xff]  ;;  %v2443_v2 = vld [vmem:[#allocation4_spill] sm:$0xff] }
  0x3c   : >> { %v2444_v1 = vld [vmem:[#allocation3_spill] sm:$0xff]  ;;  %v2445_v0 = vld [vmem:[#allocation2_spill] sm:$0xff]  ;;  %v1300_v29 = vcombine.high %v2443_v2, %v2442_v3 }
  0x3d   : >> { %v2446_v32 = vld [vmem:[#allocation34_spill] sm:$0xff]  ;;  %v1298_v28 = vcombine.high %v2445_v0, %v2444_v1  ;;  %v1297_v62 = vcombine.low %v2445_v0, %v2444_v1  ;;  %v1266_v0 = vcombine.high %v1697_v36, %v1702_v37  ;;  %v1301_v1 = vcombine.low %v2441_v4, %v2440_v5 }
  0x3e   : >> { %v1262_v30 = vcombine.high %v2446_v32, %v2417_v33  ;;  %v1261_v31 = vcombine.low %v2446_v32, %v2417_v33  ;;  %v1299_v32 = vcombine.low %v2443_v2, %v2442_v3  ;;  %v2449_v2 = vld [vmem:[#allocation30_spill] sm:$0xff] }
  0x3f   : >> { %741 = vmatprep.subr.bf16.mxu0 %v1298_v28  ;;  %v1302_v28 = vcombine.high %v2441_v4, %v2440_v5  ;;  %v2452_v5 = vld [vmem:[#allocation33_spill] sm:$0xff] }
  0x40   : >> { %508 = vmatprep.subr.bf16.mxu1 %v1262_v30  ;;  %742 = vmatpush1.bf16.msra.mxu0 %v1297_v62  ;;  %v2034_v30 = vld [vmem:[%s2027_s10 + $0x14] ss:$8 sps:$4 sm:$0xff]   ;;  %v1265_v62 = vcombine.low %v1697_v36, %v1702_v37 }
  0x41   : >> { %509 = vmatpush1.bf16.msra.mxu1 %v1261_v31  ;;  %743 = vmatprep.subr.bf16.mxu0 %v1300_v29  ;;  %v1448_v31 = vld [vmem:[%s2027_s10 + $0x4] ss:$8 sps:$4 sm:$0xff]   ;;  %v1268_v29 = vcombine.high %v1707_v38, %v1712_v39 }
  0x42   : >> { %510 = vmatprep.subr.bf16.mxu1 %v1264_v63  ;;  %v1304_v63 = vcombine.high %v2439_v6, %v2438_v7  ;;  %540 = vmatprep.mubr.bf16.mxu1 %v2034_v30 }
  0x43   : >> { %773 = vmatprep.mubr.bf16.mxu0 %v1448_v31  ;;  %v1269_v31 = vcombine.low %v1717_v40, %v1722_v41 }
  0x44   : >> { %744 = vmatpush1.bf16.msra.mxu0 %v1299_v32  ;;  %v1267_v32 = vcombine.low %v1707_v38, %v1712_v39 }
  0x45   : >> { %511 = vmatpush1.bf16.msra.mxu1 %v1263_v60  ;;  %745 = vmatprep.subr.bf16.mxu0 %v1302_v28  ;;  %v1303_v60 = vcombine.low %v2439_v6, %v2438_v7  ;;  %v1306_v28 = vcombine.high %v2437_v8, %v2436_v9  ;;  %v2453_v6 = vld [vmem:[#allocation32_spill] sm:$0xff] }
  0x46   : >> { %512 = vmatprep.subr.bf16.mxu1 %v1266_v0  ;;  %v1270_v0 = vcombine.high %v1717_v40, %v1722_v41  ;;  %v1328_v7 = vcombine.high %v2453_v6, %v2452_v5 }
  0x48   : >> { %746 = vmatpush1.bf16.msra.mxu0 %v1301_v1  ;;  %v1305_v1 = vcombine.low %v2437_v8, %v2436_v9  ;;  %v1443_v8 = vld [vmem:[%s2027_s10 + $0x10] ss:$8 sps:$4 sm:$0xff]   ;;  %v1446_v9 = vld [vmem:[%s2027_s10] ss:$8 sps:$4 sm:$0xff]  }
  0x49   : >> { %513 = vmatpush1.bf16.msra.mxu1 %v1265_v62  ;;  %747 = vmatprep.subr.bf16.mxu0 %v1304_v63  ;;  %v1272_v62 = vcombine.high %v1727_v42, %v1732_v43  ;;  %v1271_v63 = vcombine.low %v1727_v42, %v1732_v43 }
  0x4a   : >> { %514 = vmatprep.subr.bf16.mxu1 %v1268_v29  ;;  %v1308_v29 = vcombine.high %v2435_v10, %v2434_v11 }
  0x4c   : >> { %748 = vmatpush1.bf16.msra.mxu0 %v1303_v60  ;;  %v1274_v60 = vcombine.high %v1737_v44, %v1742_v45 }
  0x4d   : >> { %515 = vmatpush1.bf16.msra.mxu1 %v1267_v32  ;;  %749 = vmatprep.subr.bf16.mxu0 %v1306_v28  ;;  %v1307_v32 = vcombine.low %v2435_v10, %v2434_v11  ;;  %v1273_v28 = vcombine.low %v1737_v44, %v1742_v45  ;;  %v1449_v11 = vld [vmem:[%s2027_s10 + $0x24] ss:$8 sps:$4 sm:$0xff]  }
  0x4e   : >> { %516 = vmatprep.subr.bf16.mxu1 %v1270_v0  ;;  %v1310_v0 = vcombine.high %v2433_v12, %v2432_v13 }
  0x50   : >> { %750 = vmatpush1.bf16.msra.mxu0 %v1305_v1  ;;  %v1276_v1 = vcombine.high %v1747_v46, %v1752_v47 }
  0x51   : >> { %517 = vmatpush1.bf16.msra.mxu1 %v1269_v31  ;;  %751 = vmatprep.subr.bf16.mxu0 %v1308_v29  ;;  %v1309_v31 = vcombine.low %v2433_v12, %v2432_v13  ;;  %v1275_v29 = vcombine.low %v1747_v46, %v1752_v47 }
  0x52   : >> { %518 = vmatprep.subr.bf16.mxu1 %v1272_v62  ;;  %v1312_v62 = vcombine.high %v2431_v14, %v2430_v15 }
  0x54   : >> { %752 = vmatpush1.bf16.msra.mxu0 %v1307_v32  ;;  %v1278_v32 = vcombine.high %v1757_v48, %v1762_v49 }
  0x55   : >> { %519 = vmatpush1.bf16.msra.mxu1 %v1271_v63  ;;  %753 = vmatprep.subr.bf16.mxu0 %v1310_v0  ;;  %v1311_v63 = vcombine.low %v2431_v14, %v2430_v15  ;;  %v1277_v0 = vcombine.low %v1757_v48, %v1762_v49 }
  0x56   : >> { %520 = vmatprep.subr.bf16.mxu1 %v1274_v60  ;;  %v1314_v60 = vcombine.high %v2429_v16, %v2428_v17 }
  0x58   : >> { %754 = vmatpush1.bf16.msra.mxu0 %v1309_v31  ;;  %v1280_v31 = vcombine.high %v1767_v50, %v1772_v51 }
  0x59   : >> { %521 = vmatpush1.bf16.msra.mxu1 %v1273_v28  ;;  %755 = vmatprep.subr.bf16.mxu0 %v1312_v62  ;;  %v1313_v28 = vcombine.low %v2429_v16, %v2428_v17  ;;  %v1279_v62 = vcombine.low %v1767_v50, %v1772_v51 }
  0x5a   : >> { %522 = vmatprep.subr.bf16.mxu1 %v1276_v1  ;;  %v1316_v1 = vcombine.high %v2427_v18, %v2426_v19 }
  0x5c   : >> { %756 = vmatpush1.bf16.msra.mxu0 %v1311_v63  ;;  %v1282_v63 = vcombine.high %v1777_v52, %v1782_v53 }
  0x5d   : >> { %523 = vmatpush1.bf16.msra.mxu1 %v1275_v29  ;;  %757 = vmatprep.subr.bf16.mxu0 %v1314_v60  ;;  %v1315_v29 = vcombine.low %v2427_v18, %v2426_v19  ;;  %v1281_v60 = vcombine.low %v1777_v52, %v1782_v53 }
  0x5e   : >> { %524 = vmatprep.subr.bf16.mxu1 %v1278_v32  ;;  %v1318_v32 = vcombine.high %v2425_v20, %v2424_v21 }
  0x60   : >> { %758 = vmatpush1.bf16.msra.mxu0 %v1313_v28  ;;  %v1284_v28 = vcombine.high %v1787_v54, %v1792_v55 }
  0x61   : >> { %525 = vmatpush1.bf16.msra.mxu1 %v1277_v0  ;;  %759 = vmatprep.subr.bf16.mxu0 %v1316_v1  ;;  %v1317_v0 = vcombine.low %v2425_v20, %v2424_v21  ;;  %v1283_v1 = vcombine.low %v1787_v54, %v1792_v55  ;;  %v2486_v20 = vld [vmem:[#allocation71_spill] sm:$0xff] }
  0x62   : >> { %526 = vmatprep.subr.bf16.mxu1 %v1280_v31  ;;  %v1320_v31 = vcombine.high %v2423_v22, %v2422_v23 }
  0x64   : >> { %760 = vmatpush1.bf16.msra.mxu0 %v1315_v29  ;;  %v1286_v29 = vcombine.high %v1797_v56, %v1802_v57 }
  0x65   : >> { %527 = vmatpush1.bf16.msra.mxu1 %v1279_v62  ;;  %761 = vmatprep.subr.bf16.mxu0 %v1318_v32  ;;  %v1319_v62 = vcombine.low %v2423_v22, %v2422_v23  ;;  %v1285_v32 = vcombine.low %v1797_v56, %v1802_v57 }
  0x66   : >> { %528 = vmatprep.subr.bf16.mxu1 %v1282_v63  ;;  %v1322_v63 = vcombine.high %v2421_v24, %v2420_v25 }
  0x68   : >> { %762 = vmatpush1.bf16.msra.mxu0 %v1317_v0  ;;  %v1288_v0 = vcombine.high %v1807_v58, %v1812_v59 }
  0x69   : >> { %529 = vmatpush1.bf16.msra.mxu1 %v1281_v60  ;;  %763 = vmatprep.subr.bf16.mxu0 %v1320_v31  ;;  %v1321_v60 = vcombine.low %v2421_v24, %v2420_v25  ;;  %v1287_v31 = vcombine.low %v1807_v58, %v1812_v59 }
  0x6a   : >> { %530 = vmatprep.subr.bf16.mxu1 %v1284_v28  ;;  %v1324_v28 = vcombine.high %v2419_v26, %v2418_v27 }
  0x6c   : >> { %764 = vmatpush1.bf16.msra.mxu0 %v1319_v62  ;;  %v2447_v62 = vld [vmem:[#allocation36_spill] sm:$0xff] }
  0x6d   : >> { %531 = vmatpush1.bf16.msra.mxu1 %v1283_v1  ;;  %765 = vmatprep.subr.bf16.mxu0 %v1322_v63  ;;  %v1323_v1 = vcombine.low %v2419_v26, %v2418_v27  ;;  %v2448_v63 = vld [vmem:[#allocation31_spill] sm:$0xff] }
  0x6e   : >> { %532 = vmatprep.subr.bf16.mxu1 %v1286_v29  ;;  %v1290_v29 = vcombine.high %v2447_v62, %v1822_v61  ;;  %v1326_v3 = vcombine.high %v2449_v2, %v2448_v63 }
  0x70   : >> { %766 = vmatpush1.bf16.msra.mxu0 %v1321_v60  ;;  %v1325_v60 = vcombine.low %v2449_v2, %v2448_v63  ;;  %v2454_v2 = vld [vmem:[#allocation40_spill] sm:$0xff] }
  0x71   : >> { %533 = vmatpush1.bf16.msra.mxu1 %v1285_v32  ;;  %767 = vmatprep.subr.bf16.mxu0 %v1324_v28  ;;  %v1289_v32 = vcombine.low %v2447_v62, %v1822_v61  ;;  %v2451_v28 = vld [vmem:[#allocation37_spill] sm:$0xff] }
  0x72   : >> { %534 = vmatprep.subr.bf16.mxu1 %v1288_v0  ;;  %v2450_v0 = vld [vmem:[#allocation38_spill] sm:$0xff] }
  0x73   : >> { %v1292_v4 = vcombine.high %v2451_v28, %v2450_v0 }
  0x74   : >> { %768 = vmatpush1.bf16.msra.mxu0 %v1323_v1  ;;  %v1327_v1 = vcombine.low %v2453_v6, %v2452_v5  ;;  %v1454_v5 = vld [vmem:[%s2027_s10 + $0x34] ss:$8 sps:$4 sm:$0xff]  }
  0x75   : >> { %535 = vmatpush1.bf16.msra.mxu1 %v1287_v31  ;;  %769 = vmatprep.subr.bf16.mxu0 %v1326_v3  ;;  %v1291_v31 = vcombine.low %v2451_v28, %v2450_v0  ;;  %v2457_v0 = vld [vmem:[#allocation41_spill] sm:$0xff] }
  0x76   : >> { %536 = vmatprep.subr.bf16.mxu1 %v1290_v29  ;;  %v2455_v29 = vld [vmem:[#allocation39_spill] sm:$0xff] }
  0x77   : >> { %v1334_v3 = vcombine.high %v2455_v29, %v2454_v2 }
  0x78   : >> { %770 = vmatpush1.bf16.msra.mxu0 %v1325_v60  ;;  %v2456_v60 = vld [vmem:[#allocation42_spill] sm:$0xff] }
  0x79   : >> { %537 = vmatpush1.bf16.msra.mxu1 %v1289_v32  ;;  %771 = vmatprep.subr.bf16.mxu0 %v1328_v7  ;;  %v1333_v32 = vcombine.low %v2455_v29, %v2454_v2  ;;  %v1336_v10 = vcombine.high %v2457_v0, %v2456_v60  ;;  %v2458_v7 = vld [vmem:[#allocation44_spill] sm:$0xff]  ;;  %v2461_v2 = vld [vmem:[#allocation45_spill] sm:$0xff] }
  0x7a   : >> { %538 = vmatprep.subr.bf16.mxu1 %v1292_v4  ;;  %v1335_v4 = vcombine.low %v2457_v0, %v2456_v60 }
  0x7c   : >> { %772 = vmatpush1.bf16.msra.mxu0 %v1327_v1 }
  0x7d   : >> { %539 = vmatpush1.bf16.msra.mxu1 %v1291_v31  ;;  %974 = vmatprep.subr.bf16.mxu0 %v1334_v3  ;;  %v2459_v31 = vld [vmem:[#allocation43_spill] sm:$0xff] }
  0x7e   : >> { %1377 = vmatprep.subr.bf16.mxu1 %v1334_v3  ;;  %v1338_v1 = vcombine.high %v2459_v31, %v2458_v7  ;;  %v2161_v3 = vld [vmem:[%s2027_s10 + $0x20] ss:$8 sps:$4 sm:$0xff]  }
  0x7f   : >> { %774 = vmatmul.mubr.bf16.vlgmr.msra.gmra.mrb[0].mxu0 %v1446_v9  ;;  %v1337_v9 = vcombine.low %v2459_v31, %v2458_v7  ;;  %v2465_v7 = vld [vmem:[#allocation49_spill] sm:$0xff] }
  0x80   : >> { %541 = vmatmul.mubr.bf16.vlgmr.msra.gmra.mrb[0].mxu1 %v1443_v8  ;;  %975 = vmatpush1.bf16.msra.mxu0 %v1333_v32 }
  0x81   : >> { %1393 = vmatpush1.bf16.msra.mxu1 %v1333_v32  ;;  %976 = vmatprep.subr.bf16.mxu0 %v1336_v10  ;;  %v2460_v32 = vld [vmem:[#allocation46_spill] sm:$0xff] }
  0x82   : >> { %1378 = vmatprep.subr.bf16.mxu1 %v1336_v10  ;;  %550 = vmatprep.mubr.bf16.mxu1 %v1449_v11  ;;  %v1340_v0 = vcombine.high %v2461_v2, %v2460_v32  ;;  %v1339_v10 = vcombine.low %v2461_v2, %v2460_v32  ;;  %v2466_v2 = vld [vmem:[#allocation52_spill] sm:$0xff] }
  0x83   : >> { %783 = vmatprep.mubr.bf16.mxu0 %v2034_v30  ;;  %v2462_v30 = vld [vmem:[#allocation48_spill] sm:$0xff] }
  0x84   : >> { %977 = vmatpush1.bf16.msra.mxu0 %v1335_v4 }
  0x85   : >> { %1394 = vmatpush1.bf16.msra.mxu1 %v1335_v4  ;;  %978 = vmatprep.subr.bf16.mxu0 %v1338_v1  ;;  %v2463_v4 = vld [vmem:[#allocation47_spill] sm:$0xff] }
  0x86   : >> { %1379 = vmatprep.subr.bf16.mxu1 %v1338_v1  ;;  %v1342_v6 = vcombine.high %v2463_v4, %v2462_v30  ;;  %v1341_v1 = vcombine.low %v2463_v4, %v2462_v30  ;;  %v2469_v4 = vld [vmem:[#allocation53_spill] sm:$0xff] }
  0x87   : >> { %784 = vmatmul.mubr.bf16.gmra.mrb[4].mxu0 %v1443_v8  ;;  %v2464_v8 = vld [vmem:[#allocation50_spill] sm:$0xff] }
  0x88   : >> { %551 = vmatmul.mubr.bf16.gmra.mrb[4].mxu1 %v2161_v3  ;;  %979 = vmatpush1.bf16.msra.mxu0 %v1337_v9 }
  0x89   : >> { %1395 = vmatpush1.bf16.msra.mxu1 %v1337_v9  ;;  %980 = vmatprep.subr.bf16.mxu0 %v1340_v0  ;;  %v1344_v9 = vcombine.high %v2465_v7, %v2464_v8 }
  0x8a   : >> { %1380 = vmatprep.subr.bf16.mxu1 %v1340_v0  ;;  %1006 = vmatprep.mubr.bf16.mxu0 %v1449_v11  ;;  %v1343_v0 = vcombine.low %v2465_v7, %v2464_v8  ;;  %v2467_v11 = vld [vmem:[#allocation51_spill] sm:$0xff] }
  0x8b   : >> { %1016 = vmatprep.mubr.bf16.mxu1 %v1454_v5  ;;  %v1346_v5 = vcombine.high %v2467_v11, %v2466_v2  ;;  %v2471_v7 = vld [vmem:[#allocation55_spill] sm:$0xff] }
  0x8c   : >> { %981 = vmatpush1.bf16.msra.mxu0 %v1339_v10 }
  0x8d   : >> { %1396 = vmatpush1.bf16.msra.mxu1 %v1339_v10  ;;  %982 = vmatprep.subr.bf16.mxu0 %v1342_v6  ;;  %v1345_v10 = vcombine.low %v2467_v11, %v2466_v2  ;;  %v2473_v2 = vld [vmem:[#allocation57_spill] sm:$0xff] }
  0x8e   : >> { %1381 = vmatprep.subr.bf16.mxu1 %v1342_v6  ;;  %v2468_v6 = vld [vmem:[#allocation54_spill] sm:$0xff] }
  0x8f   : >> { %v1348_v12 = vcombine.high %v2469_v4, %v2468_v6 }
  0x90   : >> { %983 = vmatpush1.bf16.msra.mxu0 %v1341_v1 }
  0x91   : >> { %1397 = vmatpush1.bf16.msra.mxu1 %v1341_v1  ;;  %984 = vmatprep.subr.bf16.mxu0 %v1344_v9  ;;  %v1347_v1 = vcombine.low %v2469_v4, %v2468_v6  ;;  %v2475_v4 = vld [vmem:[#allocation59_spill] sm:$0xff] }
  0x92   : >> { %1382 = vmatprep.subr.bf16.mxu1 %v1344_v9  ;;  %v2470_v9 = vld [vmem:[#allocation56_spill] sm:$0xff] }
  0x93   : >> { %v1350_v8 = vcombine.high %v2471_v7, %v2470_v9 }
  0x94   : >> { %985 = vmatpush1.bf16.msra.mxu0 %v1343_v0 }
  0x95   : >> { %1398 = vmatpush1.bf16.msra.mxu1 %v1343_v0  ;;  %986 = vmatprep.subr.bf16.mxu0 %v1346_v5  ;;  %v1349_v0 = vcombine.low %v2471_v7, %v2470_v9  ;;  %v2477_v7 = vld [vmem:[#allocation61_spill] sm:$0xff] }
  0x96   : >> { %1383 = vmatprep.subr.bf16.mxu1 %v1346_v5  ;;  %v2472_v5 = vld [vmem:[#allocation58_spill] sm:$0xff] }
  0x97   : >> { %v1352_v11 = vcombine.high %v2473_v2, %v2472_v5 }
  0x98   : >> { %987 = vmatpush1.bf16.msra.mxu0 %v1345_v10 }
  0x99   : >> { %1399 = vmatpush1.bf16.msra.mxu1 %v1345_v10  ;;  %988 = vmatprep.subr.bf16.mxu0 %v1348_v12  ;;  %v1351_v10 = vcombine.low %v2473_v2, %v2472_v5  ;;  %v2479_v2 = vld [vmem:[#allocation63_spill] sm:$0xff] }
  0x9a   : >> { %1384 = vmatprep.subr.bf16.mxu1 %v1348_v12  ;;  %v2474_v12 = vld [vmem:[#allocation60_spill] sm:$0xff] }
  0x9b   : >> { %v1354_v6 = vcombine.high %v2475_v4, %v2474_v12 }
  0x9c   : >> { %989 = vmatpush1.bf16.msra.mxu0 %v1347_v1 }
  0x9d   : >> { %1400 = vmatpush1.bf16.msra.mxu1 %v1347_v1  ;;  %990 = vmatprep.subr.bf16.mxu0 %v1350_v8  ;;  %v1353_v1 = vcombine.low %v2475_v4, %v2474_v12  ;;  %v2481_v4 = vld [vmem:[#allocation65_spill] sm:$0xff] }
  0x9e   : >> { %1385 = vmatprep.subr.bf16.mxu1 %v1350_v8  ;;  %v2476_v8 = vld [vmem:[#allocation62_spill] sm:$0xff] }
  0x9f   : >> { %v1356_v9 = vcombine.high %v2477_v7, %v2476_v8 }
  0xa0   : >> { %991 = vmatpush1.bf16.msra.mxu0 %v1349_v0 }
  0xa1   : >> { %1401 = vmatpush1.bf16.msra.mxu1 %v1349_v0  ;;  %992 = vmatprep.subr.bf16.mxu0 %v1352_v11  ;;  %v1355_v0 = vcombine.low %v2477_v7, %v2476_v8  ;;  %v2483_v7 = vld [vmem:[#allocation67_spill] sm:$0xff] }
  0xa2   : >> { %1386 = vmatprep.subr.bf16.mxu1 %v1352_v11  ;;  %v2478_v11 = vld [vmem:[#allocation64_spill] sm:$0xff] }
  0xa3   : >> { %v1358_v5 = vcombine.high %v2479_v2, %v2478_v11 }
  0xa4   : >> { %993 = vmatpush1.bf16.msra.mxu0 %v1351_v10 }
  0xa5   : >> { %1402 = vmatpush1.bf16.msra.mxu1 %v1351_v10  ;;  %994 = vmatprep.subr.bf16.mxu0 %v1354_v6  ;;  %v1357_v10 = vcombine.low %v2479_v2, %v2478_v11  ;;  %v2485_v2 = vld [vmem:[#allocation69_spill] sm:$0xff] }
  0xa6   : >> { %1387 = vmatprep.subr.bf16.mxu1 %v1354_v6  ;;  %v2480_v6 = vld [vmem:[#allocation66_spill] sm:$0xff] }
  0xa7   : >> { %v1360_v12 = vcombine.high %v2481_v4, %v2480_v6 }
  0xa8   : >> { %995 = vmatpush1.bf16.msra.mxu0 %v1353_v1 }
  0xa9   : >> { %1403 = vmatpush1.bf16.msra.mxu1 %v1353_v1  ;;  %996 = vmatprep.subr.bf16.mxu0 %v1356_v9  ;;  %v1359_v1 = vcombine.low %v2481_v4, %v2480_v6 }
  0xaa   : >> { %1388 = vmatprep.subr.bf16.mxu1 %v1356_v9  ;;  %v2482_v9 = vld [vmem:[#allocation68_spill] sm:$0xff] }
  0xab   : >> { %v1362_v8 = vcombine.high %v2483_v7, %v2482_v9 }
  0xac   : >> { %997 = vmatpush1.bf16.msra.mxu0 %v1355_v0 }
  0xad   : >> { %1404 = vmatpush1.bf16.msra.mxu1 %v1355_v0  ;;  %998 = vmatprep.subr.bf16.mxu0 %v1358_v5  ;;  %v1361_v0 = vcombine.low %v2483_v7, %v2482_v9 }
  0xae   : >> { %1389 = vmatprep.subr.bf16.mxu1 %v1358_v5  ;;  %v2484_v5 = vld [vmem:[#allocation70_spill] sm:$0xff] }
  0xaf   : >> { %v1364_v11 = vcombine.high %v2485_v2, %v2484_v5 }
  0xb0   : >> { %999 = vmatpush1.bf16.msra.mxu0 %v1357_v10 }
  0xb1   : >> { %1405 = vmatpush1.bf16.msra.mxu1 %v1357_v10  ;;  %1000 = vmatprep.subr.bf16.mxu0 %v1360_v12  ;;  %v1363_v10 = vcombine.low %v2485_v2, %v2484_v5 }
  0xb2   : >> { %1390 = vmatprep.subr.bf16.mxu1 %v1360_v12  ;;  %v1452_v12 = vld [vmem:[%s2027_s10 + $0x30] ss:$8 sps:$4 sm:$0xff]  }
  0xb4   : >> { %1001 = vmatpush1.bf16.msra.mxu0 %v1359_v1 }
  0xb5   : >> { %1406 = vmatpush1.bf16.msra.mxu1 %v1359_v1  ;;  %1002 = vmatprep.subr.bf16.mxu0 %v1362_v8 }
  0xb6   : >> { %1391 = vmatprep.subr.bf16.mxu1 %v1362_v8 }
  0xb8   : >> { %1003 = vmatpush1.bf16.msra.mxu0 %v1361_v0 }
  0xb9   : >> { %1407 = vmatpush1.bf16.msra.mxu1 %v1361_v0  ;;  %1004 = vmatprep.subr.bf16.mxu0 %v1364_v11 }
  0xba   : >> { %1392 = vmatprep.subr.bf16.mxu1 %v1364_v11 }
  0xbc   : >> { %1005 = vmatpush1.bf16.msra.mxu0 %v1363_v10 }
  0xbd   : >> { %1408 = vmatpush1.bf16.msra.mxu1 %v1363_v10  ;;  %v1036_v10 = vlaneseq }
  0xbf   : >> { %1007 = vmatmul.mubr.bf16.vlgmr.msra.gmra.mrb[0].mxu0 %v2161_v3  ;;  %v1037_v19 = vshrl.u32 %v1036_v10, 7 }
  0xc0   : >> { %1017 = vmatmul.mubr.bf16.vlgmr.msra.gmra.mrb[8].mxu1 %v1452_v12 }
  0xc1   : >> { %v1038_v3 = vsub.s32 0, %v1037_v19  ;;  %v1042_v12 = vsub.s32 1, %v1037_v19 }
  0xc3   : >> { %v1039_v21 = vrot.slane %v2486_v20, %v1038_v3  ;;  %v1043_v24 = vrot.slane %v2486_v20, %v1042_v12 }
 0x153   : >> { %v542_v1 = vpop.f32.mrb[0].mxu1 }
 0x154   : >> { %v544_v4 = vpop.f32.mrb[1].mxu1 }
 0x155   : >> { %v546_v6 = vpop.f32.mrb[2].mxu1 }
 0x156   : >> { %v548_v8 = vpop.f32.mrb[3].mxu1 }
 0x15a   : >> { %v785_v9 = vpop.f32.mrb[4].mxu0 }
 0x15b   : >> { %v552_v7 = vpop.f32.mrb[4].mxu1  ;;  %v787_v0 = vpop.f32.mrb[5].mxu0 }
 0x15c   : >> { %v786_v13 = vadd.f32 %v785_v9, %v552_v7  ;;  %v554_v14 = vpop.f32.mrb[5].mxu1  ;;  %v789_v2 = vpop.f32.mrb[6].mxu0  ;;  %v2487_v9 = vld [vmem:[#allocation72_spill] sm:$0xff] }
 0x15d   : >> { %v788_v15 = vadd.f32 %v787_v0, %v554_v14  ;;  %v556_v16 = vpop.f32.mrb[6].mxu1  ;;  %v791_v17 = vpop.f32.mrb[7].mxu0  ;;  %v1058_v25 = vrot.slane %v2487_v9, %v1038_v3 }
 0x15e   : >> { %v790_v5 = vadd.f32 %v789_v2, %v556_v16  ;;  %v558_v11 = vpop.f32.mrb[7].mxu1  ;;  %v1062_v16 = vrot.slane %v2487_v9, %v1042_v12 }
 0x15f   : >> { %v792_v18 = vadd.f32 %v791_v17, %v558_v11 }
 0x192   : >> { %v1008_v22 = vpop.f32.mrb[0].mxu0 }
 0x193   : >> { %v1018_v23 = vpop.f32.mrb[8].mxu1  ;;  %v1409_v7 = vadd.f32 %v1008_v22, %v542_v1  ;;  %v1010_v0 = vpop.f32.mrb[1].mxu0 }
 0x194   : >> { %v1031_v14 = vadd.f32 %v1018_v23, %v786_v13  ;;  %v1020_v26 = vpop.f32.mrb[9].mxu1  ;;  %v1410_v2 = vadd.f32 %v1010_v0, %v544_v4  ;;  %v1012_v11 = vpop.f32.mrb[2].mxu0 }
 0x195   : >> { %v1032_v17 = vadd.f32 %v1020_v26, %v788_v15  ;;  %v1022_v10 = vpop.f32.mrb[10].mxu1  ;;  %v1046_v27 = vmul.f32 %v1409_v7, %v1039_v21  ;;  %v1411_v28 = vadd.f32 %v1012_v11, %v546_v6  ;;  %v1014_v30 = vpop.f32.mrb[3].mxu0 }
 0x196   : >> { %v1050_v19 = vmul.f32 %v1039_v21, %v1031_v14  ;;  %v1033_v29 = vadd.f32 %v1022_v10, %v790_v5  ;;  %v1024_v31 = vpop.f32.mrb[11].mxu1  ;;  %v1047_v32 = vmul.f32 %v1410_v2, %v1043_v24  ;;  %v1412_v22 = vadd.f32 %v1014_v30, %v548_v8 }
 0x197   : >> { %v1051_v20 = vmul.f32 %v1043_v24, %v1032_v17  ;;  %v1034_v1 = vadd.f32 %v1024_v31, %v792_v18  ;;  %v1065_v3 = vadd.f32 %v1058_v25, %v1046_v27  ;;  %v1048_v23 = vmul.f32 %v1411_v28, %v1039_v21 }
 0x198   : >> { %v1069_v13 = vadd.f32 %v1058_v25, %v1050_v19  ;;  %v1052_v33 = vmul.f32 %v1039_v21, %v1033_v29  ;;  %v1066_v4 = vadd.f32 %v1062_v16, %v1047_v32  ;;  %v1049_v15 = vmul.f32 %v1412_v22, %v1043_v24 }
 0x199   : >> { %v1070_v12 = vadd.f32 %v1062_v16, %v1051_v20  ;;  %v1053_v26 = vmul.f32 %v1043_v24, %v1034_v1  ;;  %v1073_v0 = vmax.f32 %v1065_v3, 0.0  ;;  %v1067_v14 = vadd.f32 %v1058_v25, %v1048_v23 }
 0x19a   : >> { %v1077_v7 = vmax.f32 %v1069_v13, 0.0  ;;  %v1071_v6 = vadd.f32 %v1058_v25, %v1052_v33  ;;  %v1074_v5 = vmax.f32 %v1066_v4, 0.0  ;;  %v1068_v2 = vadd.f32 %v1062_v16, %v1049_v15 }
 0x19b   : >> { %v1078_v11 = vmax.f32 %v1070_v12, 0.0  ;;  %v1072_v17 = vadd.f32 %v1062_v16, %v1053_v26  ;;  %v1075_v18 = vmax.f32 %v1067_v14, 0.0 }
 0x19c   : >> { %v1081_v30 = vmax.f32 %v1073_v0, %v1077_v7  ;;  %v1079_v27 = vmax.f32 %v1071_v6, 0.0  ;;  %v1076_v21 = vmax.f32 %v1068_v2, 0.0 }
 0x19d   : >> { %v1082_v31 = vmax.f32 %v1074_v5, %v1078_v11  ;;  %v1080_v28 = vmax.f32 %v1072_v17, 0.0 }
 0x19e   : >> { %v1083_v29 = vmax.f32 %v1075_v18, %v1079_v27 }
 0x19f   : >> { %v1085_v20 = vmax.f32 %v1081_v30, %v1082_v31  ;;  %v1084_v32 = vmax.f32 %v1076_v21, %v1080_v28  ;;  %302 = sbr.rel (!%p300_p4) target bundleno = 51 (0x33), region = 79 }
 0x1a1   : >> { %v1374_v24 = vpack.c.bf16 %v1085_v20, %v1085_v20  ;;  %v1086_v8 = vmax.f32 %v1083_v29, %v1084_v32 }
 0x1a3   : >> { %1097 = vst [vmem:[%s1096_s12] sm:$0xf] %v1374_v24  ;;  %v1375_v10 = vpack.c.bf16 %v1086_v8, %v1086_v8 }
 0x1a5   : >> { %1098 = vst [vmem:[%s1096_s12 + $0x4] sm:$0x7] %v1375_v10 }
 0x1a6 PF: > { %s14_s15 = sadd.s32 1, %s1465_s15  }
 0x1a7   : > { %p11_p5 = scmp.ge.s32.totalorder %s14_s15, 4  }
 0x1a9   :  { %13 = sbr.rel (!%p11_p5) target bundleno = 1 (0x1), region = 90 }

// kernel: simpsons_net2_forward.11
= control target key start
LH: loop header
LB: loop body
LE: loop exit
PB: predicated region body
PF: predicated region fallthrough
CT: control target
= control target key end

     0   :  { %v968_v36 = vmov 1983009808   ;;  %v28_v38 = vlaneseq  ;;  %s1266_s0 = inlined_call_operand.vmem [shape: f32[2,512], index: 0, kind: input, shape index: {}]   ;;  %s1267_s1 = inlined_call_operand.vmem [shape: bf16[512,256], index: 1, kind: input, shape index: {}]   ;;  %s1268_s2 = inlined_call_operand.vmem [shape: f32[1,256], index: 2, kind: input, shape index: {}]   ;;  %s1269_s3 = inlined_call_operand.vmem [shape: bf16[256,29], index: 3, kind: input, shape index: {}]   ;;  %s1270_s4 = inlined_call_operand.vmem [shape: f32[1,29], index: 4, kind: input, shape index: {}]   ;;  %s1271_s5 = inlined_call_operand.hbm [shape: f32[2,29], index: 5, kind: output, shape index: {}]  }
   0x1   :  { %v831_v0 = vld [vmem:[%s1267_s1 + $0x4] ss:$8 sps:$4 sm:$0xff]   ;;  %v835_v2 = vld [vmem:[%s1267_s1] ss:$8 sps:$4 sm:$0xff]   ;;  %v837_v4 = vld [vmem:[%s1267_s1 + $0x14] ss:$8 sps:$4 sm:$0xff]   ;;  %v26_v37 = vunpack.c.l.s4 %v968_v36 }
   0x2   :  { %v833_v1 = vld [vmem:[%s1267_s1 + $0x104] ss:$8 sps:$4 sm:$0xff]   ;;  %445 = vmatprep.subr.bf16.mxu1 %v831_v0  ;;  %v836_v3 = vld [vmem:[%s1267_s1 + $0x100] ss:$8 sps:$4 sm:$0xff]   ;;  %v839_v5 = vld [vmem:[%s1267_s1 + $0x114] ss:$8 sps:$4 sm:$0xff]  }
   0x3   :  { %486 = vmatprep.subr.bf16.mxu0 %v833_v1  ;;  %446 = vmatpush1.bf16.msra.mxu1 %v835_v2  ;;  %v841_v6 = vld [vmem:[%s1267_s1 + $0x10] ss:$8 sps:$4 sm:$0xff]   ;;  %v843_v8 = vld [vmem:[%s1267_s1 + $0x24] ss:$8 sps:$4 sm:$0xff]   ;;  %v847_v10 = vld [vmem:[%s1267_s1 + $0x20] ss:$8 sps:$4 sm:$0xff]   ;;  %v27_v42 = vunpack.c.0.s8 %v26_v37 }
   0x4   :  { %487 = vmatpush1.bf16.msra.mxu0 %v836_v3  ;;  %447 = vmatprep.subr.bf16.mxu1 %v837_v4  ;;  %v842_v7 = vld [vmem:[%s1267_s1 + $0x110] ss:$8 sps:$4 sm:$0xff]   ;;  %v845_v9 = vld [vmem:[%s1267_s1 + $0x124] ss:$8 sps:$4 sm:$0xff]   ;;  %v848_v11 = vld [vmem:[%s1267_s1 + $0x120] ss:$8 sps:$4 sm:$0xff]  }
   0x5   :  { %488 = vmatprep.subr.bf16.mxu0 %v839_v5  ;;  %v849_v12 = vld [vmem:[%s1267_s1 + $0x34] ss:$8 sps:$4 sm:$0xff]   ;;  %v853_v14 = vld [vmem:[%s1267_s1 + $0x30] ss:$8 sps:$4 sm:$0xff]   ;;  %v855_v16 = vld [vmem:[%s1267_s1 + $0x44] ss:$8 sps:$4 sm:$0xff]  }
   0x6   :  { %v851_v13 = vld [vmem:[%s1267_s1 + $0x134] ss:$8 sps:$4 sm:$0xff]   ;;  %v854_v15 = vld [vmem:[%s1267_s1 + $0x130] ss:$8 sps:$4 sm:$0xff]   ;;  %v857_v17 = vld [vmem:[%s1267_s1 + $0x144] ss:$8 sps:$4 sm:$0xff]  }
   0x7   :  { %448 = vmatpush1.bf16.msra.mxu1 %v841_v6  ;;  %v859_v18 = vld [vmem:[%s1267_s1 + $0x40] ss:$8 sps:$4 sm:$0xff]   ;;  %v861_v20 = vld [vmem:[%s1267_s1 + $0x54] ss:$8 sps:$4 sm:$0xff]   ;;  %v865_v22 = vld [vmem:[%s1267_s1 + $0x50] ss:$8 sps:$4 sm:$0xff]  }
   0x8   :  { %489 = vmatpush1.bf16.msra.mxu0 %v842_v7  ;;  %449 = vmatprep.subr.bf16.mxu1 %v843_v8  ;;  %v860_v19 = vld [vmem:[%s1267_s1 + $0x140] ss:$8 sps:$4 sm:$0xff]   ;;  %v863_v21 = vld [vmem:[%s1267_s1 + $0x154] ss:$8 sps:$4 sm:$0xff]   ;;  %v866_v23 = vld [vmem:[%s1267_s1 + $0x150] ss:$8 sps:$4 sm:$0xff]  }
   0x9   :  { %490 = vmatprep.subr.bf16.mxu0 %v845_v9  ;;  %v867_v24 = vld [vmem:[%s1267_s1 + $0x64] ss:$8 sps:$4 sm:$0xff]   ;;  %v871_v26 = vld [vmem:[%s1267_s1 + $0x60] ss:$8 sps:$4 sm:$0xff]   ;;  %v873_v28 = vld [vmem:[%s1267_s1 + $0x74] ss:$8 sps:$4 sm:$0xff]  }
   0xa   :  { %v869_v25 = vld [vmem:[%s1267_s1 + $0x164] ss:$8 sps:$4 sm:$0xff]   ;;  %v872_v27 = vld [vmem:[%s1267_s1 + $0x160] ss:$8 sps:$4 sm:$0xff]   ;;  %v875_v29 = vld [vmem:[%s1267_s1 + $0x174] ss:$8 sps:$4 sm:$0xff]  }
   0xb   :  { %450 = vmatpush1.bf16.msra.mxu1 %v847_v10  ;;  %v877_v30 = vld [vmem:[%s1267_s1 + $0x70] ss:$8 sps:$4 sm:$0xff]   ;;  %v879_v32 = vld [vmem:[%s1267_s1 + $0x84] ss:$8 sps:$4 sm:$0xff]   ;;  %v883_v34 = vld [vmem:[%s1267_s1 + $0x80] ss:$8 sps:$4 sm:$0xff]  }
   0xc   :  { %491 = vmatpush1.bf16.msra.mxu0 %v848_v11  ;;  %451 = vmatprep.subr.bf16.mxu1 %v849_v12  ;;  %v878_v31 = vld [vmem:[%s1267_s1 + $0x170] ss:$8 sps:$4 sm:$0xff]   ;;  %v881_v33 = vld [vmem:[%s1267_s1 + $0x184] ss:$8 sps:$4 sm:$0xff]   ;;  %v884_v35 = vld [vmem:[%s1267_s1 + $0x180] ss:$8 sps:$4 sm:$0xff]  }
   0xd   :  { %492 = vmatprep.subr.bf16.mxu0 %v851_v13  ;;  %v885_v39 = vld [vmem:[%s1267_s1 + $0x94] ss:$8 sps:$4 sm:$0xff]   ;;  %v889_v41 = vld [vmem:[%s1267_s1 + $0x90] ss:$8 sps:$4 sm:$0xff]   ;;  %v1117_v43 = vshrl.u32 %v28_v38, 7  ;;  %v22_v53 = vld [vmem:[%s1266_s0] sm:$0xff] }
   0xe   :  { %v887_v40 = vld [vmem:[%s1267_s1 + $0x194] ss:$8 sps:$4 sm:$0xff]   ;;  %v890_v44 = vld [vmem:[%s1267_s1 + $0x190] ss:$8 sps:$4 sm:$0xff]   ;;  %v891_v45 = vld [vmem:[%s1267_s1 + $0xa4] ss:$8 sps:$4 sm:$0xff]   ;;  %v24_v56 = vcombine.high %v22_v53, %v22_v53 }
   0xf   :  { %452 = vmatpush1.bf16.msra.mxu1 %v853_v14  ;;  %v893_v46 = vld [vmem:[%s1267_s1 + $0x1a4] ss:$8 sps:$4 sm:$0xff]   ;;  %v895_v47 = vld [vmem:[%s1267_s1 + $0xa0] ss:$8 sps:$4 sm:$0xff]   ;;  %v30_v49 = vsub.s32 %v27_v42, %v1117_v43  ;;  %v897_v50 = vld [vmem:[%s1267_s1 + $0xb4] ss:$8 sps:$4 sm:$0xff]  }
  0x10   :  { %493 = vmatpush1.bf16.msra.mxu0 %v854_v15  ;;  %453 = vmatprep.subr.bf16.mxu1 %v855_v16  ;;  %v896_v48 = vld [vmem:[%s1267_s1 + $0x1a0] ss:$8 sps:$4 sm:$0xff]   ;;  %v899_v51 = vld [vmem:[%s1267_s1 + $0x1b4] ss:$8 sps:$4 sm:$0xff]   ;;  %v901_v52 = vld [vmem:[%s1267_s1 + $0xb0] ss:$8 sps:$4 sm:$0xff]  }
  0x11   :  { %494 = vmatprep.subr.bf16.mxu0 %v857_v17  ;;  %v902_v54 = vld [vmem:[%s1267_s1 + $0x1b0] ss:$8 sps:$4 sm:$0xff]   ;;  %v31_v55 = vrot.slane %v22_v53, %v30_v49  ;;  %v903_v57 = vld [vmem:[%s1267_s1 + $0xc4] ss:$8 sps:$4 sm:$0xff]   ;;  %v38_v60 = vrot.slane %v24_v56, %v30_v49  ;;  %v907_v61 = vld [vmem:[%s1267_s1 + $0xc0] ss:$8 sps:$4 sm:$0xff]  }
  0x12   :  { %v905_v58 = vld [vmem:[%s1267_s1 + $0x1c4] ss:$8 sps:$4 sm:$0xff]   ;;  %v908_v62 = vld [vmem:[%s1267_s1 + $0x1c0] ss:$8 sps:$4 sm:$0xff]   ;;  %v909_v1 = vld [vmem:[%s1267_s1 + $0xd4] ss:$8 sps:$4 sm:$0xff]  }
  0x13   :  { %454 = vmatpush1.bf16.msra.mxu1 %v859_v18  ;;  %v39_v59 = vcombine.high %v31_v55, %v31_v55  ;;  %v40_v0 = vcombine.high %v38_v60, %v38_v60  ;;  %v911_v2 = vld [vmem:[%s1267_s1 + $0x1d4] ss:$8 sps:$4 sm:$0xff]   ;;  %v913_v4 = vld [vmem:[%s1267_s1 + $0xd0] ss:$8 sps:$4 sm:$0xff]   ;;  %v915_v6 = vld [vmem:[%s1267_s1 + $0xe4] ss:$8 sps:$4 sm:$0xff]  }
  0x14   :  { %495 = vmatpush1.bf16.msra.mxu0 %v860_v19  ;;  %455 = vmatprep.subr.bf16.mxu1 %v861_v20  ;;  %v914_v5 = vld [vmem:[%s1267_s1 + $0x1d0] ss:$8 sps:$4 sm:$0xff]   ;;  %v917_v7 = vld [vmem:[%s1267_s1 + $0x1e4] ss:$8 sps:$4 sm:$0xff]   ;;  %v919_v8 = vld [vmem:[%s1267_s1 + $0xe0] ss:$8 sps:$4 sm:$0xff]  }
  0x15   :  { %496 = vmatprep.subr.bf16.mxu0 %v863_v21  ;;  %v46_v63 = vpack.c.bf16 %v39_v59, %v39_v59  ;;  %v48_v3 = vpack.c.bf16 %v40_v0, %v40_v0  ;;  %v920_v9 = vld [vmem:[%s1267_s1 + $0x1e0] ss:$8 sps:$4 sm:$0xff]   ;;  %v921_v10 = vld [vmem:[%s1267_s1 + $0xf4] ss:$8 sps:$4 sm:$0xff]  }
  0x16   :  { %v923_v11 = vld [vmem:[%s1267_s1 + $0x1f4] ss:$8 sps:$4 sm:$0xff]  }
  0x17   :  { %456 = vmatpush1.bf16.msra.mxu1 %v865_v22  ;;  %477 = vmatprep.mubr.bf16.mxu1 %v46_v63 }
  0x18   :  { %497 = vmatpush1.bf16.msra.mxu0 %v866_v23  ;;  %457 = vmatprep.subr.bf16.mxu1 %v867_v24 }
  0x19   :  { %498 = vmatprep.subr.bf16.mxu0 %v869_v25  ;;  %518 = vmatprep.mubr.bf16.mxu0 %v48_v3 }
  0x1b   :  { %458 = vmatpush1.bf16.msra.mxu1 %v871_v26 }
  0x1c   :  { %499 = vmatpush1.bf16.msra.mxu0 %v872_v27  ;;  %459 = vmatprep.subr.bf16.mxu1 %v873_v28 }
  0x1d   :  { %500 = vmatprep.subr.bf16.mxu0 %v875_v29 }
  0x1f   :  { %460 = vmatpush1.bf16.msra.mxu1 %v877_v30 }
  0x20   :  { %501 = vmatpush1.bf16.msra.mxu0 %v878_v31  ;;  %461 = vmatprep.subr.bf16.mxu1 %v879_v32 }
  0x21   :  { %502 = vmatprep.subr.bf16.mxu0 %v881_v33 }
  0x23   :  { %462 = vmatpush1.bf16.msra.mxu1 %v883_v34 }
  0x24   :  { %503 = vmatpush1.bf16.msra.mxu0 %v884_v35  ;;  %463 = vmatprep.subr.bf16.mxu1 %v885_v39 }
  0x25   :  { %504 = vmatprep.subr.bf16.mxu0 %v887_v40 }
  0x27   :  { %464 = vmatpush1.bf16.msra.mxu1 %v889_v41 }
  0x28   :  { %505 = vmatpush1.bf16.msra.mxu0 %v890_v44  ;;  %465 = vmatprep.subr.bf16.mxu1 %v891_v45 }
  0x29   :  { %506 = vmatprep.subr.bf16.mxu0 %v893_v46 }
  0x2b   :  { %466 = vmatpush1.bf16.msra.mxu1 %v895_v47 }
  0x2c   :  { %507 = vmatpush1.bf16.msra.mxu0 %v896_v48  ;;  %467 = vmatprep.subr.bf16.mxu1 %v897_v50 }
  0x2d   :  { %508 = vmatprep.subr.bf16.mxu0 %v899_v51 }
  0x2f   :  { %468 = vmatpush1.bf16.msra.mxu1 %v901_v52 }
  0x30   :  { %509 = vmatpush1.bf16.msra.mxu0 %v902_v54  ;;  %469 = vmatprep.subr.bf16.mxu1 %v903_v57 }
  0x31   :  { %510 = vmatprep.subr.bf16.mxu0 %v905_v58 }
  0x33   :  { %470 = vmatpush1.bf16.msra.mxu1 %v907_v61 }
  0x34   :  { %511 = vmatpush1.bf16.msra.mxu0 %v908_v62  ;;  %471 = vmatprep.subr.bf16.mxu1 %v909_v1 }
  0x35   :  { %512 = vmatprep.subr.bf16.mxu0 %v911_v2 }
  0x37   :  { %472 = vmatpush1.bf16.msra.mxu1 %v913_v4 }
  0x38   :  { %513 = vmatpush1.bf16.msra.mxu0 %v914_v5  ;;  %473 = vmatprep.subr.bf16.mxu1 %v915_v6 }
  0x39   :  { %514 = vmatprep.subr.bf16.mxu0 %v917_v7 }
  0x3a   :  { %10 = vsyncpa [#allocation3], 0  ;;  %v925_v12 = vld [vmem:[%s1267_s1 + $0xf0] ss:$8 sps:$4 sm:$0xff]   ;;  %v928_v14 = vld [vmem:[%s1269_s3 + $0x40] sm:$0xff]   ;;  %v45_v15 = vpack.c.bf16 %v31_v55, %v31_v55  ;;  %v47_v16 = vpack.c.bf16 %v38_v60, %v38_v60  ;;  %v117_v32 = vsub.s32 0, %v1117_v43 }
  0x3b   :  { %474 = vmatpush1.bf16.msra.mxu1 %v919_v8  ;;  %v926_v13 = vld [vmem:[%s1267_s1 + $0x1f0] ss:$8 sps:$4 sm:$0xff]   ;;  %v929_v17 = vld [vmem:[%s1269_s3] sm:$0xff]   ;;  %v930_v18 = vld [vmem:[%s1269_s3 + $0x48] sm:$0xff]   ;;  %v121_v34 = vsub.s32 1, %v1117_v43  ;;  %s969_s27 = smov [#allocation2]  }
  0x3c   :  { %515 = vmatpush1.bf16.msra.mxu0 %v920_v9  ;;  %475 = vmatprep.subr.bf16.mxu1 %v921_v10  ;;  %v931_v19 = vld [vmem:[%s1269_s3 + $0x8] sm:$0xff]   ;;  %v932_v20 = vld [vmem:[%s1269_s3 + $0x50] sm:$0xff]   ;;  %v934_v22 = vld [vmem:[%s1269_s3 + $0x58] sm:$0xff]   ;;  %s714_s28 = sshll.u32 %s969_s27, 4  ;;  %vm706_vm0 = vcmask 230400   ;;  %s715_s28 = int_to_ptr.vmem [resolvable:$true] %s714_s28 }
  0x3d   :  { %516 = vmatprep.subr.bf16.mxu0 %v923_v11  ;;  %v933_v21 = vld [vmem:[%s1269_s3 + $0x10] sm:$0xff]   ;;  %v935_v23 = vld [vmem:[%s1269_s3 + $0x18] sm:$0xff]   ;;  %v936_v24 = vld [vmem:[%s1269_s3 + $0x60] sm:$0xff]   ;;  %s944_s29 = scalar_lea.vmem %s715_s28, 32  ;;  %p949_p1 = scmp.lt.s32.totalorder %s715_s28, %s715_s28 }
  0x3e   :  { %v937_v25 = vld [vmem:[%s1269_s3 + $0x20] sm:$0xff]   ;;  %v938_v26 = vld [vmem:[%s1269_s3 + $0x68] sm:$0xff]   ;;  %v940_v28 = vld [vmem:[%s1269_s3 + $0x70] sm:$0xff]   ;;  %p945_p0 = scmp.ne.s32.totalorder %s715_s28, %s944_s29  ;;  %p950_p2 = scmp.lt.s32.totalorder %s944_s29, %s944_s29 }
  0x3f   :  { %476 = vmatpush1.bf16.msra.mxu1 %v925_v12  ;;  %v939_v27 = vld [vmem:[%s1269_s3 + $0x28] sm:$0xff]   ;;  %v941_v29 = vld [vmem:[%s1269_s3 + $0x30] sm:$0xff]   ;;  %v942_v30 = vld [vmem:[%s1269_s3 + $0x78] sm:$0xff]  }
  0x40   :  { %517 = vmatpush1.bf16.msra.mxu0 %v926_v13  ;;  %803 = vmatprep.subr.bf16.mxu1 %v928_v14  ;;  %v943_v31 = vld [vmem:[%s1269_s3 + $0x38] sm:$0xff]   ;;  %v113_v33 = vld [vmem:[%s1268_s2] sm:$0x3]  ;;  %p951_p3 = por %p950_p2, %p949_p1 }
  0x41   :  { %v118_v35 = vrot.slane %v113_v33, %v117_v32  ;;  %v122_v36 = vrot.slane %v113_v33, %v121_v34  ;;  %v786_v54 = vld [vmem:[%s1270_s4] ss:$0 sm:$0xff] }
  0x42   :  { %478 = vmatmul.mubr.bf16.vlgmr.msra.gmra.mrb[0].mxu1 %v45_v15  ;;  %p952_p4 = pnand %p951_p3, %p945_p0 }
  0x43   :  { %519 = vmatmul.mubr.bf16.vlgmr.msra.gmra.mrb[0].mxu0 %v47_v16  ;;  %804 = vmatpush3.bf16.msra.mxu1 %v929_v17 }
  0x44   :  { %805 = vmatprep.subr.bf16.mxu1 %v930_v18 }
  0x47   :  { %806 = vmatpush3.bf16.msra.mxu1 %v931_v19 }
  0x48   :  { %807 = vmatprep.subr.bf16.mxu1 %v932_v20 }
  0x4b   :  { %808 = vmatpush3.bf16.msra.mxu1 %v933_v21 }
  0x4c   :  { %809 = vmatprep.subr.bf16.mxu1 %v934_v22 }
  0x4f   :  { %810 = vmatpush3.bf16.msra.mxu1 %v935_v23 }
  0x50   :  { %811 = vmatprep.subr.bf16.mxu1 %v936_v24 }
  0x53   :  { %812 = vmatpush3.bf16.msra.mxu1 %v937_v25 }
  0x54   :  { %813 = vmatprep.subr.bf16.mxu1 %v938_v26 }
  0x57   :  { %814 = vmatpush3.bf16.msra.mxu1 %v939_v27 }
  0x58   :  { %815 = vmatprep.subr.bf16.mxu1 %v940_v28 }
  0x5b   :  { %816 = vmatpush3.bf16.msra.mxu1 %v941_v29 }
  0x5c   :  { %817 = vmatprep.subr.bf16.mxu1 %v942_v30 }
  0x5f   :  { %818 = vmatpush3.bf16.msra.mxu1 %v943_v31 }
 0x115   :  { %v479_v37 = vpop.f32.mrb[0].mxu1 }
 0x116   :  { %v520_v38 = vpop.f32.mrb[0].mxu0  ;;  %v480_v39 = vadd.f32 %v479_v37, %v118_v35  ;;  %v481_v40 = vpop.f32.mrb[1].mxu1 }
 0x117   :  { %v522_v41 = vpop.f32.mrb[1].mxu0  ;;  %v482_v42 = vadd.f32 %v481_v40, %v122_v36  ;;  %v483_v44 = vpop.f32.mrb[2].mxu1 }
 0x118   :  { %v524_v45 = vpop.f32.mrb[2].mxu0  ;;  %v521_v46 = vadd.f32 %v520_v38, %v480_v39  ;;  %v484_v47 = vpop.f32.mrb[3].mxu1 }
 0x119   :  { %v525_v48 = vpop.f32.mrb[3].mxu0  ;;  %v523_v49 = vadd.f32 %v522_v41, %v482_v42 }
 0x11a   :  { %v527_v50 = vmax.f32 %v521_v46, 0.0 }
 0x11b   :  { %v528_v51 = vmax.f32 %v523_v49, 0.0 }
 0x11c   :  { %v529_v53 = vpack.c.bf16 %v527_v50, %v527_v50 }
 0x11d   :  { %v530_v52 = vpack.c.bf16 %v528_v51, %v528_v51 }
 0x11f   :  { %698 = vmatprep.mubr.bf16.mxu1 %v530_v52 }
 0x120   :  { %699 = vmatmul.mubr.bf16.vlgmr.msra.gmra.mrb[4].mxu1 %v529_v53 }
 0x1f3   :  { %v819_v43 = vpop.f32.mrb[4].mxu1 }
 0x1f4   :  { %v820_v55 = vpop.f32.mrb[5].mxu1 }
 0x1f5   :  { %v821_v56 = vadd.f32 %v820_v55, %v819_v43  ;;  %v822_v57 = vpop.f32.mrb[6].mxu1 }
 0x1f6   :  { %v823_v58 = vpop.f32.mrb[7].mxu1 }
 0x1f7   :  { %v701_v59 = vadd.f32 %v821_v56, %v786_v54 }
 0x1f9   :  { %707 = vst.msk [vmem:[#allocation2] sm:$0x3] %vm706_vm0, %v701_v59 }
 0x1fa   :  { %955 = shalt.err (!%p952_p4)
}
 0x1fb   :  { %s956_s4 = scalar_lea.hbm %s1271_s5, 32 }
 0x1fc   :  { %p957_p5 = scmp.ne.s32.totalorder %s1271_s5, %s956_s4  ;;  %p960_p6 = scmp.lt.u32.totalorder %s956_s4, %s1271_s5 }
 0x1fe   :  { %p962_p7 = pnand %p960_p6, %p957_p5 }
 0x200   :  { %965 = shalt.err (!%p962_p7)
}
 0x201   :  { %717 = dma.vmem_to_hbm [thread:$0]  %s715_s28, 32, %s1271_s5, [#allocation3]  }
 0x202   :  { %966 = dma.done.wait [#allocation3], 32  }
 0x203   :  { %967 = vsyncadd [#allocation3], 4294967264 }
 0x204   :  { %721 = vsyncpa [#allocation3], 1 }

// kernel: simpsons_net2_forward.10
= control target key start
LH: loop header
LB: loop body
LE: loop exit
PB: predicated region body
PF: predicated region fallthrough
CT: control target
= control target key end

     0   :  { %s15045_s12 = smov 0   ;;  %s15047_s13 = smov 0   ;;  %s17750_s0 = inlined_call_operand.vmem [shape: bf16[2,25088], index: 0, kind: input, shape index: {}]   ;;  %s17751_s1 = inlined_call_operand.vmem [shape: bf16[25088,512], index: 1, kind: input, shape index: {}]   ;;  %s17752_s2 = inlined_call_operand.vmem [shape: f32[1,512], index: 2, kind: input, shape index: {}]   ;;  %s17753_s3 = inlined_call_operand.vmem [shape: f32[2,512], index: 3, kind: output, shape index: {}]  }
   0x1   :  { %s15049_s14 = smov 0   ;;  %s15051_s15 = smov 0  }
   0x2   :  { %s15053_s16 = smov 0   ;;  %s15055_s17 = smov 0  }
   0x3   :  { %s15057_s18 = smov 0  }
   0x4 LB: > { %s22_s19 = sadd.s32 1, %s15011_s16  ;;  %s25_s20 = sadd.s32 1, %s15015_s17  ;;  %s15019_s18 = sphi %s15057_s18, %s13_s18   ;;  %s15015_s17 = sphi %s15055_s17, %s17759_s17   ;;  %s15011_s16 = sphi %s15053_s16, %s17758_s16   ;;  %s15007_s15 = sphi %s15051_s15, %s17757_s15   ;;  %s15003_s14 = sphi %s15049_s14, %s17756_s14   ;;  %s14999_s13 = sphi %s15047_s13, %s17755_s13   ;;  %s14995_s12 = sphi %s15045_s12, %s17754_s12  }
   0x5   : > { %p23_p0 = scmp.ge.s32.totalorder %s22_s19, 4  ;;  %p67_p1 = scmp.ne.s32.totalorder %s14999_s13, %s14995_s12 }
   0x6   : > { %p68_p2 = scmp.eq.s32.totalorder %s15019_s18, 0  ;;  %s60_s24 = sadd.s32 1, %s14999_s13 }
   0x7   : > { %s17761_s19 = smov (%p23_p0, %s22_s19), 0  ;;  %s17763_s20 = smov (!%p23_p0, %s25_s20), %s15015_s17 }
   0x8   : > { %p69_p3 = por %p68_p2, %p67_p1  ;;  %p27_p4 = scmp.ge.s32.totalorder %s17763_s20, 2 }
   0x9   : > { %s55_s21 = ssub.s32 %s15011_s16, %s17761_s19  ;;  %p12825_p6 = scmp.ge.s32.totalorder %s15019_s18, 8 }
   0xa   : > { %s17765_s20 = smov (%p27_p4, %s17763_s20), 0 }
   0xb   : > { %s56_s22 = ssub.s32 %s15015_s17, %s17765_s20  ;;  %145 = sbr.rel (%p12825_p6) target bundleno = 418 (0x1a2), region = 16 }
   0xc   : > { %s57_s23 = sor.u32 %s56_s22, %s55_s21 }
   0xd   : > { %p58_p5 = scmp.eq.s32.totalorder %s57_s23, 0 }
   0xf   : > { %s15096_s25 = scalar_select %p58_p5, %s14999_s13, %s60_s24  }
  0x12   : > { %156 = sbr.rel (!%p69_p3) target bundleno = 418 (0x1a2), region = 24  ;;  %s158_s26 = sand.u32 (%p69_p3), 1, %s14999_s13  }
  0x13   : > { %s13717_s27 = smul.u32 (%p69_p3), 6272, %s158_s26  ;;  %s12826_s28 = sshll.u32 (%p69_p3), %s15015_s17, 1 }
  0x14   : > { %s13622_s29 = smul.u32 (%p69_p3), 3136, %s15011_s16 }
  0x15   : > { %s15110_s8 = scalar_lea.vmem (%p69_p3), [#allocation2], %s13717_s27 }
  0x16   : > { %s164_s30 = sadd.s32 (%p69_p3), %s13622_s29, %s12826_s28 }
  0x17   : > { %s12828_s4 = sshll.u32 (%p69_p3), %s164_s30, 2 }
  0x18   : > { %s15105_s7 = scalar_lea.vmem (%p69_p3), %s17751_s1, %s12828_s4 }
  0x19   : > { %v1763_v0 = vld [vmem:[%s15105_s7] sm:$0xff]  ;;  %v1765_v1 = vld [vmem:[%s15105_s7 + $0x10] sm:$0xff] }
  0x1a   : > { %v1767_v2 = vld [vmem:[%s15105_s7 + $0x20] sm:$0xff]  ;;  %1764 = vst [vmem:[%s15110_s8] sm:$0xff] %v1763_v0  ;;  %1766 = vst [vmem:[%s15110_s8 + $0x8] sm:$0xff] %v1765_v1  ;;  %v1769_v3 = vld [vmem:[%s15105_s7 + $0x30] sm:$0xff] }
  0x1b   : > { %1768 = vst [vmem:[%s15110_s8 + $0x10] sm:$0xff] %v1767_v2  ;;  %v1771_v4 = vld [vmem:[%s15105_s7 + $0x40] sm:$0xff]  ;;  %v1773_v5 = vld [vmem:[%s15105_s7 + $0x50] sm:$0xff]  ;;  %1770 = vst [vmem:[%s15110_s8 + $0x18] sm:$0xff] %v1769_v3 }
  0x1c   : > { %1772 = vst [vmem:[%s15110_s8 + $0x20] sm:$0xff] %v1771_v4  ;;  %1774 = vst [vmem:[%s15110_s8 + $0x28] sm:$0xff] %v1773_v5  ;;  %v1775_v6 = vld [vmem:[%s15105_s7 + $0x60] sm:$0xff]  ;;  %v1777_v7 = vld [vmem:[%s15105_s7 + $0x70] sm:$0xff] }
  0x1d   : > { %v1779_v8 = vld [vmem:[%s15105_s7 + $0x80] sm:$0xff]  ;;  %1776 = vst [vmem:[%s15110_s8 + $0x30] sm:$0xff] %v1775_v6  ;;  %1778 = vst [vmem:[%s15110_s8 + $0x38] sm:$0xff] %v1777_v7  ;;  %v1781_v9 = vld [vmem:[%s15105_s7 + $0x90] sm:$0xff] }
  0x1e   : > { %1780 = vst [vmem:[%s15110_s8 + $0x40] sm:$0xff] %v1779_v8  ;;  %v1783_v10 = vld [vmem:[%s15105_s7 + $0xa0] sm:$0xff]  ;;  %v1785_v11 = vld [vmem:[%s15105_s7 + $0xb0] sm:$0xff]  ;;  %1782 = vst [vmem:[%s15110_s8 + $0x48] sm:$0xff] %v1781_v9 }
  0x1f   : > { %1784 = vst [vmem:[%s15110_s8 + $0x50] sm:$0xff] %v1783_v10  ;;  %1786 = vst [vmem:[%s15110_s8 + $0x58] sm:$0xff] %v1785_v11  ;;  %v1787_v12 = vld [vmem:[%s15105_s7 + $0xc0] sm:$0xff]  ;;  %v1789_v13 = vld [vmem:[%s15105_s7 + $0xd0] sm:$0xff] }
  0x20   : > { %v1791_v14 = vld [vmem:[%s15105_s7 + $0xe0] sm:$0xff]  ;;  %1788 = vst [vmem:[%s15110_s8 + $0x60] sm:$0xff] %v1787_v12  ;;  %1790 = vst [vmem:[%s15110_s8 + $0x68] sm:$0xff] %v1789_v13  ;;  %v1793_v15 = vld [vmem:[%s15105_s7 + $0xf0] sm:$0xff] }
  0x21   : > { %1792 = vst [vmem:[%s15110_s8 + $0x70] sm:$0xff] %v1791_v14  ;;  %v1795_v16 = vld [vmem:[%s15105_s7 + $0x100] sm:$0xff]  ;;  %v1797_v17 = vld [vmem:[%s15105_s7 + $0x110] sm:$0xff]  ;;  %1794 = vst [vmem:[%s15110_s8 + $0x78] sm:$0xff] %v1793_v15 }
  0x22   : > { %1796 = vst [vmem:[%s15110_s8 + $0x80] sm:$0xff] %v1795_v16  ;;  %1798 = vst [vmem:[%s15110_s8 + $0x88] sm:$0xff] %v1797_v17  ;;  %v1799_v18 = vld [vmem:[%s15105_s7 + $0x120] sm:$0xff]  ;;  %v1801_v19 = vld [vmem:[%s15105_s7 + $0x130] sm:$0xff] }
  0x23   : > { %v1803_v20 = vld [vmem:[%s15105_s7 + $0x140] sm:$0xff]  ;;  %1800 = vst [vmem:[%s15110_s8 + $0x90] sm:$0xff] %v1799_v18  ;;  %1802 = vst [vmem:[%s15110_s8 + $0x98] sm:$0xff] %v1801_v19  ;;  %v1805_v21 = vld [vmem:[%s15105_s7 + $0x150] sm:$0xff] }
  0x24   : > { %1804 = vst [vmem:[%s15110_s8 + $0xa0] sm:$0xff] %v1803_v20  ;;  %v1807_v22 = vld [vmem:[%s15105_s7 + $0x160] sm:$0xff]  ;;  %v1809_v23 = vld [vmem:[%s15105_s7 + $0x170] sm:$0xff]  ;;  %1806 = vst [vmem:[%s15110_s8 + $0xa8] sm:$0xff] %v1805_v21 }
  0x25   : > { %1808 = vst [vmem:[%s15110_s8 + $0xb0] sm:$0xff] %v1807_v22  ;;  %1810 = vst [vmem:[%s15110_s8 + $0xb8] sm:$0xff] %v1809_v23  ;;  %v1811_v24 = vld [vmem:[%s15105_s7 + $0x180] sm:$0xff]  ;;  %v1813_v25 = vld [vmem:[%s15105_s7 + $0x190] sm:$0xff] }
  0x26   : > { %v1815_v26 = vld [vmem:[%s15105_s7 + $0x1a0] sm:$0xff]  ;;  %1812 = vst [vmem:[%s15110_s8 + $0xc0] sm:$0xff] %v1811_v24  ;;  %1814 = vst [vmem:[%s15110_s8 + $0xc8] sm:$0xff] %v1813_v25  ;;  %v1817_v27 = vld [vmem:[%s15105_s7 + $0x1b0] sm:$0xff] }
  0x27   : > { %1816 = vst [vmem:[%s15110_s8 + $0xd0] sm:$0xff] %v1815_v26  ;;  %v1819_v28 = vld [vmem:[%s15105_s7 + $0x1c0] sm:$0xff]  ;;  %v1821_v29 = vld [vmem:[%s15105_s7 + $0x1d0] sm:$0xff]  ;;  %1818 = vst [vmem:[%s15110_s8 + $0xd8] sm:$0xff] %v1817_v27 }
  0x28   : > { %1820 = vst [vmem:[%s15110_s8 + $0xe0] sm:$0xff] %v1819_v28  ;;  %1822 = vst [vmem:[%s15110_s8 + $0xe8] sm:$0xff] %v1821_v29  ;;  %v1823_v30 = vld [vmem:[%s15105_s7 + $0x1e0] sm:$0xff]  ;;  %v1825_v31 = vld [vmem:[%s15105_s7 + $0x1f0] sm:$0xff] }
  0x29   : > { %v1827_v32 = vld [vmem:[%s15105_s7 + $0x200] sm:$0xff]  ;;  %1824 = vst [vmem:[%s15110_s8 + $0xf0] sm:$0xff] %v1823_v30  ;;  %1826 = vst [vmem:[%s15110_s8 + $0xf8] sm:$0xff] %v1825_v31  ;;  %v1829_v33 = vld [vmem:[%s15105_s7 + $0x210] sm:$0xff] }
  0x2a   : > { %1828 = vst [vmem:[%s15110_s8 + $0x100] sm:$0xff] %v1827_v32  ;;  %v1831_v34 = vld [vmem:[%s15105_s7 + $0x220] sm:$0xff]  ;;  %v1833_v35 = vld [vmem:[%s15105_s7 + $0x230] sm:$0xff]  ;;  %1830 = vst [vmem:[%s15110_s8 + $0x108] sm:$0xff] %v1829_v33 }
  0x2b   : > { %1832 = vst [vmem:[%s15110_s8 + $0x110] sm:$0xff] %v1831_v34  ;;  %1834 = vst [vmem:[%s15110_s8 + $0x118] sm:$0xff] %v1833_v35  ;;  %v1835_v36 = vld [vmem:[%s15105_s7 + $0x240] sm:$0xff]  ;;  %v1837_v37 = vld [vmem:[%s15105_s7 + $0x250] sm:$0xff] }
  0x2c   : > { %v1839_v38 = vld [vmem:[%s15105_s7 + $0x260] sm:$0xff]  ;;  %1836 = vst [vmem:[%s15110_s8 + $0x120] sm:$0xff] %v1835_v36  ;;  %1838 = vst [vmem:[%s15110_s8 + $0x128] sm:$0xff] %v1837_v37  ;;  %v1841_v39 = vld [vmem:[%s15105_s7 + $0x270] sm:$0xff] }
  0x2d   : > { %1840 = vst [vmem:[%s15110_s8 + $0x130] sm:$0xff] %v1839_v38  ;;  %v1843_v40 = vld [vmem:[%s15105_s7 + $0x280] sm:$0xff]  ;;  %v1845_v41 = vld [vmem:[%s15105_s7 + $0x290] sm:$0xff]  ;;  %1842 = vst [vmem:[%s15110_s8 + $0x138] sm:$0xff] %v1841_v39 }
  0x2e   : > { %1844 = vst [vmem:[%s15110_s8 + $0x140] sm:$0xff] %v1843_v40  ;;  %1846 = vst [vmem:[%s15110_s8 + $0x148] sm:$0xff] %v1845_v41  ;;  %v1847_v42 = vld [vmem:[%s15105_s7 + $0x2a0] sm:$0xff]  ;;  %v1849_v43 = vld [vmem:[%s15105_s7 + $0x2b0] sm:$0xff] }
  0x2f   : > { %v1851_v44 = vld [vmem:[%s15105_s7 + $0x2c0] sm:$0xff]  ;;  %1848 = vst [vmem:[%s15110_s8 + $0x150] sm:$0xff] %v1847_v42  ;;  %1850 = vst [vmem:[%s15110_s8 + $0x158] sm:$0xff] %v1849_v43  ;;  %v1853_v45 = vld [vmem:[%s15105_s7 + $0x2d0] sm:$0xff] }
  0x30   : > { %1852 = vst [vmem:[%s15110_s8 + $0x160] sm:$0xff] %v1851_v44  ;;  %v1855_v46 = vld [vmem:[%s15105_s7 + $0x2e0] sm:$0xff]  ;;  %v1857_v47 = vld [vmem:[%s15105_s7 + $0x2f0] sm:$0xff]  ;;  %1854 = vst [vmem:[%s15110_s8 + $0x168] sm:$0xff] %v1853_v45 }
  0x31   : > { %1856 = vst [vmem:[%s15110_s8 + $0x170] sm:$0xff] %v1855_v46  ;;  %1858 = vst [vmem:[%s15110_s8 + $0x178] sm:$0xff] %v1857_v47  ;;  %v1859_v48 = vld [vmem:[%s15105_s7 + $0x300] sm:$0xff]  ;;  %v1861_v49 = vld [vmem:[%s15105_s7 + $0x310] sm:$0xff] }
  0x32   : > { %v1863_v50 = vld [vmem:[%s15105_s7 + $0x320] sm:$0xff]  ;;  %1860 = vst [vmem:[%s15110_s8 + $0x180] sm:$0xff] %v1859_v48  ;;  %1862 = vst [vmem:[%s15110_s8 + $0x188] sm:$0xff] %v1861_v49  ;;  %v1865_v51 = vld [vmem:[%s15105_s7 + $0x330] sm:$0xff] }
  0x33   : > { %1864 = vst [vmem:[%s15110_s8 + $0x190] sm:$0xff] %v1863_v50  ;;  %v1867_v52 = vld [vmem:[%s15105_s7 + $0x340] sm:$0xff]  ;;  %v1869_v53 = vld [vmem:[%s15105_s7 + $0x350] sm:$0xff]  ;;  %1866 = vst [vmem:[%s15110_s8 + $0x198] sm:$0xff] %v1865_v51 }
  0x34   : > { %1868 = vst [vmem:[%s15110_s8 + $0x1a0] sm:$0xff] %v1867_v52  ;;  %1870 = vst [vmem:[%s15110_s8 + $0x1a8] sm:$0xff] %v1869_v53  ;;  %v1871_v54 = vld [vmem:[%s15105_s7 + $0x360] sm:$0xff]  ;;  %v1873_v55 = vld [vmem:[%s15105_s7 + $0x370] sm:$0xff] }
  0x35   : > { %v1875_v56 = vld [vmem:[%s15105_s7 + $0x380] sm:$0xff]  ;;  %1872 = vst [vmem:[%s15110_s8 + $0x1b0] sm:$0xff] %v1871_v54  ;;  %1874 = vst [vmem:[%s15110_s8 + $0x1b8] sm:$0xff] %v1873_v55  ;;  %v1877_v57 = vld [vmem:[%s15105_s7 + $0x390] sm:$0xff] }
  0x36   : > { %1876 = vst [vmem:[%s15110_s8 + $0x1c0] sm:$0xff] %v1875_v56  ;;  %v1879_v58 = vld [vmem:[%s15105_s7 + $0x3a0] sm:$0xff]  ;;  %v1881_v59 = vld [vmem:[%s15105_s7 + $0x3b0] sm:$0xff]  ;;  %1878 = vst [vmem:[%s15110_s8 + $0x1c8] sm:$0xff] %v1877_v57 }
  0x37   : > { %1880 = vst [vmem:[%s15110_s8 + $0x1d0] sm:$0xff] %v1879_v58  ;;  %1882 = vst [vmem:[%s15110_s8 + $0x1d8] sm:$0xff] %v1881_v59  ;;  %v1883_v60 = vld [vmem:[%s15105_s7 + $0x3c0] sm:$0xff]  ;;  %v1885_v61 = vld [vmem:[%s15105_s7 + $0x3d0] sm:$0xff] }
  0x38   : > { %v1887_v62 = vld [vmem:[%s15105_s7 + $0x3e0] sm:$0xff]  ;;  %1884 = vst [vmem:[%s15110_s8 + $0x1e0] sm:$0xff] %v1883_v60  ;;  %1886 = vst [vmem:[%s15110_s8 + $0x1e8] sm:$0xff] %v1885_v61  ;;  %v1889_v63 = vld [vmem:[%s15105_s7 + $0x3f0] sm:$0xff] }
  0x39   : > { %1888 = vst [vmem:[%s15110_s8 + $0x1f0] sm:$0xff] %v1887_v62  ;;  %v1891_v0 = vld [vmem:[%s15105_s7 + $0x400] sm:$0xff]  ;;  %v1893_v1 = vld [vmem:[%s15105_s7 + $0x410] sm:$0xff]  ;;  %1890 = vst [vmem:[%s15110_s8 + $0x1f8] sm:$0xff] %v1889_v63 }
  0x3a   : > { %1892 = vst [vmem:[%s15110_s8 + $0x200] sm:$0xff] %v1891_v0  ;;  %1894 = vst [vmem:[%s15110_s8 + $0x208] sm:$0xff] %v1893_v1  ;;  %v1895_v2 = vld [vmem:[%s15105_s7 + $0x420] sm:$0xff]  ;;  %v1897_v3 = vld [vmem:[%s15105_s7 + $0x430] sm:$0xff] }
  0x3b   : > { %v1899_v4 = vld [vmem:[%s15105_s7 + $0x440] sm:$0xff]  ;;  %1896 = vst [vmem:[%s15110_s8 + $0x210] sm:$0xff] %v1895_v2  ;;  %1898 = vst [vmem:[%s15110_s8 + $0x218] sm:$0xff] %v1897_v3  ;;  %v1901_v5 = vld [vmem:[%s15105_s7 + $0x450] sm:$0xff] }
  0x3c   : > { %1900 = vst [vmem:[%s15110_s8 + $0x220] sm:$0xff] %v1899_v4  ;;  %v1903_v6 = vld [vmem:[%s15105_s7 + $0x460] sm:$0xff]  ;;  %v1905_v7 = vld [vmem:[%s15105_s7 + $0x470] sm:$0xff]  ;;  %1902 = vst [vmem:[%s15110_s8 + $0x228] sm:$0xff] %v1901_v5 }
  0x3d   : > { %1904 = vst [vmem:[%s15110_s8 + $0x230] sm:$0xff] %v1903_v6  ;;  %1906 = vst [vmem:[%s15110_s8 + $0x238] sm:$0xff] %v1905_v7  ;;  %v1907_v8 = vld [vmem:[%s15105_s7 + $0x480] sm:$0xff]  ;;  %v1909_v9 = vld [vmem:[%s15105_s7 + $0x490] sm:$0xff] }
  0x3e   : > { %v1911_v10 = vld [vmem:[%s15105_s7 + $0x4a0] sm:$0xff]  ;;  %1908 = vst [vmem:[%s15110_s8 + $0x240] sm:$0xff] %v1907_v8  ;;  %1910 = vst [vmem:[%s15110_s8 + $0x248] sm:$0xff] %v1909_v9  ;;  %v1913_v11 = vld [vmem:[%s15105_s7 + $0x4b0] sm:$0xff] }
  0x3f   : > { %1912 = vst [vmem:[%s15110_s8 + $0x250] sm:$0xff] %v1911_v10  ;;  %v1915_v12 = vld [vmem:[%s15105_s7 + $0x4c0] sm:$0xff]  ;;  %v1917_v13 = vld [vmem:[%s15105_s7 + $0x4d0] sm:$0xff]  ;;  %1914 = vst [vmem:[%s15110_s8 + $0x258] sm:$0xff] %v1913_v11 }
  0x40   : > { %1916 = vst [vmem:[%s15110_s8 + $0x260] sm:$0xff] %v1915_v12  ;;  %1918 = vst [vmem:[%s15110_s8 + $0x268] sm:$0xff] %v1917_v13  ;;  %v1919_v14 = vld [vmem:[%s15105_s7 + $0x4e0] sm:$0xff]  ;;  %v1921_v15 = vld [vmem:[%s15105_s7 + $0x4f0] sm:$0xff] }
  0x41   : > { %v1923_v16 = vld [vmem:[%s15105_s7 + $0x500] sm:$0xff]  ;;  %1920 = vst [vmem:[%s15110_s8 + $0x270] sm:$0xff] %v1919_v14  ;;  %1922 = vst [vmem:[%s15110_s8 + $0x278] sm:$0xff] %v1921_v15  ;;  %v1925_v17 = vld [vmem:[%s15105_s7 + $0x510] sm:$0xff] }
  0x42   : > { %1924 = vst [vmem:[%s15110_s8 + $0x280] sm:$0xff] %v1923_v16  ;;  %v1927_v18 = vld [vmem:[%s15105_s7 + $0x520] sm:$0xff]  ;;  %v1929_v19 = vld [vmem:[%s15105_s7 + $0x530] sm:$0xff]  ;;  %1926 = vst [vmem:[%s15110_s8 + $0x288] sm:$0xff] %v1925_v17 }
  0x43   : > { %1928 = vst [vmem:[%s15110_s8 + $0x290] sm:$0xff] %v1927_v18  ;;  %1930 = vst [vmem:[%s15110_s8 + $0x298] sm:$0xff] %v1929_v19  ;;  %v1931_v20 = vld [vmem:[%s15105_s7 + $0x540] sm:$0xff]  ;;  %v1933_v21 = vld [vmem:[%s15105_s7 + $0x550] sm:$0xff] }
  0x44   : > { %v1935_v22 = vld [vmem:[%s15105_s7 + $0x560] sm:$0xff]  ;;  %1932 = vst [vmem:[%s15110_s8 + $0x2a0] sm:$0xff] %v1931_v20  ;;  %1934 = vst [vmem:[%s15110_s8 + $0x2a8] sm:$0xff] %v1933_v21  ;;  %v1937_v23 = vld [vmem:[%s15105_s7 + $0x570] sm:$0xff] }
  0x45   : > { %1936 = vst [vmem:[%s15110_s8 + $0x2b0] sm:$0xff] %v1935_v22  ;;  %v1939_v24 = vld [vmem:[%s15105_s7 + $0x580] sm:$0xff]  ;;  %v1941_v25 = vld [vmem:[%s15105_s7 + $0x590] sm:$0xff]  ;;  %1938 = vst [vmem:[%s15110_s8 + $0x2b8] sm:$0xff] %v1937_v23 }
  0x46   : > { %1940 = vst [vmem:[%s15110_s8 + $0x2c0] sm:$0xff] %v1939_v24  ;;  %1942 = vst [vmem:[%s15110_s8 + $0x2c8] sm:$0xff] %v1941_v25  ;;  %v1943_v26 = vld [vmem:[%s15105_s7 + $0x5a0] sm:$0xff]  ;;  %v1945_v27 = vld [vmem:[%s15105_s7 + $0x5b0] sm:$0xff] }
  0x47   : > { %v1947_v28 = vld [vmem:[%s15105_s7 + $0x5c0] sm:$0xff]  ;;  %1944 = vst [vmem:[%s15110_s8 + $0x2d0] sm:$0xff] %v1943_v26  ;;  %1946 = vst [vmem:[%s15110_s8 + $0x2d8] sm:$0xff] %v1945_v27  ;;  %v1949_v29 = vld [vmem:[%s15105_s7 + $0x5d0] sm:$0xff] }
  0x48   : > { %1948 = vst [vmem:[%s15110_s8 + $0x2e0] sm:$0xff] %v1947_v28  ;;  %v1951_v30 = vld [vmem:[%s15105_s7 + $0x5e0] sm:$0xff]  ;;  %v1953_v31 = vld [vmem:[%s15105_s7 + $0x5f0] sm:$0xff]  ;;  %1950 = vst [vmem:[%s15110_s8 + $0x2e8] sm:$0xff] %v1949_v29 }
  0x49   : > { %1952 = vst [vmem:[%s15110_s8 + $0x2f0] sm:$0xff] %v1951_v30  ;;  %1954 = vst [vmem:[%s15110_s8 + $0x2f8] sm:$0xff] %v1953_v31  ;;  %v1955_v32 = vld [vmem:[%s15105_s7 + $0x600] sm:$0xff]  ;;  %v1957_v33 = vld [vmem:[%s15105_s7 + $0x610] sm:$0xff] }
  0x4a   : > { %v1959_v34 = vld [vmem:[%s15105_s7 + $0x620] sm:$0xff]  ;;  %1956 = vst [vmem:[%s15110_s8 + $0x300] sm:$0xff] %v1955_v32  ;;  %1958 = vst [vmem:[%s15110_s8 + $0x308] sm:$0xff] %v1957_v33  ;;  %v1961_v35 = vld [vmem:[%s15105_s7 + $0x630] sm:$0xff] }
  0x4b   : > { %1960 = vst [vmem:[%s15110_s8 + $0x310] sm:$0xff] %v1959_v34  ;;  %v1963_v36 = vld [vmem:[%s15105_s7 + $0x640] sm:$0xff]  ;;  %v1965_v37 = vld [vmem:[%s15105_s7 + $0x650] sm:$0xff]  ;;  %1962 = vst [vmem:[%s15110_s8 + $0x318] sm:$0xff] %v1961_v35 }
  0x4c   : > { %1964 = vst [vmem:[%s15110_s8 + $0x320] sm:$0xff] %v1963_v36  ;;  %1966 = vst [vmem:[%s15110_s8 + $0x328] sm:$0xff] %v1965_v37  ;;  %v1967_v38 = vld [vmem:[%s15105_s7 + $0x660] sm:$0xff]  ;;  %v1969_v39 = vld [vmem:[%s15105_s7 + $0x670] sm:$0xff] }
  0x4d   : > { %v1971_v40 = vld [vmem:[%s15105_s7 + $0x680] sm:$0xff]  ;;  %1968 = vst [vmem:[%s15110_s8 + $0x330] sm:$0xff] %v1967_v38  ;;  %1970 = vst [vmem:[%s15110_s8 + $0x338] sm:$0xff] %v1969_v39  ;;  %v1973_v41 = vld [vmem:[%s15105_s7 + $0x690] sm:$0xff] }
  0x4e   : > { %1972 = vst [vmem:[%s15110_s8 + $0x340] sm:$0xff] %v1971_v40  ;;  %v1975_v42 = vld [vmem:[%s15105_s7 + $0x6a0] sm:$0xff]  ;;  %v1977_v43 = vld [vmem:[%s15105_s7 + $0x6b0] sm:$0xff]  ;;  %1974 = vst [vmem:[%s15110_s8 + $0x348] sm:$0xff] %v1973_v41 }
  0x4f   : > { %1976 = vst [vmem:[%s15110_s8 + $0x350] sm:$0xff] %v1975_v42  ;;  %1978 = vst [vmem:[%s15110_s8 + $0x358] sm:$0xff] %v1977_v43  ;;  %v1979_v44 = vld [vmem:[%s15105_s7 + $0x6c0] sm:$0xff]  ;;  %v1981_v45 = vld [vmem:[%s15105_s7 + $0x6d0] sm:$0xff] }
  0x50   : > { %v1983_v46 = vld [vmem:[%s15105_s7 + $0x6e0] sm:$0xff]  ;;  %1980 = vst [vmem:[%s15110_s8 + $0x360] sm:$0xff] %v1979_v44  ;;  %1982 = vst [vmem:[%s15110_s8 + $0x368] sm:$0xff] %v1981_v45  ;;  %v1985_v47 = vld [vmem:[%s15105_s7 + $0x6f0] sm:$0xff] }
  0x51   : > { %1984 = vst [vmem:[%s15110_s8 + $0x370] sm:$0xff] %v1983_v46  ;;  %v1987_v48 = vld [vmem:[%s15105_s7 + $0x700] sm:$0xff]  ;;  %v1989_v49 = vld [vmem:[%s15105_s7 + $0x710] sm:$0xff]  ;;  %1986 = vst [vmem:[%s15110_s8 + $0x378] sm:$0xff] %v1985_v47 }
  0x52   : > { %1988 = vst [vmem:[%s15110_s8 + $0x380] sm:$0xff] %v1987_v48  ;;  %1990 = vst [vmem:[%s15110_s8 + $0x388] sm:$0xff] %v1989_v49  ;;  %v1991_v50 = vld [vmem:[%s15105_s7 + $0x720] sm:$0xff]  ;;  %v1993_v51 = vld [vmem:[%s15105_s7 + $0x730] sm:$0xff] }
  0x53   : > { %v1995_v52 = vld [vmem:[%s15105_s7 + $0x740] sm:$0xff]  ;;  %1992 = vst [vmem:[%s15110_s8 + $0x390] sm:$0xff] %v1991_v50  ;;  %1994 = vst [vmem:[%s15110_s8 + $0x398] sm:$0xff] %v1993_v51  ;;  %v1997_v53 = vld [vmem:[%s15105_s7 + $0x750] sm:$0xff] }
  0x54   : > { %1996 = vst [vmem:[%s15110_s8 + $0x3a0] sm:$0xff] %v1995_v52  ;;  %v1999_v54 = vld [vmem:[%s15105_s7 + $0x760] sm:$0xff]  ;;  %v2001_v55 = vld [vmem:[%s15105_s7 + $0x770] sm:$0xff]  ;;  %1998 = vst [vmem:[%s15110_s8 + $0x3a8] sm:$0xff] %v1997_v53 }
  0x55   : > { %2000 = vst [vmem:[%s15110_s8 + $0x3b0] sm:$0xff] %v1999_v54  ;;  %2002 = vst [vmem:[%s15110_s8 + $0x3b8] sm:$0xff] %v2001_v55  ;;  %v2003_v56 = vld [vmem:[%s15105_s7 + $0x780] sm:$0xff]  ;;  %v2005_v57 = vld [vmem:[%s15105_s7 + $0x790] sm:$0xff] }
  0x56   : > { %v2007_v58 = vld [vmem:[%s15105_s7 + $0x7a0] sm:$0xff]  ;;  %2004 = vst [vmem:[%s15110_s8 + $0x3c0] sm:$0xff] %v2003_v56  ;;  %2006 = vst [vmem:[%s15110_s8 + $0x3c8] sm:$0xff] %v2005_v57  ;;  %v2009_v59 = vld [vmem:[%s15105_s7 + $0x7b0] sm:$0xff] }
  0x57   : > { %2008 = vst [vmem:[%s15110_s8 + $0x3d0] sm:$0xff] %v2007_v58  ;;  %v2011_v60 = vld [vmem:[%s15105_s7 + $0x7c0] sm:$0xff]  ;;  %v2013_v61 = vld [vmem:[%s15105_s7 + $0x7d0] sm:$0xff]  ;;  %2010 = vst [vmem:[%s15110_s8 + $0x3d8] sm:$0xff] %v2009_v59 }
  0x58   : > { %2012 = vst [vmem:[%s15110_s8 + $0x3e0] sm:$0xff] %v2011_v60  ;;  %2014 = vst [vmem:[%s15110_s8 + $0x3e8] sm:$0xff] %v2013_v61  ;;  %v2015_v62 = vld [vmem:[%s15105_s7 + $0x7e0] sm:$0xff]  ;;  %v2017_v63 = vld [vmem:[%s15105_s7 + $0x7f0] sm:$0xff] }
  0x59   : > { %v2019_v0 = vld [vmem:[%s15105_s7 + $0x800] sm:$0xff]  ;;  %2016 = vst [vmem:[%s15110_s8 + $0x3f0] sm:$0xff] %v2015_v62  ;;  %2018 = vst [vmem:[%s15110_s8 + $0x3f8] sm:$0xff] %v2017_v63  ;;  %v2021_v1 = vld [vmem:[%s15105_s7 + $0x810] sm:$0xff] }
  0x5a   : > { %2020 = vst [vmem:[%s15110_s8 + $0x400] sm:$0xff] %v2019_v0  ;;  %v2023_v2 = vld [vmem:[%s15105_s7 + $0x820] sm:$0xff]  ;;  %v2025_v3 = vld [vmem:[%s15105_s7 + $0x830] sm:$0xff]  ;;  %2022 = vst [vmem:[%s15110_s8 + $0x408] sm:$0xff] %v2021_v1 }
  0x5b   : > { %2024 = vst [vmem:[%s15110_s8 + $0x410] sm:$0xff] %v2023_v2  ;;  %2026 = vst [vmem:[%s15110_s8 + $0x418] sm:$0xff] %v2025_v3  ;;  %v2027_v4 = vld [vmem:[%s15105_s7 + $0x840] sm:$0xff]  ;;  %v2029_v5 = vld [vmem:[%s15105_s7 + $0x850] sm:$0xff] }
  0x5c   : > { %v2031_v6 = vld [vmem:[%s15105_s7 + $0x860] sm:$0xff]  ;;  %2028 = vst [vmem:[%s15110_s8 + $0x420] sm:$0xff] %v2027_v4  ;;  %2030 = vst [vmem:[%s15110_s8 + $0x428] sm:$0xff] %v2029_v5  ;;  %v2033_v7 = vld [vmem:[%s15105_s7 + $0x870] sm:$0xff] }
  0x5d   : > { %2032 = vst [vmem:[%s15110_s8 + $0x430] sm:$0xff] %v2031_v6  ;;  %v2035_v8 = vld [vmem:[%s15105_s7 + $0x880] sm:$0xff]  ;;  %v2037_v9 = vld [vmem:[%s15105_s7 + $0x890] sm:$0xff]  ;;  %2034 = vst [vmem:[%s15110_s8 + $0x438] sm:$0xff] %v2033_v7 }
  0x5e   : > { %2036 = vst [vmem:[%s15110_s8 + $0x440] sm:$0xff] %v2035_v8  ;;  %2038 = vst [vmem:[%s15110_s8 + $0x448] sm:$0xff] %v2037_v9  ;;  %v2039_v10 = vld [vmem:[%s15105_s7 + $0x8a0] sm:$0xff]  ;;  %v2041_v11 = vld [vmem:[%s15105_s7 + $0x8b0] sm:$0xff] }
  0x5f   : > { %v2043_v12 = vld [vmem:[%s15105_s7 + $0x8c0] sm:$0xff]  ;;  %2040 = vst [vmem:[%s15110_s8 + $0x450] sm:$0xff] %v2039_v10  ;;  %2042 = vst [vmem:[%s15110_s8 + $0x458] sm:$0xff] %v2041_v11  ;;  %v2045_v13 = vld [vmem:[%s15105_s7 + $0x8d0] sm:$0xff] }
  0x60   : > { %2044 = vst [vmem:[%s15110_s8 + $0x460] sm:$0xff] %v2043_v12  ;;  %v2047_v14 = vld [vmem:[%s15105_s7 + $0x8e0] sm:$0xff]  ;;  %v2049_v15 = vld [vmem:[%s15105_s7 + $0x8f0] sm:$0xff]  ;;  %2046 = vst [vmem:[%s15110_s8 + $0x468] sm:$0xff] %v2045_v13 }
  0x61   : > { %2048 = vst [vmem:[%s15110_s8 + $0x470] sm:$0xff] %v2047_v14  ;;  %2050 = vst [vmem:[%s15110_s8 + $0x478] sm:$0xff] %v2049_v15  ;;  %v2051_v16 = vld [vmem:[%s15105_s7 + $0x900] sm:$0xff]  ;;  %v2053_v17 = vld [vmem:[%s15105_s7 + $0x910] sm:$0xff] }
  0x62   : > { %v2055_v18 = vld [vmem:[%s15105_s7 + $0x920] sm:$0xff]  ;;  %2052 = vst [vmem:[%s15110_s8 + $0x480] sm:$0xff] %v2051_v16  ;;  %2054 = vst [vmem:[%s15110_s8 + $0x488] sm:$0xff] %v2053_v17  ;;  %v2057_v19 = vld [vmem:[%s15105_s7 + $0x930] sm:$0xff] }
  0x63   : > { %2056 = vst [vmem:[%s15110_s8 + $0x490] sm:$0xff] %v2055_v18  ;;  %v2059_v20 = vld [vmem:[%s15105_s7 + $0x940] sm:$0xff]  ;;  %v2061_v21 = vld [vmem:[%s15105_s7 + $0x950] sm:$0xff]  ;;  %2058 = vst [vmem:[%s15110_s8 + $0x498] sm:$0xff] %v2057_v19 }
  0x64   : > { %2060 = vst [vmem:[%s15110_s8 + $0x4a0] sm:$0xff] %v2059_v20  ;;  %2062 = vst [vmem:[%s15110_s8 + $0x4a8] sm:$0xff] %v2061_v21  ;;  %v2063_v22 = vld [vmem:[%s15105_s7 + $0x960] sm:$0xff]  ;;  %v2065_v23 = vld [vmem:[%s15105_s7 + $0x970] sm:$0xff] }
  0x65   : > { %v2067_v24 = vld [vmem:[%s15105_s7 + $0x980] sm:$0xff]  ;;  %2064 = vst [vmem:[%s15110_s8 + $0x4b0] sm:$0xff] %v2063_v22  ;;  %2066 = vst [vmem:[%s15110_s8 + $0x4b8] sm:$0xff] %v2065_v23  ;;  %v2069_v25 = vld [vmem:[%s15105_s7 + $0x990] sm:$0xff] }
  0x66   : > { %2068 = vst [vmem:[%s15110_s8 + $0x4c0] sm:$0xff] %v2067_v24  ;;  %v2071_v26 = vld [vmem:[%s15105_s7 + $0x9a0] sm:$0xff]  ;;  %v2073_v27 = vld [vmem:[%s15105_s7 + $0x9b0] sm:$0xff]  ;;  %2070 = vst [vmem:[%s15110_s8 + $0x4c8] sm:$0xff] %v2069_v25 }
  0x67   : > { %2072 = vst [vmem:[%s15110_s8 + $0x4d0] sm:$0xff] %v2071_v26  ;;  %2074 = vst [vmem:[%s15110_s8 + $0x4d8] sm:$0xff] %v2073_v27  ;;  %v2075_v28 = vld [vmem:[%s15105_s7 + $0x9c0] sm:$0xff]  ;;  %v2077_v29 = vld [vmem:[%s15105_s7 + $0x9d0] sm:$0xff] }
  0x68   : > { %v2079_v30 = vld [vmem:[%s15105_s7 + $0x9e0] sm:$0xff]  ;;  %2076 = vst [vmem:[%s15110_s8 + $0x4e0] sm:$0xff] %v2075_v28  ;;  %2078 = vst [vmem:[%s15110_s8 + $0x4e8] sm:$0xff] %v2077_v29  ;;  %v2081_v31 = vld [vmem:[%s15105_s7 + $0x9f0] sm:$0xff] }
  0x69   : > { %2080 = vst [vmem:[%s15110_s8 + $0x4f0] sm:$0xff] %v2079_v30  ;;  %v2083_v32 = vld [vmem:[%s15105_s7 + $0xa00] sm:$0xff]  ;;  %v2085_v33 = vld [vmem:[%s15105_s7 + $0xa10] sm:$0xff]  ;;  %2082 = vst [vmem:[%s15110_s8 + $0x4f8] sm:$0xff] %v2081_v31 }
  0x6a   : > { %2084 = vst [vmem:[%s15110_s8 + $0x500] sm:$0xff] %v2083_v32  ;;  %2086 = vst [vmem:[%s15110_s8 + $0x508] sm:$0xff] %v2085_v33  ;;  %v2087_v34 = vld [vmem:[%s15105_s7 + $0xa20] sm:$0xff]  ;;  %v2089_v35 = vld [vmem:[%s15105_s7 + $0xa30] sm:$0xff] }
  0x6b   : > { %v2091_v36 = vld [vmem:[%s15105_s7 + $0xa40] sm:$0xff]  ;;  %2088 = vst [vmem:[%s15110_s8 + $0x510] sm:$0xff] %v2087_v34  ;;  %2090 = vst [vmem:[%s15110_s8 + $0x518] sm:$0xff] %v2089_v35  ;;  %v2093_v37 = vld [vmem:[%s15105_s7 + $0xa50] sm:$0xff] }
  0x6c   : > { %2092 = vst [vmem:[%s15110_s8 + $0x520] sm:$0xff] %v2091_v36  ;;  %v2095_v38 = vld [vmem:[%s15105_s7 + $0xa60] sm:$0xff]  ;;  %v2097_v39 = vld [vmem:[%s15105_s7 + $0xa70] sm:$0xff]  ;;  %2094 = vst [vmem:[%s15110_s8 + $0x528] sm:$0xff] %v2093_v37 }
  0x6d   : > { %2096 = vst [vmem:[%s15110_s8 + $0x530] sm:$0xff] %v2095_v38  ;;  %2098 = vst [vmem:[%s15110_s8 + $0x538] sm:$0xff] %v2097_v39  ;;  %v2099_v40 = vld [vmem:[%s15105_s7 + $0xa80] sm:$0xff]  ;;  %v2101_v41 = vld [vmem:[%s15105_s7 + $0xa90] sm:$0xff] }
  0x6e   : > { %v2103_v42 = vld [vmem:[%s15105_s7 + $0xaa0] sm:$0xff]  ;;  %2100 = vst [vmem:[%s15110_s8 + $0x540] sm:$0xff] %v2099_v40  ;;  %2102 = vst [vmem:[%s15110_s8 + $0x548] sm:$0xff] %v2101_v41  ;;  %v2105_v43 = vld [vmem:[%s15105_s7 + $0xab0] sm:$0xff] }
  0x6f   : > { %2104 = vst [vmem:[%s15110_s8 + $0x550] sm:$0xff] %v2103_v42  ;;  %v2107_v44 = vld [vmem:[%s15105_s7 + $0xac0] sm:$0xff]  ;;  %v2109_v45 = vld [vmem:[%s15105_s7 + $0xad0] sm:$0xff]  ;;  %2106 = vst [vmem:[%s15110_s8 + $0x558] sm:$0xff] %v2105_v43 }
  0x70   : > { %2108 = vst [vmem:[%s15110_s8 + $0x560] sm:$0xff] %v2107_v44  ;;  %2110 = vst [vmem:[%s15110_s8 + $0x568] sm:$0xff] %v2109_v45  ;;  %v2111_v46 = vld [vmem:[%s15105_s7 + $0xae0] sm:$0xff]  ;;  %v2113_v47 = vld [vmem:[%s15105_s7 + $0xaf0] sm:$0xff] }
  0x71   : > { %v2115_v48 = vld [vmem:[%s15105_s7 + $0xb00] sm:$0xff]  ;;  %2112 = vst [vmem:[%s15110_s8 + $0x570] sm:$0xff] %v2111_v46  ;;  %2114 = vst [vmem:[%s15110_s8 + $0x578] sm:$0xff] %v2113_v47  ;;  %v2117_v49 = vld [vmem:[%s15105_s7 + $0xb10] sm:$0xff] }
  0x72   : > { %2116 = vst [vmem:[%s15110_s8 + $0x580] sm:$0xff] %v2115_v48  ;;  %v2119_v50 = vld [vmem:[%s15105_s7 + $0xb20] sm:$0xff]  ;;  %v2121_v51 = vld [vmem:[%s15105_s7 + $0xb30] sm:$0xff]  ;;  %2118 = vst [vmem:[%s15110_s8 + $0x588] sm:$0xff] %v2117_v49 }
  0x73   : > { %2120 = vst [vmem:[%s15110_s8 + $0x590] sm:$0xff] %v2119_v50  ;;  %2122 = vst [vmem:[%s15110_s8 + $0x598] sm:$0xff] %v2121_v51  ;;  %v2123_v52 = vld [vmem:[%s15105_s7 + $0xb40] sm:$0xff]  ;;  %v2125_v53 = vld [vmem:[%s15105_s7 + $0xb50] sm:$0xff] }
  0x74   : > { %v2127_v54 = vld [vmem:[%s15105_s7 + $0xb60] sm:$0xff]  ;;  %2124 = vst [vmem:[%s15110_s8 + $0x5a0] sm:$0xff] %v2123_v52  ;;  %2126 = vst [vmem:[%s15110_s8 + $0x5a8] sm:$0xff] %v2125_v53  ;;  %v2129_v55 = vld [vmem:[%s15105_s7 + $0xb70] sm:$0xff] }
  0x75   : > { %2128 = vst [vmem:[%s15110_s8 + $0x5b0] sm:$0xff] %v2127_v54  ;;  %v2131_v56 = vld [vmem:[%s15105_s7 + $0xb80] sm:$0xff]  ;;  %v2133_v57 = vld [vmem:[%s15105_s7 + $0xb90] sm:$0xff]  ;;  %2130 = vst [vmem:[%s15110_s8 + $0x5b8] sm:$0xff] %v2129_v55 }
  0x76   : > { %2132 = vst [vmem:[%s15110_s8 + $0x5c0] sm:$0xff] %v2131_v56  ;;  %2134 = vst [vmem:[%s15110_s8 + $0x5c8] sm:$0xff] %v2133_v57  ;;  %v2135_v58 = vld [vmem:[%s15105_s7 + $0xba0] sm:$0xff]  ;;  %v2137_v59 = vld [vmem:[%s15105_s7 + $0xbb0] sm:$0xff] }
  0x77   : > { %v2139_v60 = vld [vmem:[%s15105_s7 + $0xbc0] sm:$0xff]  ;;  %2136 = vst [vmem:[%s15110_s8 + $0x5d0] sm:$0xff] %v2135_v58  ;;  %2138 = vst [vmem:[%s15110_s8 + $0x5d8] sm:$0xff] %v2137_v59  ;;  %v2141_v61 = vld [vmem:[%s15105_s7 + $0xbd0] sm:$0xff] }
  0x78   : > { %2140 = vst [vmem:[%s15110_s8 + $0x5e0] sm:$0xff] %v2139_v60  ;;  %v2143_v62 = vld [vmem:[%s15105_s7 + $0xbe0] sm:$0xff]  ;;  %v2145_v63 = vld [vmem:[%s15105_s7 + $0xbf0] sm:$0xff]  ;;  %2142 = vst [vmem:[%s15110_s8 + $0x5e8] sm:$0xff] %v2141_v61 }
  0x79   : > { %2144 = vst [vmem:[%s15110_s8 + $0x5f0] sm:$0xff] %v2143_v62  ;;  %2146 = vst [vmem:[%s15110_s8 + $0x5f8] sm:$0xff] %v2145_v63  ;;  %v2147_v0 = vld [vmem:[%s15105_s7 + $0xc00] sm:$0xff]  ;;  %v2149_v1 = vld [vmem:[%s15105_s7 + $0xc10] sm:$0xff] }
  0x7a   : > { %v2151_v2 = vld [vmem:[%s15105_s7 + $0xc20] sm:$0xff]  ;;  %2148 = vst [vmem:[%s15110_s8 + $0x600] sm:$0xff] %v2147_v0  ;;  %2150 = vst [vmem:[%s15110_s8 + $0x608] sm:$0xff] %v2149_v1  ;;  %v2153_v3 = vld [vmem:[%s15105_s7 + $0xc30] sm:$0xff] }
  0x7b   : > { %2152 = vst [vmem:[%s15110_s8 + $0x610] sm:$0xff] %v2151_v2  ;;  %v2155_v4 = vld [vmem:[%s15105_s7 + $0xc40] sm:$0xff]  ;;  %v2157_v5 = vld [vmem:[%s15105_s7 + $0xc50] sm:$0xff]  ;;  %2154 = vst [vmem:[%s15110_s8 + $0x618] sm:$0xff] %v2153_v3 }
  0x7c   : > { %2156 = vst [vmem:[%s15110_s8 + $0x620] sm:$0xff] %v2155_v4  ;;  %2158 = vst [vmem:[%s15110_s8 + $0x628] sm:$0xff] %v2157_v5  ;;  %v2159_v6 = vld [vmem:[%s15105_s7 + $0xc60] sm:$0xff]  ;;  %v2161_v7 = vld [vmem:[%s15105_s7 + $0xc70] sm:$0xff] }
  0x7d   : > { %v2163_v8 = vld [vmem:[%s15105_s7 + $0xc80] sm:$0xff]  ;;  %2160 = vst [vmem:[%s15110_s8 + $0x630] sm:$0xff] %v2159_v6  ;;  %2162 = vst [vmem:[%s15110_s8 + $0x638] sm:$0xff] %v2161_v7  ;;  %v2165_v9 = vld [vmem:[%s15105_s7 + $0xc90] sm:$0xff] }
  0x7e   : > { %2164 = vst [vmem:[%s15110_s8 + $0x640] sm:$0xff] %v2163_v8  ;;  %v2167_v10 = vld [vmem:[%s15105_s7 + $0xca0] sm:$0xff]  ;;  %v2169_v11 = vld [vmem:[%s15105_s7 + $0xcb0] sm:$0xff]  ;;  %2166 = vst [vmem:[%s15110_s8 + $0x648] sm:$0xff] %v2165_v9 }
  0x7f   : > { %2168 = vst [vmem:[%s15110_s8 + $0x650] sm:$0xff] %v2167_v10  ;;  %2170 = vst [vmem:[%s15110_s8 + $0x658] sm:$0xff] %v2169_v11  ;;  %v2171_v12 = vld [vmem:[%s15105_s7 + $0xcc0] sm:$0xff]  ;;  %v2173_v13 = vld [vmem:[%s15105_s7 + $0xcd0] sm:$0xff] }
  0x80   : > { %v2175_v14 = vld [vmem:[%s15105_s7 + $0xce0] sm:$0xff]  ;;  %2172 = vst [vmem:[%s15110_s8 + $0x660] sm:$0xff] %v2171_v12  ;;  %2174 = vst [vmem:[%s15110_s8 + $0x668] sm:$0xff] %v2173_v13  ;;  %v2177_v15 = vld [vmem:[%s15105_s7 + $0xcf0] sm:$0xff] }
  0x81   : > { %2176 = vst [vmem:[%s15110_s8 + $0x670] sm:$0xff] %v2175_v14  ;;  %v2179_v16 = vld [vmem:[%s15105_s7 + $0xd00] sm:$0xff]  ;;  %v2181_v17 = vld [vmem:[%s15105_s7 + $0xd10] sm:$0xff]  ;;  %2178 = vst [vmem:[%s15110_s8 + $0x678] sm:$0xff] %v2177_v15 }
  0x82   : > { %2180 = vst [vmem:[%s15110_s8 + $0x680] sm:$0xff] %v2179_v16  ;;  %2182 = vst [vmem:[%s15110_s8 + $0x688] sm:$0xff] %v2181_v17  ;;  %v2183_v18 = vld [vmem:[%s15105_s7 + $0xd20] sm:$0xff]  ;;  %v2185_v19 = vld [vmem:[%s15105_s7 + $0xd30] sm:$0xff] }
  0x83   : > { %v2187_v20 = vld [vmem:[%s15105_s7 + $0xd40] sm:$0xff]  ;;  %2184 = vst [vmem:[%s15110_s8 + $0x690] sm:$0xff] %v2183_v18  ;;  %2186 = vst [vmem:[%s15110_s8 + $0x698] sm:$0xff] %v2185_v19  ;;  %v2189_v21 = vld [vmem:[%s15105_s7 + $0xd50] sm:$0xff] }
  0x84   : > { %2188 = vst [vmem:[%s15110_s8 + $0x6a0] sm:$0xff] %v2187_v20  ;;  %v2191_v22 = vld [vmem:[%s15105_s7 + $0xd60] sm:$0xff]  ;;  %v2193_v23 = vld [vmem:[%s15105_s7 + $0xd70] sm:$0xff]  ;;  %2190 = vst [vmem:[%s15110_s8 + $0x6a8] sm:$0xff] %v2189_v21 }
  0x85   : > { %2192 = vst [vmem:[%s15110_s8 + $0x6b0] sm:$0xff] %v2191_v22  ;;  %2194 = vst [vmem:[%s15110_s8 + $0x6b8] sm:$0xff] %v2193_v23  ;;  %v2195_v24 = vld [vmem:[%s15105_s7 + $0xd80] sm:$0xff]  ;;  %v2197_v25 = vld [vmem:[%s15105_s7 + $0xd90] sm:$0xff] }
  0x86   : > { %v2199_v26 = vld [vmem:[%s15105_s7 + $0xda0] sm:$0xff]  ;;  %2196 = vst [vmem:[%s15110_s8 + $0x6c0] sm:$0xff] %v2195_v24  ;;  %2198 = vst [vmem:[%s15110_s8 + $0x6c8] sm:$0xff] %v2197_v25  ;;  %v2201_v27 = vld [vmem:[%s15105_s7 + $0xdb0] sm:$0xff] }
  0x87   : > { %2200 = vst [vmem:[%s15110_s8 + $0x6d0] sm:$0xff] %v2199_v26  ;;  %v2203_v28 = vld [vmem:[%s15105_s7 + $0xdc0] sm:$0xff]  ;;  %v2205_v29 = vld [vmem:[%s15105_s7 + $0xdd0] sm:$0xff]  ;;  %2202 = vst [vmem:[%s15110_s8 + $0x6d8] sm:$0xff] %v2201_v27 }
  0x88   : > { %2204 = vst [vmem:[%s15110_s8 + $0x6e0] sm:$0xff] %v2203_v28  ;;  %2206 = vst [vmem:[%s15110_s8 + $0x6e8] sm:$0xff] %v2205_v29  ;;  %v2207_v30 = vld [vmem:[%s15105_s7 + $0xde0] sm:$0xff]  ;;  %v2209_v31 = vld [vmem:[%s15105_s7 + $0xdf0] sm:$0xff] }
  0x89   : > { %v2211_v32 = vld [vmem:[%s15105_s7 + $0xe00] sm:$0xff]  ;;  %2208 = vst [vmem:[%s15110_s8 + $0x6f0] sm:$0xff] %v2207_v30  ;;  %2210 = vst [vmem:[%s15110_s8 + $0x6f8] sm:$0xff] %v2209_v31  ;;  %v2213_v33 = vld [vmem:[%s15105_s7 + $0xe10] sm:$0xff] }
  0x8a   : > { %2212 = vst [vmem:[%s15110_s8 + $0x700] sm:$0xff] %v2211_v32  ;;  %v2215_v34 = vld [vmem:[%s15105_s7 + $0xe20] sm:$0xff]  ;;  %v2217_v35 = vld [vmem:[%s15105_s7 + $0xe30] sm:$0xff]  ;;  %2214 = vst [vmem:[%s15110_s8 + $0x708] sm:$0xff] %v2213_v33 }
  0x8b   : > { %2216 = vst [vmem:[%s15110_s8 + $0x710] sm:$0xff] %v2215_v34  ;;  %2218 = vst [vmem:[%s15110_s8 + $0x718] sm:$0xff] %v2217_v35  ;;  %v2219_v36 = vld [vmem:[%s15105_s7 + $0xe40] sm:$0xff]  ;;  %v2221_v37 = vld [vmem:[%s15105_s7 + $0xe50] sm:$0xff] }
  0x8c   : > { %v2223_v38 = vld [vmem:[%s15105_s7 + $0xe60] sm:$0xff]  ;;  %2220 = vst [vmem:[%s15110_s8 + $0x720] sm:$0xff] %v2219_v36  ;;  %2222 = vst [vmem:[%s15110_s8 + $0x728] sm:$0xff] %v2221_v37  ;;  %v2225_v39 = vld [vmem:[%s15105_s7 + $0xe70] sm:$0xff] }
  0x8d   : > { %2224 = vst [vmem:[%s15110_s8 + $0x730] sm:$0xff] %v2223_v38  ;;  %v2227_v40 = vld [vmem:[%s15105_s7 + $0xe80] sm:$0xff]  ;;  %v2229_v41 = vld [vmem:[%s15105_s7 + $0xe90] sm:$0xff]  ;;  %2226 = vst [vmem:[%s15110_s8 + $0x738] sm:$0xff] %v2225_v39 }
  0x8e   : > { %2228 = vst [vmem:[%s15110_s8 + $0x740] sm:$0xff] %v2227_v40  ;;  %2230 = vst [vmem:[%s15110_s8 + $0x748] sm:$0xff] %v2229_v41  ;;  %v2231_v42 = vld [vmem:[%s15105_s7 + $0xea0] sm:$0xff]  ;;  %v2233_v43 = vld [vmem:[%s15105_s7 + $0xeb0] sm:$0xff] }
  0x8f   : > { %v2235_v44 = vld [vmem:[%s15105_s7 + $0xec0] sm:$0xff]  ;;  %2232 = vst [vmem:[%s15110_s8 + $0x750] sm:$0xff] %v2231_v42  ;;  %2234 = vst [vmem:[%s15110_s8 + $0x758] sm:$0xff] %v2233_v43  ;;  %v2237_v45 = vld [vmem:[%s15105_s7 + $0xed0] sm:$0xff] }
  0x90   : > { %2236 = vst [vmem:[%s15110_s8 + $0x760] sm:$0xff] %v2235_v44  ;;  %v2239_v46 = vld [vmem:[%s15105_s7 + $0xee0] sm:$0xff]  ;;  %v2241_v47 = vld [vmem:[%s15105_s7 + $0xef0] sm:$0xff]  ;;  %2238 = vst [vmem:[%s15110_s8 + $0x768] sm:$0xff] %v2237_v45 }
  0x91   : > { %2240 = vst [vmem:[%s15110_s8 + $0x770] sm:$0xff] %v2239_v46  ;;  %2242 = vst [vmem:[%s15110_s8 + $0x778] sm:$0xff] %v2241_v47  ;;  %v2243_v48 = vld [vmem:[%s15105_s7 + $0xf00] sm:$0xff]  ;;  %v2245_v49 = vld [vmem:[%s15105_s7 + $0xf10] sm:$0xff] }
  0x92   : > { %v2247_v50 = vld [vmem:[%s15105_s7 + $0xf20] sm:$0xff]  ;;  %2244 = vst [vmem:[%s15110_s8 + $0x780] sm:$0xff] %v2243_v48  ;;  %2246 = vst [vmem:[%s15110_s8 + $0x788] sm:$0xff] %v2245_v49  ;;  %v2249_v51 = vld [vmem:[%s15105_s7 + $0xf30] sm:$0xff] }
  0x93   : > { %2248 = vst [vmem:[%s15110_s8 + $0x790] sm:$0xff] %v2247_v50  ;;  %v2251_v52 = vld [vmem:[%s15105_s7 + $0xf40] sm:$0xff]  ;;  %v2253_v53 = vld [vmem:[%s15105_s7 + $0xf50] sm:$0xff]  ;;  %2250 = vst [vmem:[%s15110_s8 + $0x798] sm:$0xff] %v2249_v51 }
  0x94   : > { %2252 = vst [vmem:[%s15110_s8 + $0x7a0] sm:$0xff] %v2251_v52  ;;  %2254 = vst [vmem:[%s15110_s8 + $0x7a8] sm:$0xff] %v2253_v53  ;;  %v2255_v54 = vld [vmem:[%s15105_s7 + $0xf60] sm:$0xff]  ;;  %v2257_v55 = vld [vmem:[%s15105_s7 + $0xf70] sm:$0xff] }
  0x95   : > { %v2259_v56 = vld [vmem:[%s15105_s7 + $0xf80] sm:$0xff]  ;;  %2256 = vst [vmem:[%s15110_s8 + $0x7b0] sm:$0xff] %v2255_v54  ;;  %2258 = vst [vmem:[%s15110_s8 + $0x7b8] sm:$0xff] %v2257_v55  ;;  %v2261_v57 = vld [vmem:[%s15105_s7 + $0xf90] sm:$0xff] }
  0x96   : > { %2260 = vst [vmem:[%s15110_s8 + $0x7c0] sm:$0xff] %v2259_v56  ;;  %v2263_v58 = vld [vmem:[%s15105_s7 + $0xfa0] sm:$0xff]  ;;  %v2265_v59 = vld [vmem:[%s15105_s7 + $0xfb0] sm:$0xff]  ;;  %2262 = vst [vmem:[%s15110_s8 + $0x7c8] sm:$0xff] %v2261_v57 }
  0x97   : > { %2264 = vst [vmem:[%s15110_s8 + $0x7d0] sm:$0xff] %v2263_v58  ;;  %2266 = vst [vmem:[%s15110_s8 + $0x7d8] sm:$0xff] %v2265_v59  ;;  %v2267_v60 = vld [vmem:[%s15105_s7 + $0xfc0] sm:$0xff]  ;;  %v2269_v61 = vld [vmem:[%s15105_s7 + $0xfd0] sm:$0xff] }
  0x98   : > { %v2271_v62 = vld [vmem:[%s15105_s7 + $0xfe0] sm:$0xff]  ;;  %2268 = vst [vmem:[%s15110_s8 + $0x7e0] sm:$0xff] %v2267_v60  ;;  %2270 = vst [vmem:[%s15110_s8 + $0x7e8] sm:$0xff] %v2269_v61  ;;  %v2273_v63 = vld [vmem:[%s15105_s7 + $0xff0] sm:$0xff] }
  0x99   : > { %2272 = vst [vmem:[%s15110_s8 + $0x7f0] sm:$0xff] %v2271_v62  ;;  %v2275_v0 = vld [vmem:[%s15105_s7 + $0x1000] sm:$0xff]  ;;  %v2277_v1 = vld [vmem:[%s15105_s7 + $0x1010] sm:$0xff]  ;;  %2274 = vst [vmem:[%s15110_s8 + $0x7f8] sm:$0xff] %v2273_v63 }
  0x9a   : > { %2276 = vst [vmem:[%s15110_s8 + $0x800] sm:$0xff] %v2275_v0  ;;  %2278 = vst [vmem:[%s15110_s8 + $0x808] sm:$0xff] %v2277_v1  ;;  %v2279_v2 = vld [vmem:[%s15105_s7 + $0x1020] sm:$0xff]  ;;  %v2281_v3 = vld [vmem:[%s15105_s7 + $0x1030] sm:$0xff] }
  0x9b   : > { %v2283_v4 = vld [vmem:[%s15105_s7 + $0x1040] sm:$0xff]  ;;  %2280 = vst [vmem:[%s15110_s8 + $0x810] sm:$0xff] %v2279_v2  ;;  %2282 = vst [vmem:[%s15110_s8 + $0x818] sm:$0xff] %v2281_v3  ;;  %v2285_v5 = vld [vmem:[%s15105_s7 + $0x1050] sm:$0xff] }
  0x9c   : > { %2284 = vst [vmem:[%s15110_s8 + $0x820] sm:$0xff] %v2283_v4  ;;  %v2287_v6 = vld [vmem:[%s15105_s7 + $0x1060] sm:$0xff]  ;;  %v2289_v7 = vld [vmem:[%s15105_s7 + $0x1070] sm:$0xff]  ;;  %2286 = vst [vmem:[%s15110_s8 + $0x828] sm:$0xff] %v2285_v5 }
  0x9d   : > { %2288 = vst [vmem:[%s15110_s8 + $0x830] sm:$0xff] %v2287_v6  ;;  %2290 = vst [vmem:[%s15110_s8 + $0x838] sm:$0xff] %v2289_v7  ;;  %v2291_v8 = vld [vmem:[%s15105_s7 + $0x1080] sm:$0xff]  ;;  %v2293_v9 = vld [vmem:[%s15105_s7 + $0x1090] sm:$0xff] }
  0x9e   : > { %v2295_v10 = vld [vmem:[%s15105_s7 + $0x10a0] sm:$0xff]  ;;  %2292 = vst [vmem:[%s15110_s8 + $0x840] sm:$0xff] %v2291_v8  ;;  %2294 = vst [vmem:[%s15110_s8 + $0x848] sm:$0xff] %v2293_v9  ;;  %v2297_v11 = vld [vmem:[%s15105_s7 + $0x10b0] sm:$0xff] }
  0x9f   : > { %2296 = vst [vmem:[%s15110_s8 + $0x850] sm:$0xff] %v2295_v10  ;;  %v2299_v12 = vld [vmem:[%s15105_s7 + $0x10c0] sm:$0xff]  ;;  %v2301_v13 = vld [vmem:[%s15105_s7 + $0x10d0] sm:$0xff]  ;;  %2298 = vst [vmem:[%s15110_s8 + $0x858] sm:$0xff] %v2297_v11 }
  0xa0   : > { %2300 = vst [vmem:[%s15110_s8 + $0x860] sm:$0xff] %v2299_v12  ;;  %2302 = vst [vmem:[%s15110_s8 + $0x868] sm:$0xff] %v2301_v13  ;;  %v2303_v14 = vld [vmem:[%s15105_s7 + $0x10e0] sm:$0xff]  ;;  %v2305_v15 = vld [vmem:[%s15105_s7 + $0x10f0] sm:$0xff] }
  0xa1   : > { %v2307_v16 = vld [vmem:[%s15105_s7 + $0x1100] sm:$0xff]  ;;  %2304 = vst [vmem:[%s15110_s8 + $0x870] sm:$0xff] %v2303_v14  ;;  %2306 = vst [vmem:[%s15110_s8 + $0x878] sm:$0xff] %v2305_v15  ;;  %v2309_v17 = vld [vmem:[%s15105_s7 + $0x1110] sm:$0xff] }
  0xa2   : > { %2308 = vst [vmem:[%s15110_s8 + $0x880] sm:$0xff] %v2307_v16  ;;  %v2311_v18 = vld [vmem:[%s15105_s7 + $0x1120] sm:$0xff]  ;;  %v2313_v19 = vld [vmem:[%s15105_s7 + $0x1130] sm:$0xff]  ;;  %2310 = vst [vmem:[%s15110_s8 + $0x888] sm:$0xff] %v2309_v17 }
  0xa3   : > { %2312 = vst [vmem:[%s15110_s8 + $0x890] sm:$0xff] %v2311_v18  ;;  %2314 = vst [vmem:[%s15110_s8 + $0x898] sm:$0xff] %v2313_v19  ;;  %v2315_v20 = vld [vmem:[%s15105_s7 + $0x1140] sm:$0xff]  ;;  %v2317_v21 = vld [vmem:[%s15105_s7 + $0x1150] sm:$0xff] }
  0xa4   : > { %v2319_v22 = vld [vmem:[%s15105_s7 + $0x1160] sm:$0xff]  ;;  %2316 = vst [vmem:[%s15110_s8 + $0x8a0] sm:$0xff] %v2315_v20  ;;  %2318 = vst [vmem:[%s15110_s8 + $0x8a8] sm:$0xff] %v2317_v21  ;;  %v2321_v23 = vld [vmem:[%s15105_s7 + $0x1170] sm:$0xff] }
  0xa5   : > { %2320 = vst [vmem:[%s15110_s8 + $0x8b0] sm:$0xff] %v2319_v22  ;;  %v2323_v24 = vld [vmem:[%s15105_s7 + $0x1180] sm:$0xff]  ;;  %v2325_v25 = vld [vmem:[%s15105_s7 + $0x1190] sm:$0xff]  ;;  %2322 = vst [vmem:[%s15110_s8 + $0x8b8] sm:$0xff] %v2321_v23 }
  0xa6   : > { %2324 = vst [vmem:[%s15110_s8 + $0x8c0] sm:$0xff] %v2323_v24  ;;  %2326 = vst [vmem:[%s15110_s8 + $0x8c8] sm:$0xff] %v2325_v25  ;;  %v2327_v26 = vld [vmem:[%s15105_s7 + $0x11a0] sm:$0xff]  ;;  %v2329_v27 = vld [vmem:[%s15105_s7 + $0x11b0] sm:$0xff] }
  0xa7   : > { %v2331_v28 = vld [vmem:[%s15105_s7 + $0x11c0] sm:$0xff]  ;;  %2328 = vst [vmem:[%s15110_s8 + $0x8d0] sm:$0xff] %v2327_v26  ;;  %2330 = vst [vmem:[%s15110_s8 + $0x8d8] sm:$0xff] %v2329_v27  ;;  %v2333_v29 = vld [vmem:[%s15105_s7 + $0x11d0] sm:$0xff] }
  0xa8   : > { %2332 = vst [vmem:[%s15110_s8 + $0x8e0] sm:$0xff] %v2331_v28  ;;  %v2335_v30 = vld [vmem:[%s15105_s7 + $0x11e0] sm:$0xff]  ;;  %v2337_v31 = vld [vmem:[%s15105_s7 + $0x11f0] sm:$0xff]  ;;  %2334 = vst [vmem:[%s15110_s8 + $0x8e8] sm:$0xff] %v2333_v29 }
  0xa9   : > { %2336 = vst [vmem:[%s15110_s8 + $0x8f0] sm:$0xff] %v2335_v30  ;;  %2338 = vst [vmem:[%s15110_s8 + $0x8f8] sm:$0xff] %v2337_v31  ;;  %v2339_v32 = vld [vmem:[%s15105_s7 + $0x1200] sm:$0xff]  ;;  %v2341_v33 = vld [vmem:[%s15105_s7 + $0x1210] sm:$0xff] }
  0xaa   : > { %v2343_v34 = vld [vmem:[%s15105_s7 + $0x1220] sm:$0xff]  ;;  %2340 = vst [vmem:[%s15110_s8 + $0x900] sm:$0xff] %v2339_v32  ;;  %2342 = vst [vmem:[%s15110_s8 + $0x908] sm:$0xff] %v2341_v33  ;;  %v2345_v35 = vld [vmem:[%s15105_s7 + $0x1230] sm:$0xff] }
  0xab   : > { %2344 = vst [vmem:[%s15110_s8 + $0x910] sm:$0xff] %v2343_v34  ;;  %v2347_v36 = vld [vmem:[%s15105_s7 + $0x1240] sm:$0xff]  ;;  %v2349_v37 = vld [vmem:[%s15105_s7 + $0x1250] sm:$0xff]  ;;  %2346 = vst [vmem:[%s15110_s8 + $0x918] sm:$0xff] %v2345_v35 }
  0xac   : > { %2348 = vst [vmem:[%s15110_s8 + $0x920] sm:$0xff] %v2347_v36  ;;  %2350 = vst [vmem:[%s15110_s8 + $0x928] sm:$0xff] %v2349_v37  ;;  %v2351_v38 = vld [vmem:[%s15105_s7 + $0x1260] sm:$0xff]  ;;  %v2353_v39 = vld [vmem:[%s15105_s7 + $0x1270] sm:$0xff] }
  0xad   : > { %v2355_v40 = vld [vmem:[%s15105_s7 + $0x1280] sm:$0xff]  ;;  %2352 = vst [vmem:[%s15110_s8 + $0x930] sm:$0xff] %v2351_v38  ;;  %2354 = vst [vmem:[%s15110_s8 + $0x938] sm:$0xff] %v2353_v39  ;;  %v2357_v41 = vld [vmem:[%s15105_s7 + $0x1290] sm:$0xff] }
  0xae   : > { %2356 = vst [vmem:[%s15110_s8 + $0x940] sm:$0xff] %v2355_v40  ;;  %v2359_v42 = vld [vmem:[%s15105_s7 + $0x12a0] sm:$0xff]  ;;  %v2361_v43 = vld [vmem:[%s15105_s7 + $0x12b0] sm:$0xff]  ;;  %2358 = vst [vmem:[%s15110_s8 + $0x948] sm:$0xff] %v2357_v41 }
  0xaf   : > { %2360 = vst [vmem:[%s15110_s8 + $0x950] sm:$0xff] %v2359_v42  ;;  %2362 = vst [vmem:[%s15110_s8 + $0x958] sm:$0xff] %v2361_v43  ;;  %v2363_v44 = vld [vmem:[%s15105_s7 + $0x12c0] sm:$0xff]  ;;  %v2365_v45 = vld [vmem:[%s15105_s7 + $0x12d0] sm:$0xff] }
  0xb0   : > { %v2367_v46 = vld [vmem:[%s15105_s7 + $0x12e0] sm:$0xff]  ;;  %2364 = vst [vmem:[%s15110_s8 + $0x960] sm:$0xff] %v2363_v44  ;;  %2366 = vst [vmem:[%s15110_s8 + $0x968] sm:$0xff] %v2365_v45  ;;  %v2369_v47 = vld [vmem:[%s15105_s7 + $0x12f0] sm:$0xff] }
  0xb1   : > { %2368 = vst [vmem:[%s15110_s8 + $0x970] sm:$0xff] %v2367_v46  ;;  %v2371_v48 = vld [vmem:[%s15105_s7 + $0x1300] sm:$0xff]  ;;  %v2373_v49 = vld [vmem:[%s15105_s7 + $0x1310] sm:$0xff]  ;;  %2370 = vst [vmem:[%s15110_s8 + $0x978] sm:$0xff] %v2369_v47 }
  0xb2   : > { %2372 = vst [vmem:[%s15110_s8 + $0x980] sm:$0xff] %v2371_v48  ;;  %2374 = vst [vmem:[%s15110_s8 + $0x988] sm:$0xff] %v2373_v49  ;;  %v2375_v50 = vld [vmem:[%s15105_s7 + $0x1320] sm:$0xff]  ;;  %v2377_v51 = vld [vmem:[%s15105_s7 + $0x1330] sm:$0xff] }
  0xb3   : > { %v2379_v52 = vld [vmem:[%s15105_s7 + $0x1340] sm:$0xff]  ;;  %2376 = vst [vmem:[%s15110_s8 + $0x990] sm:$0xff] %v2375_v50  ;;  %2378 = vst [vmem:[%s15110_s8 + $0x998] sm:$0xff] %v2377_v51  ;;  %v2381_v53 = vld [vmem:[%s15105_s7 + $0x1350] sm:$0xff] }
  0xb4   : > { %2380 = vst [vmem:[%s15110_s8 + $0x9a0] sm:$0xff] %v2379_v52  ;;  %v2383_v54 = vld [vmem:[%s15105_s7 + $0x1360] sm:$0xff]  ;;  %v2385_v55 = vld [vmem:[%s15105_s7 + $0x1370] sm:$0xff]  ;;  %2382 = vst [vmem:[%s15110_s8 + $0x9a8] sm:$0xff] %v2381_v53 }
  0xb5   : > { %2384 = vst [vmem:[%s15110_s8 + $0x9b0] sm:$0xff] %v2383_v54  ;;  %2386 = vst [vmem:[%s15110_s8 + $0x9b8] sm:$0xff] %v2385_v55  ;;  %v2387_v56 = vld [vmem:[%s15105_s7 + $0x1380] sm:$0xff]  ;;  %v2389_v57 = vld [vmem:[%s15105_s7 + $0x1390] sm:$0xff] }
  0xb6   : > { %v2391_v58 = vld [vmem:[%s15105_s7 + $0x13a0] sm:$0xff]  ;;  %2388 = vst [vmem:[%s15110_s8 + $0x9c0] sm:$0xff] %v2387_v56  ;;  %2390 = vst [vmem:[%s15110_s8 + $0x9c8] sm:$0xff] %v2389_v57  ;;  %v2393_v59 = vld [vmem:[%s15105_s7 + $0x13b0] sm:$0xff] }
  0xb7   : > { %2392 = vst [vmem:[%s15110_s8 + $0x9d0] sm:$0xff] %v2391_v58  ;;  %v2395_v60 = vld [vmem:[%s15105_s7 + $0x13c0] sm:$0xff]  ;;  %v2397_v61 = vld [vmem:[%s15105_s7 + $0x13d0] sm:$0xff]  ;;  %2394 = vst [vmem:[%s15110_s8 + $0x9d8] sm:$0xff] %v2393_v59 }
  0xb8   : > { %2396 = vst [vmem:[%s15110_s8 + $0x9e0] sm:$0xff] %v2395_v60  ;;  %2398 = vst [vmem:[%s15110_s8 + $0x9e8] sm:$0xff] %v2397_v61  ;;  %v2399_v62 = vld [vmem:[%s15105_s7 + $0x13e0] sm:$0xff]  ;;  %v2401_v63 = vld [vmem:[%s15105_s7 + $0x13f0] sm:$0xff] }
  0xb9   : > { %v2403_v0 = vld [vmem:[%s15105_s7 + $0x1400] sm:$0xff]  ;;  %2400 = vst [vmem:[%s15110_s8 + $0x9f0] sm:$0xff] %v2399_v62  ;;  %2402 = vst [vmem:[%s15110_s8 + $0x9f8] sm:$0xff] %v2401_v63  ;;  %v2405_v1 = vld [vmem:[%s15105_s7 + $0x1410] sm:$0xff] }
  0xba   : > { %2404 = vst [vmem:[%s15110_s8 + $0xa00] sm:$0xff] %v2403_v0  ;;  %v2407_v2 = vld [vmem:[%s15105_s7 + $0x1420] sm:$0xff]  ;;  %v2409_v3 = vld [vmem:[%s15105_s7 + $0x1430] sm:$0xff]  ;;  %2406 = vst [vmem:[%s15110_s8 + $0xa08] sm:$0xff] %v2405_v1 }
  0xbb   : > { %2408 = vst [vmem:[%s15110_s8 + $0xa10] sm:$0xff] %v2407_v2  ;;  %2410 = vst [vmem:[%s15110_s8 + $0xa18] sm:$0xff] %v2409_v3  ;;  %v2411_v4 = vld [vmem:[%s15105_s7 + $0x1440] sm:$0xff]  ;;  %v2413_v5 = vld [vmem:[%s15105_s7 + $0x1450] sm:$0xff] }
  0xbc   : > { %v2415_v6 = vld [vmem:[%s15105_s7 + $0x1460] sm:$0xff]  ;;  %2412 = vst [vmem:[%s15110_s8 + $0xa20] sm:$0xff] %v2411_v4  ;;  %2414 = vst [vmem:[%s15110_s8 + $0xa28] sm:$0xff] %v2413_v5  ;;  %v2417_v7 = vld [vmem:[%s15105_s7 + $0x1470] sm:$0xff] }
  0xbd   : > { %2416 = vst [vmem:[%s15110_s8 + $0xa30] sm:$0xff] %v2415_v6  ;;  %v2419_v8 = vld [vmem:[%s15105_s7 + $0x1480] sm:$0xff]  ;;  %v2421_v9 = vld [vmem:[%s15105_s7 + $0x1490] sm:$0xff]  ;;  %2418 = vst [vmem:[%s15110_s8 + $0xa38] sm:$0xff] %v2417_v7 }
  0xbe   : > { %2420 = vst [vmem:[%s15110_s8 + $0xa40] sm:$0xff] %v2419_v8  ;;  %2422 = vst [vmem:[%s15110_s8 + $0xa48] sm:$0xff] %v2421_v9  ;;  %v2423_v10 = vld [vmem:[%s15105_s7 + $0x14a0] sm:$0xff]  ;;  %v2425_v11 = vld [vmem:[%s15105_s7 + $0x14b0] sm:$0xff] }
  0xbf   : > { %v2427_v12 = vld [vmem:[%s15105_s7 + $0x14c0] sm:$0xff]  ;;  %2424 = vst [vmem:[%s15110_s8 + $0xa50] sm:$0xff] %v2423_v10  ;;  %2426 = vst [vmem:[%s15110_s8 + $0xa58] sm:$0xff] %v2425_v11  ;;  %v2429_v13 = vld [vmem:[%s15105_s7 + $0x14d0] sm:$0xff] }
  0xc0   : > { %2428 = vst [vmem:[%s15110_s8 + $0xa60] sm:$0xff] %v2427_v12  ;;  %v2431_v14 = vld [vmem:[%s15105_s7 + $0x14e0] sm:$0xff]  ;;  %v2433_v15 = vld [vmem:[%s15105_s7 + $0x14f0] sm:$0xff]  ;;  %2430 = vst [vmem:[%s15110_s8 + $0xa68] sm:$0xff] %v2429_v13 }
  0xc1   : > { %2432 = vst [vmem:[%s15110_s8 + $0xa70] sm:$0xff] %v2431_v14  ;;  %2434 = vst [vmem:[%s15110_s8 + $0xa78] sm:$0xff] %v2433_v15  ;;  %v2435_v16 = vld [vmem:[%s15105_s7 + $0x1500] sm:$0xff]  ;;  %v2437_v17 = vld [vmem:[%s15105_s7 + $0x1510] sm:$0xff] }
  0xc2   : > { %v2439_v18 = vld [vmem:[%s15105_s7 + $0x1520] sm:$0xff]  ;;  %2436 = vst [vmem:[%s15110_s8 + $0xa80] sm:$0xff] %v2435_v16  ;;  %2438 = vst [vmem:[%s15110_s8 + $0xa88] sm:$0xff] %v2437_v17  ;;  %v2441_v19 = vld [vmem:[%s15105_s7 + $0x1530] sm:$0xff] }
  0xc3   : > { %2440 = vst [vmem:[%s15110_s8 + $0xa90] sm:$0xff] %v2439_v18  ;;  %v2443_v20 = vld [vmem:[%s15105_s7 + $0x1540] sm:$0xff]  ;;  %v2445_v21 = vld [vmem:[%s15105_s7 + $0x1550] sm:$0xff]  ;;  %2442 = vst [vmem:[%s15110_s8 + $0xa98] sm:$0xff] %v2441_v19 }
  0xc4   : > { %2444 = vst [vmem:[%s15110_s8 + $0xaa0] sm:$0xff] %v2443_v20  ;;  %2446 = vst [vmem:[%s15110_s8 + $0xaa8] sm:$0xff] %v2445_v21  ;;  %v2447_v22 = vld [vmem:[%s15105_s7 + $0x1560] sm:$0xff]  ;;  %v2449_v23 = vld [vmem:[%s15105_s7 + $0x1570] sm:$0xff] }
  0xc5   : > { %v2451_v24 = vld [vmem:[%s15105_s7 + $0x1580] sm:$0xff]  ;;  %2448 = vst [vmem:[%s15110_s8 + $0xab0] sm:$0xff] %v2447_v22  ;;  %2450 = vst [vmem:[%s15110_s8 + $0xab8] sm:$0xff] %v2449_v23  ;;  %v2453_v25 = vld [vmem:[%s15105_s7 + $0x1590] sm:$0xff] }
  0xc6   : > { %2452 = vst [vmem:[%s15110_s8 + $0xac0] sm:$0xff] %v2451_v24  ;;  %v2455_v26 = vld [vmem:[%s15105_s7 + $0x15a0] sm:$0xff]  ;;  %v2457_v27 = vld [vmem:[%s15105_s7 + $0x15b0] sm:$0xff]  ;;  %2454 = vst [vmem:[%s15110_s8 + $0xac8] sm:$0xff] %v2453_v25 }
  0xc7   : > { %2456 = vst [vmem:[%s15110_s8 + $0xad0] sm:$0xff] %v2455_v26  ;;  %2458 = vst [vmem:[%s15110_s8 + $0xad8] sm:$0xff] %v2457_v27  ;;  %v2459_v28 = vld [vmem:[%s15105_s7 + $0x15c0] sm:$0xff]  ;;  %v2461_v29 = vld [vmem:[%s15105_s7 + $0x15d0] sm:$0xff] }
  0xc8   : > { %v2463_v30 = vld [vmem:[%s15105_s7 + $0x15e0] sm:$0xff]  ;;  %2460 = vst [vmem:[%s15110_s8 + $0xae0] sm:$0xff] %v2459_v28  ;;  %2462 = vst [vmem:[%s15110_s8 + $0xae8] sm:$0xff] %v2461_v29  ;;  %v2465_v31 = vld [vmem:[%s15105_s7 + $0x15f0] sm:$0xff] }
  0xc9   : > { %2464 = vst [vmem:[%s15110_s8 + $0xaf0] sm:$0xff] %v2463_v30  ;;  %v2467_v32 = vld [vmem:[%s15105_s7 + $0x1600] sm:$0xff]  ;;  %v2469_v33 = vld [vmem:[%s15105_s7 + $0x1610] sm:$0xff]  ;;  %2466 = vst [vmem:[%s15110_s8 + $0xaf8] sm:$0xff] %v2465_v31 }
  0xca   : > { %2468 = vst [vmem:[%s15110_s8 + $0xb00] sm:$0xff] %v2467_v32  ;;  %2470 = vst [vmem:[%s15110_s8 + $0xb08] sm:$0xff] %v2469_v33  ;;  %v2471_v34 = vld [vmem:[%s15105_s7 + $0x1620] sm:$0xff]  ;;  %v2473_v35 = vld [vmem:[%s15105_s7 + $0x1630] sm:$0xff] }
  0xcb   : > { %v2475_v36 = vld [vmem:[%s15105_s7 + $0x1640] sm:$0xff]  ;;  %2472 = vst [vmem:[%s15110_s8 + $0xb10] sm:$0xff] %v2471_v34  ;;  %2474 = vst [vmem:[%s15110_s8 + $0xb18] sm:$0xff] %v2473_v35  ;;  %v2477_v37 = vld [vmem:[%s15105_s7 + $0x1650] sm:$0xff] }
  0xcc   : > { %2476 = vst [vmem:[%s15110_s8 + $0xb20] sm:$0xff] %v2475_v36  ;;  %v2479_v38 = vld [vmem:[%s15105_s7 + $0x1660] sm:$0xff]  ;;  %v2481_v39 = vld [vmem:[%s15105_s7 + $0x1670] sm:$0xff]  ;;  %2478 = vst [vmem:[%s15110_s8 + $0xb28] sm:$0xff] %v2477_v37 }
  0xcd   : > { %2480 = vst [vmem:[%s15110_s8 + $0xb30] sm:$0xff] %v2479_v38  ;;  %2482 = vst [vmem:[%s15110_s8 + $0xb38] sm:$0xff] %v2481_v39  ;;  %v2483_v40 = vld [vmem:[%s15105_s7 + $0x1680] sm:$0xff]  ;;  %v2485_v41 = vld [vmem:[%s15105_s7 + $0x1690] sm:$0xff] }
  0xce   : > { %v2487_v42 = vld [vmem:[%s15105_s7 + $0x16a0] sm:$0xff]  ;;  %2484 = vst [vmem:[%s15110_s8 + $0xb40] sm:$0xff] %v2483_v40  ;;  %2486 = vst [vmem:[%s15110_s8 + $0xb48] sm:$0xff] %v2485_v41  ;;  %v2489_v43 = vld [vmem:[%s15105_s7 + $0x16b0] sm:$0xff] }
  0xcf   : > { %2488 = vst [vmem:[%s15110_s8 + $0xb50] sm:$0xff] %v2487_v42  ;;  %v2491_v44 = vld [vmem:[%s15105_s7 + $0x16c0] sm:$0xff]  ;;  %v2493_v45 = vld [vmem:[%s15105_s7 + $0x16d0] sm:$0xff]  ;;  %2490 = vst [vmem:[%s15110_s8 + $0xb58] sm:$0xff] %v2489_v43 }
  0xd0   : > { %2492 = vst [vmem:[%s15110_s8 + $0xb60] sm:$0xff] %v2491_v44  ;;  %2494 = vst [vmem:[%s15110_s8 + $0xb68] sm:$0xff] %v2493_v45  ;;  %v2495_v46 = vld [vmem:[%s15105_s7 + $0x16e0] sm:$0xff]  ;;  %v2497_v47 = vld [vmem:[%s15105_s7 + $0x16f0] sm:$0xff] }
  0xd1   : > { %v2499_v48 = vld [vmem:[%s15105_s7 + $0x1700] sm:$0xff]  ;;  %2496 = vst [vmem:[%s15110_s8 + $0xb70] sm:$0xff] %v2495_v46  ;;  %2498 = vst [vmem:[%s15110_s8 + $0xb78] sm:$0xff] %v2497_v47  ;;  %v2501_v49 = vld [vmem:[%s15105_s7 + $0x1710] sm:$0xff] }
  0xd2   : > { %2500 = vst [vmem:[%s15110_s8 + $0xb80] sm:$0xff] %v2499_v48  ;;  %v2503_v50 = vld [vmem:[%s15105_s7 + $0x1720] sm:$0xff]  ;;  %v2505_v51 = vld [vmem:[%s15105_s7 + $0x1730] sm:$0xff]  ;;  %2502 = vst [vmem:[%s15110_s8 + $0xb88] sm:$0xff] %v2501_v49 }
  0xd3   : > { %2504 = vst [vmem:[%s15110_s8 + $0xb90] sm:$0xff] %v2503_v50  ;;  %2506 = vst [vmem:[%s15110_s8 + $0xb98] sm:$0xff] %v2505_v51  ;;  %v2507_v52 = vld [vmem:[%s15105_s7 + $0x1740] sm:$0xff]  ;;  %v2509_v53 = vld [vmem:[%s15105_s7 + $0x1750] sm:$0xff] }
  0xd4   : > { %v2511_v54 = vld [vmem:[%s15105_s7 + $0x1760] sm:$0xff]  ;;  %2508 = vst [vmem:[%s15110_s8 + $0xba0] sm:$0xff] %v2507_v52  ;;  %2510 = vst [vmem:[%s15110_s8 + $0xba8] sm:$0xff] %v2509_v53  ;;  %v2513_v55 = vld [vmem:[%s15105_s7 + $0x1770] sm:$0xff] }
  0xd5   : > { %2512 = vst [vmem:[%s15110_s8 + $0xbb0] sm:$0xff] %v2511_v54  ;;  %v2515_v56 = vld [vmem:[%s15105_s7 + $0x1780] sm:$0xff]  ;;  %v2517_v57 = vld [vmem:[%s15105_s7 + $0x1790] sm:$0xff]  ;;  %2514 = vst [vmem:[%s15110_s8 + $0xbb8] sm:$0xff] %v2513_v55 }
  0xd6   : > { %2516 = vst [vmem:[%s15110_s8 + $0xbc0] sm:$0xff] %v2515_v56  ;;  %2518 = vst [vmem:[%s15110_s8 + $0xbc8] sm:$0xff] %v2517_v57  ;;  %v2519_v58 = vld [vmem:[%s15105_s7 + $0x17a0] sm:$0xff]  ;;  %v2521_v59 = vld [vmem:[%s15105_s7 + $0x17b0] sm:$0xff] }
  0xd7   : > { %v2523_v60 = vld [vmem:[%s15105_s7 + $0x17c0] sm:$0xff]  ;;  %2520 = vst [vmem:[%s15110_s8 + $0xbd0] sm:$0xff] %v2519_v58  ;;  %2522 = vst [vmem:[%s15110_s8 + $0xbd8] sm:$0xff] %v2521_v59  ;;  %v2525_v61 = vld [vmem:[%s15105_s7 + $0x17d0] sm:$0xff] }
  0xd8   : > { %2524 = vst [vmem:[%s15110_s8 + $0xbe0] sm:$0xff] %v2523_v60  ;;  %v2527_v62 = vld [vmem:[%s15105_s7 + $0x17e0] sm:$0xff]  ;;  %v2529_v63 = vld [vmem:[%s15105_s7 + $0x17f0] sm:$0xff]  ;;  %2526 = vst [vmem:[%s15110_s8 + $0xbe8] sm:$0xff] %v2525_v61 }
  0xd9   : > { %2528 = vst [vmem:[%s15110_s8 + $0xbf0] sm:$0xff] %v2527_v62  ;;  %2530 = vst [vmem:[%s15110_s8 + $0xbf8] sm:$0xff] %v2529_v63  ;;  %v2531_v0 = vld [vmem:[%s15105_s7 + $0x1800] sm:$0xff]  ;;  %v2533_v1 = vld [vmem:[%s15105_s7 + $0x1810] sm:$0xff] }
  0xda   : > { %v2535_v2 = vld [vmem:[%s15105_s7 + $0x1820] sm:$0xff]  ;;  %2532 = vst [vmem:[%s15110_s8 + $0xc00] sm:$0xff] %v2531_v0  ;;  %2534 = vst [vmem:[%s15110_s8 + $0xc08] sm:$0xff] %v2533_v1  ;;  %v2537_v3 = vld [vmem:[%s15105_s7 + $0x1830] sm:$0xff] }
  0xdb   : > { %2536 = vst [vmem:[%s15110_s8 + $0xc10] sm:$0xff] %v2535_v2  ;;  %v2539_v4 = vld [vmem:[%s15105_s7 + $0x1840] sm:$0xff]  ;;  %v2541_v5 = vld [vmem:[%s15105_s7 + $0x1850] sm:$0xff]  ;;  %2538 = vst [vmem:[%s15110_s8 + $0xc18] sm:$0xff] %v2537_v3 }
  0xdc   : > { %2540 = vst [vmem:[%s15110_s8 + $0xc20] sm:$0xff] %v2539_v4  ;;  %2542 = vst [vmem:[%s15110_s8 + $0xc28] sm:$0xff] %v2541_v5  ;;  %v2543_v6 = vld [vmem:[%s15105_s7 + $0x1860] sm:$0xff]  ;;  %v2545_v7 = vld [vmem:[%s15105_s7 + $0x1870] sm:$0xff] }
  0xdd   : > { %v2547_v8 = vld [vmem:[%s15105_s7 + $0x1880] sm:$0xff]  ;;  %2544 = vst [vmem:[%s15110_s8 + $0xc30] sm:$0xff] %v2543_v6  ;;  %2546 = vst [vmem:[%s15110_s8 + $0xc38] sm:$0xff] %v2545_v7  ;;  %v2549_v9 = vld [vmem:[%s15105_s7 + $0x1890] sm:$0xff] }
  0xde   : > { %2548 = vst [vmem:[%s15110_s8 + $0xc40] sm:$0xff] %v2547_v8  ;;  %v2551_v10 = vld [vmem:[%s15105_s7 + $0x18a0] sm:$0xff]  ;;  %v2553_v11 = vld [vmem:[%s15105_s7 + $0x18b0] sm:$0xff]  ;;  %2550 = vst [vmem:[%s15110_s8 + $0xc48] sm:$0xff] %v2549_v9 }
  0xdf   : > { %2552 = vst [vmem:[%s15110_s8 + $0xc50] sm:$0xff] %v2551_v10  ;;  %2554 = vst [vmem:[%s15110_s8 + $0xc58] sm:$0xff] %v2553_v11  ;;  %v2555_v12 = vld [vmem:[%s15105_s7 + $0x18c0] sm:$0xff]  ;;  %v2557_v13 = vld [vmem:[%s15105_s7 + $0x18d0] sm:$0xff] }
  0xe0   : > { %v2559_v14 = vld [vmem:[%s15105_s7 + $0x18e0] sm:$0xff]  ;;  %2556 = vst [vmem:[%s15110_s8 + $0xc60] sm:$0xff] %v2555_v12  ;;  %2558 = vst [vmem:[%s15110_s8 + $0xc68] sm:$0xff] %v2557_v13  ;;  %v2561_v15 = vld [vmem:[%s15105_s7 + $0x18f0] sm:$0xff] }
  0xe1   : > { %2560 = vst [vmem:[%s15110_s8 + $0xc70] sm:$0xff] %v2559_v14  ;;  %v2563_v16 = vld [vmem:[%s15105_s7 + $0x1900] sm:$0xff]  ;;  %v2565_v17 = vld [vmem:[%s15105_s7 + $0x1910] sm:$0xff]  ;;  %2562 = vst [vmem:[%s15110_s8 + $0xc78] sm:$0xff] %v2561_v15 }
  0xe2   : > { %2564 = vst [vmem:[%s15110_s8 + $0xc80] sm:$0xff] %v2563_v16  ;;  %2566 = vst [vmem:[%s15110_s8 + $0xc88] sm:$0xff] %v2565_v17  ;;  %v2567_v18 = vld [vmem:[%s15105_s7 + $0x1920] sm:$0xff]  ;;  %v2569_v19 = vld [vmem:[%s15105_s7 + $0x1930] sm:$0xff] }
  0xe3   : > { %v2571_v20 = vld [vmem:[%s15105_s7 + $0x1940] sm:$0xff]  ;;  %2568 = vst [vmem:[%s15110_s8 + $0xc90] sm:$0xff] %v2567_v18  ;;  %2570 = vst [vmem:[%s15110_s8 + $0xc98] sm:$0xff] %v2569_v19  ;;  %v2573_v21 = vld [vmem:[%s15105_s7 + $0x1950] sm:$0xff] }
  0xe4   : > { %2572 = vst [vmem:[%s15110_s8 + $0xca0] sm:$0xff] %v2571_v20  ;;  %v2575_v22 = vld [vmem:[%s15105_s7 + $0x1960] sm:$0xff]  ;;  %v2577_v23 = vld [vmem:[%s15105_s7 + $0x1970] sm:$0xff]  ;;  %2574 = vst [vmem:[%s15110_s8 + $0xca8] sm:$0xff] %v2573_v21 }
  0xe5   : > { %2576 = vst [vmem:[%s15110_s8 + $0xcb0] sm:$0xff] %v2575_v22  ;;  %2578 = vst [vmem:[%s15110_s8 + $0xcb8] sm:$0xff] %v2577_v23  ;;  %v2579_v24 = vld [vmem:[%s15105_s7 + $0x1980] sm:$0xff]  ;;  %v2581_v25 = vld [vmem:[%s15105_s7 + $0x1990] sm:$0xff] }
  0xe6   : > { %v2583_v26 = vld [vmem:[%s15105_s7 + $0x19a0] sm:$0xff]  ;;  %2580 = vst [vmem:[%s15110_s8 + $0xcc0] sm:$0xff] %v2579_v24  ;;  %2582 = vst [vmem:[%s15110_s8 + $0xcc8] sm:$0xff] %v2581_v25  ;;  %v2585_v27 = vld [vmem:[%s15105_s7 + $0x19b0] sm:$0xff] }
  0xe7   : > { %2584 = vst [vmem:[%s15110_s8 + $0xcd0] sm:$0xff] %v2583_v26  ;;  %v2587_v28 = vld [vmem:[%s15105_s7 + $0x19c0] sm:$0xff]  ;;  %v2589_v29 = vld [vmem:[%s15105_s7 + $0x19d0] sm:$0xff]  ;;  %2586 = vst [vmem:[%s15110_s8 + $0xcd8] sm:$0xff] %v2585_v27 }
  0xe8   : > { %2588 = vst [vmem:[%s15110_s8 + $0xce0] sm:$0xff] %v2587_v28  ;;  %2590 = vst [vmem:[%s15110_s8 + $0xce8] sm:$0xff] %v2589_v29  ;;  %v2591_v30 = vld [vmem:[%s15105_s7 + $0x19e0] sm:$0xff]  ;;  %v2593_v31 = vld [vmem:[%s15105_s7 + $0x19f0] sm:$0xff] }
  0xe9   : > { %v2595_v32 = vld [vmem:[%s15105_s7 + $0x1a00] sm:$0xff]  ;;  %2592 = vst [vmem:[%s15110_s8 + $0xcf0] sm:$0xff] %v2591_v30  ;;  %2594 = vst [vmem:[%s15110_s8 + $0xcf8] sm:$0xff] %v2593_v31  ;;  %v2597_v33 = vld [vmem:[%s15105_s7 + $0x1a10] sm:$0xff] }
  0xea   : > { %2596 = vst [vmem:[%s15110_s8 + $0xd00] sm:$0xff] %v2595_v32  ;;  %v2599_v34 = vld [vmem:[%s15105_s7 + $0x1a20] sm:$0xff]  ;;  %v2601_v35 = vld [vmem:[%s15105_s7 + $0x1a30] sm:$0xff]  ;;  %2598 = vst [vmem:[%s15110_s8 + $0xd08] sm:$0xff] %v2597_v33 }
  0xeb   : > { %2600 = vst [vmem:[%s15110_s8 + $0xd10] sm:$0xff] %v2599_v34  ;;  %2602 = vst [vmem:[%s15110_s8 + $0xd18] sm:$0xff] %v2601_v35  ;;  %v2603_v36 = vld [vmem:[%s15105_s7 + $0x1a40] sm:$0xff]  ;;  %v2605_v37 = vld [vmem:[%s15105_s7 + $0x1a50] sm:$0xff] }
  0xec   : > { %v2607_v38 = vld [vmem:[%s15105_s7 + $0x1a60] sm:$0xff]  ;;  %2604 = vst [vmem:[%s15110_s8 + $0xd20] sm:$0xff] %v2603_v36  ;;  %2606 = vst [vmem:[%s15110_s8 + $0xd28] sm:$0xff] %v2605_v37  ;;  %v2609_v39 = vld [vmem:[%s15105_s7 + $0x1a70] sm:$0xff] }
  0xed   : > { %2608 = vst [vmem:[%s15110_s8 + $0xd30] sm:$0xff] %v2607_v38  ;;  %v2611_v40 = vld [vmem:[%s15105_s7 + $0x1a80] sm:$0xff]  ;;  %v2613_v41 = vld [vmem:[%s15105_s7 + $0x1a90] sm:$0xff]  ;;  %2610 = vst [vmem:[%s15110_s8 + $0xd38] sm:$0xff] %v2609_v39 }
  0xee   : > { %2612 = vst [vmem:[%s15110_s8 + $0xd40] sm:$0xff] %v2611_v40  ;;  %2614 = vst [vmem:[%s15110_s8 + $0xd48] sm:$0xff] %v2613_v41  ;;  %v2615_v42 = vld [vmem:[%s15105_s7 + $0x1aa0] sm:$0xff]  ;;  %v2617_v43 = vld [vmem:[%s15105_s7 + $0x1ab0] sm:$0xff] }
  0xef   : > { %v2619_v44 = vld [vmem:[%s15105_s7 + $0x1ac0] sm:$0xff]  ;;  %2616 = vst [vmem:[%s15110_s8 + $0xd50] sm:$0xff] %v2615_v42  ;;  %2618 = vst [vmem:[%s15110_s8 + $0xd58] sm:$0xff] %v2617_v43  ;;  %v2621_v45 = vld [vmem:[%s15105_s7 + $0x1ad0] sm:$0xff] }
  0xf0   : > { %2620 = vst [vmem:[%s15110_s8 + $0xd60] sm:$0xff] %v2619_v44  ;;  %v2623_v46 = vld [vmem:[%s15105_s7 + $0x1ae0] sm:$0xff]  ;;  %v2625_v47 = vld [vmem:[%s15105_s7 + $0x1af0] sm:$0xff]  ;;  %2622 = vst [vmem:[%s15110_s8 + $0xd68] sm:$0xff] %v2621_v45 }
  0xf1   : > { %2624 = vst [vmem:[%s15110_s8 + $0xd70] sm:$0xff] %v2623_v46  ;;  %2626 = vst [vmem:[%s15110_s8 + $0xd78] sm:$0xff] %v2625_v47  ;;  %v2627_v48 = vld [vmem:[%s15105_s7 + $0x1b00] sm:$0xff]  ;;  %v2629_v49 = vld [vmem:[%s15105_s7 + $0x1b10] sm:$0xff] }
  0xf2   : > { %v2631_v50 = vld [vmem:[%s15105_s7 + $0x1b20] sm:$0xff]  ;;  %2628 = vst [vmem:[%s15110_s8 + $0xd80] sm:$0xff] %v2627_v48  ;;  %2630 = vst [vmem:[%s15110_s8 + $0xd88] sm:$0xff] %v2629_v49  ;;  %v2633_v51 = vld [vmem:[%s15105_s7 + $0x1b30] sm:$0xff] }
  0xf3   : > { %2632 = vst [vmem:[%s15110_s8 + $0xd90] sm:$0xff] %v2631_v50  ;;  %v2635_v52 = vld [vmem:[%s15105_s7 + $0x1b40] sm:$0xff]  ;;  %v2637_v53 = vld [vmem:[%s15105_s7 + $0x1b50] sm:$0xff]  ;;  %2634 = vst [vmem:[%s15110_s8 + $0xd98] sm:$0xff] %v2633_v51 }
  0xf4   : > { %2636 = vst [vmem:[%s15110_s8 + $0xda0] sm:$0xff] %v2635_v52  ;;  %2638 = vst [vmem:[%s15110_s8 + $0xda8] sm:$0xff] %v2637_v53  ;;  %v2639_v54 = vld [vmem:[%s15105_s7 + $0x1b60] sm:$0xff]  ;;  %v2641_v55 = vld [vmem:[%s15105_s7 + $0x1b70] sm:$0xff] }
  0xf5   : > { %v2643_v56 = vld [vmem:[%s15105_s7 + $0x1b80] sm:$0xff]  ;;  %2640 = vst [vmem:[%s15110_s8 + $0xdb0] sm:$0xff] %v2639_v54  ;;  %2642 = vst [vmem:[%s15110_s8 + $0xdb8] sm:$0xff] %v2641_v55  ;;  %v2645_v57 = vld [vmem:[%s15105_s7 + $0x1b90] sm:$0xff] }
  0xf6   : > { %2644 = vst [vmem:[%s15110_s8 + $0xdc0] sm:$0xff] %v2643_v56  ;;  %v2647_v58 = vld [vmem:[%s15105_s7 + $0x1ba0] sm:$0xff]  ;;  %v2649_v59 = vld [vmem:[%s15105_s7 + $0x1bb0] sm:$0xff]  ;;  %2646 = vst [vmem:[%s15110_s8 + $0xdc8] sm:$0xff] %v2645_v57 }
  0xf7   : > { %2648 = vst [vmem:[%s15110_s8 + $0xdd0] sm:$0xff] %v2647_v58  ;;  %2650 = vst [vmem:[%s15110_s8 + $0xdd8] sm:$0xff] %v2649_v59  ;;  %v2651_v60 = vld [vmem:[%s15105_s7 + $0x1bc0] sm:$0xff]  ;;  %v2653_v61 = vld [vmem:[%s15105_s7 + $0x1bd0] sm:$0xff] }
  0xf8   : > { %v2655_v62 = vld [vmem:[%s15105_s7 + $0x1be0] sm:$0xff]  ;;  %2652 = vst [vmem:[%s15110_s8 + $0xde0] sm:$0xff] %v2651_v60  ;;  %2654 = vst [vmem:[%s15110_s8 + $0xde8] sm:$0xff] %v2653_v61  ;;  %v2657_v63 = vld [vmem:[%s15105_s7 + $0x1bf0] sm:$0xff] }
  0xf9   : > { %2656 = vst [vmem:[%s15110_s8 + $0xdf0] sm:$0xff] %v2655_v62  ;;  %v2659_v0 = vld [vmem:[%s15105_s7 + $0x1c00] sm:$0xff]  ;;  %v2661_v1 = vld [vmem:[%s15105_s7 + $0x1c10] sm:$0xff]  ;;  %2658 = vst [vmem:[%s15110_s8 + $0xdf8] sm:$0xff] %v2657_v63 }
  0xfa   : > { %2660 = vst [vmem:[%s15110_s8 + $0xe00] sm:$0xff] %v2659_v0  ;;  %2662 = vst [vmem:[%s15110_s8 + $0xe08] sm:$0xff] %v2661_v1  ;;  %v2663_v2 = vld [vmem:[%s15105_s7 + $0x1c20] sm:$0xff]  ;;  %v2665_v3 = vld [vmem:[%s15105_s7 + $0x1c30] sm:$0xff] }
  0xfb   : > { %v2667_v4 = vld [vmem:[%s15105_s7 + $0x1c40] sm:$0xff]  ;;  %2664 = vst [vmem:[%s15110_s8 + $0xe10] sm:$0xff] %v2663_v2  ;;  %2666 = vst [vmem:[%s15110_s8 + $0xe18] sm:$0xff] %v2665_v3  ;;  %v2669_v5 = vld [vmem:[%s15105_s7 + $0x1c50] sm:$0xff] }
  0xfc   : > { %2668 = vst [vmem:[%s15110_s8 + $0xe20] sm:$0xff] %v2667_v4  ;;  %v2671_v6 = vld [vmem:[%s15105_s7 + $0x1c60] sm:$0xff]  ;;  %v2673_v7 = vld [vmem:[%s15105_s7 + $0x1c70] sm:$0xff]  ;;  %2670 = vst [vmem:[%s15110_s8 + $0xe28] sm:$0xff] %v2669_v5 }
  0xfd   : > { %2672 = vst [vmem:[%s15110_s8 + $0xe30] sm:$0xff] %v2671_v6  ;;  %2674 = vst [vmem:[%s15110_s8 + $0xe38] sm:$0xff] %v2673_v7  ;;  %v2675_v8 = vld [vmem:[%s15105_s7 + $0x1c80] sm:$0xff]  ;;  %v2677_v9 = vld [vmem:[%s15105_s7 + $0x1c90] sm:$0xff] }
  0xfe   : > { %v2679_v10 = vld [vmem:[%s15105_s7 + $0x1ca0] sm:$0xff]  ;;  %2676 = vst [vmem:[%s15110_s8 + $0xe40] sm:$0xff] %v2675_v8  ;;  %2678 = vst [vmem:[%s15110_s8 + $0xe48] sm:$0xff] %v2677_v9  ;;  %v2681_v11 = vld [vmem:[%s15105_s7 + $0x1cb0] sm:$0xff] }
  0xff   : > { %2680 = vst [vmem:[%s15110_s8 + $0xe50] sm:$0xff] %v2679_v10  ;;  %v2683_v12 = vld [vmem:[%s15105_s7 + $0x1cc0] sm:$0xff]  ;;  %v2685_v13 = vld [vmem:[%s15105_s7 + $0x1cd0] sm:$0xff]  ;;  %2682 = vst [vmem:[%s15110_s8 + $0xe58] sm:$0xff] %v2681_v11 }
 0x100   : > { %2684 = vst [vmem:[%s15110_s8 + $0xe60] sm:$0xff] %v2683_v12  ;;  %2686 = vst [vmem:[%s15110_s8 + $0xe68] sm:$0xff] %v2685_v13  ;;  %v2687_v14 = vld [vmem:[%s15105_s7 + $0x1ce0] sm:$0xff]  ;;  %v2689_v15 = vld [vmem:[%s15105_s7 + $0x1cf0] sm:$0xff] }
 0x101   : > { %v2691_v16 = vld [vmem:[%s15105_s7 + $0x1d00] sm:$0xff]  ;;  %2688 = vst [vmem:[%s15110_s8 + $0xe70] sm:$0xff] %v2687_v14  ;;  %2690 = vst [vmem:[%s15110_s8 + $0xe78] sm:$0xff] %v2689_v15  ;;  %v2693_v17 = vld [vmem:[%s15105_s7 + $0x1d10] sm:$0xff] }
 0x102   : > { %2692 = vst [vmem:[%s15110_s8 + $0xe80] sm:$0xff] %v2691_v16  ;;  %v2695_v18 = vld [vmem:[%s15105_s7 + $0x1d20] sm:$0xff]  ;;  %v2697_v19 = vld [vmem:[%s15105_s7 + $0x1d30] sm:$0xff]  ;;  %2694 = vst [vmem:[%s15110_s8 + $0xe88] sm:$0xff] %v2693_v17 }
 0x103   : > { %2696 = vst [vmem:[%s15110_s8 + $0xe90] sm:$0xff] %v2695_v18  ;;  %2698 = vst [vmem:[%s15110_s8 + $0xe98] sm:$0xff] %v2697_v19  ;;  %v2699_v20 = vld [vmem:[%s15105_s7 + $0x1d40] sm:$0xff]  ;;  %v2701_v21 = vld [vmem:[%s15105_s7 + $0x1d50] sm:$0xff] }
 0x104   : > { %v2703_v22 = vld [vmem:[%s15105_s7 + $0x1d60] sm:$0xff]  ;;  %2700 = vst [vmem:[%s15110_s8 + $0xea0] sm:$0xff] %v2699_v20  ;;  %2702 = vst [vmem:[%s15110_s8 + $0xea8] sm:$0xff] %v2701_v21  ;;  %v2705_v23 = vld [vmem:[%s15105_s7 + $0x1d70] sm:$0xff] }
 0x105   : > { %2704 = vst [vmem:[%s15110_s8 + $0xeb0] sm:$0xff] %v2703_v22  ;;  %v2707_v24 = vld [vmem:[%s15105_s7 + $0x1d80] sm:$0xff]  ;;  %v2709_v25 = vld [vmem:[%s15105_s7 + $0x1d90] sm:$0xff]  ;;  %2706 = vst [vmem:[%s15110_s8 + $0xeb8] sm:$0xff] %v2705_v23 }
 0x106   : > { %2708 = vst [vmem:[%s15110_s8 + $0xec0] sm:$0xff] %v2707_v24  ;;  %2710 = vst [vmem:[%s15110_s8 + $0xec8] sm:$0xff] %v2709_v25  ;;  %v2711_v26 = vld [vmem:[%s15105_s7 + $0x1da0] sm:$0xff]  ;;  %v2713_v27 = vld [vmem:[%s15105_s7 + $0x1db0] sm:$0xff] }
 0x107   : > { %v2715_v28 = vld [vmem:[%s15105_s7 + $0x1dc0] sm:$0xff]  ;;  %2712 = vst [vmem:[%s15110_s8 + $0xed0] sm:$0xff] %v2711_v26  ;;  %2714 = vst [vmem:[%s15110_s8 + $0xed8] sm:$0xff] %v2713_v27  ;;  %v2717_v29 = vld [vmem:[%s15105_s7 + $0x1dd0] sm:$0xff] }
 0x108   : > { %2716 = vst [vmem:[%s15110_s8 + $0xee0] sm:$0xff] %v2715_v28  ;;  %v2719_v30 = vld [vmem:[%s15105_s7 + $0x1de0] sm:$0xff]  ;;  %v2721_v31 = vld [vmem:[%s15105_s7 + $0x1df0] sm:$0xff]  ;;  %2718 = vst [vmem:[%s15110_s8 + $0xee8] sm:$0xff] %v2717_v29 }
 0x109   : > { %2720 = vst [vmem:[%s15110_s8 + $0xef0] sm:$0xff] %v2719_v30  ;;  %2722 = vst [vmem:[%s15110_s8 + $0xef8] sm:$0xff] %v2721_v31  ;;  %v2723_v32 = vld [vmem:[%s15105_s7 + $0x1e00] sm:$0xff]  ;;  %v2725_v33 = vld [vmem:[%s15105_s7 + $0x1e10] sm:$0xff] }
 0x10a   : > { %v2727_v34 = vld [vmem:[%s15105_s7 + $0x1e20] sm:$0xff]  ;;  %2724 = vst [vmem:[%s15110_s8 + $0xf00] sm:$0xff] %v2723_v32  ;;  %2726 = vst [vmem:[%s15110_s8 + $0xf08] sm:$0xff] %v2725_v33  ;;  %v2729_v35 = vld [vmem:[%s15105_s7 + $0x1e30] sm:$0xff] }
 0x10b   : > { %2728 = vst [vmem:[%s15110_s8 + $0xf10] sm:$0xff] %v2727_v34  ;;  %v2731_v36 = vld [vmem:[%s15105_s7 + $0x1e40] sm:$0xff]  ;;  %v2733_v37 = vld [vmem:[%s15105_s7 + $0x1e50] sm:$0xff]  ;;  %2730 = vst [vmem:[%s15110_s8 + $0xf18] sm:$0xff] %v2729_v35 }
 0x10c   : > { %2732 = vst [vmem:[%s15110_s8 + $0xf20] sm:$0xff] %v2731_v36  ;;  %2734 = vst [vmem:[%s15110_s8 + $0xf28] sm:$0xff] %v2733_v37  ;;  %v2735_v38 = vld [vmem:[%s15105_s7 + $0x1e60] sm:$0xff]  ;;  %v2737_v39 = vld [vmem:[%s15105_s7 + $0x1e70] sm:$0xff] }
 0x10d   : > { %v2739_v40 = vld [vmem:[%s15105_s7 + $0x1e80] sm:$0xff]  ;;  %2736 = vst [vmem:[%s15110_s8 + $0xf30] sm:$0xff] %v2735_v38  ;;  %2738 = vst [vmem:[%s15110_s8 + $0xf38] sm:$0xff] %v2737_v39  ;;  %v2741_v41 = vld [vmem:[%s15105_s7 + $0x1e90] sm:$0xff] }
 0x10e   : > { %2740 = vst [vmem:[%s15110_s8 + $0xf40] sm:$0xff] %v2739_v40  ;;  %v2743_v42 = vld [vmem:[%s15105_s7 + $0x1ea0] sm:$0xff]  ;;  %v2745_v43 = vld [vmem:[%s15105_s7 + $0x1eb0] sm:$0xff]  ;;  %2742 = vst [vmem:[%s15110_s8 + $0xf48] sm:$0xff] %v2741_v41 }
 0x10f   : > { %2744 = vst [vmem:[%s15110_s8 + $0xf50] sm:$0xff] %v2743_v42  ;;  %2746 = vst [vmem:[%s15110_s8 + $0xf58] sm:$0xff] %v2745_v43  ;;  %v2747_v44 = vld [vmem:[%s15105_s7 + $0x1ec0] sm:$0xff]  ;;  %v2749_v45 = vld [vmem:[%s15105_s7 + $0x1ed0] sm:$0xff] }
 0x110   : > { %v2751_v46 = vld [vmem:[%s15105_s7 + $0x1ee0] sm:$0xff]  ;;  %2748 = vst [vmem:[%s15110_s8 + $0xf60] sm:$0xff] %v2747_v44  ;;  %2750 = vst [vmem:[%s15110_s8 + $0xf68] sm:$0xff] %v2749_v45  ;;  %v2753_v47 = vld [vmem:[%s15105_s7 + $0x1ef0] sm:$0xff] }
 0x111   : > { %2752 = vst [vmem:[%s15110_s8 + $0xf70] sm:$0xff] %v2751_v46  ;;  %v2755_v48 = vld [vmem:[%s15105_s7 + $0x1f00] sm:$0xff]  ;;  %v2757_v49 = vld [vmem:[%s15105_s7 + $0x1f10] sm:$0xff]  ;;  %2754 = vst [vmem:[%s15110_s8 + $0xf78] sm:$0xff] %v2753_v47 }
 0x112   : > { %2756 = vst [vmem:[%s15110_s8 + $0xf80] sm:$0xff] %v2755_v48  ;;  %2758 = vst [vmem:[%s15110_s8 + $0xf88] sm:$0xff] %v2757_v49  ;;  %v2759_v50 = vld [vmem:[%s15105_s7 + $0x1f20] sm:$0xff]  ;;  %v2761_v51 = vld [vmem:[%s15105_s7 + $0x1f30] sm:$0xff] }
 0x113   : > { %v2763_v52 = vld [vmem:[%s15105_s7 + $0x1f40] sm:$0xff]  ;;  %2760 = vst [vmem:[%s15110_s8 + $0xf90] sm:$0xff] %v2759_v50  ;;  %2762 = vst [vmem:[%s15110_s8 + $0xf98] sm:$0xff] %v2761_v51  ;;  %v2765_v53 = vld [vmem:[%s15105_s7 + $0x1f50] sm:$0xff] }
 0x114   : > { %2764 = vst [vmem:[%s15110_s8 + $0xfa0] sm:$0xff] %v2763_v52  ;;  %v2767_v54 = vld [vmem:[%s15105_s7 + $0x1f60] sm:$0xff]  ;;  %v2769_v55 = vld [vmem:[%s15105_s7 + $0x1f70] sm:$0xff]  ;;  %2766 = vst [vmem:[%s15110_s8 + $0xfa8] sm:$0xff] %v2765_v53 }
 0x115   : > { %2768 = vst [vmem:[%s15110_s8 + $0xfb0] sm:$0xff] %v2767_v54  ;;  %2770 = vst [vmem:[%s15110_s8 + $0xfb8] sm:$0xff] %v2769_v55  ;;  %v2771_v56 = vld [vmem:[%s15105_s7 + $0x1f80] sm:$0xff]  ;;  %v2773_v57 = vld [vmem:[%s15105_s7 + $0x1f90] sm:$0xff] }
 0x116   : > { %v2775_v58 = vld [vmem:[%s15105_s7 + $0x1fa0] sm:$0xff]  ;;  %2772 = vst [vmem:[%s15110_s8 + $0xfc0] sm:$0xff] %v2771_v56  ;;  %2774 = vst [vmem:[%s15110_s8 + $0xfc8] sm:$0xff] %v2773_v57  ;;  %v2777_v59 = vld [vmem:[%s15105_s7 + $0x1fb0] sm:$0xff] }
 0x117   : > { %2776 = vst [vmem:[%s15110_s8 + $0xfd0] sm:$0xff] %v2775_v58  ;;  %v2779_v60 = vld [vmem:[%s15105_s7 + $0x1fc0] sm:$0xff]  ;;  %v2781_v61 = vld [vmem:[%s15105_s7 + $0x1fd0] sm:$0xff]  ;;  %2778 = vst [vmem:[%s15110_s8 + $0xfd8] sm:$0xff] %v2777_v59 }
 0x118   : > { %2780 = vst [vmem:[%s15110_s8 + $0xfe0] sm:$0xff] %v2779_v60  ;;  %2782 = vst [vmem:[%s15110_s8 + $0xfe8] sm:$0xff] %v2781_v61  ;;  %v2783_v62 = vld [vmem:[%s15105_s7 + $0x1fe0] sm:$0xff]  ;;  %v2785_v63 = vld [vmem:[%s15105_s7 + $0x1ff0] sm:$0xff] }
 0x119   : > { %v2787_v0 = vld [vmem:[%s15105_s7 + $0x2000] sm:$0xff]  ;;  %2784 = vst [vmem:[%s15110_s8 + $0xff0] sm:$0xff] %v2783_v62  ;;  %2786 = vst [vmem:[%s15110_s8 + $0xff8] sm:$0xff] %v2785_v63  ;;  %v2789_v1 = vld [vmem:[%s15105_s7 + $0x2010] sm:$0xff] }
 0x11a   : > { %2788 = vst [vmem:[%s15110_s8 + $0x1000] sm:$0xff] %v2787_v0  ;;  %v2791_v2 = vld [vmem:[%s15105_s7 + $0x2020] sm:$0xff]  ;;  %v2793_v3 = vld [vmem:[%s15105_s7 + $0x2030] sm:$0xff]  ;;  %2790 = vst [vmem:[%s15110_s8 + $0x1008] sm:$0xff] %v2789_v1 }
 0x11b   : > { %2792 = vst [vmem:[%s15110_s8 + $0x1010] sm:$0xff] %v2791_v2  ;;  %2794 = vst [vmem:[%s15110_s8 + $0x1018] sm:$0xff] %v2793_v3  ;;  %v2795_v4 = vld [vmem:[%s15105_s7 + $0x2040] sm:$0xff]  ;;  %v2797_v5 = vld [vmem:[%s15105_s7 + $0x2050] sm:$0xff] }
 0x11c   : > { %v2799_v6 = vld [vmem:[%s15105_s7 + $0x2060] sm:$0xff]  ;;  %2796 = vst [vmem:[%s15110_s8 + $0x1020] sm:$0xff] %v2795_v4  ;;  %2798 = vst [vmem:[%s15110_s8 + $0x1028] sm:$0xff] %v2797_v5  ;;  %v2801_v7 = vld [vmem:[%s15105_s7 + $0x2070] sm:$0xff] }
 0x11d   : > { %2800 = vst [vmem:[%s15110_s8 + $0x1030] sm:$0xff] %v2799_v6  ;;  %v2803_v8 = vld [vmem:[%s15105_s7 + $0x2080] sm:$0xff]  ;;  %v2805_v9 = vld [vmem:[%s15105_s7 + $0x2090] sm:$0xff]  ;;  %2802 = vst [vmem:[%s15110_s8 + $0x1038] sm:$0xff] %v2801_v7 }
 0x11e   : > { %2804 = vst [vmem:[%s15110_s8 + $0x1040] sm:$0xff] %v2803_v8  ;;  %2806 = vst [vmem:[%s15110_s8 + $0x1048] sm:$0xff] %v2805_v9  ;;  %v2807_v10 = vld [vmem:[%s15105_s7 + $0x20a0] sm:$0xff]  ;;  %v2809_v11 = vld [vmem:[%s15105_s7 + $0x20b0] sm:$0xff] }
 0x11f   : > { %v2811_v12 = vld [vmem:[%s15105_s7 + $0x20c0] sm:$0xff]  ;;  %2808 = vst [vmem:[%s15110_s8 + $0x1050] sm:$0xff] %v2807_v10  ;;  %2810 = vst [vmem:[%s15110_s8 + $0x1058] sm:$0xff] %v2809_v11  ;;  %v2813_v13 = vld [vmem:[%s15105_s7 + $0x20d0] sm:$0xff] }
 0x120   : > { %2812 = vst [vmem:[%s15110_s8 + $0x1060] sm:$0xff] %v2811_v12  ;;  %v2815_v14 = vld [vmem:[%s15105_s7 + $0x20e0] sm:$0xff]  ;;  %v2817_v15 = vld [vmem:[%s15105_s7 + $0x20f0] sm:$0xff]  ;;  %2814 = vst [vmem:[%s15110_s8 + $0x1068] sm:$0xff] %v2813_v13 }
 0x121   : > { %2816 = vst [vmem:[%s15110_s8 + $0x1070] sm:$0xff] %v2815_v14  ;;  %2818 = vst [vmem:[%s15110_s8 + $0x1078] sm:$0xff] %v2817_v15  ;;  %v2819_v16 = vld [vmem:[%s15105_s7 + $0x2100] sm:$0xff]  ;;  %v2821_v17 = vld [vmem:[%s15105_s7 + $0x2110] sm:$0xff] }
 0x122   : > { %v2823_v18 = vld [vmem:[%s15105_s7 + $0x2120] sm:$0xff]  ;;  %2820 = vst [vmem:[%s15110_s8 + $0x1080] sm:$0xff] %v2819_v16  ;;  %2822 = vst [vmem:[%s15110_s8 + $0x1088] sm:$0xff] %v2821_v17  ;;  %v2825_v19 = vld [vmem:[%s15105_s7 + $0x2130] sm:$0xff] }
 0x123   : > { %2824 = vst [vmem:[%s15110_s8 + $0x1090] sm:$0xff] %v2823_v18  ;;  %v2827_v20 = vld [vmem:[%s15105_s7 + $0x2140] sm:$0xff]  ;;  %v2829_v21 = vld [vmem:[%s15105_s7 + $0x2150] sm:$0xff]  ;;  %2826 = vst [vmem:[%s15110_s8 + $0x1098] sm:$0xff] %v2825_v19 }
 0x124   : > { %2828 = vst [vmem:[%s15110_s8 + $0x10a0] sm:$0xff] %v2827_v20  ;;  %2830 = vst [vmem:[%s15110_s8 + $0x10a8] sm:$0xff] %v2829_v21  ;;  %v2831_v22 = vld [vmem:[%s15105_s7 + $0x2160] sm:$0xff]  ;;  %v2833_v23 = vld [vmem:[%s15105_s7 + $0x2170] sm:$0xff] }
 0x125   : > { %v2835_v24 = vld [vmem:[%s15105_s7 + $0x2180] sm:$0xff]  ;;  %2832 = vst [vmem:[%s15110_s8 + $0x10b0] sm:$0xff] %v2831_v22  ;;  %2834 = vst [vmem:[%s15110_s8 + $0x10b8] sm:$0xff] %v2833_v23  ;;  %v2837_v25 = vld [vmem:[%s15105_s7 + $0x2190] sm:$0xff] }
 0x126   : > { %2836 = vst [vmem:[%s15110_s8 + $0x10c0] sm:$0xff] %v2835_v24  ;;  %v2839_v26 = vld [vmem:[%s15105_s7 + $0x21a0] sm:$0xff]  ;;  %v2841_v27 = vld [vmem:[%s15105_s7 + $0x21b0] sm:$0xff]  ;;  %2838 = vst [vmem:[%s15110_s8 + $0x10c8] sm:$0xff] %v2837_v25 }
 0x127   : > { %2840 = vst [vmem:[%s15110_s8 + $0x10d0] sm:$0xff] %v2839_v26  ;;  %2842 = vst [vmem:[%s15110_s8 + $0x10d8] sm:$0xff] %v2841_v27  ;;  %v2843_v28 = vld [vmem:[%s15105_s7 + $0x21c0] sm:$0xff]  ;;  %v2845_v29 = vld [vmem:[%s15105_s7 + $0x21d0] sm:$0xff] }
 0x128   : > { %v2847_v30 = vld [vmem:[%s15105_s7 + $0x21e0] sm:$0xff]  ;;  %2844 = vst [vmem:[%s15110_s8 + $0x10e0] sm:$0xff] %v2843_v28  ;;  %2846 = vst [vmem:[%s15110_s8 + $0x10e8] sm:$0xff] %v2845_v29  ;;  %v2849_v31 = vld [vmem:[%s15105_s7 + $0x21f0] sm:$0xff] }
 0x129   : > { %2848 = vst [vmem:[%s15110_s8 + $0x10f0] sm:$0xff] %v2847_v30  ;;  %v2851_v32 = vld [vmem:[%s15105_s7 + $0x2200] sm:$0xff]  ;;  %v2853_v33 = vld [vmem:[%s15105_s7 + $0x2210] sm:$0xff]  ;;  %2850 = vst [vmem:[%s15110_s8 + $0x10f8] sm:$0xff] %v2849_v31 }
 0x12a   : > { %2852 = vst [vmem:[%s15110_s8 + $0x1100] sm:$0xff] %v2851_v32  ;;  %2854 = vst [vmem:[%s15110_s8 + $0x1108] sm:$0xff] %v2853_v33  ;;  %v2855_v34 = vld [vmem:[%s15105_s7 + $0x2220] sm:$0xff]  ;;  %v2857_v35 = vld [vmem:[%s15105_s7 + $0x2230] sm:$0xff] }
 0x12b   : > { %v2859_v36 = vld [vmem:[%s15105_s7 + $0x2240] sm:$0xff]  ;;  %2856 = vst [vmem:[%s15110_s8 + $0x1110] sm:$0xff] %v2855_v34  ;;  %2858 = vst [vmem:[%s15110_s8 + $0x1118] sm:$0xff] %v2857_v35  ;;  %v2861_v37 = vld [vmem:[%s15105_s7 + $0x2250] sm:$0xff] }
 0x12c   : > { %2860 = vst [vmem:[%s15110_s8 + $0x1120] sm:$0xff] %v2859_v36  ;;  %v2863_v38 = vld [vmem:[%s15105_s7 + $0x2260] sm:$0xff]  ;;  %v2865_v39 = vld [vmem:[%s15105_s7 + $0x2270] sm:$0xff]  ;;  %2862 = vst [vmem:[%s15110_s8 + $0x1128] sm:$0xff] %v2861_v37 }
 0x12d   : > { %2864 = vst [vmem:[%s15110_s8 + $0x1130] sm:$0xff] %v2863_v38  ;;  %2866 = vst [vmem:[%s15110_s8 + $0x1138] sm:$0xff] %v2865_v39  ;;  %v2867_v40 = vld [vmem:[%s15105_s7 + $0x2280] sm:$0xff]  ;;  %v2869_v41 = vld [vmem:[%s15105_s7 + $0x2290] sm:$0xff] }
 0x12e   : > { %v2871_v42 = vld [vmem:[%s15105_s7 + $0x22a0] sm:$0xff]  ;;  %2868 = vst [vmem:[%s15110_s8 + $0x1140] sm:$0xff] %v2867_v40  ;;  %2870 = vst [vmem:[%s15110_s8 + $0x1148] sm:$0xff] %v2869_v41  ;;  %v2873_v43 = vld [vmem:[%s15105_s7 + $0x22b0] sm:$0xff] }
 0x12f   : > { %2872 = vst [vmem:[%s15110_s8 + $0x1150] sm:$0xff] %v2871_v42  ;;  %v2875_v44 = vld [vmem:[%s15105_s7 + $0x22c0] sm:$0xff]  ;;  %v2877_v45 = vld [vmem:[%s15105_s7 + $0x22d0] sm:$0xff]  ;;  %2874 = vst [vmem:[%s15110_s8 + $0x1158] sm:$0xff] %v2873_v43 }
 0x130   : > { %2876 = vst [vmem:[%s15110_s8 + $0x1160] sm:$0xff] %v2875_v44  ;;  %2878 = vst [vmem:[%s15110_s8 + $0x1168] sm:$0xff] %v2877_v45  ;;  %v2879_v46 = vld [vmem:[%s15105_s7 + $0x22e0] sm:$0xff]  ;;  %v2881_v47 = vld [vmem:[%s15105_s7 + $0x22f0] sm:$0xff] }
 0x131   : > { %v2883_v48 = vld [vmem:[%s15105_s7 + $0x2300] sm:$0xff]  ;;  %2880 = vst [vmem:[%s15110_s8 + $0x1170] sm:$0xff] %v2879_v46  ;;  %2882 = vst [vmem:[%s15110_s8 + $0x1178] sm:$0xff] %v2881_v47  ;;  %v2885_v49 = vld [vmem:[%s15105_s7 + $0x2310] sm:$0xff] }
 0x132   : > { %2884 = vst [vmem:[%s15110_s8 + $0x1180] sm:$0xff] %v2883_v48  ;;  %v2887_v50 = vld [vmem:[%s15105_s7 + $0x2320] sm:$0xff]  ;;  %v2889_v51 = vld [vmem:[%s15105_s7 + $0x2330] sm:$0xff]  ;;  %2886 = vst [vmem:[%s15110_s8 + $0x1188] sm:$0xff] %v2885_v49 }
 0x133   : > { %2888 = vst [vmem:[%s15110_s8 + $0x1190] sm:$0xff] %v2887_v50  ;;  %2890 = vst [vmem:[%s15110_s8 + $0x1198] sm:$0xff] %v2889_v51  ;;  %v2891_v52 = vld [vmem:[%s15105_s7 + $0x2340] sm:$0xff]  ;;  %v2893_v53 = vld [vmem:[%s15105_s7 + $0x2350] sm:$0xff] }
 0x134   : > { %v2895_v54 = vld [vmem:[%s15105_s7 + $0x2360] sm:$0xff]  ;;  %2892 = vst [vmem:[%s15110_s8 + $0x11a0] sm:$0xff] %v2891_v52  ;;  %2894 = vst [vmem:[%s15110_s8 + $0x11a8] sm:$0xff] %v2893_v53  ;;  %v2897_v55 = vld [vmem:[%s15105_s7 + $0x2370] sm:$0xff] }
 0x135   : > { %2896 = vst [vmem:[%s15110_s8 + $0x11b0] sm:$0xff] %v2895_v54  ;;  %v2899_v56 = vld [vmem:[%s15105_s7 + $0x2380] sm:$0xff]  ;;  %v2901_v57 = vld [vmem:[%s15105_s7 + $0x2390] sm:$0xff]  ;;  %2898 = vst [vmem:[%s15110_s8 + $0x11b8] sm:$0xff] %v2897_v55 }
 0x136   : > { %2900 = vst [vmem:[%s15110_s8 + $0x11c0] sm:$0xff] %v2899_v56  ;;  %2902 = vst [vmem:[%s15110_s8 + $0x11c8] sm:$0xff] %v2901_v57  ;;  %v2903_v58 = vld [vmem:[%s15105_s7 + $0x23a0] sm:$0xff]  ;;  %v2905_v59 = vld [vmem:[%s15105_s7 + $0x23b0] sm:$0xff] }
 0x137   : > { %v2907_v60 = vld [vmem:[%s15105_s7 + $0x23c0] sm:$0xff]  ;;  %2904 = vst [vmem:[%s15110_s8 + $0x11d0] sm:$0xff] %v2903_v58  ;;  %2906 = vst [vmem:[%s15110_s8 + $0x11d8] sm:$0xff] %v2905_v59  ;;  %v2909_v61 = vld [vmem:[%s15105_s7 + $0x23d0] sm:$0xff] }
 0x138   : > { %2908 = vst [vmem:[%s15110_s8 + $0x11e0] sm:$0xff] %v2907_v60  ;;  %v2911_v62 = vld [vmem:[%s15105_s7 + $0x23e0] sm:$0xff]  ;;  %v2913_v63 = vld [vmem:[%s15105_s7 + $0x23f0] sm:$0xff]  ;;  %2910 = vst [vmem:[%s15110_s8 + $0x11e8] sm:$0xff] %v2909_v61 }
 0x139   : > { %2912 = vst [vmem:[%s15110_s8 + $0x11f0] sm:$0xff] %v2911_v62  ;;  %2914 = vst [vmem:[%s15110_s8 + $0x11f8] sm:$0xff] %v2913_v63  ;;  %v2915_v0 = vld [vmem:[%s15105_s7 + $0x2400] sm:$0xff]  ;;  %v2917_v1 = vld [vmem:[%s15105_s7 + $0x2410] sm:$0xff] }
 0x13a   : > { %v2919_v2 = vld [vmem:[%s15105_s7 + $0x2420] sm:$0xff]  ;;  %2916 = vst [vmem:[%s15110_s8 + $0x1200] sm:$0xff] %v2915_v0  ;;  %2918 = vst [vmem:[%s15110_s8 + $0x1208] sm:$0xff] %v2917_v1  ;;  %v2921_v3 = vld [vmem:[%s15105_s7 + $0x2430] sm:$0xff] }
 0x13b   : > { %2920 = vst [vmem:[%s15110_s8 + $0x1210] sm:$0xff] %v2919_v2  ;;  %v2923_v4 = vld [vmem:[%s15105_s7 + $0x2440] sm:$0xff]  ;;  %v2925_v5 = vld [vmem:[%s15105_s7 + $0x2450] sm:$0xff]  ;;  %2922 = vst [vmem:[%s15110_s8 + $0x1218] sm:$0xff] %v2921_v3 }
 0x13c   : > { %2924 = vst [vmem:[%s15110_s8 + $0x1220] sm:$0xff] %v2923_v4  ;;  %2926 = vst [vmem:[%s15110_s8 + $0x1228] sm:$0xff] %v2925_v5  ;;  %v2927_v6 = vld [vmem:[%s15105_s7 + $0x2460] sm:$0xff]  ;;  %v2929_v7 = vld [vmem:[%s15105_s7 + $0x2470] sm:$0xff] }
 0x13d   : > { %v2931_v8 = vld [vmem:[%s15105_s7 + $0x2480] sm:$0xff]  ;;  %2928 = vst [vmem:[%s15110_s8 + $0x1230] sm:$0xff] %v2927_v6  ;;  %2930 = vst [vmem:[%s15110_s8 + $0x1238] sm:$0xff] %v2929_v7  ;;  %v2933_v9 = vld [vmem:[%s15105_s7 + $0x2490] sm:$0xff] }
 0x13e   : > { %2932 = vst [vmem:[%s15110_s8 + $0x1240] sm:$0xff] %v2931_v8  ;;  %v2935_v10 = vld [vmem:[%s15105_s7 + $0x24a0] sm:$0xff]  ;;  %v2937_v11 = vld [vmem:[%s15105_s7 + $0x24b0] sm:$0xff]  ;;  %2934 = vst [vmem:[%s15110_s8 + $0x1248] sm:$0xff] %v2933_v9 }
 0x13f   : > { %2936 = vst [vmem:[%s15110_s8 + $0x1250] sm:$0xff] %v2935_v10  ;;  %2938 = vst [vmem:[%s15110_s8 + $0x1258] sm:$0xff] %v2937_v11  ;;  %v2939_v12 = vld [vmem:[%s15105_s7 + $0x24c0] sm:$0xff]  ;;  %v2941_v13 = vld [vmem:[%s15105_s7 + $0x24d0] sm:$0xff] }
 0x140   : > { %v2943_v14 = vld [vmem:[%s15105_s7 + $0x24e0] sm:$0xff]  ;;  %2940 = vst [vmem:[%s15110_s8 + $0x1260] sm:$0xff] %v2939_v12  ;;  %2942 = vst [vmem:[%s15110_s8 + $0x1268] sm:$0xff] %v2941_v13  ;;  %v2945_v15 = vld [vmem:[%s15105_s7 + $0x24f0] sm:$0xff] }
 0x141   : > { %2944 = vst [vmem:[%s15110_s8 + $0x1270] sm:$0xff] %v2943_v14  ;;  %v2947_v16 = vld [vmem:[%s15105_s7 + $0x2500] sm:$0xff]  ;;  %v2949_v17 = vld [vmem:[%s15105_s7 + $0x2510] sm:$0xff]  ;;  %2946 = vst [vmem:[%s15110_s8 + $0x1278] sm:$0xff] %v2945_v15 }
 0x142   : > { %2948 = vst [vmem:[%s15110_s8 + $0x1280] sm:$0xff] %v2947_v16  ;;  %2950 = vst [vmem:[%s15110_s8 + $0x1288] sm:$0xff] %v2949_v17  ;;  %v2951_v18 = vld [vmem:[%s15105_s7 + $0x2520] sm:$0xff]  ;;  %v2953_v19 = vld [vmem:[%s15105_s7 + $0x2530] sm:$0xff] }
 0x143   : > { %v2955_v20 = vld [vmem:[%s15105_s7 + $0x2540] sm:$0xff]  ;;  %2952 = vst [vmem:[%s15110_s8 + $0x1290] sm:$0xff] %v2951_v18  ;;  %2954 = vst [vmem:[%s15110_s8 + $0x1298] sm:$0xff] %v2953_v19  ;;  %v2957_v21 = vld [vmem:[%s15105_s7 + $0x2550] sm:$0xff] }
 0x144   : > { %2956 = vst [vmem:[%s15110_s8 + $0x12a0] sm:$0xff] %v2955_v20  ;;  %v2959_v22 = vld [vmem:[%s15105_s7 + $0x2560] sm:$0xff]  ;;  %v2961_v23 = vld [vmem:[%s15105_s7 + $0x2570] sm:$0xff]  ;;  %2958 = vst [vmem:[%s15110_s8 + $0x12a8] sm:$0xff] %v2957_v21 }
 0x145   : > { %2960 = vst [vmem:[%s15110_s8 + $0x12b0] sm:$0xff] %v2959_v22  ;;  %2962 = vst [vmem:[%s15110_s8 + $0x12b8] sm:$0xff] %v2961_v23  ;;  %v2963_v24 = vld [vmem:[%s15105_s7 + $0x2580] sm:$0xff]  ;;  %v2965_v25 = vld [vmem:[%s15105_s7 + $0x2590] sm:$0xff] }
 0x146   : > { %v2967_v26 = vld [vmem:[%s15105_s7 + $0x25a0] sm:$0xff]  ;;  %2964 = vst [vmem:[%s15110_s8 + $0x12c0] sm:$0xff] %v2963_v24  ;;  %2966 = vst [vmem:[%s15110_s8 + $0x12c8] sm:$0xff] %v2965_v25  ;;  %v2969_v27 = vld [vmem:[%s15105_s7 + $0x25b0] sm:$0xff] }
 0x147   : > { %2968 = vst [vmem:[%s15110_s8 + $0x12d0] sm:$0xff] %v2967_v26  ;;  %v2971_v28 = vld [vmem:[%s15105_s7 + $0x25c0] sm:$0xff]  ;;  %v2973_v29 = vld [vmem:[%s15105_s7 + $0x25d0] sm:$0xff]  ;;  %2970 = vst [vmem:[%s15110_s8 + $0x12d8] sm:$0xff] %v2969_v27 }
 0x148   : > { %2972 = vst [vmem:[%s15110_s8 + $0x12e0] sm:$0xff] %v2971_v28  ;;  %2974 = vst [vmem:[%s15110_s8 + $0x12e8] sm:$0xff] %v2973_v29  ;;  %v2975_v30 = vld [vmem:[%s15105_s7 + $0x25e0] sm:$0xff]  ;;  %v2977_v31 = vld [vmem:[%s15105_s7 + $0x25f0] sm:$0xff] }
 0x149   : > { %v2979_v32 = vld [vmem:[%s15105_s7 + $0x2600] sm:$0xff]  ;;  %2976 = vst [vmem:[%s15110_s8 + $0x12f0] sm:$0xff] %v2975_v30  ;;  %2978 = vst [vmem:[%s15110_s8 + $0x12f8] sm:$0xff] %v2977_v31  ;;  %v2981_v33 = vld [vmem:[%s15105_s7 + $0x2610] sm:$0xff] }
 0x14a   : > { %2980 = vst [vmem:[%s15110_s8 + $0x1300] sm:$0xff] %v2979_v32  ;;  %v2983_v34 = vld [vmem:[%s15105_s7 + $0x2620] sm:$0xff]  ;;  %v2985_v35 = vld [vmem:[%s15105_s7 + $0x2630] sm:$0xff]  ;;  %2982 = vst [vmem:[%s15110_s8 + $0x1308] sm:$0xff] %v2981_v33 }
 0x14b   : > { %2984 = vst [vmem:[%s15110_s8 + $0x1310] sm:$0xff] %v2983_v34  ;;  %2986 = vst [vmem:[%s15110_s8 + $0x1318] sm:$0xff] %v2985_v35  ;;  %v2987_v36 = vld [vmem:[%s15105_s7 + $0x2640] sm:$0xff]  ;;  %v2989_v37 = vld [vmem:[%s15105_s7 + $0x2650] sm:$0xff] }
 0x14c   : > { %v2991_v38 = vld [vmem:[%s15105_s7 + $0x2660] sm:$0xff]  ;;  %2988 = vst [vmem:[%s15110_s8 + $0x1320] sm:$0xff] %v2987_v36  ;;  %2990 = vst [vmem:[%s15110_s8 + $0x1328] sm:$0xff] %v2989_v37  ;;  %v2993_v39 = vld [vmem:[%s15105_s7 + $0x2670] sm:$0xff] }
 0x14d   : > { %2992 = vst [vmem:[%s15110_s8 + $0x1330] sm:$0xff] %v2991_v38  ;;  %v2995_v40 = vld [vmem:[%s15105_s7 + $0x2680] sm:$0xff]  ;;  %v2997_v41 = vld [vmem:[%s15105_s7 + $0x2690] sm:$0xff]  ;;  %2994 = vst [vmem:[%s15110_s8 + $0x1338] sm:$0xff] %v2993_v39 }
 0x14e   : > { %2996 = vst [vmem:[%s15110_s8 + $0x1340] sm:$0xff] %v2995_v40  ;;  %2998 = vst [vmem:[%s15110_s8 + $0x1348] sm:$0xff] %v2997_v41  ;;  %v2999_v42 = vld [vmem:[%s15105_s7 + $0x26a0] sm:$0xff]  ;;  %v3001_v43 = vld [vmem:[%s15105_s7 + $0x26b0] sm:$0xff] }
 0x14f   : > { %v3003_v44 = vld [vmem:[%s15105_s7 + $0x26c0] sm:$0xff]  ;;  %3000 = vst [vmem:[%s15110_s8 + $0x1350] sm:$0xff] %v2999_v42  ;;  %3002 = vst [vmem:[%s15110_s8 + $0x1358] sm:$0xff] %v3001_v43  ;;  %v3005_v45 = vld [vmem:[%s15105_s7 + $0x26d0] sm:$0xff] }
 0x150   : > { %3004 = vst [vmem:[%s15110_s8 + $0x1360] sm:$0xff] %v3003_v44  ;;  %v3007_v46 = vld [vmem:[%s15105_s7 + $0x26e0] sm:$0xff]  ;;  %v3009_v47 = vld [vmem:[%s15105_s7 + $0x26f0] sm:$0xff]  ;;  %3006 = vst [vmem:[%s15110_s8 + $0x1368] sm:$0xff] %v3005_v45 }
 0x151   : > { %3008 = vst [vmem:[%s15110_s8 + $0x1370] sm:$0xff] %v3007_v46  ;;  %3010 = vst [vmem:[%s15110_s8 + $0x1378] sm:$0xff] %v3009_v47  ;;  %v3011_v48 = vld [vmem:[%s15105_s7 + $0x2700] sm:$0xff]  ;;  %v3013_v49 = vld [vmem:[%s15105_s7 + $0x2710] sm:$0xff] }
 0x152   : > { %v3015_v50 = vld [vmem:[%s15105_s7 + $0x2720] sm:$0xff]  ;;  %3012 = vst [vmem:[%s15110_s8 + $0x1380] sm:$0xff] %v3011_v48  ;;  %3014 = vst [vmem:[%s15110_s8 + $0x1388] sm:$0xff] %v3013_v49  ;;  %v3017_v51 = vld [vmem:[%s15105_s7 + $0x2730] sm:$0xff] }
 0x153   : > { %3016 = vst [vmem:[%s15110_s8 + $0x1390] sm:$0xff] %v3015_v50  ;;  %v3019_v52 = vld [vmem:[%s15105_s7 + $0x2740] sm:$0xff]  ;;  %v3021_v53 = vld [vmem:[%s15105_s7 + $0x2750] sm:$0xff]  ;;  %3018 = vst [vmem:[%s15110_s8 + $0x1398] sm:$0xff] %v3017_v51 }
 0x154   : > { %3020 = vst [vmem:[%s15110_s8 + $0x13a0] sm:$0xff] %v3019_v52  ;;  %3022 = vst [vmem:[%s15110_s8 + $0x13a8] sm:$0xff] %v3021_v53  ;;  %v3023_v54 = vld [vmem:[%s15105_s7 + $0x2760] sm:$0xff]  ;;  %v3025_v55 = vld [vmem:[%s15105_s7 + $0x2770] sm:$0xff] }
 0x155   : > { %v3027_v56 = vld [vmem:[%s15105_s7 + $0x2780] sm:$0xff]  ;;  %3024 = vst [vmem:[%s15110_s8 + $0x13b0] sm:$0xff] %v3023_v54  ;;  %3026 = vst [vmem:[%s15110_s8 + $0x13b8] sm:$0xff] %v3025_v55  ;;  %v3029_v57 = vld [vmem:[%s15105_s7 + $0x2790] sm:$0xff] }
 0x156   : > { %3028 = vst [vmem:[%s15110_s8 + $0x13c0] sm:$0xff] %v3027_v56  ;;  %v3031_v58 = vld [vmem:[%s15105_s7 + $0x27a0] sm:$0xff]  ;;  %v3033_v59 = vld [vmem:[%s15105_s7 + $0x27b0] sm:$0xff]  ;;  %3030 = vst [vmem:[%s15110_s8 + $0x13c8] sm:$0xff] %v3029_v57 }
 0x157   : > { %3032 = vst [vmem:[%s15110_s8 + $0x13d0] sm:$0xff] %v3031_v58  ;;  %3034 = vst [vmem:[%s15110_s8 + $0x13d8] sm:$0xff] %v3033_v59  ;;  %v3035_v60 = vld [vmem:[%s15105_s7 + $0x27c0] sm:$0xff]  ;;  %v3037_v61 = vld [vmem:[%s15105_s7 + $0x27d0] sm:$0xff] }
 0x158   : > { %v3039_v62 = vld [vmem:[%s15105_s7 + $0x27e0] sm:$0xff]  ;;  %3036 = vst [vmem:[%s15110_s8 + $0x13e0] sm:$0xff] %v3035_v60  ;;  %3038 = vst [vmem:[%s15110_s8 + $0x13e8] sm:$0xff] %v3037_v61  ;;  %v3041_v63 = vld [vmem:[%s15105_s7 + $0x27f0] sm:$0xff] }
 0x159   : > { %3040 = vst [vmem:[%s15110_s8 + $0x13f0] sm:$0xff] %v3039_v62  ;;  %v3043_v0 = vld [vmem:[%s15105_s7 + $0x2800] sm:$0xff]  ;;  %v3045_v1 = vld [vmem:[%s15105_s7 + $0x2810] sm:$0xff]  ;;  %3042 = vst [vmem:[%s15110_s8 + $0x13f8] sm:$0xff] %v3041_v63 }
 0x15a   : > { %3044 = vst [vmem:[%s15110_s8 + $0x1400] sm:$0xff] %v3043_v0  ;;  %3046 = vst [vmem:[%s15110_s8 + $0x1408] sm:$0xff] %v3045_v1  ;;  %v3047_v2 = vld [vmem:[%s15105_s7 + $0x2820] sm:$0xff]  ;;  %v3049_v3 = vld [vmem:[%s15105_s7 + $0x2830] sm:$0xff] }
 0x15b   : > { %v3051_v4 = vld [vmem:[%s15105_s7 + $0x2840] sm:$0xff]  ;;  %3048 = vst [vmem:[%s15110_s8 + $0x1410] sm:$0xff] %v3047_v2  ;;  %3050 = vst [vmem:[%s15110_s8 + $0x1418] sm:$0xff] %v3049_v3  ;;  %v3053_v5 = vld [vmem:[%s15105_s7 + $0x2850] sm:$0xff] }
 0x15c   : > { %3052 = vst [vmem:[%s15110_s8 + $0x1420] sm:$0xff] %v3051_v4  ;;  %v3055_v6 = vld [vmem:[%s15105_s7 + $0x2860] sm:$0xff]  ;;  %v3057_v7 = vld [vmem:[%s15105_s7 + $0x2870] sm:$0xff]  ;;  %3054 = vst [vmem:[%s15110_s8 + $0x1428] sm:$0xff] %v3053_v5 }
 0x15d   : > { %3056 = vst [vmem:[%s15110_s8 + $0x1430] sm:$0xff] %v3055_v6  ;;  %3058 = vst [vmem:[%s15110_s8 + $0x1438] sm:$0xff] %v3057_v7  ;;  %v3059_v8 = vld [vmem:[%s15105_s7 + $0x2880] sm:$0xff]  ;;  %v3061_v9 = vld [vmem:[%s15105_s7 + $0x2890] sm:$0xff] }
 0x15e   : > { %v3063_v10 = vld [vmem:[%s15105_s7 + $0x28a0] sm:$0xff]  ;;  %3060 = vst [vmem:[%s15110_s8 + $0x1440] sm:$0xff] %v3059_v8  ;;  %3062 = vst [vmem:[%s15110_s8 + $0x1448] sm:$0xff] %v3061_v9  ;;  %v3065_v11 = vld [vmem:[%s15105_s7 + $0x28b0] sm:$0xff] }
 0x15f   : > { %3064 = vst [vmem:[%s15110_s8 + $0x1450] sm:$0xff] %v3063_v10  ;;  %v3067_v12 = vld [vmem:[%s15105_s7 + $0x28c0] sm:$0xff]  ;;  %v3069_v13 = vld [vmem:[%s15105_s7 + $0x28d0] sm:$0xff]  ;;  %3066 = vst [vmem:[%s15110_s8 + $0x1458] sm:$0xff] %v3065_v11 }
 0x160   : > { %3068 = vst [vmem:[%s15110_s8 + $0x1460] sm:$0xff] %v3067_v12  ;;  %3070 = vst [vmem:[%s15110_s8 + $0x1468] sm:$0xff] %v3069_v13  ;;  %v3071_v14 = vld [vmem:[%s15105_s7 + $0x28e0] sm:$0xff]  ;;  %v3073_v15 = vld [vmem:[%s15105_s7 + $0x28f0] sm:$0xff] }
 0x161   : > { %v3075_v16 = vld [vmem:[%s15105_s7 + $0x2900] sm:$0xff]  ;;  %3072 = vst [vmem:[%s15110_s8 + $0x1470] sm:$0xff] %v3071_v14  ;;  %3074 = vst [vmem:[%s15110_s8 + $0x1478] sm:$0xff] %v3073_v15  ;;  %v3077_v17 = vld [vmem:[%s15105_s7 + $0x2910] sm:$0xff] }
 0x162   : > { %3076 = vst [vmem:[%s15110_s8 + $0x1480] sm:$0xff] %v3075_v16  ;;  %v3079_v18 = vld [vmem:[%s15105_s7 + $0x2920] sm:$0xff]  ;;  %v3081_v19 = vld [vmem:[%s15105_s7 + $0x2930] sm:$0xff]  ;;  %3078 = vst [vmem:[%s15110_s8 + $0x1488] sm:$0xff] %v3077_v17 }
 0x163   : > { %3080 = vst [vmem:[%s15110_s8 + $0x1490] sm:$0xff] %v3079_v18  ;;  %3082 = vst [vmem:[%s15110_s8 + $0x1498] sm:$0xff] %v3081_v19  ;;  %v3083_v20 = vld [vmem:[%s15105_s7 + $0x2940] sm:$0xff]  ;;  %v3085_v21 = vld [vmem:[%s15105_s7 + $0x2950] sm:$0xff] }
 0x164   : > { %v3087_v22 = vld [vmem:[%s15105_s7 + $0x2960] sm:$0xff]  ;;  %3084 = vst [vmem:[%s15110_s8 + $0x14a0] sm:$0xff] %v3083_v20  ;;  %3086 = vst [vmem:[%s15110_s8 + $0x14a8] sm:$0xff] %v3085_v21  ;;  %v3089_v23 = vld [vmem:[%s15105_s7 + $0x2970] sm:$0xff] }
 0x165   : > { %3088 = vst [vmem:[%s15110_s8 + $0x14b0] sm:$0xff] %v3087_v22  ;;  %v3091_v24 = vld [vmem:[%s15105_s7 + $0x2980] sm:$0xff]  ;;  %v3093_v25 = vld [vmem:[%s15105_s7 + $0x2990] sm:$0xff]  ;;  %3090 = vst [vmem:[%s15110_s8 + $0x14b8] sm:$0xff] %v3089_v23 }
 0x166   : > { %3092 = vst [vmem:[%s15110_s8 + $0x14c0] sm:$0xff] %v3091_v24  ;;  %3094 = vst [vmem:[%s15110_s8 + $0x14c8] sm:$0xff] %v3093_v25  ;;  %v3095_v26 = vld [vmem:[%s15105_s7 + $0x29a0] sm:$0xff]  ;;  %v3097_v27 = vld [vmem:[%s15105_s7 + $0x29b0] sm:$0xff] }
 0x167   : > { %v3099_v28 = vld [vmem:[%s15105_s7 + $0x29c0] sm:$0xff]  ;;  %3096 = vst [vmem:[%s15110_s8 + $0x14d0] sm:$0xff] %v3095_v26  ;;  %3098 = vst [vmem:[%s15110_s8 + $0x14d8] sm:$0xff] %v3097_v27  ;;  %v3101_v29 = vld [vmem:[%s15105_s7 + $0x29d0] sm:$0xff] }
 0x168   : > { %3100 = vst [vmem:[%s15110_s8 + $0x14e0] sm:$0xff] %v3099_v28  ;;  %v3103_v30 = vld [vmem:[%s15105_s7 + $0x29e0] sm:$0xff]  ;;  %v3105_v31 = vld [vmem:[%s15105_s7 + $0x29f0] sm:$0xff]  ;;  %3102 = vst [vmem:[%s15110_s8 + $0x14e8] sm:$0xff] %v3101_v29 }
 0x169   : > { %3104 = vst [vmem:[%s15110_s8 + $0x14f0] sm:$0xff] %v3103_v30  ;;  %3106 = vst [vmem:[%s15110_s8 + $0x14f8] sm:$0xff] %v3105_v31  ;;  %v3107_v32 = vld [vmem:[%s15105_s7 + $0x2a00] sm:$0xff]  ;;  %v3109_v33 = vld [vmem:[%s15105_s7 + $0x2a10] sm:$0xff] }
 0x16a   : > { %v3111_v34 = vld [vmem:[%s15105_s7 + $0x2a20] sm:$0xff]  ;;  %3108 = vst [vmem:[%s15110_s8 + $0x1500] sm:$0xff] %v3107_v32  ;;  %3110 = vst [vmem:[%s15110_s8 + $0x1508] sm:$0xff] %v3109_v33  ;;  %v3113_v35 = vld [vmem:[%s15105_s7 + $0x2a30] sm:$0xff] }
 0x16b   : > { %3112 = vst [vmem:[%s15110_s8 + $0x1510] sm:$0xff] %v3111_v34  ;;  %v3115_v36 = vld [vmem:[%s15105_s7 + $0x2a40] sm:$0xff]  ;;  %v3117_v37 = vld [vmem:[%s15105_s7 + $0x2a50] sm:$0xff]  ;;  %3114 = vst [vmem:[%s15110_s8 + $0x1518] sm:$0xff] %v3113_v35 }
 0x16c   : > { %3116 = vst [vmem:[%s15110_s8 + $0x1520] sm:$0xff] %v3115_v36  ;;  %3118 = vst [vmem:[%s15110_s8 + $0x1528] sm:$0xff] %v3117_v37  ;;  %v3119_v38 = vld [vmem:[%s15105_s7 + $0x2a60] sm:$0xff]  ;;  %v3121_v39 = vld [vmem:[%s15105_s7 + $0x2a70] sm:$0xff] }
 0x16d   : > { %v3123_v40 = vld [vmem:[%s15105_s7 + $0x2a80] sm:$0xff]  ;;  %3120 = vst [vmem:[%s15110_s8 + $0x1530] sm:$0xff] %v3119_v38  ;;  %3122 = vst [vmem:[%s15110_s8 + $0x1538] sm:$0xff] %v3121_v39  ;;  %v3125_v41 = vld [vmem:[%s15105_s7 + $0x2a90] sm:$0xff] }
 0x16e   : > { %3124 = vst [vmem:[%s15110_s8 + $0x1540] sm:$0xff] %v3123_v40  ;;  %v3127_v42 = vld [vmem:[%s15105_s7 + $0x2aa0] sm:$0xff]  ;;  %v3129_v43 = vld [vmem:[%s15105_s7 + $0x2ab0] sm:$0xff]  ;;  %3126 = vst [vmem:[%s15110_s8 + $0x1548] sm:$0xff] %v3125_v41 }
 0x16f   : > { %3128 = vst [vmem:[%s15110_s8 + $0x1550] sm:$0xff] %v3127_v42  ;;  %3130 = vst [vmem:[%s15110_s8 + $0x1558] sm:$0xff] %v3129_v43  ;;  %v3131_v44 = vld [vmem:[%s15105_s7 + $0x2ac0] sm:$0xff]  ;;  %v3133_v45 = vld [vmem:[%s15105_s7 + $0x2ad0] sm:$0xff] }
 0x170   : > { %v3135_v46 = vld [vmem:[%s15105_s7 + $0x2ae0] sm:$0xff]  ;;  %3132 = vst [vmem:[%s15110_s8 + $0x1560] sm:$0xff] %v3131_v44  ;;  %3134 = vst [vmem:[%s15110_s8 + $0x1568] sm:$0xff] %v3133_v45  ;;  %v3137_v47 = vld [vmem:[%s15105_s7 + $0x2af0] sm:$0xff] }
 0x171   : > { %3136 = vst [vmem:[%s15110_s8 + $0x1570] sm:$0xff] %v3135_v46  ;;  %v3139_v48 = vld [vmem:[%s15105_s7 + $0x2b00] sm:$0xff]  ;;  %v3141_v49 = vld [vmem:[%s15105_s7 + $0x2b10] sm:$0xff]  ;;  %3138 = vst [vmem:[%s15110_s8 + $0x1578] sm:$0xff] %v3137_v47 }
 0x172   : > { %3140 = vst [vmem:[%s15110_s8 + $0x1580] sm:$0xff] %v3139_v48  ;;  %3142 = vst [vmem:[%s15110_s8 + $0x1588] sm:$0xff] %v3141_v49  ;;  %v3143_v50 = vld [vmem:[%s15105_s7 + $0x2b20] sm:$0xff]  ;;  %v3145_v51 = vld [vmem:[%s15105_s7 + $0x2b30] sm:$0xff] }
 0x173   : > { %v3147_v52 = vld [vmem:[%s15105_s7 + $0x2b40] sm:$0xff]  ;;  %3144 = vst [vmem:[%s15110_s8 + $0x1590] sm:$0xff] %v3143_v50  ;;  %3146 = vst [vmem:[%s15110_s8 + $0x1598] sm:$0xff] %v3145_v51  ;;  %v3149_v53 = vld [vmem:[%s15105_s7 + $0x2b50] sm:$0xff] }
 0x174   : > { %3148 = vst [vmem:[%s15110_s8 + $0x15a0] sm:$0xff] %v3147_v52  ;;  %v3151_v54 = vld [vmem:[%s15105_s7 + $0x2b60] sm:$0xff]  ;;  %v3153_v55 = vld [vmem:[%s15105_s7 + $0x2b70] sm:$0xff]  ;;  %3150 = vst [vmem:[%s15110_s8 + $0x15a8] sm:$0xff] %v3149_v53 }
 0x175   : > { %3152 = vst [vmem:[%s15110_s8 + $0x15b0] sm:$0xff] %v3151_v54  ;;  %3154 = vst [vmem:[%s15110_s8 + $0x15b8] sm:$0xff] %v3153_v55  ;;  %v3155_v56 = vld [vmem:[%s15105_s7 + $0x2b80] sm:$0xff]  ;;  %v3157_v57 = vld [vmem:[%s15105_s7 + $0x2b90] sm:$0xff] }
 0x176   : > { %v3159_v58 = vld [vmem:[%s15105_s7 + $0x2ba0] sm:$0xff]  ;;  %3156 = vst [vmem:[%s15110_s8 + $0x15c0] sm:$0xff] %v3155_v56  ;;  %3158 = vst [vmem:[%s15110_s8 + $0x15c8] sm:$0xff] %v3157_v57  ;;  %v3161_v59 = vld [vmem:[%s15105_s7 + $0x2bb0] sm:$0xff] }
 0x177   : > { %3160 = vst [vmem:[%s15110_s8 + $0x15d0] sm:$0xff] %v3159_v58  ;;  %v3163_v60 = vld [vmem:[%s15105_s7 + $0x2bc0] sm:$0xff]  ;;  %v3165_v61 = vld [vmem:[%s15105_s7 + $0x2bd0] sm:$0xff]  ;;  %3162 = vst [vmem:[%s15110_s8 + $0x15d8] sm:$0xff] %v3161_v59 }
 0x178   : > { %3164 = vst [vmem:[%s15110_s8 + $0x15e0] sm:$0xff] %v3163_v60  ;;  %3166 = vst [vmem:[%s15110_s8 + $0x15e8] sm:$0xff] %v3165_v61  ;;  %v3167_v62 = vld [vmem:[%s15105_s7 + $0x2be0] sm:$0xff]  ;;  %v3169_v63 = vld [vmem:[%s15105_s7 + $0x2bf0] sm:$0xff] }
 0x179   : > { %v3171_v0 = vld [vmem:[%s15105_s7 + $0x2c00] sm:$0xff]  ;;  %3168 = vst [vmem:[%s15110_s8 + $0x15f0] sm:$0xff] %v3167_v62  ;;  %3170 = vst [vmem:[%s15110_s8 + $0x15f8] sm:$0xff] %v3169_v63  ;;  %v3173_v1 = vld [vmem:[%s15105_s7 + $0x2c10] sm:$0xff] }
 0x17a   : > { %3172 = vst [vmem:[%s15110_s8 + $0x1600] sm:$0xff] %v3171_v0  ;;  %v3175_v2 = vld [vmem:[%s15105_s7 + $0x2c20] sm:$0xff]  ;;  %v3177_v3 = vld [vmem:[%s15105_s7 + $0x2c30] sm:$0xff]  ;;  %3174 = vst [vmem:[%s15110_s8 + $0x1608] sm:$0xff] %v3173_v1 }
 0x17b   : > { %3176 = vst [vmem:[%s15110_s8 + $0x1610] sm:$0xff] %v3175_v2  ;;  %3178 = vst [vmem:[%s15110_s8 + $0x1618] sm:$0xff] %v3177_v3  ;;  %v3179_v4 = vld [vmem:[%s15105_s7 + $0x2c40] sm:$0xff]  ;;  %v3181_v5 = vld [vmem:[%s15105_s7 + $0x2c50] sm:$0xff] }
 0x17c   : > { %v3183_v6 = vld [vmem:[%s15105_s7 + $0x2c60] sm:$0xff]  ;;  %3180 = vst [vmem:[%s15110_s8 + $0x1620] sm:$0xff] %v3179_v4  ;;  %3182 = vst [vmem:[%s15110_s8 + $0x1628] sm:$0xff] %v3181_v5  ;;  %v3185_v7 = vld [vmem:[%s15105_s7 + $0x2c70] sm:$0xff] }
 0x17d   : > { %3184 = vst [vmem:[%s15110_s8 + $0x1630] sm:$0xff] %v3183_v6  ;;  %v3187_v8 = vld [vmem:[%s15105_s7 + $0x2c80] sm:$0xff]  ;;  %v3189_v9 = vld [vmem:[%s15105_s7 + $0x2c90] sm:$0xff]  ;;  %3186 = vst [vmem:[%s15110_s8 + $0x1638] sm:$0xff] %v3185_v7 }
 0x17e   : > { %3188 = vst [vmem:[%s15110_s8 + $0x1640] sm:$0xff] %v3187_v8  ;;  %3190 = vst [vmem:[%s15110_s8 + $0x1648] sm:$0xff] %v3189_v9  ;;  %v3191_v10 = vld [vmem:[%s15105_s7 + $0x2ca0] sm:$0xff]  ;;  %v3193_v11 = vld [vmem:[%s15105_s7 + $0x2cb0] sm:$0xff] }
 0x17f   : > { %v3195_v12 = vld [vmem:[%s15105_s7 + $0x2cc0] sm:$0xff]  ;;  %3192 = vst [vmem:[%s15110_s8 + $0x1650] sm:$0xff] %v3191_v10  ;;  %3194 = vst [vmem:[%s15110_s8 + $0x1658] sm:$0xff] %v3193_v11  ;;  %v3197_v13 = vld [vmem:[%s15105_s7 + $0x2cd0] sm:$0xff] }
 0x180   : > { %3196 = vst [vmem:[%s15110_s8 + $0x1660] sm:$0xff] %v3195_v12  ;;  %v3199_v14 = vld [vmem:[%s15105_s7 + $0x2ce0] sm:$0xff]  ;;  %v3201_v15 = vld [vmem:[%s15105_s7 + $0x2cf0] sm:$0xff]  ;;  %3198 = vst [vmem:[%s15110_s8 + $0x1668] sm:$0xff] %v3197_v13 }
 0x181   : > { %3200 = vst [vmem:[%s15110_s8 + $0x1670] sm:$0xff] %v3199_v14  ;;  %3202 = vst [vmem:[%s15110_s8 + $0x1678] sm:$0xff] %v3201_v15  ;;  %v3203_v16 = vld [vmem:[%s15105_s7 + $0x2d00] sm:$0xff]  ;;  %v3205_v17 = vld [vmem:[%s15105_s7 + $0x2d10] sm:$0xff] }
 0x182   : > { %v3207_v18 = vld [vmem:[%s15105_s7 + $0x2d20] sm:$0xff]  ;;  %3204 = vst [vmem:[%s15110_s8 + $0x1680] sm:$0xff] %v3203_v16  ;;  %3206 = vst [vmem:[%s15110_s8 + $0x1688] sm:$0xff] %v3205_v17  ;;  %v3209_v19 = vld [vmem:[%s15105_s7 + $0x2d30] sm:$0xff] }
 0x183   : > { %3208 = vst [vmem:[%s15110_s8 + $0x1690] sm:$0xff] %v3207_v18  ;;  %v3211_v20 = vld [vmem:[%s15105_s7 + $0x2d40] sm:$0xff]  ;;  %v3213_v21 = vld [vmem:[%s15105_s7 + $0x2d50] sm:$0xff]  ;;  %3210 = vst [vmem:[%s15110_s8 + $0x1698] sm:$0xff] %v3209_v19 }
 0x184   : > { %3212 = vst [vmem:[%s15110_s8 + $0x16a0] sm:$0xff] %v3211_v20  ;;  %3214 = vst [vmem:[%s15110_s8 + $0x16a8] sm:$0xff] %v3213_v21  ;;  %v3215_v22 = vld [vmem:[%s15105_s7 + $0x2d60] sm:$0xff]  ;;  %v3217_v23 = vld [vmem:[%s15105_s7 + $0x2d70] sm:$0xff] }
 0x185   : > { %v3219_v24 = vld [vmem:[%s15105_s7 + $0x2d80] sm:$0xff]  ;;  %3216 = vst [vmem:[%s15110_s8 + $0x16b0] sm:$0xff] %v3215_v22  ;;  %3218 = vst [vmem:[%s15110_s8 + $0x16b8] sm:$0xff] %v3217_v23  ;;  %v3221_v25 = vld [vmem:[%s15105_s7 + $0x2d90] sm:$0xff] }
 0x186   : > { %3220 = vst [vmem:[%s15110_s8 + $0x16c0] sm:$0xff] %v3219_v24  ;;  %v3223_v26 = vld [vmem:[%s15105_s7 + $0x2da0] sm:$0xff]  ;;  %v3225_v27 = vld [vmem:[%s15105_s7 + $0x2db0] sm:$0xff]  ;;  %3222 = vst [vmem:[%s15110_s8 + $0x16c8] sm:$0xff] %v3221_v25 }
 0x187   : > { %3224 = vst [vmem:[%s15110_s8 + $0x16d0] sm:$0xff] %v3223_v26  ;;  %3226 = vst [vmem:[%s15110_s8 + $0x16d8] sm:$0xff] %v3225_v27  ;;  %v3227_v28 = vld [vmem:[%s15105_s7 + $0x2dc0] sm:$0xff]  ;;  %v3229_v29 = vld [vmem:[%s15105_s7 + $0x2dd0] sm:$0xff] }
 0x188   : > { %v3231_v30 = vld [vmem:[%s15105_s7 + $0x2de0] sm:$0xff]  ;;  %3228 = vst [vmem:[%s15110_s8 + $0x16e0] sm:$0xff] %v3227_v28  ;;  %3230 = vst [vmem:[%s15110_s8 + $0x16e8] sm:$0xff] %v3229_v29  ;;  %v3233_v31 = vld [vmem:[%s15105_s7 + $0x2df0] sm:$0xff] }
 0x189   : > { %3232 = vst [vmem:[%s15110_s8 + $0x16f0] sm:$0xff] %v3231_v30  ;;  %v3235_v32 = vld [vmem:[%s15105_s7 + $0x2e00] sm:$0xff]  ;;  %v3237_v33 = vld [vmem:[%s15105_s7 + $0x2e10] sm:$0xff]  ;;  %3234 = vst [vmem:[%s15110_s8 + $0x16f8] sm:$0xff] %v3233_v31 }
 0x18a   : > { %3236 = vst [vmem:[%s15110_s8 + $0x1700] sm:$0xff] %v3235_v32  ;;  %3238 = vst [vmem:[%s15110_s8 + $0x1708] sm:$0xff] %v3237_v33  ;;  %v3239_v34 = vld [vmem:[%s15105_s7 + $0x2e20] sm:$0xff]  ;;  %v3241_v35 = vld [vmem:[%s15105_s7 + $0x2e30] sm:$0xff] }
 0x18b   : > { %v3243_v36 = vld [vmem:[%s15105_s7 + $0x2e40] sm:$0xff]  ;;  %3240 = vst [vmem:[%s15110_s8 + $0x1710] sm:$0xff] %v3239_v34  ;;  %3242 = vst [vmem:[%s15110_s8 + $0x1718] sm:$0xff] %v3241_v35  ;;  %v3245_v37 = vld [vmem:[%s15105_s7 + $0x2e50] sm:$0xff] }
 0x18c   : > { %3244 = vst [vmem:[%s15110_s8 + $0x1720] sm:$0xff] %v3243_v36  ;;  %v3247_v38 = vld [vmem:[%s15105_s7 + $0x2e60] sm:$0xff]  ;;  %v3249_v39 = vld [vmem:[%s15105_s7 + $0x2e70] sm:$0xff]  ;;  %3246 = vst [vmem:[%s15110_s8 + $0x1728] sm:$0xff] %v3245_v37 }
 0x18d   : > { %3248 = vst [vmem:[%s15110_s8 + $0x1730] sm:$0xff] %v3247_v38  ;;  %3250 = vst [vmem:[%s15110_s8 + $0x1738] sm:$0xff] %v3249_v39  ;;  %v3251_v40 = vld [vmem:[%s15105_s7 + $0x2e80] sm:$0xff]  ;;  %v3253_v41 = vld [vmem:[%s15105_s7 + $0x2e90] sm:$0xff] }
 0x18e   : > { %v3255_v42 = vld [vmem:[%s15105_s7 + $0x2ea0] sm:$0xff]  ;;  %3252 = vst [vmem:[%s15110_s8 + $0x1740] sm:$0xff] %v3251_v40  ;;  %3254 = vst [vmem:[%s15110_s8 + $0x1748] sm:$0xff] %v3253_v41  ;;  %v3257_v43 = vld [vmem:[%s15105_s7 + $0x2eb0] sm:$0xff] }
 0x18f   : > { %3256 = vst [vmem:[%s15110_s8 + $0x1750] sm:$0xff] %v3255_v42  ;;  %v3259_v44 = vld [vmem:[%s15105_s7 + $0x2ec0] sm:$0xff]  ;;  %v3261_v45 = vld [vmem:[%s15105_s7 + $0x2ed0] sm:$0xff]  ;;  %3258 = vst [vmem:[%s15110_s8 + $0x1758] sm:$0xff] %v3257_v43 }
 0x190   : > { %3260 = vst [vmem:[%s15110_s8 + $0x1760] sm:$0xff] %v3259_v44  ;;  %3262 = vst [vmem:[%s15110_s8 + $0x1768] sm:$0xff] %v3261_v45  ;;  %v3263_v46 = vld [vmem:[%s15105_s7 + $0x2ee0] sm:$0xff]  ;;  %v3265_v47 = vld [vmem:[%s15105_s7 + $0x2ef0] sm:$0xff] }
 0x191   : > { %v3267_v48 = vld [vmem:[%s15105_s7 + $0x2f00] sm:$0xff]  ;;  %3264 = vst [vmem:[%s15110_s8 + $0x1770] sm:$0xff] %v3263_v46  ;;  %3266 = vst [vmem:[%s15110_s8 + $0x1778] sm:$0xff] %v3265_v47  ;;  %v3269_v49 = vld [vmem:[%s15105_s7 + $0x2f10] sm:$0xff] }
 0x192   : > { %3268 = vst [vmem:[%s15110_s8 + $0x1780] sm:$0xff] %v3267_v48  ;;  %v3271_v50 = vld [vmem:[%s15105_s7 + $0x2f20] sm:$0xff]  ;;  %v3273_v51 = vld [vmem:[%s15105_s7 + $0x2f30] sm:$0xff]  ;;  %3270 = vst [vmem:[%s15110_s8 + $0x1788] sm:$0xff] %v3269_v49 }
 0x193   : > { %3272 = vst [vmem:[%s15110_s8 + $0x1790] sm:$0xff] %v3271_v50  ;;  %3274 = vst [vmem:[%s15110_s8 + $0x1798] sm:$0xff] %v3273_v51  ;;  %v3275_v52 = vld [vmem:[%s15105_s7 + $0x2f40] sm:$0xff]  ;;  %v3277_v53 = vld [vmem:[%s15105_s7 + $0x2f50] sm:$0xff] }
 0x194   : > { %v3279_v54 = vld [vmem:[%s15105_s7 + $0x2f60] sm:$0xff]  ;;  %3276 = vst [vmem:[%s15110_s8 + $0x17a0] sm:$0xff] %v3275_v52  ;;  %3278 = vst [vmem:[%s15110_s8 + $0x17a8] sm:$0xff] %v3277_v53  ;;  %v3281_v55 = vld [vmem:[%s15105_s7 + $0x2f70] sm:$0xff] }
 0x195   : > { %3280 = vst [vmem:[%s15110_s8 + $0x17b0] sm:$0xff] %v3279_v54  ;;  %v3283_v56 = vld [vmem:[%s15105_s7 + $0x2f80] sm:$0xff]  ;;  %v3285_v57 = vld [vmem:[%s15105_s7 + $0x2f90] sm:$0xff]  ;;  %3282 = vst [vmem:[%s15110_s8 + $0x17b8] sm:$0xff] %v3281_v55 }
 0x196   : > { %3284 = vst [vmem:[%s15110_s8 + $0x17c0] sm:$0xff] %v3283_v56  ;;  %3286 = vst [vmem:[%s15110_s8 + $0x17c8] sm:$0xff] %v3285_v57  ;;  %v3287_v58 = vld [vmem:[%s15105_s7 + $0x2fa0] sm:$0xff]  ;;  %v3289_v59 = vld [vmem:[%s15105_s7 + $0x2fb0] sm:$0xff] }
 0x197   : > { %v3291_v60 = vld [vmem:[%s15105_s7 + $0x2fc0] sm:$0xff]  ;;  %3288 = vst [vmem:[%s15110_s8 + $0x17d0] sm:$0xff] %v3287_v58  ;;  %3290 = vst [vmem:[%s15110_s8 + $0x17d8] sm:$0xff] %v3289_v59  ;;  %v3293_v61 = vld [vmem:[%s15105_s7 + $0x2fd0] sm:$0xff] }
 0x198   : > { %3292 = vst [vmem:[%s15110_s8 + $0x17e0] sm:$0xff] %v3291_v60  ;;  %v3295_v62 = vld [vmem:[%s15105_s7 + $0x2fe0] sm:$0xff]  ;;  %v3297_v63 = vld [vmem:[%s15105_s7 + $0x2ff0] sm:$0xff]  ;;  %3294 = vst [vmem:[%s15110_s8 + $0x17e8] sm:$0xff] %v3293_v61 }
 0x199   : > { %3296 = vst [vmem:[%s15110_s8 + $0x17f0] sm:$0xff] %v3295_v62  ;;  %3298 = vst [vmem:[%s15110_s8 + $0x17f8] sm:$0xff] %v3297_v63  ;;  %v3299_v0 = vld [vmem:[%s15105_s7 + $0x3000] sm:$0xff]  ;;  %v3301_v1 = vld [vmem:[%s15105_s7 + $0x3010] sm:$0xff] }
 0x19a   : > { %v3303_v2 = vld [vmem:[%s15105_s7 + $0x3020] sm:$0xff]  ;;  %3300 = vst [vmem:[%s15110_s8 + $0x1800] sm:$0xff] %v3299_v0  ;;  %3302 = vst [vmem:[%s15110_s8 + $0x1808] sm:$0xff] %v3301_v1  ;;  %v3305_v3 = vld [vmem:[%s15105_s7 + $0x3030] sm:$0xff] }
 0x19b   : > { %3304 = vst [vmem:[%s15110_s8 + $0x1810] sm:$0xff] %v3303_v2  ;;  %v3307_v4 = vld [vmem:[%s15105_s7 + $0x3040] sm:$0xff]  ;;  %v3309_v5 = vld [vmem:[%s15105_s7 + $0x3050] sm:$0xff]  ;;  %3306 = vst [vmem:[%s15110_s8 + $0x1818] sm:$0xff] %v3305_v3 }
 0x19c   : > { %3308 = vst [vmem:[%s15110_s8 + $0x1820] sm:$0xff] %v3307_v4  ;;  %3310 = vst [vmem:[%s15110_s8 + $0x1828] sm:$0xff] %v3309_v5  ;;  %v3311_v6 = vld [vmem:[%s15105_s7 + $0x3060] sm:$0xff]  ;;  %v3313_v7 = vld [vmem:[%s15105_s7 + $0x3070] sm:$0xff] }
 0x19d   : > { %v3315_v8 = vld [vmem:[%s15105_s7 + $0x3080] sm:$0xff]  ;;  %3312 = vst [vmem:[%s15110_s8 + $0x1830] sm:$0xff] %v3311_v6  ;;  %3314 = vst [vmem:[%s15110_s8 + $0x1838] sm:$0xff] %v3313_v7  ;;  %v3317_v9 = vld [vmem:[%s15105_s7 + $0x3090] sm:$0xff] }
 0x19e   : > { %3316 = vst [vmem:[%s15110_s8 + $0x1840] sm:$0xff] %v3315_v8  ;;  %v3319_v10 = vld [vmem:[%s15105_s7 + $0x30a0] sm:$0xff]  ;;  %v3321_v11 = vld [vmem:[%s15105_s7 + $0x30b0] sm:$0xff]  ;;  %3318 = vst [vmem:[%s15110_s8 + $0x1848] sm:$0xff] %v3317_v9 }
 0x19f   : > { %3320 = vst [vmem:[%s15110_s8 + $0x1850] sm:$0xff] %v3319_v10  ;;  %3322 = vst [vmem:[%s15110_s8 + $0x1858] sm:$0xff] %v3321_v11  ;;  %v3323_v12 = vld [vmem:[%s15105_s7 + $0x30c0] sm:$0xff]  ;;  %v3325_v13 = vld [vmem:[%s15105_s7 + $0x30d0] sm:$0xff] }
 0x1a0   : > { %v3327_v14 = vld [vmem:[%s15105_s7 + $0x30e0] sm:$0xff]  ;;  %3324 = vst [vmem:[%s15110_s8 + $0x1860] sm:$0xff] %v3323_v12  ;;  %3326 = vst [vmem:[%s15110_s8 + $0x1868] sm:$0xff] %v3325_v13  ;;  %v3329_v15 = vld [vmem:[%s15105_s7 + $0x30f0] sm:$0xff] }
 0x1a1   : > { %3328 = vst [vmem:[%s15110_s8 + $0x1870] sm:$0xff] %v3327_v14  ;;  %3330 = vst [vmem:[%s15110_s8 + $0x1878] sm:$0xff] %v3329_v15 }
 0x1a2 PF: > { %p12829_p7 = scmp.ge.s32.totalorder %s15019_s18, 1  ;;  %p6515_p8 = scmp.lt.s32.totalorder %s15019_s18, 9 }
 0x1a4   : > { %p6516_p9 = pnand %p12829_p7, %p6515_p8 }
 0x1a5   : > { %s6522_s9 = sand.u32 (!%p6516_p9), 1, %s14995_s12   ;;  %s6553_s10 = smul.u32 (!%p6516_p9), 49, %s15003_s14 }
 0x1a6   : > { %6519 = sbr.rel (%p6516_p9) target bundleno = 1474 (0x5c2), region = 80  ;;  %s12830_s21 = sshll.u32 (!%p6516_p9), %s15007_s15, 1 }
 0x1a7   : > { %s13718_s11 = smul.u32 (!%p6516_p9), 6272, %s6522_s9  ;;  %p6554_p10 = scmp.lt.s32.totalorder (!%p6516_p9), %s6553_s10, 195 }
 0x1a8   : > { %p6561_p11 = scmp.lt.s32.totalorder (!%p6516_p9), %s12830_s21, 3  ;;  %p12833_p12 = scmp.ne.s32.totalorder (!%p6516_p9), %s15003_s14, 0 }
 0x1a9   : > { %s16699_s4 = scalar_lea.vmem (!%p6516_p9), [#allocation2], %s13718_s11 }
 0x1ad   : > { %s17767_s10 = smov (!%p6554_p10, %s6553_s10), 195  ;;  %s17769_s21 = smov (!%p6561_p11, %s12830_s21), 3 }
 0x1ae   : > { %s16687_s24 = scalar_lea.vmem %s17750_s0, %s17767_s10  ;;  %s6563_s28 = scalar_lea.vmem %s17752_s2, %s17769_s21  ;;  %v15021_v16 = vmov (!%p12833_p12), 0.0  }
 0x1af   : > { %s12832_s12 = sshll.u32 %s17769_s21, 1  ;;  %6575 = sbr.rel (%p12833_p12) target bundleno = 438 (0x1b6), region = 88 }
 0x1b0   : > { %s16697_s15 = scalar_lea.vmem %s17753_s3, %s12832_s12 }
 0x1b1   : > { %6576 = vst [vmem:[%s16697_s15] sm:$0xf] (!%p12833_p12), %v15021_v16 }
 0x1b6 PF: > { %v13779_v17 = vld [vmem:[%s16699_s4 + $0x4] ss:$8 sps:$4 sm:$0xff]   ;;  %v13783_v19 = vld [vmem:[%s16699_s4] ss:$8 sps:$4 sm:$0xff]   ;;  %v13785_v21 = vld [vmem:[%s16699_s4 + $0x14] ss:$8 sps:$4 sm:$0xff]   ;;  %v7380_v55 = vlaneseq }
 0x1b7   : > { %v13781_v18 = vld [vmem:[%s16699_s4 + $0xc04] ss:$8 sps:$4 sm:$0xff]   ;;  %11653 = vmatprep.subr.bf16.mxu1 %v13779_v17  ;;  %v13784_v20 = vld [vmem:[%s16699_s4 + $0xc00] ss:$8 sps:$4 sm:$0xff]   ;;  %v13787_v22 = vld [vmem:[%s16699_s4 + $0xc14] ss:$8 sps:$4 sm:$0xff]  }
 0x1b8   : > { %12145 = vmatprep.subr.bf16.mxu0 %v13781_v18  ;;  %11654 = vmatpush1.bf16.msra.mxu1 %v13783_v19  ;;  %v13789_v23 = vld [vmem:[%s16699_s4 + $0x10] ss:$8 sps:$4 sm:$0xff]   ;;  %v13791_v25 = vld [vmem:[%s16699_s4 + $0x24] ss:$8 sps:$4 sm:$0xff]   ;;  %v13795_v27 = vld [vmem:[%s16699_s4 + $0x20] ss:$8 sps:$4 sm:$0xff]  }
 0x1b9   : > { %12146 = vmatpush1.bf16.msra.mxu0 %v13784_v20  ;;  %11655 = vmatprep.subr.bf16.mxu1 %v13785_v21  ;;  %v13790_v24 = vld [vmem:[%s16699_s4 + $0xc10] ss:$8 sps:$4 sm:$0xff]   ;;  %v13793_v26 = vld [vmem:[%s16699_s4 + $0xc24] ss:$8 sps:$4 sm:$0xff]   ;;  %v13796_v28 = vld [vmem:[%s16699_s4 + $0xc20] ss:$8 sps:$4 sm:$0xff]  }
 0x1ba   : > { %12147 = vmatprep.subr.bf16.mxu0 %v13787_v22  ;;  %v13797_v29 = vld [vmem:[%s16699_s4 + $0x34] ss:$8 sps:$4 sm:$0xff]   ;;  %v13801_v31 = vld [vmem:[%s16699_s4 + $0x30] ss:$8 sps:$4 sm:$0xff]   ;;  %v13803_v33 = vld [vmem:[%s16699_s4 + $0x44] ss:$8 sps:$4 sm:$0xff]  }
 0x1bb   : > { %v13799_v30 = vld [vmem:[%s16699_s4 + $0xc34] ss:$8 sps:$4 sm:$0xff]   ;;  %v13802_v32 = vld [vmem:[%s16699_s4 + $0xc30] ss:$8 sps:$4 sm:$0xff]   ;;  %v13805_v34 = vld [vmem:[%s16699_s4 + $0xc44] ss:$8 sps:$4 sm:$0xff]  }
 0x1bc   : > { %11656 = vmatpush1.bf16.msra.mxu1 %v13789_v23  ;;  %v13807_v35 = vld [vmem:[%s16699_s4 + $0x40] ss:$8 sps:$4 sm:$0xff]   ;;  %v13809_v37 = vld [vmem:[%s16699_s4 + $0x54] ss:$8 sps:$4 sm:$0xff]   ;;  %v13813_v39 = vld [vmem:[%s16699_s4 + $0x50] ss:$8 sps:$4 sm:$0xff]  }
 0x1bd   : > { %12148 = vmatpush1.bf16.msra.mxu0 %v13790_v24  ;;  %11657 = vmatprep.subr.bf16.mxu1 %v13791_v25  ;;  %v13808_v36 = vld [vmem:[%s16699_s4 + $0xc40] ss:$8 sps:$4 sm:$0xff]   ;;  %v13811_v38 = vld [vmem:[%s16699_s4 + $0xc54] ss:$8 sps:$4 sm:$0xff]   ;;  %v13814_v40 = vld [vmem:[%s16699_s4 + $0xc50] ss:$8 sps:$4 sm:$0xff]  }
 0x1be   : > { %12149 = vmatprep.subr.bf16.mxu0 %v13793_v26  ;;  %v13815_v41 = vld [vmem:[%s16699_s4 + $0x64] ss:$8 sps:$4 sm:$0xff]   ;;  %v13819_v43 = vld [vmem:[%s16699_s4 + $0x60] ss:$8 sps:$4 sm:$0xff]   ;;  %v13821_v45 = vld [vmem:[%s16699_s4 + $0x74] ss:$8 sps:$4 sm:$0xff]  }
 0x1bf   : > { %v13817_v42 = vld [vmem:[%s16699_s4 + $0xc64] ss:$8 sps:$4 sm:$0xff]   ;;  %v13820_v44 = vld [vmem:[%s16699_s4 + $0xc60] ss:$8 sps:$4 sm:$0xff]   ;;  %v13823_v46 = vld [vmem:[%s16699_s4 + $0xc74] ss:$8 sps:$4 sm:$0xff]  }
 0x1c0   : > { %11658 = vmatpush1.bf16.msra.mxu1 %v13795_v27  ;;  %v13825_v47 = vld [vmem:[%s16699_s4 + $0x70] ss:$8 sps:$4 sm:$0xff]   ;;  %v13827_v49 = vld [vmem:[%s16699_s4 + $0x84] ss:$8 sps:$4 sm:$0xff]   ;;  %v13831_v51 = vld [vmem:[%s16699_s4 + $0x80] ss:$8 sps:$4 sm:$0xff]  }
 0x1c1   : > { %12150 = vmatpush1.bf16.msra.mxu0 %v13796_v28  ;;  %11659 = vmatprep.subr.bf16.mxu1 %v13797_v29  ;;  %v13826_v48 = vld [vmem:[%s16699_s4 + $0xc70] ss:$8 sps:$4 sm:$0xff]   ;;  %v13829_v50 = vld [vmem:[%s16699_s4 + $0xc84] ss:$8 sps:$4 sm:$0xff]   ;;  %v13832_v52 = vld [vmem:[%s16699_s4 + $0xc80] ss:$8 sps:$4 sm:$0xff]  }
 0x1c2   : > { %12151 = vmatprep.subr.bf16.mxu0 %v13799_v30  ;;  %v15022_v53 = vmov 1966171168   ;;  %v13833_v56 = vld [vmem:[%s16699_s4 + $0x94] ss:$8 sps:$4 sm:$0xff]   ;;  %v13837_v58 = vld [vmem:[%s16699_s4 + $0x90] ss:$8 sps:$4 sm:$0xff]  }
 0x1c3   : > { %v7378_v54 = vunpack.c.l.s4 %v15022_v53  ;;  %v13835_v57 = vld [vmem:[%s16699_s4 + $0xc94] ss:$8 sps:$4 sm:$0xff]   ;;  %v16742_v60 = vshrl.u32 %v7380_v55, 7  ;;  %v13838_v61 = vld [vmem:[%s16699_s4 + $0xc90] ss:$8 sps:$4 sm:$0xff]   ;;  %v16755_v5 = vld [vmem:[%s16687_s24] sm:$0xff] }
 0x1c4   : > { %11660 = vmatpush1.bf16.msra.mxu1 %v13801_v31  ;;  %v13839_v62 = vld [vmem:[%s16699_s4 + $0xa4] ss:$8 sps:$4 sm:$0xff]   ;;  %v13843_v0 = vld [vmem:[%s16699_s4 + $0xa0] ss:$8 sps:$4 sm:$0xff]   ;;  %v13845_v3 = vld [vmem:[%s16699_s4 + $0xb4] ss:$8 sps:$4 sm:$0xff]  }
 0x1c5   : > { %12152 = vmatpush1.bf16.msra.mxu0 %v13802_v32  ;;  %11661 = vmatprep.subr.bf16.mxu1 %v13803_v33  ;;  %v7379_v59 = vunpack.c.0.s8 %v7378_v54  ;;  %v13841_v63 = vld [vmem:[%s16699_s4 + $0xca4] ss:$8 sps:$4 sm:$0xff]   ;;  %v13844_v1 = vld [vmem:[%s16699_s4 + $0xca0] ss:$8 sps:$4 sm:$0xff]   ;;  %v13847_v4 = vld [vmem:[%s16699_s4 + $0xcb4] ss:$8 sps:$4 sm:$0xff]  }
 0x1c6   : > { %12153 = vmatprep.subr.bf16.mxu0 %v13805_v34  ;;  %v13849_v6 = vld [vmem:[%s16699_s4 + $0xb0] ss:$8 sps:$4 sm:$0xff]   ;;  %v13851_v10 = vld [vmem:[%s16699_s4 + $0xc4] ss:$8 sps:$4 sm:$0xff]   ;;  %v13855_v16 = vld [vmem:[%s16699_s4 + $0xc0] ss:$8 sps:$4 sm:$0xff]  }
 0x1c7   : > { %v16750_v2 = vsub.s32 %v7379_v59, %v16742_v60  ;;  %v13850_v8 = vld [vmem:[%s16699_s4 + $0xcb0] ss:$8 sps:$4 sm:$0xff]   ;;  %v13853_v11 = vld [vmem:[%s16699_s4 + $0xcc4] ss:$8 sps:$4 sm:$0xff]   ;;  %v13856_v17 = vld [vmem:[%s16699_s4 + $0xcc0] ss:$8 sps:$4 sm:$0xff]  }
 0x1c8   : > { %11662 = vmatpush1.bf16.msra.mxu1 %v13807_v35  ;;  %v16762_v9 = vld [vmem:[%s16687_s24 + $0x18] sm:$0xff]  ;;  %v13863_v23 = vld [vmem:[%s16699_s4 + $0xe4] ss:$8 sps:$4 sm:$0xff]   ;;  %v13867_v25 = vld [vmem:[%s16699_s4 + $0xe0] ss:$8 sps:$4 sm:$0xff]   ;;  %p13619_p13 = scmp.ne.s32.totalorder %s15003_s14, 3 }
 0x1c9   : > { %12154 = vmatpush1.bf16.msra.mxu0 %v13808_v36  ;;  %11663 = vmatprep.subr.bf16.mxu1 %v13809_v37  ;;  %v7383_v7 = vrot.slane %v16755_v5, %v16750_v2  ;;  %v7530_v13 = vrot.slane %v16762_v9, %v16750_v2  ;;  %v13857_v18 = vld [vmem:[%s16699_s4 + $0xd4] ss:$8 sps:$4 sm:$0xff]   ;;  %v13861_v21 = vld [vmem:[%s16699_s4 + $0xd0] ss:$8 sps:$4 sm:$0xff]   ;;  %v13865_v24 = vld [vmem:[%s16699_s4 + $0xce4] ss:$8 sps:$4 sm:$0xff]  }
 0x1ca   : > { %12155 = vmatprep.subr.bf16.mxu0 %v13811_v38  ;;  %v13859_v19 = vld [vmem:[%s16699_s4 + $0xcd4] ss:$8 sps:$4 sm:$0xff]   ;;  %v13862_v22 = vld [vmem:[%s16699_s4 + $0xcd0] ss:$8 sps:$4 sm:$0xff]   ;;  %v13868_v26 = vld [vmem:[%s16699_s4 + $0xce0] ss:$8 sps:$4 sm:$0xff]  }
 0x1cb   : > { %v7391_v12 = vcombine.high %v7383_v7, %v7383_v7  ;;  %v7538_v15 = vcombine.high %v7530_v13, %v7530_v13  ;;  %v13869_v27 = vld [vmem:[%s16699_s4 + $0xf4] ss:$8 sps:$4 sm:$0xff]   ;;  %v13873_v29 = vld [vmem:[%s16699_s4 + $0xf0] ss:$8 sps:$4 sm:$0xff]   ;;  %v13878_v31 = vld [vmem:[%s16699_s4 + $0x104] ss:$8 sps:$4 sm:$0xff]   ;;  %v16787_v33 = vrot.slane %v7383_v7, %v16750_v2  ;;  %v16790_v34 = vrot.slane %v7530_v13, %v16750_v2 }
 0x1cc   : > { %11664 = vmatpush1.bf16.msra.mxu1 %v13813_v39  ;;  %v13871_v28 = vld [vmem:[%s16699_s4 + $0xcf4] ss:$8 sps:$4 sm:$0xff]   ;;  %v13874_v30 = vld [vmem:[%s16699_s4 + $0xcf0] ss:$8 sps:$4 sm:$0xff]   ;;  %v13882_v32 = vld [vmem:[%s16699_s4 + $0xd04] ss:$8 sps:$4 sm:$0xff]  }
 0x1cd   : > { %12156 = vmatpush1.bf16.msra.mxu0 %v13814_v40  ;;  %11665 = vmatprep.subr.bf16.mxu1 %v13815_v41  ;;  %v7413_v14 = vrot.slane %v7391_v12, %v16750_v2  ;;  %v7560_v20 = vrot.slane %v7538_v15, %v16750_v2  ;;  %v13876_v35 = vld [vmem:[%s16699_s4 + $0x100] ss:$8 sps:$4 sm:$0xff]   ;;  %v13885_v37 = vld [vmem:[%s16699_s4 + $0x114] ss:$8 sps:$4 sm:$0xff]   ;;  %v13883_v41 = vld [vmem:[%s16699_s4 + $0x110] ss:$8 sps:$4 sm:$0xff]  }
 0x1ce   : > { %12157 = vmatprep.subr.bf16.mxu0 %v13817_v42  ;;  %v13880_v36 = vld [vmem:[%s16699_s4 + $0xd00] ss:$8 sps:$4 sm:$0xff]   ;;  %v13888_v38 = vld [vmem:[%s16699_s4 + $0xd14] ss:$8 sps:$4 sm:$0xff]   ;;  %v13886_v42 = vld [vmem:[%s16699_s4 + $0xd10] ss:$8 sps:$4 sm:$0xff]  }
 0x1cf   : > { %11685 = vmatprep.mubr.bf16.mxu1 %v7413_v14  ;;  %12177 = vmatprep.mubr.bf16.mxu0 %v7560_v20  ;;  %v7423_v39 = vcombine.high %v7413_v14, %v7413_v14  ;;  %v7570_v40 = vcombine.high %v7560_v20, %v7560_v20  ;;  %v13901_v53 = vld [vmem:[%s16699_s4 + $0x140] ss:$8 sps:$4 sm:$0xff]   ;;  %v13909_v55 = vld [vmem:[%s16699_s4 + $0x154] ss:$8 sps:$4 sm:$0xff]   ;;  %v13915_v59 = vld [vmem:[%s16699_s4 + $0x164] ss:$8 sps:$4 sm:$0xff]  }
 0x1d0   : > { %11666 = vmatpush1.bf16.msra.mxu1 %v13819_v43  ;;  %v13891_v43 = vld [vmem:[%s16699_s4 + $0x124] ss:$8 sps:$4 sm:$0xff]   ;;  %v13904_v54 = vld [vmem:[%s16699_s4 + $0xd40] ss:$8 sps:$4 sm:$0xff]   ;;  %v13936_v12 = vld [vmem:[%s16699_s4 + $0xd94] ss:$8 sps:$4 sm:$0xff]  }
 0x1d1   : > { %12158 = vmatpush1.bf16.msra.mxu0 %v13820_v44  ;;  %11667 = vmatprep.subr.bf16.mxu1 %v13821_v45  ;;  %v13894_v44 = vld [vmem:[%s16699_s4 + $0xd24] ss:$8 sps:$4 sm:$0xff]   ;;  %v13889_v45 = vld [vmem:[%s16699_s4 + $0x120] ss:$8 sps:$4 sm:$0xff]   ;;  %v13931_v13 = vld [vmem:[%s16699_s4 + $0x190] ss:$8 sps:$4 sm:$0xff]  }
 0x1d2   : > { %12159 = vmatprep.subr.bf16.mxu0 %v13823_v46  ;;  %v13892_v46 = vld [vmem:[%s16699_s4 + $0xd20] ss:$8 sps:$4 sm:$0xff]   ;;  %v13930_v7 = vld [vmem:[%s16699_s4 + $0xd84] ss:$8 sps:$4 sm:$0xff]   ;;  %v13934_v14 = vld [vmem:[%s16699_s4 + $0xd90] ss:$8 sps:$4 sm:$0xff]  }
 0x1d3   : > { %v13939_v15 = vld [vmem:[%s16699_s4 + $0x1a4] ss:$8 sps:$4 sm:$0xff]   ;;  %v13948_v20 = vld [vmem:[%s16699_s4 + $0xdb4] ss:$8 sps:$4 sm:$0xff]  }
 0x1d4   : > { %11668 = vmatpush1.bf16.msra.mxu1 %v13825_v47  ;;  %v13897_v47 = vld [vmem:[%s16699_s4 + $0x134] ss:$8 sps:$4 sm:$0xff]  }
 0x1d5   : > { %12160 = vmatpush1.bf16.msra.mxu0 %v13826_v48  ;;  %11669 = vmatprep.subr.bf16.mxu1 %v13827_v49  ;;  %v13900_v48 = vld [vmem:[%s16699_s4 + $0xd34] ss:$8 sps:$4 sm:$0xff]   ;;  %v13895_v49 = vld [vmem:[%s16699_s4 + $0x130] ss:$8 sps:$4 sm:$0xff]  }
 0x1d6   : > { %12161 = vmatprep.subr.bf16.mxu0 %v13829_v50  ;;  %v13898_v50 = vld [vmem:[%s16699_s4 + $0xd30] ss:$8 sps:$4 sm:$0xff]  }
 0x1d8   : > { %11670 = vmatpush1.bf16.msra.mxu1 %v13831_v51  ;;  %v13903_v51 = vld [vmem:[%s16699_s4 + $0x144] ss:$8 sps:$4 sm:$0xff]  }
 0x1d9   : > { %12162 = vmatpush1.bf16.msra.mxu0 %v13832_v52  ;;  %11671 = vmatprep.subr.bf16.mxu1 %v13833_v56  ;;  %v13906_v52 = vld [vmem:[%s16699_s4 + $0xd44] ss:$8 sps:$4 sm:$0xff]   ;;  %v13912_v56 = vld [vmem:[%s16699_s4 + $0xd54] ss:$8 sps:$4 sm:$0xff]  }
 0x1da   : > { %12163 = vmatprep.subr.bf16.mxu0 %v13835_v57  ;;  %v13907_v57 = vld [vmem:[%s16699_s4 + $0x150] ss:$8 sps:$4 sm:$0xff]  }
 0x1dc   : > { %11672 = vmatpush1.bf16.msra.mxu1 %v13837_v58  ;;  %v13910_v58 = vld [vmem:[%s16699_s4 + $0xd50] ss:$8 sps:$4 sm:$0xff]  }
 0x1dd   : > { %12164 = vmatpush1.bf16.msra.mxu0 %v13838_v61  ;;  %11673 = vmatprep.subr.bf16.mxu1 %v13839_v62  ;;  %v13918_v61 = vld [vmem:[%s16699_s4 + $0xd64] ss:$8 sps:$4 sm:$0xff]   ;;  %v13913_v62 = vld [vmem:[%s16699_s4 + $0x160] ss:$8 sps:$4 sm:$0xff]  }
 0x1de   : > { %12165 = vmatprep.subr.bf16.mxu0 %v13841_v63  ;;  %v13916_v63 = vld [vmem:[%s16699_s4 + $0xd60] ss:$8 sps:$4 sm:$0xff]  }
 0x1e0   : > { %11674 = vmatpush1.bf16.msra.mxu1 %v13843_v0  ;;  %v13921_v0 = vld [vmem:[%s16699_s4 + $0x174] ss:$8 sps:$4 sm:$0xff]  }
 0x1e1   : > { %12166 = vmatpush1.bf16.msra.mxu0 %v13844_v1  ;;  %11675 = vmatprep.subr.bf16.mxu1 %v13845_v3  ;;  %v13924_v1 = vld [vmem:[%s16699_s4 + $0xd74] ss:$8 sps:$4 sm:$0xff]   ;;  %v13919_v3 = vld [vmem:[%s16699_s4 + $0x170] ss:$8 sps:$4 sm:$0xff]  }
 0x1e2   : > { %12167 = vmatprep.subr.bf16.mxu0 %v13847_v4  ;;  %v13922_v4 = vld [vmem:[%s16699_s4 + $0xd70] ss:$8 sps:$4 sm:$0xff]  }
 0x1e4   : > { %11676 = vmatpush1.bf16.msra.mxu1 %v13849_v6  ;;  %v13927_v6 = vld [vmem:[%s16699_s4 + $0x184] ss:$8 sps:$4 sm:$0xff]  }
 0x1e5   : > { %12168 = vmatpush1.bf16.msra.mxu0 %v13850_v8  ;;  %11677 = vmatprep.subr.bf16.mxu1 %v13851_v10  ;;  %v13925_v8 = vld [vmem:[%s16699_s4 + $0x180] ss:$8 sps:$4 sm:$0xff]  }
 0x1e6   : > { %12169 = vmatprep.subr.bf16.mxu0 %v13853_v11  ;;  %v13928_v10 = vld [vmem:[%s16699_s4 + $0xd80] ss:$8 sps:$4 sm:$0xff]   ;;  %v13933_v11 = vld [vmem:[%s16699_s4 + $0x194] ss:$8 sps:$4 sm:$0xff]  }
 0x1e8   : > { %11678 = vmatpush1.bf16.msra.mxu1 %v13855_v16  ;;  %v13942_v16 = vld [vmem:[%s16699_s4 + $0xda4] ss:$8 sps:$4 sm:$0xff]  }
 0x1e9   : > { %12170 = vmatpush1.bf16.msra.mxu0 %v13856_v17  ;;  %11679 = vmatprep.subr.bf16.mxu1 %v13857_v18  ;;  %v13937_v17 = vld [vmem:[%s16699_s4 + $0x1a0] ss:$8 sps:$4 sm:$0xff]  }
 0x1ea   : > { %12171 = vmatprep.subr.bf16.mxu0 %v13859_v19  ;;  %v13940_v18 = vld [vmem:[%s16699_s4 + $0xda0] ss:$8 sps:$4 sm:$0xff]   ;;  %v13945_v19 = vld [vmem:[%s16699_s4 + $0x1b4] ss:$8 sps:$4 sm:$0xff]  }
 0x1ec   : > { %11680 = vmatpush1.bf16.msra.mxu1 %v13861_v21  ;;  %v13943_v21 = vld [vmem:[%s16699_s4 + $0x1b0] ss:$8 sps:$4 sm:$0xff]  }
 0x1ed   : > { %12172 = vmatpush1.bf16.msra.mxu0 %v13862_v22  ;;  %11681 = vmatprep.subr.bf16.mxu1 %v13863_v23  ;;  %v13946_v22 = vld [vmem:[%s16699_s4 + $0xdb0] ss:$8 sps:$4 sm:$0xff]   ;;  %v13951_v23 = vld [vmem:[%s16699_s4 + $0x1c4] ss:$8 sps:$4 sm:$0xff]  }
 0x1ee   : > { %12173 = vmatprep.subr.bf16.mxu0 %v13865_v24  ;;  %v13954_v24 = vld [vmem:[%s16699_s4 + $0xdc4] ss:$8 sps:$4 sm:$0xff]  }
 0x1f0   : > { %11682 = vmatpush1.bf16.msra.mxu1 %v13867_v25  ;;  %v13949_v25 = vld [vmem:[%s16699_s4 + $0x1c0] ss:$8 sps:$4 sm:$0xff]  }
 0x1f1   : > { %12174 = vmatpush1.bf16.msra.mxu0 %v13868_v26  ;;  %11683 = vmatprep.subr.bf16.mxu1 %v13869_v27  ;;  %v13952_v26 = vld [vmem:[%s16699_s4 + $0xdc0] ss:$8 sps:$4 sm:$0xff]   ;;  %v13957_v27 = vld [vmem:[%s16699_s4 + $0x1d4] ss:$8 sps:$4 sm:$0xff]  }
 0x1f2   : > { %12175 = vmatprep.subr.bf16.mxu0 %v13871_v28  ;;  %v13960_v28 = vld [vmem:[%s16699_s4 + $0xdd4] ss:$8 sps:$4 sm:$0xff]  }
 0x1f4   : > { %11684 = vmatpush1.bf16.msra.mxu1 %v13873_v29  ;;  %v13955_v29 = vld [vmem:[%s16699_s4 + $0x1d0] ss:$8 sps:$4 sm:$0xff]  }
 0x1f5   : > { %12176 = vmatpush1.bf16.msra.mxu0 %v13874_v30  ;;  %11694 = vmatprep.subr.bf16.mxu1 %v13878_v31  ;;  %v13958_v30 = vld [vmem:[%s16699_s4 + $0xdd0] ss:$8 sps:$4 sm:$0xff]   ;;  %v13963_v31 = vld [vmem:[%s16699_s4 + $0x1e4] ss:$8 sps:$4 sm:$0xff]  }
 0x1f6   : > { %12186 = vmatprep.subr.bf16.mxu0 %v13882_v32  ;;  %v13966_v32 = vld [vmem:[%s16699_s4 + $0xde4] ss:$8 sps:$4 sm:$0xff]  }
 0x1f7   : > { %11686 = vmatmul.mubr.bf16.vlgmr.msra.gmra.mrb[0].mxu1 %v16787_v33 }
 0x1f8   : > { %12178 = vmatmul.mubr.bf16.vlgmr.msra.gmra.mrb[0].mxu0 %v16790_v34  ;;  %11695 = vmatpush1.bf16.msra.mxu1 %v13876_v35  ;;  %v7376_v35 = vcombine.high %v16755_v5, %v16755_v5  ;;  %v13967_v5 = vld [vmem:[%s16699_s4 + $0x1f0] ss:$8 sps:$4 sm:$0xff]  }
 0x1f9   : > { %12187 = vmatpush1.bf16.msra.mxu0 %v13880_v36  ;;  %11696 = vmatprep.subr.bf16.mxu1 %v13885_v37  ;;  %v7523_v36 = vcombine.high %v16762_v9, %v16762_v9  ;;  %v13961_v37 = vld [vmem:[%s16699_s4 + $0x1e0] ss:$8 sps:$4 sm:$0xff]   ;;  %v13970_v9 = vld [vmem:[%s16699_s4 + $0xdf0] ss:$8 sps:$4 sm:$0xff]  }
 0x1fa   : > { %12188 = vmatprep.subr.bf16.mxu0 %v13888_v38  ;;  %11726 = vmatprep.mubr.bf16.mxu1 %v7423_v39  ;;  %v13964_v38 = vld [vmem:[%s16699_s4 + $0xde0] ss:$8 sps:$4 sm:$0xff]   ;;  %v13969_v39 = vld [vmem:[%s16699_s4 + $0x1f4] ss:$8 sps:$4 sm:$0xff]  }
 0x1fb   : > { %12218 = vmatprep.mubr.bf16.mxu0 %v7570_v40  ;;  %v13972_v40 = vld [vmem:[%s16699_s4 + $0xdf4] ss:$8 sps:$4 sm:$0xff]  }
 0x1fc   : > { %11697 = vmatpush1.bf16.msra.mxu1 %v13883_v41  ;;  %v16859_v41 = vrot.slane %v7376_v35, %v16750_v2  ;;  %v14039_v35 = vld [vmem:[%s16699_s4 + $0x2b0] ss:$8 sps:$4 sm:$0xff]  }
 0x1fd   : > { %12189 = vmatpush1.bf16.msra.mxu0 %v13886_v42  ;;  %11698 = vmatprep.subr.bf16.mxu1 %v13891_v43  ;;  %v16862_v42 = vrot.slane %v7523_v36, %v16750_v2  ;;  %v13975_v43 = vld [vmem:[%s16699_s4 + $0x204] ss:$8 sps:$4 sm:$0xff]   ;;  %v14042_v36 = vld [vmem:[%s16699_s4 + $0xeb0] ss:$8 sps:$4 sm:$0xff]  }
 0x1fe   : > { %12190 = vmatprep.subr.bf16.mxu0 %v13894_v44  ;;  %v13978_v44 = vld [vmem:[%s16699_s4 + $0xe04] ss:$8 sps:$4 sm:$0xff]  }
 0x200   : > { %11699 = vmatpush1.bf16.msra.mxu1 %v13889_v45  ;;  %v7392_v45 = vcombine.high %v16859_v41, %v16859_v41 }
 0x201   : > { %12191 = vmatpush1.bf16.msra.mxu0 %v13892_v46  ;;  %11700 = vmatprep.subr.bf16.mxu1 %v13897_v47  ;;  %v7539_v46 = vcombine.high %v16862_v42, %v16862_v42  ;;  %v7421_v47 = vcombine.high %v16787_v33, %v16787_v33 }
 0x202   : > { %12192 = vmatprep.subr.bf16.mxu0 %v13900_v48  ;;  %v7568_v48 = vcombine.high %v16790_v34, %v16790_v34  ;;  %v13979_v34 = vld [vmem:[%s16699_s4 + $0x210] ss:$8 sps:$4 sm:$0xff]  }
 0x203   : > { %v16884_v33 = vrot.slane %v7539_v46, %v16750_v2  ;;  %v14062_v46 = vld [vmem:[%s16699_s4 + $0xee4] ss:$8 sps:$4 sm:$0xff]  }
 0x204   : > { %11701 = vmatpush1.bf16.msra.mxu1 %v13895_v49  ;;  %v13973_v49 = vld [vmem:[%s16699_s4 + $0x200] ss:$8 sps:$4 sm:$0xff]  }
 0x205   : > { %12193 = vmatpush1.bf16.msra.mxu0 %v13898_v50  ;;  %11702 = vmatprep.subr.bf16.mxu1 %v13903_v51  ;;  %v13976_v50 = vld [vmem:[%s16699_s4 + $0xe00] ss:$8 sps:$4 sm:$0xff]   ;;  %v13981_v51 = vld [vmem:[%s16699_s4 + $0x214] ss:$8 sps:$4 sm:$0xff]  }
 0x206   : > { %12194 = vmatprep.subr.bf16.mxu0 %v13906_v52  ;;  %v13984_v52 = vld [vmem:[%s16699_s4 + $0xe14] ss:$8 sps:$4 sm:$0xff]  }
 0x208   : > { %11703 = vmatpush1.bf16.msra.mxu1 %v13901_v53  ;;  %v16881_v53 = vrot.slane %v7392_v45, %v16750_v2  ;;  %v14059_v45 = vld [vmem:[%s16699_s4 + $0x2e4] ss:$8 sps:$4 sm:$0xff]  }
 0x209   : > { %12195 = vmatpush1.bf16.msra.mxu0 %v13904_v54  ;;  %11704 = vmatprep.subr.bf16.mxu1 %v13909_v55  ;;  %v13982_v54 = vld [vmem:[%s16699_s4 + $0xe10] ss:$8 sps:$4 sm:$0xff]   ;;  %v13987_v55 = vld [vmem:[%s16699_s4 + $0x224] ss:$8 sps:$4 sm:$0xff]  }
 0x20a   : > { %12196 = vmatprep.subr.bf16.mxu0 %v13912_v56  ;;  %v13990_v56 = vld [vmem:[%s16699_s4 + $0xe24] ss:$8 sps:$4 sm:$0xff]  }
 0x20c   : > { %11705 = vmatpush1.bf16.msra.mxu1 %v13907_v57  ;;  %v13985_v57 = vld [vmem:[%s16699_s4 + $0x220] ss:$8 sps:$4 sm:$0xff]  }
 0x20d   : > { %12197 = vmatpush1.bf16.msra.mxu0 %v13910_v58  ;;  %11706 = vmatprep.subr.bf16.mxu1 %v13915_v59  ;;  %v13988_v58 = vld [vmem:[%s16699_s4 + $0xe20] ss:$8 sps:$4 sm:$0xff]   ;;  %v13993_v59 = vld [vmem:[%s16699_s4 + $0x234] ss:$8 sps:$4 sm:$0xff]  }
 0x20e   : > { %12198 = vmatprep.subr.bf16.mxu0 %v13918_v61  ;;  %v13996_v61 = vld [vmem:[%s16699_s4 + $0xe34] ss:$8 sps:$4 sm:$0xff]  }
 0x210   : > { %11707 = vmatpush1.bf16.msra.mxu1 %v13913_v62  ;;  %v13991_v62 = vld [vmem:[%s16699_s4 + $0x230] ss:$8 sps:$4 sm:$0xff]  }
 0x211   : > { %12199 = vmatpush1.bf16.msra.mxu0 %v13916_v63  ;;  %11708 = vmatprep.subr.bf16.mxu1 %v13921_v0  ;;  %v13994_v63 = vld [vmem:[%s16699_s4 + $0xe30] ss:$8 sps:$4 sm:$0xff]   ;;  %v13999_v0 = vld [vmem:[%s16699_s4 + $0x244] ss:$8 sps:$4 sm:$0xff]  }
 0x212   : > { %12200 = vmatprep.subr.bf16.mxu0 %v13924_v1  ;;  %v14002_v1 = vld [vmem:[%s16699_s4 + $0xe44] ss:$8 sps:$4 sm:$0xff]  }
 0x214   : > { %11709 = vmatpush1.bf16.msra.mxu1 %v13919_v3  ;;  %v13997_v3 = vld [vmem:[%s16699_s4 + $0x240] ss:$8 sps:$4 sm:$0xff]  }
 0x215   : > { %12201 = vmatpush1.bf16.msra.mxu0 %v13922_v4  ;;  %11710 = vmatprep.subr.bf16.mxu1 %v13927_v6  ;;  %v14000_v4 = vld [vmem:[%s16699_s4 + $0xe40] ss:$8 sps:$4 sm:$0xff]   ;;  %v14005_v6 = vld [vmem:[%s16699_s4 + $0x254] ss:$8 sps:$4 sm:$0xff]  }
 0x216   : > { %12202 = vmatprep.subr.bf16.mxu0 %v13930_v7  ;;  %v14008_v7 = vld [vmem:[%s16699_s4 + $0xe54] ss:$8 sps:$4 sm:$0xff]  }
 0x218   : > { %11711 = vmatpush1.bf16.msra.mxu1 %v13925_v8  ;;  %v14003_v8 = vld [vmem:[%s16699_s4 + $0x250] ss:$8 sps:$4 sm:$0xff]  }
 0x219   : > { %12203 = vmatpush1.bf16.msra.mxu0 %v13928_v10  ;;  %11712 = vmatprep.subr.bf16.mxu1 %v13933_v11  ;;  %v14006_v10 = vld [vmem:[%s16699_s4 + $0xe50] ss:$8 sps:$4 sm:$0xff]   ;;  %v14011_v11 = vld [vmem:[%s16699_s4 + $0x264] ss:$8 sps:$4 sm:$0xff]  }
 0x21a   : > { %12204 = vmatprep.subr.bf16.mxu0 %v13936_v12  ;;  %v14014_v12 = vld [vmem:[%s16699_s4 + $0xe64] ss:$8 sps:$4 sm:$0xff]  }
 0x21c   : > { %11713 = vmatpush1.bf16.msra.mxu1 %v13931_v13  ;;  %v14009_v13 = vld [vmem:[%s16699_s4 + $0x260] ss:$8 sps:$4 sm:$0xff]  }
 0x21d   : > { %12205 = vmatpush1.bf16.msra.mxu0 %v13934_v14  ;;  %11714 = vmatprep.subr.bf16.mxu1 %v13939_v15  ;;  %v14012_v14 = vld [vmem:[%s16699_s4 + $0xe60] ss:$8 sps:$4 sm:$0xff]   ;;  %v14017_v15 = vld [vmem:[%s16699_s4 + $0x274] ss:$8 sps:$4 sm:$0xff]  }
 0x21e   : > { %12206 = vmatprep.subr.bf16.mxu0 %v13942_v16  ;;  %v14020_v16 = vld [vmem:[%s16699_s4 + $0xe74] ss:$8 sps:$4 sm:$0xff]  }
 0x220   : > { %11715 = vmatpush1.bf16.msra.mxu1 %v13937_v17  ;;  %v14015_v17 = vld [vmem:[%s16699_s4 + $0x270] ss:$8 sps:$4 sm:$0xff]  }
 0x221   : > { %12207 = vmatpush1.bf16.msra.mxu0 %v13940_v18  ;;  %11716 = vmatprep.subr.bf16.mxu1 %v13945_v19  ;;  %v14018_v18 = vld [vmem:[%s16699_s4 + $0xe70] ss:$8 sps:$4 sm:$0xff]   ;;  %v14023_v19 = vld [vmem:[%s16699_s4 + $0x284] ss:$8 sps:$4 sm:$0xff]  }
 0x222   : > { %12208 = vmatprep.subr.bf16.mxu0 %v13948_v20  ;;  %v14026_v20 = vld [vmem:[%s16699_s4 + $0xe84] ss:$8 sps:$4 sm:$0xff]  }
 0x224   : > { %11717 = vmatpush1.bf16.msra.mxu1 %v13943_v21  ;;  %v14021_v21 = vld [vmem:[%s16699_s4 + $0x280] ss:$8 sps:$4 sm:$0xff]  }
 0x225   : > { %12209 = vmatpush1.bf16.msra.mxu0 %v13946_v22  ;;  %11718 = vmatprep.subr.bf16.mxu1 %v13951_v23  ;;  %v14024_v22 = vld [vmem:[%s16699_s4 + $0xe80] ss:$8 sps:$4 sm:$0xff]   ;;  %v14029_v23 = vld [vmem:[%s16699_s4 + $0x294] ss:$8 sps:$4 sm:$0xff]  }
 0x226   : > { %12210 = vmatprep.subr.bf16.mxu0 %v13954_v24  ;;  %v14032_v24 = vld [vmem:[%s16699_s4 + $0xe94] ss:$8 sps:$4 sm:$0xff]  }
 0x228   : > { %11719 = vmatpush1.bf16.msra.mxu1 %v13949_v25  ;;  %v14027_v25 = vld [vmem:[%s16699_s4 + $0x290] ss:$8 sps:$4 sm:$0xff]  }
 0x229   : > { %12211 = vmatpush1.bf16.msra.mxu0 %v13952_v26  ;;  %11720 = vmatprep.subr.bf16.mxu1 %v13957_v27  ;;  %v14030_v26 = vld [vmem:[%s16699_s4 + $0xe90] ss:$8 sps:$4 sm:$0xff]   ;;  %v14035_v27 = vld [vmem:[%s16699_s4 + $0x2a4] ss:$8 sps:$4 sm:$0xff]  }
 0x22a   : > { %12212 = vmatprep.subr.bf16.mxu0 %v13960_v28  ;;  %v14038_v28 = vld [vmem:[%s16699_s4 + $0xea4] ss:$8 sps:$4 sm:$0xff]  }
 0x22c   : > { %11721 = vmatpush1.bf16.msra.mxu1 %v13955_v29  ;;  %v14033_v29 = vld [vmem:[%s16699_s4 + $0x2a0] ss:$8 sps:$4 sm:$0xff]  }
 0x22d   : > { %12213 = vmatpush1.bf16.msra.mxu0 %v13958_v30  ;;  %11722 = vmatprep.subr.bf16.mxu1 %v13963_v31  ;;  %v14036_v30 = vld [vmem:[%s16699_s4 + $0xea0] ss:$8 sps:$4 sm:$0xff]   ;;  %v14041_v31 = vld [vmem:[%s16699_s4 + $0x2b4] ss:$8 sps:$4 sm:$0xff]  }
 0x22e   : > { %12214 = vmatprep.subr.bf16.mxu0 %v13966_v32  ;;  %v14044_v32 = vld [vmem:[%s16699_s4 + $0xeb4] ss:$8 sps:$4 sm:$0xff]  }
 0x230   : > { %11723 = vmatpush1.bf16.msra.mxu1 %v13961_v37  ;;  %v14047_v37 = vld [vmem:[%s16699_s4 + $0x2c4] ss:$8 sps:$4 sm:$0xff]  }
 0x231   : > { %12215 = vmatpush1.bf16.msra.mxu0 %v13964_v38  ;;  %11724 = vmatprep.subr.bf16.mxu1 %v13969_v39  ;;  %v14050_v38 = vld [vmem:[%s16699_s4 + $0xec4] ss:$8 sps:$4 sm:$0xff]   ;;  %v14045_v39 = vld [vmem:[%s16699_s4 + $0x2c0] ss:$8 sps:$4 sm:$0xff]  }
 0x232   : > { %12216 = vmatprep.subr.bf16.mxu0 %v13972_v40  ;;  %v14048_v40 = vld [vmem:[%s16699_s4 + $0xec0] ss:$8 sps:$4 sm:$0xff]  }
 0x234   : > { %11725 = vmatpush1.bf16.msra.mxu1 %v13967_v5  ;;  %v14053_v5 = vld [vmem:[%s16699_s4 + $0x2d4] ss:$8 sps:$4 sm:$0xff]  }
 0x235   : > { %12217 = vmatpush1.bf16.msra.mxu0 %v13970_v9  ;;  %11735 = vmatprep.subr.bf16.mxu1 %v13975_v43  ;;  %v14056_v9 = vld [vmem:[%s16699_s4 + $0xed4] ss:$8 sps:$4 sm:$0xff]   ;;  %v14051_v43 = vld [vmem:[%s16699_s4 + $0x2d0] ss:$8 sps:$4 sm:$0xff]  }
 0x236   : > { %12227 = vmatprep.subr.bf16.mxu0 %v13978_v44  ;;  %v14054_v44 = vld [vmem:[%s16699_s4 + $0xed0] ss:$8 sps:$4 sm:$0xff]  }
 0x237   : > { %11727 = vmatmul.mubr.bf16.vlgmr.msra.gmra.mrb[0].mxu1 %v7421_v47  ;;  %v14057_v47 = vld [vmem:[%s16699_s4 + $0x2e0] ss:$8 sps:$4 sm:$0xff]  }
 0x238   : > { %12219 = vmatmul.mubr.bf16.vlgmr.msra.gmra.mrb[0].mxu0 %v7568_v48  ;;  %11736 = vmatpush1.bf16.msra.mxu1 %v13973_v49  ;;  %v14060_v48 = vld [vmem:[%s16699_s4 + $0xee0] ss:$8 sps:$4 sm:$0xff]   ;;  %v14065_v49 = vld [vmem:[%s16699_s4 + $0x2f4] ss:$8 sps:$4 sm:$0xff]  }
 0x239   : > { %12228 = vmatpush1.bf16.msra.mxu0 %v13976_v50  ;;  %11737 = vmatprep.subr.bf16.mxu1 %v13981_v51  ;;  %v14068_v50 = vld [vmem:[%s16699_s4 + $0xef4] ss:$8 sps:$4 sm:$0xff]   ;;  %v14063_v51 = vld [vmem:[%s16699_s4 + $0x2f0] ss:$8 sps:$4 sm:$0xff]  }
 0x23a   : > { %12229 = vmatprep.subr.bf16.mxu0 %v13984_v52  ;;  %11767 = vmatprep.mubr.bf16.mxu1 %v16881_v53  ;;  %v14066_v52 = vld [vmem:[%s16699_s4 + $0xef0] ss:$8 sps:$4 sm:$0xff]  }
 0x23b   : > { %12259 = vmatprep.mubr.bf16.mxu0 %v16884_v33 }
 0x23c   : > { %11738 = vmatpush1.bf16.msra.mxu1 %v13979_v34  ;;  %v14071_v34 = vld [vmem:[%s16699_s4 + $0x304] ss:$8 sps:$4 sm:$0xff]  }
 0x23d   : > { %12230 = vmatpush1.bf16.msra.mxu0 %v13982_v54  ;;  %11739 = vmatprep.subr.bf16.mxu1 %v13987_v55  ;;  %v14074_v54 = vld [vmem:[%s16699_s4 + $0xf04] ss:$8 sps:$4 sm:$0xff]   ;;  %v16950_v55 = vrot.slane %v16859_v41, %v16750_v2  ;;  %v7424_v41 = vcombine.high %v16881_v53, %v16881_v53 }
 0x23e   : > { %12231 = vmatprep.subr.bf16.mxu0 %v13990_v56  ;;  %v16954_v56 = vrot.slane %v16862_v42, %v16750_v2  ;;  %v14075_v42 = vld [vmem:[%s16699_s4 + $0x310] ss:$8 sps:$4 sm:$0xff]   ;;  %v14083_v53 = vld [vmem:[%s16699_s4 + $0x324] ss:$8 sps:$4 sm:$0xff]  }
 0x240   : > { %11740 = vmatpush1.bf16.msra.mxu1 %v13985_v57  ;;  %v14069_v57 = vld [vmem:[%s16699_s4 + $0x300] ss:$8 sps:$4 sm:$0xff]  }
 0x241   : > { %12232 = vmatpush1.bf16.msra.mxu0 %v13988_v58  ;;  %11741 = vmatprep.subr.bf16.mxu1 %v13993_v59  ;;  %v14072_v58 = vld [vmem:[%s16699_s4 + $0xf00] ss:$8 sps:$4 sm:$0xff]   ;;  %v14077_v59 = vld [vmem:[%s16699_s4 + $0x314] ss:$8 sps:$4 sm:$0xff]  }
 0x242   : > { %12233 = vmatprep.subr.bf16.mxu0 %v13996_v61  ;;  %v14080_v61 = vld [vmem:[%s16699_s4 + $0xf14] ss:$8 sps:$4 sm:$0xff]  }
 0x244   : > { %11742 = vmatpush1.bf16.msra.mxu1 %v13991_v62  ;;  %v7571_v62 = vcombine.high %v16884_v33, %v16884_v33  ;;  %v14081_v33 = vld [vmem:[%s16699_s4 + $0x320] ss:$8 sps:$4 sm:$0xff]  }
 0x245   : > { %12234 = vmatpush1.bf16.msra.mxu0 %v13994_v63  ;;  %11743 = vmatprep.subr.bf16.mxu1 %v13999_v0  ;;  %v14078_v63 = vld [vmem:[%s16699_s4 + $0xf10] ss:$8 sps:$4 sm:$0xff]   ;;  %v14086_v0 = vld [vmem:[%s16699_s4 + $0xf24] ss:$8 sps:$4 sm:$0xff]  }
 0x246   : > { %12235 = vmatprep.subr.bf16.mxu0 %v14002_v1  ;;  %v14084_v1 = vld [vmem:[%s16699_s4 + $0xf20] ss:$8 sps:$4 sm:$0xff]  }
 0x248   : > { %11744 = vmatpush1.bf16.msra.mxu1 %v13997_v3  ;;  %v14089_v3 = vld [vmem:[%s16699_s4 + $0x334] ss:$8 sps:$4 sm:$0xff]  }
 0x249   : > { %12236 = vmatpush1.bf16.msra.mxu0 %v14000_v4  ;;  %11745 = vmatprep.subr.bf16.mxu1 %v14005_v6  ;;  %v14092_v4 = vld [vmem:[%s16699_s4 + $0xf34] ss:$8 sps:$4 sm:$0xff]   ;;  %v14087_v6 = vld [vmem:[%s16699_s4 + $0x330] ss:$8 sps:$4 sm:$0xff]  }
 0x24a   : > { %12237 = vmatprep.subr.bf16.mxu0 %v14008_v7  ;;  %v14090_v7 = vld [vmem:[%s16699_s4 + $0xf30] ss:$8 sps:$4 sm:$0xff]  }
 0x24c   : > { %11746 = vmatpush1.bf16.msra.mxu1 %v14003_v8  ;;  %v14095_v8 = vld [vmem:[%s16699_s4 + $0x344] ss:$8 sps:$4 sm:$0xff]  }
 0x24d   : > { %12238 = vmatpush1.bf16.msra.mxu0 %v14006_v10  ;;  %11747 = vmatprep.subr.bf16.mxu1 %v14011_v11  ;;  %v14098_v10 = vld [vmem:[%s16699_s4 + $0xf44] ss:$8 sps:$4 sm:$0xff]   ;;  %v14093_v11 = vld [vmem:[%s16699_s4 + $0x340] ss:$8 sps:$4 sm:$0xff]  }
 0x24e   : > { %12239 = vmatprep.subr.bf16.mxu0 %v14014_v12  ;;  %v14096_v12 = vld [vmem:[%s16699_s4 + $0xf40] ss:$8 sps:$4 sm:$0xff]  }
 0x250   : > { %11748 = vmatpush1.bf16.msra.mxu1 %v14009_v13  ;;  %v14101_v13 = vld [vmem:[%s16699_s4 + $0x354] ss:$8 sps:$4 sm:$0xff]  }
 0x251   : > { %12240 = vmatpush1.bf16.msra.mxu0 %v14012_v14  ;;  %11749 = vmatprep.subr.bf16.mxu1 %v14017_v15  ;;  %v14104_v14 = vld [vmem:[%s16699_s4 + $0xf54] ss:$8 sps:$4 sm:$0xff]   ;;  %v14099_v15 = vld [vmem:[%s16699_s4 + $0x350] ss:$8 sps:$4 sm:$0xff]  }
 0x252   : > { %12241 = vmatprep.subr.bf16.mxu0 %v14020_v16  ;;  %v14102_v16 = vld [vmem:[%s16699_s4 + $0xf50] ss:$8 sps:$4 sm:$0xff]  }
 0x254   : > { %11750 = vmatpush1.bf16.msra.mxu1 %v14015_v17  ;;  %v14107_v17 = vld [vmem:[%s16699_s4 + $0x364] ss:$8 sps:$4 sm:$0xff]  }
 0x255   : > { %12242 = vmatpush1.bf16.msra.mxu0 %v14018_v18  ;;  %11751 = vmatprep.subr.bf16.mxu1 %v14023_v19  ;;  %v14110_v18 = vld [vmem:[%s16699_s4 + $0xf64] ss:$8 sps:$4 sm:$0xff]   ;;  %v14105_v19 = vld [vmem:[%s16699_s4 + $0x360] ss:$8 sps:$4 sm:$0xff]  }
 0x256   : > { %12243 = vmatprep.subr.bf16.mxu0 %v14026_v20  ;;  %v14108_v20 = vld [vmem:[%s16699_s4 + $0xf60] ss:$8 sps:$4 sm:$0xff]  }
 0x258   : > { %11752 = vmatpush1.bf16.msra.mxu1 %v14021_v21  ;;  %v14113_v21 = vld [vmem:[%s16699_s4 + $0x374] ss:$8 sps:$4 sm:$0xff]  }
 0x259   : > { %12244 = vmatpush1.bf16.msra.mxu0 %v14024_v22  ;;  %11753 = vmatprep.subr.bf16.mxu1 %v14029_v23  ;;  %v14116_v22 = vld [vmem:[%s16699_s4 + $0xf74] ss:$8 sps:$4 sm:$0xff]   ;;  %v14111_v23 = vld [vmem:[%s16699_s4 + $0x370] ss:$8 sps:$4 sm:$0xff]  }
 0x25a   : > { %12245 = vmatprep.subr.bf16.mxu0 %v14032_v24  ;;  %v14114_v24 = vld [vmem:[%s16699_s4 + $0xf70] ss:$8 sps:$4 sm:$0xff]  }
 0x25c   : > { %11754 = vmatpush1.bf16.msra.mxu1 %v14027_v25  ;;  %v14119_v25 = vld [vmem:[%s16699_s4 + $0x384] ss:$8 sps:$4 sm:$0xff]  }
 0x25d   : > { %12246 = vmatpush1.bf16.msra.mxu0 %v14030_v26  ;;  %11755 = vmatprep.subr.bf16.mxu1 %v14035_v27  ;;  %v14122_v26 = vld [vmem:[%s16699_s4 + $0xf84] ss:$8 sps:$4 sm:$0xff]   ;;  %v14117_v27 = vld [vmem:[%s16699_s4 + $0x380] ss:$8 sps:$4 sm:$0xff]  }
 0x25e   : > { %12247 = vmatprep.subr.bf16.mxu0 %v14038_v28  ;;  %v14120_v28 = vld [vmem:[%s16699_s4 + $0xf80] ss:$8 sps:$4 sm:$0xff]  }
 0x260   : > { %11756 = vmatpush1.bf16.msra.mxu1 %v14033_v29  ;;  %v14125_v29 = vld [vmem:[%s16699_s4 + $0x394] ss:$8 sps:$4 sm:$0xff]  }
 0x261   : > { %12248 = vmatpush1.bf16.msra.mxu0 %v14036_v30  ;;  %11757 = vmatprep.subr.bf16.mxu1 %v14041_v31  ;;  %v14128_v30 = vld [vmem:[%s16699_s4 + $0xf94] ss:$8 sps:$4 sm:$0xff]   ;;  %v14123_v31 = vld [vmem:[%s16699_s4 + $0x390] ss:$8 sps:$4 sm:$0xff]  }
 0x262   : > { %12249 = vmatprep.subr.bf16.mxu0 %v14044_v32  ;;  %v14126_v32 = vld [vmem:[%s16699_s4 + $0xf90] ss:$8 sps:$4 sm:$0xff]  }
 0x264   : > { %11758 = vmatpush1.bf16.msra.mxu1 %v14039_v35  ;;  %v14131_v35 = vld [vmem:[%s16699_s4 + $0x3a4] ss:$8 sps:$4 sm:$0xff]  }
 0x265   : > { %12250 = vmatpush1.bf16.msra.mxu0 %v14042_v36  ;;  %11759 = vmatprep.subr.bf16.mxu1 %v14047_v37  ;;  %v14134_v36 = vld [vmem:[%s16699_s4 + $0xfa4] ss:$8 sps:$4 sm:$0xff]   ;;  %v14129_v37 = vld [vmem:[%s16699_s4 + $0x3a0] ss:$8 sps:$4 sm:$0xff]  }
 0x266   : > { %12251 = vmatprep.subr.bf16.mxu0 %v14050_v38  ;;  %v14132_v38 = vld [vmem:[%s16699_s4 + $0xfa0] ss:$8 sps:$4 sm:$0xff]  }
 0x268   : > { %11760 = vmatpush1.bf16.msra.mxu1 %v14045_v39  ;;  %v14137_v39 = vld [vmem:[%s16699_s4 + $0x3b4] ss:$8 sps:$4 sm:$0xff]  }
 0x269   : > { %12252 = vmatpush1.bf16.msra.mxu0 %v14048_v40  ;;  %11761 = vmatprep.subr.bf16.mxu1 %v14053_v5  ;;  %v14140_v40 = vld [vmem:[%s16699_s4 + $0xfb4] ss:$8 sps:$4 sm:$0xff]   ;;  %v14135_v5 = vld [vmem:[%s16699_s4 + $0x3b0] ss:$8 sps:$4 sm:$0xff]  }
 0x26a   : > { %12253 = vmatprep.subr.bf16.mxu0 %v14056_v9  ;;  %v14138_v9 = vld [vmem:[%s16699_s4 + $0xfb0] ss:$8 sps:$4 sm:$0xff]  }
 0x26c   : > { %11762 = vmatpush1.bf16.msra.mxu1 %v14051_v43  ;;  %v14143_v43 = vld [vmem:[%s16699_s4 + $0x3c4] ss:$8 sps:$4 sm:$0xff]  }
 0x26d   : > { %12254 = vmatpush1.bf16.msra.mxu0 %v14054_v44  ;;  %11763 = vmatprep.subr.bf16.mxu1 %v14059_v45  ;;  %v14146_v44 = vld [vmem:[%s16699_s4 + $0xfc4] ss:$8 sps:$4 sm:$0xff]   ;;  %v14141_v45 = vld [vmem:[%s16699_s4 + $0x3c0] ss:$8 sps:$4 sm:$0xff]  }
 0x26e   : > { %12255 = vmatprep.subr.bf16.mxu0 %v14062_v46  ;;  %v14144_v46 = vld [vmem:[%s16699_s4 + $0xfc0] ss:$8 sps:$4 sm:$0xff]  }
 0x270   : > { %11764 = vmatpush1.bf16.msra.mxu1 %v14057_v47  ;;  %v14149_v47 = vld [vmem:[%s16699_s4 + $0x3d4] ss:$8 sps:$4 sm:$0xff]  }
 0x271   : > { %12256 = vmatpush1.bf16.msra.mxu0 %v14060_v48  ;;  %11765 = vmatprep.subr.bf16.mxu1 %v14065_v49  ;;  %v14152_v48 = vld [vmem:[%s16699_s4 + $0xfd4] ss:$8 sps:$4 sm:$0xff]   ;;  %v14147_v49 = vld [vmem:[%s16699_s4 + $0x3d0] ss:$8 sps:$4 sm:$0xff]  }
 0x272   : > { %12257 = vmatprep.subr.bf16.mxu0 %v14068_v50  ;;  %v14150_v50 = vld [vmem:[%s16699_s4 + $0xfd0] ss:$8 sps:$4 sm:$0xff]  }
 0x274   : > { %11766 = vmatpush1.bf16.msra.mxu1 %v14063_v51  ;;  %v14155_v51 = vld [vmem:[%s16699_s4 + $0x3e4] ss:$8 sps:$4 sm:$0xff]  }
 0x275   : > { %12258 = vmatpush1.bf16.msra.mxu0 %v14066_v52  ;;  %11776 = vmatprep.subr.bf16.mxu1 %v14071_v34  ;;  %v14158_v52 = vld [vmem:[%s16699_s4 + $0xfe4] ss:$8 sps:$4 sm:$0xff]   ;;  %v14153_v34 = vld [vmem:[%s16699_s4 + $0x3e0] ss:$8 sps:$4 sm:$0xff]  }
 0x276   : > { %12268 = vmatprep.subr.bf16.mxu0 %v14074_v54  ;;  %v14156_v54 = vld [vmem:[%s16699_s4 + $0xfe0] ss:$8 sps:$4 sm:$0xff]  }
 0x277   : > { %11768 = vmatmul.mubr.bf16.vlgmr.msra.gmra.mrb[0].mxu1 %v16950_v55 }
 0x278   : > { %12260 = vmatmul.mubr.bf16.vlgmr.msra.gmra.mrb[0].mxu0 %v16954_v56  ;;  %11777 = vmatpush1.bf16.msra.mxu1 %v14069_v57  ;;  %v17021_v57 = vld.sshfl [vmem:[%s16687_s24 + $0x8] sm:$0xff pattern:$0x75316420] }
 0x279   : > { %12269 = vmatpush1.bf16.msra.mxu0 %v14072_v58  ;;  %11778 = vmatprep.subr.bf16.mxu1 %v14077_v59  ;;  %v17024_v58 = vld.sshfl [vmem:[%s16687_s24 + $0x20] sm:$0xff pattern:$0x75316420]  ;;  %v14161_v59 = vld [vmem:[%s16699_s4 + $0x3f4] ss:$8 sps:$4 sm:$0xff]  }
 0x27a   : > { %12270 = vmatprep.subr.bf16.mxu0 %v14080_v61  ;;  %11808 = vmatprep.mubr.bf16.mxu1 %v7424_v41  ;;  %v14164_v61 = vld [vmem:[%s16699_s4 + $0xff4] ss:$8 sps:$4 sm:$0xff]   ;;  %v14159_v41 = vld [vmem:[%s16699_s4 + $0x3f0] ss:$8 sps:$4 sm:$0xff]  }
 0x27b   : > { %12300 = vmatprep.mubr.bf16.mxu0 %v7571_v62  ;;  %v14162_v62 = vld [vmem:[%s16699_s4 + $0xff0] ss:$8 sps:$4 sm:$0xff]  }
 0x27c   : > { %11779 = vmatpush1.bf16.msra.mxu1 %v14075_v42  ;;  %v14167_v42 = vld [vmem:[%s16699_s4 + $0x404] ss:$8 sps:$4 sm:$0xff]  }
 0x27d   : > { %12271 = vmatpush1.bf16.msra.mxu0 %v14078_v63  ;;  %11780 = vmatprep.subr.bf16.mxu1 %v14083_v53  ;;  %v14170_v63 = vld [vmem:[%s16699_s4 + $0x1004] ss:$8 sps:$4 sm:$0xff]   ;;  %v7440_v53 = vcombine.high %v17021_v57, %v17021_v57 }
 0x27e   : > { %12272 = vmatprep.subr.bf16.mxu0 %v14086_v0  ;;  %v7587_v0 = vcombine.high %v17024_v58, %v17024_v58 }
 0x280   : > { %11781 = vmatpush1.bf16.msra.mxu1 %v14081_v33  ;;  %v14165_v33 = vld [vmem:[%s16699_s4 + $0x400] ss:$8 sps:$4 sm:$0xff]  }
 0x281   : > { %12273 = vmatpush1.bf16.msra.mxu0 %v14084_v1  ;;  %11782 = vmatprep.subr.bf16.mxu1 %v14089_v3  ;;  %v14168_v1 = vld [vmem:[%s16699_s4 + $0x1000] ss:$8 sps:$4 sm:$0xff]   ;;  %v7422_v3 = vcombine.high %v16950_v55, %v16950_v55  ;;  %v14171_v55 = vld [vmem:[%s16699_s4 + $0x410] ss:$8 sps:$4 sm:$0xff]  }
 0x282   : > { %12274 = vmatprep.subr.bf16.mxu0 %v14092_v4  ;;  %v7569_v4 = vcombine.high %v16954_v56, %v16954_v56  ;;  %v14174_v56 = vld [vmem:[%s16699_s4 + $0x1010] ss:$8 sps:$4 sm:$0xff]  }
 0x284   : > { %11783 = vmatpush1.bf16.msra.mxu1 %v14087_v6  ;;  %v14173_v6 = vld [vmem:[%s16699_s4 + $0x414] ss:$8 sps:$4 sm:$0xff]  }
 0x285   : > { %12275 = vmatpush1.bf16.msra.mxu0 %v14090_v7  ;;  %11784 = vmatprep.subr.bf16.mxu1 %v14095_v8  ;;  %v14176_v7 = vld [vmem:[%s16699_s4 + $0x1014] ss:$8 sps:$4 sm:$0xff]   ;;  %v17045_v8 = vrot.slane %v7440_v53, %v16750_v2  ;;  %v14251_v53 = vld [vmem:[%s16699_s4 + $0x4e4] ss:$8 sps:$4 sm:$0xff]  }
 0x286   : > { %12276 = vmatprep.subr.bf16.mxu0 %v14098_v10  ;;  %v17048_v10 = vrot.slane %v7587_v0, %v16750_v2  ;;  %v14254_v0 = vld [vmem:[%s16699_s4 + $0x10e4] ss:$8 sps:$4 sm:$0xff]  }
 0x288   : > { %11785 = vmatpush1.bf16.msra.mxu1 %v14093_v11  ;;  %v14179_v11 = vld [vmem:[%s16699_s4 + $0x424] ss:$8 sps:$4 sm:$0xff]  }
 0x289   : > { %12277 = vmatpush1.bf16.msra.mxu0 %v14096_v12  ;;  %11786 = vmatprep.subr.bf16.mxu1 %v14101_v13  ;;  %v14182_v12 = vld [vmem:[%s16699_s4 + $0x1024] ss:$8 sps:$4 sm:$0xff]   ;;  %v14177_v13 = vld [vmem:[%s16699_s4 + $0x420] ss:$8 sps:$4 sm:$0xff]  }
 0x28a   : > { %12278 = vmatprep.subr.bf16.mxu0 %v14104_v14  ;;  %v14180_v14 = vld [vmem:[%s16699_s4 + $0x1020] ss:$8 sps:$4 sm:$0xff]  }
 0x28c   : > { %11787 = vmatpush1.bf16.msra.mxu1 %v14099_v15  ;;  %v14185_v15 = vld [vmem:[%s16699_s4 + $0x434] ss:$8 sps:$4 sm:$0xff]  }
 0x28d   : > { %12279 = vmatpush1.bf16.msra.mxu0 %v14102_v16  ;;  %11788 = vmatprep.subr.bf16.mxu1 %v14107_v17  ;;  %v14188_v16 = vld [vmem:[%s16699_s4 + $0x1034] ss:$8 sps:$4 sm:$0xff]   ;;  %v14183_v17 = vld [vmem:[%s16699_s4 + $0x430] ss:$8 sps:$4 sm:$0xff]  }
 0x28e   : > { %12280 = vmatprep.subr.bf16.mxu0 %v14110_v18  ;;  %v14186_v18 = vld [vmem:[%s16699_s4 + $0x1030] ss:$8 sps:$4 sm:$0xff]  }
 0x290   : > { %11789 = vmatpush1.bf16.msra.mxu1 %v14105_v19  ;;  %v14191_v19 = vld [vmem:[%s16699_s4 + $0x444] ss:$8 sps:$4 sm:$0xff]  }
 0x291   : > { %12281 = vmatpush1.bf16.msra.mxu0 %v14108_v20  ;;  %11790 = vmatprep.subr.bf16.mxu1 %v14113_v21  ;;  %v14194_v20 = vld [vmem:[%s16699_s4 + $0x1044] ss:$8 sps:$4 sm:$0xff]   ;;  %v14189_v21 = vld [vmem:[%s16699_s4 + $0x440] ss:$8 sps:$4 sm:$0xff]  }
 0x292   : > { %12282 = vmatprep.subr.bf16.mxu0 %v14116_v22  ;;  %v14192_v22 = vld [vmem:[%s16699_s4 + $0x1040] ss:$8 sps:$4 sm:$0xff]  }
 0x294   : > { %11791 = vmatpush1.bf16.msra.mxu1 %v14111_v23  ;;  %v14197_v23 = vld [vmem:[%s16699_s4 + $0x454] ss:$8 sps:$4 sm:$0xff]  }
 0x295   : > { %12283 = vmatpush1.bf16.msra.mxu0 %v14114_v24  ;;  %11792 = vmatprep.subr.bf16.mxu1 %v14119_v25  ;;  %v14200_v24 = vld [vmem:[%s16699_s4 + $0x1054] ss:$8 sps:$4 sm:$0xff]   ;;  %v14195_v25 = vld [vmem:[%s16699_s4 + $0x450] ss:$8 sps:$4 sm:$0xff]  }
 0x296   : > { %12284 = vmatprep.subr.bf16.mxu0 %v14122_v26  ;;  %v14198_v26 = vld [vmem:[%s16699_s4 + $0x1050] ss:$8 sps:$4 sm:$0xff]  }
 0x298   : > { %11793 = vmatpush1.bf16.msra.mxu1 %v14117_v27  ;;  %v14203_v27 = vld [vmem:[%s16699_s4 + $0x464] ss:$8 sps:$4 sm:$0xff]  }
 0x299   : > { %12285 = vmatpush1.bf16.msra.mxu0 %v14120_v28  ;;  %11794 = vmatprep.subr.bf16.mxu1 %v14125_v29  ;;  %v14206_v28 = vld [vmem:[%s16699_s4 + $0x1064] ss:$8 sps:$4 sm:$0xff]   ;;  %v14201_v29 = vld [vmem:[%s16699_s4 + $0x460] ss:$8 sps:$4 sm:$0xff]  }
 0x29a   : > { %12286 = vmatprep.subr.bf16.mxu0 %v14128_v30  ;;  %v14204_v30 = vld [vmem:[%s16699_s4 + $0x1060] ss:$8 sps:$4 sm:$0xff]  }
 0x29c   : > { %11795 = vmatpush1.bf16.msra.mxu1 %v14123_v31  ;;  %v14209_v31 = vld [vmem:[%s16699_s4 + $0x474] ss:$8 sps:$4 sm:$0xff]  }
 0x29d   : > { %12287 = vmatpush1.bf16.msra.mxu0 %v14126_v32  ;;  %11796 = vmatprep.subr.bf16.mxu1 %v14131_v35  ;;  %v14212_v32 = vld [vmem:[%s16699_s4 + $0x1074] ss:$8 sps:$4 sm:$0xff]   ;;  %v14207_v35 = vld [vmem:[%s16699_s4 + $0x470] ss:$8 sps:$4 sm:$0xff]  }
 0x29e   : > { %12288 = vmatprep.subr.bf16.mxu0 %v14134_v36  ;;  %v14210_v36 = vld [vmem:[%s16699_s4 + $0x1070] ss:$8 sps:$4 sm:$0xff]  }
 0x2a0   : > { %11797 = vmatpush1.bf16.msra.mxu1 %v14129_v37  ;;  %v14215_v37 = vld [vmem:[%s16699_s4 + $0x484] ss:$8 sps:$4 sm:$0xff]  }
 0x2a1   : > { %12289 = vmatpush1.bf16.msra.mxu0 %v14132_v38  ;;  %11798 = vmatprep.subr.bf16.mxu1 %v14137_v39  ;;  %v14218_v38 = vld [vmem:[%s16699_s4 + $0x1084] ss:$8 sps:$4 sm:$0xff]   ;;  %v14213_v39 = vld [vmem:[%s16699_s4 + $0x480] ss:$8 sps:$4 sm:$0xff]  }
 0x2a2   : > { %12290 = vmatprep.subr.bf16.mxu0 %v14140_v40  ;;  %v14216_v40 = vld [vmem:[%s16699_s4 + $0x1080] ss:$8 sps:$4 sm:$0xff]  }
 0x2a4   : > { %11799 = vmatpush1.bf16.msra.mxu1 %v14135_v5  ;;  %v14221_v5 = vld [vmem:[%s16699_s4 + $0x494] ss:$8 sps:$4 sm:$0xff]  }
 0x2a5   : > { %12291 = vmatpush1.bf16.msra.mxu0 %v14138_v9  ;;  %11800 = vmatprep.subr.bf16.mxu1 %v14143_v43  ;;  %v14224_v9 = vld [vmem:[%s16699_s4 + $0x1094] ss:$8 sps:$4 sm:$0xff]   ;;  %v14219_v43 = vld [vmem:[%s16699_s4 + $0x490] ss:$8 sps:$4 sm:$0xff]  }
 0x2a6   : > { %12292 = vmatprep.subr.bf16.mxu0 %v14146_v44  ;;  %v14222_v44 = vld [vmem:[%s16699_s4 + $0x1090] ss:$8 sps:$4 sm:$0xff]  }
 0x2a8   : > { %11801 = vmatpush1.bf16.msra.mxu1 %v14141_v45  ;;  %v14227_v45 = vld [vmem:[%s16699_s4 + $0x4a4] ss:$8 sps:$4 sm:$0xff]  }
 0x2a9   : > { %12293 = vmatpush1.bf16.msra.mxu0 %v14144_v46  ;;  %11802 = vmatprep.subr.bf16.mxu1 %v14149_v47  ;;  %v14230_v46 = vld [vmem:[%s16699_s4 + $0x10a4] ss:$8 sps:$4 sm:$0xff]   ;;  %v14225_v47 = vld [vmem:[%s16699_s4 + $0x4a0] ss:$8 sps:$4 sm:$0xff]  }
 0x2aa   : > { %12294 = vmatprep.subr.bf16.mxu0 %v14152_v48  ;;  %v14228_v48 = vld [vmem:[%s16699_s4 + $0x10a0] ss:$8 sps:$4 sm:$0xff]  }
 0x2ac   : > { %11803 = vmatpush1.bf16.msra.mxu1 %v14147_v49  ;;  %v14233_v49 = vld [vmem:[%s16699_s4 + $0x4b4] ss:$8 sps:$4 sm:$0xff]  }
 0x2ad   : > { %12295 = vmatpush1.bf16.msra.mxu0 %v14150_v50  ;;  %11804 = vmatprep.subr.bf16.mxu1 %v14155_v51  ;;  %v14236_v50 = vld [vmem:[%s16699_s4 + $0x10b4] ss:$8 sps:$4 sm:$0xff]   ;;  %v14231_v51 = vld [vmem:[%s16699_s4 + $0x4b0] ss:$8 sps:$4 sm:$0xff]  }
 0x2ae   : > { %12296 = vmatprep.subr.bf16.mxu0 %v14158_v52  ;;  %v14234_v52 = vld [vmem:[%s16699_s4 + $0x10b0] ss:$8 sps:$4 sm:$0xff]  }
 0x2b0   : > { %11805 = vmatpush1.bf16.msra.mxu1 %v14153_v34  ;;  %v14239_v34 = vld [vmem:[%s16699_s4 + $0x4c4] ss:$8 sps:$4 sm:$0xff]  }
 0x2b1   : > { %12297 = vmatpush1.bf16.msra.mxu0 %v14156_v54  ;;  %11806 = vmatprep.subr.bf16.mxu1 %v14161_v59  ;;  %v14242_v54 = vld [vmem:[%s16699_s4 + $0x10c4] ss:$8 sps:$4 sm:$0xff]   ;;  %v14237_v59 = vld [vmem:[%s16699_s4 + $0x4c0] ss:$8 sps:$4 sm:$0xff]  }
 0x2b2   : > { %12298 = vmatprep.subr.bf16.mxu0 %v14164_v61  ;;  %v14240_v61 = vld [vmem:[%s16699_s4 + $0x10c0] ss:$8 sps:$4 sm:$0xff]  }
 0x2b4   : > { %11807 = vmatpush1.bf16.msra.mxu1 %v14159_v41  ;;  %v14245_v41 = vld [vmem:[%s16699_s4 + $0x4d4] ss:$8 sps:$4 sm:$0xff]  }
 0x2b5   : > { %12299 = vmatpush1.bf16.msra.mxu0 %v14162_v62  ;;  %11817 = vmatprep.subr.bf16.mxu1 %v14167_v42  ;;  %v14248_v62 = vld [vmem:[%s16699_s4 + $0x10d4] ss:$8 sps:$4 sm:$0xff]   ;;  %v14243_v42 = vld [vmem:[%s16699_s4 + $0x4d0] ss:$8 sps:$4 sm:$0xff]  }
 0x2b6   : > { %12309 = vmatprep.subr.bf16.mxu0 %v14170_v63  ;;  %v14246_v63 = vld [vmem:[%s16699_s4 + $0x10d0] ss:$8 sps:$4 sm:$0xff]  }
 0x2b7   : > { %11809 = vmatmul.mubr.bf16.vlgmr.msra.gmra.mrb[0].mxu1 %v7422_v3  ;;  %v14257_v3 = vld [vmem:[%s16699_s4 + $0x4f4] ss:$8 sps:$4 sm:$0xff]  }
 0x2b8   : > { %12301 = vmatmul.mubr.bf16.vlgmr.msra.gmra.mrb[0].mxu0 %v7569_v4  ;;  %11818 = vmatpush1.bf16.msra.mxu1 %v14165_v33  ;;  %v14249_v33 = vld [vmem:[%s16699_s4 + $0x4e0] ss:$8 sps:$4 sm:$0xff]   ;;  %v14260_v4 = vld [vmem:[%s16699_s4 + $0x10f4] ss:$8 sps:$4 sm:$0xff]  }
 0x2b9   : > { %12310 = vmatpush1.bf16.msra.mxu0 %v14168_v1  ;;  %11819 = vmatprep.subr.bf16.mxu1 %v14173_v6  ;;  %v14252_v1 = vld [vmem:[%s16699_s4 + $0x10e0] ss:$8 sps:$4 sm:$0xff]   ;;  %v14255_v6 = vld [vmem:[%s16699_s4 + $0x4f0] ss:$8 sps:$4 sm:$0xff]  }
 0x2ba   : > { %12311 = vmatprep.subr.bf16.mxu0 %v14176_v7  ;;  %11849 = vmatprep.mubr.bf16.mxu1 %v17045_v8  ;;  %v14258_v7 = vld [vmem:[%s16699_s4 + $0x10f0] ss:$8 sps:$4 sm:$0xff]  }
 0x2bb   : > { %12341 = vmatprep.mubr.bf16.mxu0 %v17048_v10 }
 0x2bc   : > { %11820 = vmatpush1.bf16.msra.mxu1 %v14171_v55  ;;  %v14263_v55 = vld [vmem:[%s16699_s4 + $0x504] ss:$8 sps:$4 sm:$0xff]  }
 0x2bd   : > { %12312 = vmatpush1.bf16.msra.mxu0 %v14174_v56  ;;  %11821 = vmatprep.subr.bf16.mxu1 %v14179_v11  ;;  %v14266_v56 = vld [vmem:[%s16699_s4 + $0x1104] ss:$8 sps:$4 sm:$0xff]   ;;  %v17114_v11 = vrot.slane %v17021_v57, %v16750_v2  ;;  %v7472_v57 = vcombine.high %v17045_v8, %v17045_v8 }
 0x2be   : > { %12313 = vmatprep.subr.bf16.mxu0 %v14182_v12  ;;  %v17118_v12 = vrot.slane %v17024_v58, %v16750_v2  ;;  %v14267_v58 = vld [vmem:[%s16699_s4 + $0x510] ss:$8 sps:$4 sm:$0xff]   ;;  %v14275_v8 = vld [vmem:[%s16699_s4 + $0x524] ss:$8 sps:$4 sm:$0xff]  }
 0x2c0   : > { %11822 = vmatpush1.bf16.msra.mxu1 %v14177_v13  ;;  %v14261_v13 = vld [vmem:[%s16699_s4 + $0x500] ss:$8 sps:$4 sm:$0xff]  }
 0x2c1   : > { %12314 = vmatpush1.bf16.msra.mxu0 %v14180_v14  ;;  %11823 = vmatprep.subr.bf16.mxu1 %v14185_v15  ;;  %v14264_v14 = vld [vmem:[%s16699_s4 + $0x1100] ss:$8 sps:$4 sm:$0xff]   ;;  %v14269_v15 = vld [vmem:[%s16699_s4 + $0x514] ss:$8 sps:$4 sm:$0xff]  }
 0x2c2   : > { %12315 = vmatprep.subr.bf16.mxu0 %v14188_v16  ;;  %v14272_v16 = vld [vmem:[%s16699_s4 + $0x1114] ss:$8 sps:$4 sm:$0xff]  }
 0x2c4   : > { %11824 = vmatpush1.bf16.msra.mxu1 %v14183_v17  ;;  %v7619_v17 = vcombine.high %v17048_v10, %v17048_v10  ;;  %v14273_v10 = vld [vmem:[%s16699_s4 + $0x520] ss:$8 sps:$4 sm:$0xff]  }
 0x2c5   : > { %12316 = vmatpush1.bf16.msra.mxu0 %v14186_v18  ;;  %11825 = vmatprep.subr.bf16.mxu1 %v14191_v19  ;;  %v14270_v18 = vld [vmem:[%s16699_s4 + $0x1110] ss:$8 sps:$4 sm:$0xff]   ;;  %v14278_v19 = vld [vmem:[%s16699_s4 + $0x1124] ss:$8 sps:$4 sm:$0xff]  }
 0x2c6   : > { %12317 = vmatprep.subr.bf16.mxu0 %v14194_v20  ;;  %v14276_v20 = vld [vmem:[%s16699_s4 + $0x1120] ss:$8 sps:$4 sm:$0xff]  }
 0x2c8   : > { %11826 = vmatpush1.bf16.msra.mxu1 %v14189_v21  ;;  %v14281_v21 = vld [vmem:[%s16699_s4 + $0x534] ss:$8 sps:$4 sm:$0xff]  }
 0x2c9   : > { %12318 = vmatpush1.bf16.msra.mxu0 %v14192_v22  ;;  %11827 = vmatprep.subr.bf16.mxu1 %v14197_v23  ;;  %v14284_v22 = vld [vmem:[%s16699_s4 + $0x1134] ss:$8 sps:$4 sm:$0xff]   ;;  %v14279_v23 = vld [vmem:[%s16699_s4 + $0x530] ss:$8 sps:$4 sm:$0xff]  }
 0x2ca   : > { %12319 = vmatprep.subr.bf16.mxu0 %v14200_v24  ;;  %v14282_v24 = vld [vmem:[%s16699_s4 + $0x1130] ss:$8 sps:$4 sm:$0xff]  }
 0x2cc   : > { %11828 = vmatpush1.bf16.msra.mxu1 %v14195_v25  ;;  %v14287_v25 = vld [vmem:[%s16699_s4 + $0x544] ss:$8 sps:$4 sm:$0xff]  }
 0x2cd   : > { %12320 = vmatpush1.bf16.msra.mxu0 %v14198_v26  ;;  %11829 = vmatprep.subr.bf16.mxu1 %v14203_v27  ;;  %v14290_v26 = vld [vmem:[%s16699_s4 + $0x1144] ss:$8 sps:$4 sm:$0xff]   ;;  %v14285_v27 = vld [vmem:[%s16699_s4 + $0x540] ss:$8 sps:$4 sm:$0xff]  }
 0x2ce   : > { %12321 = vmatprep.subr.bf16.mxu0 %v14206_v28  ;;  %v14288_v28 = vld [vmem:[%s16699_s4 + $0x1140] ss:$8 sps:$4 sm:$0xff]  }
 0x2d0   : > { %11830 = vmatpush1.bf16.msra.mxu1 %v14201_v29  ;;  %v14293_v29 = vld [vmem:[%s16699_s4 + $0x554] ss:$8 sps:$4 sm:$0xff]  }
 0x2d1   : > { %12322 = vmatpush1.bf16.msra.mxu0 %v14204_v30  ;;  %11831 = vmatprep.subr.bf16.mxu1 %v14209_v31  ;;  %v14296_v30 = vld [vmem:[%s16699_s4 + $0x1154] ss:$8 sps:$4 sm:$0xff]   ;;  %v14291_v31 = vld [vmem:[%s16699_s4 + $0x550] ss:$8 sps:$4 sm:$0xff]  }
 0x2d2   : > { %12323 = vmatprep.subr.bf16.mxu0 %v14212_v32  ;;  %v14294_v32 = vld [vmem:[%s16699_s4 + $0x1150] ss:$8 sps:$4 sm:$0xff]  }
 0x2d4   : > { %11832 = vmatpush1.bf16.msra.mxu1 %v14207_v35  ;;  %v14299_v35 = vld [vmem:[%s16699_s4 + $0x564] ss:$8 sps:$4 sm:$0xff]  }
 0x2d5   : > { %12324 = vmatpush1.bf16.msra.mxu0 %v14210_v36  ;;  %11833 = vmatprep.subr.bf16.mxu1 %v14215_v37  ;;  %v14302_v36 = vld [vmem:[%s16699_s4 + $0x1164] ss:$8 sps:$4 sm:$0xff]   ;;  %v14297_v37 = vld [vmem:[%s16699_s4 + $0x560] ss:$8 sps:$4 sm:$0xff]  }
 0x2d6   : > { %12325 = vmatprep.subr.bf16.mxu0 %v14218_v38  ;;  %v14300_v38 = vld [vmem:[%s16699_s4 + $0x1160] ss:$8 sps:$4 sm:$0xff]  }
 0x2d8   : > { %11834 = vmatpush1.bf16.msra.mxu1 %v14213_v39  ;;  %v14305_v39 = vld [vmem:[%s16699_s4 + $0x574] ss:$8 sps:$4 sm:$0xff]  }
 0x2d9   : > { %12326 = vmatpush1.bf16.msra.mxu0 %v14216_v40  ;;  %11835 = vmatprep.subr.bf16.mxu1 %v14221_v5  ;;  %v14308_v40 = vld [vmem:[%s16699_s4 + $0x1174] ss:$8 sps:$4 sm:$0xff]   ;;  %v14303_v5 = vld [vmem:[%s16699_s4 + $0x570] ss:$8 sps:$4 sm:$0xff]  }
 0x2da   : > { %12327 = vmatprep.subr.bf16.mxu0 %v14224_v9  ;;  %v14306_v9 = vld [vmem:[%s16699_s4 + $0x1170] ss:$8 sps:$4 sm:$0xff]  }
 0x2dc   : > { %11836 = vmatpush1.bf16.msra.mxu1 %v14219_v43  ;;  %v14311_v43 = vld [vmem:[%s16699_s4 + $0x584] ss:$8 sps:$4 sm:$0xff]  }
 0x2dd   : > { %12328 = vmatpush1.bf16.msra.mxu0 %v14222_v44  ;;  %11837 = vmatprep.subr.bf16.mxu1 %v14227_v45  ;;  %v14314_v44 = vld [vmem:[%s16699_s4 + $0x1184] ss:$8 sps:$4 sm:$0xff]   ;;  %v14309_v45 = vld [vmem:[%s16699_s4 + $0x580] ss:$8 sps:$4 sm:$0xff]  }
 0x2de   : > { %12329 = vmatprep.subr.bf16.mxu0 %v14230_v46  ;;  %v14312_v46 = vld [vmem:[%s16699_s4 + $0x1180] ss:$8 sps:$4 sm:$0xff]  }
 0x2e0   : > { %11838 = vmatpush1.bf16.msra.mxu1 %v14225_v47  ;;  %v14317_v47 = vld [vmem:[%s16699_s4 + $0x594] ss:$8 sps:$4 sm:$0xff]  }
 0x2e1   : > { %12330 = vmatpush1.bf16.msra.mxu0 %v14228_v48  ;;  %11839 = vmatprep.subr.bf16.mxu1 %v14233_v49  ;;  %v14320_v48 = vld [vmem:[%s16699_s4 + $0x1194] ss:$8 sps:$4 sm:$0xff]   ;;  %v14315_v49 = vld [vmem:[%s16699_s4 + $0x590] ss:$8 sps:$4 sm:$0xff]  }
 0x2e2   : > { %12331 = vmatprep.subr.bf16.mxu0 %v14236_v50  ;;  %v14318_v50 = vld [vmem:[%s16699_s4 + $0x1190] ss:$8 sps:$4 sm:$0xff]  }
 0x2e4   : > { %11840 = vmatpush1.bf16.msra.mxu1 %v14231_v51  ;;  %v14323_v51 = vld [vmem:[%s16699_s4 + $0x5a4] ss:$8 sps:$4 sm:$0xff]  }
 0x2e5   : > { %12332 = vmatpush1.bf16.msra.mxu0 %v14234_v52  ;;  %11841 = vmatprep.subr.bf16.mxu1 %v14239_v34  ;;  %v14326_v52 = vld [vmem:[%s16699_s4 + $0x11a4] ss:$8 sps:$4 sm:$0xff]   ;;  %v14321_v34 = vld [vmem:[%s16699_s4 + $0x5a0] ss:$8 sps:$4 sm:$0xff]  }
 0x2e6   : > { %12333 = vmatprep.subr.bf16.mxu0 %v14242_v54  ;;  %v14324_v54 = vld [vmem:[%s16699_s4 + $0x11a0] ss:$8 sps:$4 sm:$0xff]  }
 0x2e8   : > { %11842 = vmatpush1.bf16.msra.mxu1 %v14237_v59  ;;  %v14329_v59 = vld [vmem:[%s16699_s4 + $0x5b4] ss:$8 sps:$4 sm:$0xff]  }
 0x2e9   : > { %12334 = vmatpush1.bf16.msra.mxu0 %v14240_v61  ;;  %11843 = vmatprep.subr.bf16.mxu1 %v14245_v41  ;;  %v14332_v61 = vld [vmem:[%s16699_s4 + $0x11b4] ss:$8 sps:$4 sm:$0xff]   ;;  %v14327_v41 = vld [vmem:[%s16699_s4 + $0x5b0] ss:$8 sps:$4 sm:$0xff]  }
 0x2ea   : > { %12335 = vmatprep.subr.bf16.mxu0 %v14248_v62  ;;  %v14330_v62 = vld [vmem:[%s16699_s4 + $0x11b0] ss:$8 sps:$4 sm:$0xff]  }
 0x2ec   : > { %11844 = vmatpush1.bf16.msra.mxu1 %v14243_v42  ;;  %v14335_v42 = vld [vmem:[%s16699_s4 + $0x5c4] ss:$8 sps:$4 sm:$0xff]  }
 0x2ed   : > { %12336 = vmatpush1.bf16.msra.mxu0 %v14246_v63  ;;  %11845 = vmatprep.subr.bf16.mxu1 %v14251_v53  ;;  %v14338_v63 = vld [vmem:[%s16699_s4 + $0x11c4] ss:$8 sps:$4 sm:$0xff]   ;;  %v14333_v53 = vld [vmem:[%s16699_s4 + $0x5c0] ss:$8 sps:$4 sm:$0xff]  }
 0x2ee   : > { %12337 = vmatprep.subr.bf16.mxu0 %v14254_v0  ;;  %v14336_v0 = vld [vmem:[%s16699_s4 + $0x11c0] ss:$8 sps:$4 sm:$0xff]  }
 0x2f0   : > { %11846 = vmatpush1.bf16.msra.mxu1 %v14249_v33  ;;  %v14341_v33 = vld [vmem:[%s16699_s4 + $0x5d4] ss:$8 sps:$4 sm:$0xff]  }
 0x2f1   : > { %12338 = vmatpush1.bf16.msra.mxu0 %v14252_v1  ;;  %11847 = vmatprep.subr.bf16.mxu1 %v14257_v3  ;;  %v14344_v1 = vld [vmem:[%s16699_s4 + $0x11d4] ss:$8 sps:$4 sm:$0xff]   ;;  %v14339_v3 = vld [vmem:[%s16699_s4 + $0x5d0] ss:$8 sps:$4 sm:$0xff]  }
 0x2f2   : > { %12339 = vmatprep.subr.bf16.mxu0 %v14260_v4  ;;  %v14342_v4 = vld [vmem:[%s16699_s4 + $0x11d0] ss:$8 sps:$4 sm:$0xff]  }
 0x2f4   : > { %11848 = vmatpush1.bf16.msra.mxu1 %v14255_v6  ;;  %v14347_v6 = vld [vmem:[%s16699_s4 + $0x5e4] ss:$8 sps:$4 sm:$0xff]  }
 0x2f5   : > { %12340 = vmatpush1.bf16.msra.mxu0 %v14258_v7  ;;  %11858 = vmatprep.subr.bf16.mxu1 %v14263_v55  ;;  %v14350_v7 = vld [vmem:[%s16699_s4 + $0x11e4] ss:$8 sps:$4 sm:$0xff]  }
 0x2f6   : > { %12350 = vmatprep.subr.bf16.mxu0 %v14266_v56  ;;  %v14961_v55 = vld [vmem:[%s16687_s24 + $0x8] sm:$0xff] }
 0x2f7   : > { %11850 = vmatmul.mubr.bf16.vlgmr.msra.gmra.mrb[0].mxu1 %v17114_v11  ;;  %v7425_v56 = vcombine.high %v14961_v55, %v14961_v55  ;;  %v14425_v55 = vld [vmem:[%s16699_s4 + $0x6b4] ss:$8 sps:$4 sm:$0xff]  }
 0x2f8   : > { %12342 = vmatmul.mubr.bf16.vlgmr.msra.gmra.mrb[0].mxu0 %v17118_v12  ;;  %11859 = vmatpush1.bf16.msra.mxu1 %v14261_v13  ;;  %v14962_v13 = vld [vmem:[%s16687_s24 + $0x20] sm:$0xff] }
 0x2f9   : > { %12351 = vmatpush1.bf16.msra.mxu0 %v14264_v14  ;;  %11860 = vmatprep.subr.bf16.mxu1 %v14269_v15  ;;  %v7572_v14 = vcombine.high %v14962_v13, %v14962_v13  ;;  %v14345_v15 = vld [vmem:[%s16699_s4 + $0x5e0] ss:$8 sps:$4 sm:$0xff]   ;;  %v14423_v13 = vld [vmem:[%s16699_s4 + $0x6b0] ss:$8 sps:$4 sm:$0xff]  }
 0x2fa   : > { %12352 = vmatprep.subr.bf16.mxu0 %v14272_v16  ;;  %11890 = vmatprep.mubr.bf16.mxu1 %v7472_v57  ;;  %v14348_v16 = vld [vmem:[%s16699_s4 + $0x11e0] ss:$8 sps:$4 sm:$0xff]   ;;  %v14353_v57 = vld [vmem:[%s16699_s4 + $0x5f4] ss:$8 sps:$4 sm:$0xff]  }
 0x2fb   : > { %12382 = vmatprep.mubr.bf16.mxu0 %v7619_v17  ;;  %v14356_v17 = vld [vmem:[%s16699_s4 + $0x11f4] ss:$8 sps:$4 sm:$0xff]  }
 0x2fc   : > { %11861 = vmatpush1.bf16.msra.mxu1 %v14267_v58  ;;  %v17189_v58 = vrot.slane %v7425_v56, %v16750_v2  ;;  %v14428_v56 = vld [vmem:[%s16699_s4 + $0x12b4] ss:$8 sps:$4 sm:$0xff]  }
 0x2fd   : > { %12353 = vmatpush1.bf16.msra.mxu0 %v14270_v18  ;;  %11862 = vmatprep.subr.bf16.mxu1 %v14275_v8  ;;  %v17192_v18 = vrot.slane %v7572_v14, %v16750_v2  ;;  %v14351_v8 = vld [vmem:[%s16699_s4 + $0x5f0] ss:$8 sps:$4 sm:$0xff]  }
 0x2fe   : > { %12354 = vmatprep.subr.bf16.mxu0 %v14278_v19  ;;  %v14354_v19 = vld [vmem:[%s16699_s4 + $0x11f0] ss:$8 sps:$4 sm:$0xff]  }
 0x2ff   : > { %v14426_v14 = vld [vmem:[%s16699_s4 + $0x12b0] ss:$8 sps:$4 sm:$0xff]  }
 0x300   : > { %11863 = vmatpush1.bf16.msra.mxu1 %v14273_v10  ;;  %v14359_v10 = vld [vmem:[%s16699_s4 + $0x604] ss:$8 sps:$4 sm:$0xff]  }
 0x301   : > { %12355 = vmatpush1.bf16.msra.mxu0 %v14276_v20  ;;  %11864 = vmatprep.subr.bf16.mxu1 %v14281_v21  ;;  %v14362_v20 = vld [vmem:[%s16699_s4 + $0x1204] ss:$8 sps:$4 sm:$0xff]   ;;  %v7441_v21 = vcombine.high %v17189_v58, %v17189_v58 }
 0x302   : > { %12356 = vmatprep.subr.bf16.mxu0 %v14284_v22  ;;  %v7588_v22 = vcombine.high %v17192_v18, %v17192_v18 }
 0x304   : > { %11865 = vmatpush1.bf16.msra.mxu1 %v14279_v23  ;;  %v7470_v23 = vcombine.high %v17114_v11, %v17114_v11  ;;  %v17214_v11 = vrot.slane %v7588_v22, %v16750_v2  ;;  %v14446_v22 = vld [vmem:[%s16699_s4 + $0x12e4] ss:$8 sps:$4 sm:$0xff]  }
 0x305   : > { %12357 = vmatpush1.bf16.msra.mxu0 %v14282_v24  ;;  %11866 = vmatprep.subr.bf16.mxu1 %v14287_v25  ;;  %v7617_v24 = vcombine.high %v17118_v12, %v17118_v12  ;;  %v14357_v25 = vld [vmem:[%s16699_s4 + $0x600] ss:$8 sps:$4 sm:$0xff]   ;;  %v14363_v12 = vld [vmem:[%s16699_s4 + $0x610] ss:$8 sps:$4 sm:$0xff]  }
 0x306   : > { %12358 = vmatprep.subr.bf16.mxu0 %v14290_v26  ;;  %v14360_v26 = vld [vmem:[%s16699_s4 + $0x1200] ss:$8 sps:$4 sm:$0xff]  }
 0x308   : > { %11867 = vmatpush1.bf16.msra.mxu1 %v14285_v27  ;;  %v14365_v27 = vld [vmem:[%s16699_s4 + $0x614] ss:$8 sps:$4 sm:$0xff]  }
 0x309   : > { %12359 = vmatpush1.bf16.msra.mxu0 %v14288_v28  ;;  %11868 = vmatprep.subr.bf16.mxu1 %v14293_v29  ;;  %v14368_v28 = vld [vmem:[%s16699_s4 + $0x1214] ss:$8 sps:$4 sm:$0xff]   ;;  %v17211_v29 = vrot.slane %v7441_v21, %v16750_v2  ;;  %v14443_v21 = vld [vmem:[%s16699_s4 + $0x6e4] ss:$8 sps:$4 sm:$0xff]  }
 0x30a   : > { %12360 = vmatprep.subr.bf16.mxu0 %v14296_v30  ;;  %v14366_v30 = vld [vmem:[%s16699_s4 + $0x1210] ss:$8 sps:$4 sm:$0xff]  }
 0x30c   : > { %11869 = vmatpush1.bf16.msra.mxu1 %v14291_v31  ;;  %v14371_v31 = vld [vmem:[%s16699_s4 + $0x624] ss:$8 sps:$4 sm:$0xff]  }
 0x30d   : > { %12361 = vmatpush1.bf16.msra.mxu0 %v14294_v32  ;;  %11870 = vmatprep.subr.bf16.mxu1 %v14299_v35  ;;  %v14374_v32 = vld [vmem:[%s16699_s4 + $0x1224] ss:$8 sps:$4 sm:$0xff]   ;;  %v14369_v35 = vld [vmem:[%s16699_s4 + $0x620] ss:$8 sps:$4 sm:$0xff]  }
 0x30e   : > { %12362 = vmatprep.subr.bf16.mxu0 %v14302_v36  ;;  %v14372_v36 = vld [vmem:[%s16699_s4 + $0x1220] ss:$8 sps:$4 sm:$0xff]  }
 0x310   : > { %11871 = vmatpush1.bf16.msra.mxu1 %v14297_v37  ;;  %v14377_v37 = vld [vmem:[%s16699_s4 + $0x634] ss:$8 sps:$4 sm:$0xff]  }
 0x311   : > { %12363 = vmatpush1.bf16.msra.mxu0 %v14300_v38  ;;  %11872 = vmatprep.subr.bf16.mxu1 %v14305_v39  ;;  %v14380_v38 = vld [vmem:[%s16699_s4 + $0x1234] ss:$8 sps:$4 sm:$0xff]   ;;  %v14375_v39 = vld [vmem:[%s16699_s4 + $0x630] ss:$8 sps:$4 sm:$0xff]  }
 0x312   : > { %12364 = vmatprep.subr.bf16.mxu0 %v14308_v40  ;;  %v14378_v40 = vld [vmem:[%s16699_s4 + $0x1230] ss:$8 sps:$4 sm:$0xff]  }
 0x314   : > { %11873 = vmatpush1.bf16.msra.mxu1 %v14303_v5  ;;  %v14383_v5 = vld [vmem:[%s16699_s4 + $0x644] ss:$8 sps:$4 sm:$0xff]  }
 0x315   : > { %12365 = vmatpush1.bf16.msra.mxu0 %v14306_v9  ;;  %11874 = vmatprep.subr.bf16.mxu1 %v14311_v43  ;;  %v14386_v9 = vld [vmem:[%s16699_s4 + $0x1244] ss:$8 sps:$4 sm:$0xff]   ;;  %v14381_v43 = vld [vmem:[%s16699_s4 + $0x640] ss:$8 sps:$4 sm:$0xff]  }
 0x316   : > { %12366 = vmatprep.subr.bf16.mxu0 %v14314_v44  ;;  %v14384_v44 = vld [vmem:[%s16699_s4 + $0x1240] ss:$8 sps:$4 sm:$0xff]  }
 0x318   : > { %11875 = vmatpush1.bf16.msra.mxu1 %v14309_v45  ;;  %v14389_v45 = vld [vmem:[%s16699_s4 + $0x654] ss:$8 sps:$4 sm:$0xff]  }
 0x319   : > { %12367 = vmatpush1.bf16.msra.mxu0 %v14312_v46  ;;  %11876 = vmatprep.subr.bf16.mxu1 %v14317_v47  ;;  %v14392_v46 = vld [vmem:[%s16699_s4 + $0x1254] ss:$8 sps:$4 sm:$0xff]   ;;  %v14387_v47 = vld [vmem:[%s16699_s4 + $0x650] ss:$8 sps:$4 sm:$0xff]  }
 0x31a   : > { %12368 = vmatprep.subr.bf16.mxu0 %v14320_v48  ;;  %v14390_v48 = vld [vmem:[%s16699_s4 + $0x1250] ss:$8 sps:$4 sm:$0xff]  }
 0x31c   : > { %11877 = vmatpush1.bf16.msra.mxu1 %v14315_v49  ;;  %v14395_v49 = vld [vmem:[%s16699_s4 + $0x664] ss:$8 sps:$4 sm:$0xff]  }
 0x31d   : > { %12369 = vmatpush1.bf16.msra.mxu0 %v14318_v50  ;;  %11878 = vmatprep.subr.bf16.mxu1 %v14323_v51  ;;  %v14398_v50 = vld [vmem:[%s16699_s4 + $0x1264] ss:$8 sps:$4 sm:$0xff]   ;;  %v14393_v51 = vld [vmem:[%s16699_s4 + $0x660] ss:$8 sps:$4 sm:$0xff]  }
 0x31e   : > { %12370 = vmatprep.subr.bf16.mxu0 %v14326_v52  ;;  %v14396_v52 = vld [vmem:[%s16699_s4 + $0x1260] ss:$8 sps:$4 sm:$0xff]  }
 0x320   : > { %11879 = vmatpush1.bf16.msra.mxu1 %v14321_v34  ;;  %v14401_v34 = vld [vmem:[%s16699_s4 + $0x674] ss:$8 sps:$4 sm:$0xff]  }
 0x321   : > { %12371 = vmatpush1.bf16.msra.mxu0 %v14324_v54  ;;  %11880 = vmatprep.subr.bf16.mxu1 %v14329_v59  ;;  %v14404_v54 = vld [vmem:[%s16699_s4 + $0x1274] ss:$8 sps:$4 sm:$0xff]   ;;  %v14399_v59 = vld [vmem:[%s16699_s4 + $0x670] ss:$8 sps:$4 sm:$0xff]  }
 0x322   : > { %12372 = vmatprep.subr.bf16.mxu0 %v14332_v61  ;;  %v14402_v61 = vld [vmem:[%s16699_s4 + $0x1270] ss:$8 sps:$4 sm:$0xff]  }
 0x324   : > { %11881 = vmatpush1.bf16.msra.mxu1 %v14327_v41  ;;  %v14407_v41 = vld [vmem:[%s16699_s4 + $0x684] ss:$8 sps:$4 sm:$0xff]  }
 0x325   : > { %12373 = vmatpush1.bf16.msra.mxu0 %v14330_v62  ;;  %11882 = vmatprep.subr.bf16.mxu1 %v14335_v42  ;;  %v14410_v62 = vld [vmem:[%s16699_s4 + $0x1284] ss:$8 sps:$4 sm:$0xff]   ;;  %v14405_v42 = vld [vmem:[%s16699_s4 + $0x680] ss:$8 sps:$4 sm:$0xff]  }
 0x326   : > { %12374 = vmatprep.subr.bf16.mxu0 %v14338_v63  ;;  %v14408_v63 = vld [vmem:[%s16699_s4 + $0x1280] ss:$8 sps:$4 sm:$0xff]  }
 0x328   : > { %11883 = vmatpush1.bf16.msra.mxu1 %v14333_v53  ;;  %v14413_v53 = vld [vmem:[%s16699_s4 + $0x694] ss:$8 sps:$4 sm:$0xff]  }
 0x329   : > { %12375 = vmatpush1.bf16.msra.mxu0 %v14336_v0  ;;  %11884 = vmatprep.subr.bf16.mxu1 %v14341_v33  ;;  %v14416_v0 = vld [vmem:[%s16699_s4 + $0x1294] ss:$8 sps:$4 sm:$0xff]   ;;  %v14411_v33 = vld [vmem:[%s16699_s4 + $0x690] ss:$8 sps:$4 sm:$0xff]  }
 0x32a   : > { %12376 = vmatprep.subr.bf16.mxu0 %v14344_v1  ;;  %v14414_v1 = vld [vmem:[%s16699_s4 + $0x1290] ss:$8 sps:$4 sm:$0xff]  }
 0x32c   : > { %11885 = vmatpush1.bf16.msra.mxu1 %v14339_v3  ;;  %v14419_v3 = vld [vmem:[%s16699_s4 + $0x6a4] ss:$8 sps:$4 sm:$0xff]  }
 0x32d   : > { %12377 = vmatpush1.bf16.msra.mxu0 %v14342_v4  ;;  %11886 = vmatprep.subr.bf16.mxu1 %v14347_v6  ;;  %v14422_v4 = vld [vmem:[%s16699_s4 + $0x12a4] ss:$8 sps:$4 sm:$0xff]   ;;  %v14417_v6 = vld [vmem:[%s16699_s4 + $0x6a0] ss:$8 sps:$4 sm:$0xff]  }
 0x32e   : > { %12378 = vmatprep.subr.bf16.mxu0 %v14350_v7  ;;  %v14420_v7 = vld [vmem:[%s16699_s4 + $0x12a0] ss:$8 sps:$4 sm:$0xff]  }
 0x330   : > { %11887 = vmatpush1.bf16.msra.mxu1 %v14345_v15  ;;  %v14431_v15 = vld [vmem:[%s16699_s4 + $0x6c4] ss:$8 sps:$4 sm:$0xff]  }
 0x331   : > { %12379 = vmatpush1.bf16.msra.mxu0 %v14348_v16  ;;  %11888 = vmatprep.subr.bf16.mxu1 %v14353_v57  ;;  %v14434_v16 = vld [vmem:[%s16699_s4 + $0x12c4] ss:$8 sps:$4 sm:$0xff]   ;;  %v14429_v57 = vld [vmem:[%s16699_s4 + $0x6c0] ss:$8 sps:$4 sm:$0xff]  }
 0x332   : > { %12380 = vmatprep.subr.bf16.mxu0 %v14356_v17  ;;  %v14432_v17 = vld [vmem:[%s16699_s4 + $0x12c0] ss:$8 sps:$4 sm:$0xff]  }
 0x334   : > { %11889 = vmatpush1.bf16.msra.mxu1 %v14351_v8  ;;  %v14437_v8 = vld [vmem:[%s16699_s4 + $0x6d4] ss:$8 sps:$4 sm:$0xff]  }
 0x335   : > { %12381 = vmatpush1.bf16.msra.mxu0 %v14354_v19  ;;  %11899 = vmatprep.subr.bf16.mxu1 %v14359_v10  ;;  %v14440_v19 = vld [vmem:[%s16699_s4 + $0x12d4] ss:$8 sps:$4 sm:$0xff]   ;;  %v14435_v10 = vld [vmem:[%s16699_s4 + $0x6d0] ss:$8 sps:$4 sm:$0xff]  }
 0x336   : > { %12391 = vmatprep.subr.bf16.mxu0 %v14362_v20  ;;  %v14438_v20 = vld [vmem:[%s16699_s4 + $0x12d0] ss:$8 sps:$4 sm:$0xff]  }
 0x337   : > { %11891 = vmatmul.mubr.bf16.vlgmr.msra.gmra.mrb[0].mxu1 %v7470_v23  ;;  %v14441_v23 = vld [vmem:[%s16699_s4 + $0x6e0] ss:$8 sps:$4 sm:$0xff]  }
 0x338   : > { %12383 = vmatmul.mubr.bf16.vlgmr.msra.gmra.mrb[0].mxu0 %v7617_v24  ;;  %11900 = vmatpush1.bf16.msra.mxu1 %v14357_v25  ;;  %v14444_v24 = vld [vmem:[%s16699_s4 + $0x12e0] ss:$8 sps:$4 sm:$0xff]   ;;  %v14449_v25 = vld [vmem:[%s16699_s4 + $0x6f4] ss:$8 sps:$4 sm:$0xff]  }
 0x339   : > { %12392 = vmatpush1.bf16.msra.mxu0 %v14360_v26  ;;  %11901 = vmatprep.subr.bf16.mxu1 %v14365_v27  ;;  %v14452_v26 = vld [vmem:[%s16699_s4 + $0x12f4] ss:$8 sps:$4 sm:$0xff]   ;;  %v14447_v27 = vld [vmem:[%s16699_s4 + $0x6f0] ss:$8 sps:$4 sm:$0xff]  }
 0x33a   : > { %12393 = vmatprep.subr.bf16.mxu0 %v14368_v28  ;;  %11931 = vmatprep.mubr.bf16.mxu1 %v17211_v29  ;;  %v14450_v28 = vld [vmem:[%s16699_s4 + $0x12f0] ss:$8 sps:$4 sm:$0xff]  }
 0x33b   : > { %12423 = vmatprep.mubr.bf16.mxu0 %v17214_v11 }
 0x33c   : > { %11902 = vmatpush1.bf16.msra.mxu1 %v14363_v12  ;;  %v14456_v12 = vld [vmem:[%s16699_s4 + $0x704] ss:$8 sps:$4 sm:$0xff]  }
 0x33d   : > { %12394 = vmatpush1.bf16.msra.mxu0 %v14366_v30  ;;  %11903 = vmatprep.subr.bf16.mxu1 %v14371_v31  ;;  %v14460_v30 = vld [vmem:[%s16699_s4 + $0x1304] ss:$8 sps:$4 sm:$0xff]   ;;  %v17280_v31 = vrot.slane %v17189_v58, %v16750_v2  ;;  %v7473_v58 = vcombine.high %v17211_v29, %v17211_v29 }
 0x33e   : > { %12395 = vmatprep.subr.bf16.mxu0 %v14374_v32  ;;  %v17284_v32 = vrot.slane %v17192_v18, %v16750_v2  ;;  %v14461_v18 = vld [vmem:[%s16699_s4 + $0x710] ss:$8 sps:$4 sm:$0xff]   ;;  %v14469_v29 = vld [vmem:[%s16699_s4 + $0x724] ss:$8 sps:$4 sm:$0xff]  }
 0x340   : > { %11904 = vmatpush1.bf16.msra.mxu1 %v14369_v35  ;;  %v14454_v35 = vld [vmem:[%s16699_s4 + $0x700] ss:$8 sps:$4 sm:$0xff]  }
 0x341   : > { %12396 = vmatpush1.bf16.msra.mxu0 %v14372_v36  ;;  %11905 = vmatprep.subr.bf16.mxu1 %v14377_v37  ;;  %v14458_v36 = vld [vmem:[%s16699_s4 + $0x1300] ss:$8 sps:$4 sm:$0xff]   ;;  %v14463_v37 = vld [vmem:[%s16699_s4 + $0x714] ss:$8 sps:$4 sm:$0xff]  }
 0x342   : > { %12397 = vmatprep.subr.bf16.mxu0 %v14380_v38  ;;  %v14466_v38 = vld [vmem:[%s16699_s4 + $0x1314] ss:$8 sps:$4 sm:$0xff]  }
 0x344   : > { %11906 = vmatpush1.bf16.msra.mxu1 %v14375_v39  ;;  %v7620_v39 = vcombine.high %v17214_v11, %v17214_v11  ;;  %v14467_v11 = vld [vmem:[%s16699_s4 + $0x720] ss:$8 sps:$4 sm:$0xff]  }
 0x345   : > { %12398 = vmatpush1.bf16.msra.mxu0 %v14378_v40  ;;  %11907 = vmatprep.subr.bf16.mxu1 %v14383_v5  ;;  %v14464_v40 = vld [vmem:[%s16699_s4 + $0x1310] ss:$8 sps:$4 sm:$0xff]   ;;  %v14472_v5 = vld [vmem:[%s16699_s4 + $0x1324] ss:$8 sps:$4 sm:$0xff]  }
 0x346   : > { %12399 = vmatprep.subr.bf16.mxu0 %v14386_v9  ;;  %v14470_v9 = vld [vmem:[%s16699_s4 + $0x1320] ss:$8 sps:$4 sm:$0xff]  }
 0x348   : > { %11908 = vmatpush1.bf16.msra.mxu1 %v14381_v43  ;;  %v14475_v43 = vld [vmem:[%s16699_s4 + $0x734] ss:$8 sps:$4 sm:$0xff]  }
 0x349   : > { %12400 = vmatpush1.bf16.msra.mxu0 %v14384_v44  ;;  %11909 = vmatprep.subr.bf16.mxu1 %v14389_v45  ;;  %v14478_v44 = vld [vmem:[%s16699_s4 + $0x1334] ss:$8 sps:$4 sm:$0xff]   ;;  %v14473_v45 = vld [vmem:[%s16699_s4 + $0x730] ss:$8 sps:$4 sm:$0xff]  }
 0x34a   : > { %12401 = vmatprep.subr.bf16.mxu0 %v14392_v46  ;;  %v14476_v46 = vld [vmem:[%s16699_s4 + $0x1330] ss:$8 sps:$4 sm:$0xff]  }
 0x34c   : > { %11910 = vmatpush1.bf16.msra.mxu1 %v14387_v47  ;;  %v14481_v47 = vld [vmem:[%s16699_s4 + $0x744] ss:$8 sps:$4 sm:$0xff]  }
 0x34d   : > { %12402 = vmatpush1.bf16.msra.mxu0 %v14390_v48  ;;  %11911 = vmatprep.subr.bf16.mxu1 %v14395_v49  ;;  %v14484_v48 = vld [vmem:[%s16699_s4 + $0x1344] ss:$8 sps:$4 sm:$0xff]   ;;  %v14479_v49 = vld [vmem:[%s16699_s4 + $0x740] ss:$8 sps:$4 sm:$0xff]  }
 0x34e   : > { %12403 = vmatprep.subr.bf16.mxu0 %v14398_v50  ;;  %v14482_v50 = vld [vmem:[%s16699_s4 + $0x1340] ss:$8 sps:$4 sm:$0xff]  }
 0x350   : > { %11912 = vmatpush1.bf16.msra.mxu1 %v14393_v51  ;;  %v14487_v51 = vld [vmem:[%s16699_s4 + $0x754] ss:$8 sps:$4 sm:$0xff]  }
 0x351   : > { %12404 = vmatpush1.bf16.msra.mxu0 %v14396_v52  ;;  %11913 = vmatprep.subr.bf16.mxu1 %v14401_v34  ;;  %v14490_v52 = vld [vmem:[%s16699_s4 + $0x1354] ss:$8 sps:$4 sm:$0xff]   ;;  %v14485_v34 = vld [vmem:[%s16699_s4 + $0x750] ss:$8 sps:$4 sm:$0xff]  }
 0x352   : > { %12405 = vmatprep.subr.bf16.mxu0 %v14404_v54  ;;  %v14488_v54 = vld [vmem:[%s16699_s4 + $0x1350] ss:$8 sps:$4 sm:$0xff]  }
 0x354   : > { %11914 = vmatpush1.bf16.msra.mxu1 %v14399_v59  ;;  %v14493_v59 = vld [vmem:[%s16699_s4 + $0x764] ss:$8 sps:$4 sm:$0xff]  }
 0x355   : > { %12406 = vmatpush1.bf16.msra.mxu0 %v14402_v61  ;;  %11915 = vmatprep.subr.bf16.mxu1 %v14407_v41  ;;  %v14496_v61 = vld [vmem:[%s16699_s4 + $0x1364] ss:$8 sps:$4 sm:$0xff]   ;;  %v14491_v41 = vld [vmem:[%s16699_s4 + $0x760] ss:$8 sps:$4 sm:$0xff]  }
 0x356   : > { %12407 = vmatprep.subr.bf16.mxu0 %v14410_v62  ;;  %v14494_v62 = vld [vmem:[%s16699_s4 + $0x1360] ss:$8 sps:$4 sm:$0xff]  }
 0x358   : > { %11916 = vmatpush1.bf16.msra.mxu1 %v14405_v42  ;;  %v14499_v42 = vld [vmem:[%s16699_s4 + $0x774] ss:$8 sps:$4 sm:$0xff]  }
 0x359   : > { %12408 = vmatpush1.bf16.msra.mxu0 %v14408_v63  ;;  %11917 = vmatprep.subr.bf16.mxu1 %v14413_v53  ;;  %v14502_v63 = vld [vmem:[%s16699_s4 + $0x1374] ss:$8 sps:$4 sm:$0xff]   ;;  %v14497_v53 = vld [vmem:[%s16699_s4 + $0x770] ss:$8 sps:$4 sm:$0xff]  }
 0x35a   : > { %12409 = vmatprep.subr.bf16.mxu0 %v14416_v0  ;;  %v14500_v0 = vld [vmem:[%s16699_s4 + $0x1370] ss:$8 sps:$4 sm:$0xff]  }
 0x35c   : > { %11918 = vmatpush1.bf16.msra.mxu1 %v14411_v33  ;;  %v14505_v33 = vld [vmem:[%s16699_s4 + $0x784] ss:$8 sps:$4 sm:$0xff]  }
 0x35d   : > { %12410 = vmatpush1.bf16.msra.mxu0 %v14414_v1  ;;  %11919 = vmatprep.subr.bf16.mxu1 %v14419_v3  ;;  %v14508_v1 = vld [vmem:[%s16699_s4 + $0x1384] ss:$8 sps:$4 sm:$0xff]   ;;  %v14503_v3 = vld [vmem:[%s16699_s4 + $0x780] ss:$8 sps:$4 sm:$0xff]  }
 0x35e   : > { %12411 = vmatprep.subr.bf16.mxu0 %v14422_v4  ;;  %v14506_v4 = vld [vmem:[%s16699_s4 + $0x1380] ss:$8 sps:$4 sm:$0xff]  }
 0x360   : > { %11920 = vmatpush1.bf16.msra.mxu1 %v14417_v6  ;;  %v14511_v6 = vld [vmem:[%s16699_s4 + $0x794] ss:$8 sps:$4 sm:$0xff]  }
 0x361   : > { %12412 = vmatpush1.bf16.msra.mxu0 %v14420_v7  ;;  %11921 = vmatprep.subr.bf16.mxu1 %v14425_v55  ;;  %v14514_v7 = vld [vmem:[%s16699_s4 + $0x1394] ss:$8 sps:$4 sm:$0xff]   ;;  %v14509_v55 = vld [vmem:[%s16699_s4 + $0x790] ss:$8 sps:$4 sm:$0xff]  }
 0x362   : > { %12413 = vmatprep.subr.bf16.mxu0 %v14428_v56  ;;  %v14512_v56 = vld [vmem:[%s16699_s4 + $0x1390] ss:$8 sps:$4 sm:$0xff]  }
 0x364   : > { %11922 = vmatpush1.bf16.msra.mxu1 %v14423_v13  ;;  %v14517_v13 = vld [vmem:[%s16699_s4 + $0x7a4] ss:$8 sps:$4 sm:$0xff]  }
 0x365   : > { %12414 = vmatpush1.bf16.msra.mxu0 %v14426_v14  ;;  %11923 = vmatprep.subr.bf16.mxu1 %v14431_v15  ;;  %v14520_v14 = vld [vmem:[%s16699_s4 + $0x13a4] ss:$8 sps:$4 sm:$0xff]   ;;  %v14515_v15 = vld [vmem:[%s16699_s4 + $0x7a0] ss:$8 sps:$4 sm:$0xff]  }
 0x366   : > { %12415 = vmatprep.subr.bf16.mxu0 %v14434_v16  ;;  %v14518_v16 = vld [vmem:[%s16699_s4 + $0x13a0] ss:$8 sps:$4 sm:$0xff]  }
 0x368   : > { %11924 = vmatpush1.bf16.msra.mxu1 %v14429_v57  ;;  %v14523_v57 = vld [vmem:[%s16699_s4 + $0x7b4] ss:$8 sps:$4 sm:$0xff]  }
 0x369   : > { %12416 = vmatpush1.bf16.msra.mxu0 %v14432_v17  ;;  %11925 = vmatprep.subr.bf16.mxu1 %v14437_v8  ;;  %v14526_v17 = vld [vmem:[%s16699_s4 + $0x13b4] ss:$8 sps:$4 sm:$0xff]   ;;  %v14521_v8 = vld [vmem:[%s16699_s4 + $0x7b0] ss:$8 sps:$4 sm:$0xff]  }
 0x36a   : > { %12417 = vmatprep.subr.bf16.mxu0 %v14440_v19  ;;  %v14524_v19 = vld [vmem:[%s16699_s4 + $0x13b0] ss:$8 sps:$4 sm:$0xff]  }
 0x36c   : > { %11926 = vmatpush1.bf16.msra.mxu1 %v14435_v10  ;;  %v14529_v10 = vld [vmem:[%s16699_s4 + $0x7c4] ss:$8 sps:$4 sm:$0xff]  }
 0x36d   : > { %12418 = vmatpush1.bf16.msra.mxu0 %v14438_v20  ;;  %11927 = vmatprep.subr.bf16.mxu1 %v14443_v21  ;;  %v14532_v20 = vld [vmem:[%s16699_s4 + $0x13c4] ss:$8 sps:$4 sm:$0xff]   ;;  %v14527_v21 = vld [vmem:[%s16699_s4 + $0x7c0] ss:$8 sps:$4 sm:$0xff]  }
 0x36e   : > { %12419 = vmatprep.subr.bf16.mxu0 %v14446_v22  ;;  %v14530_v22 = vld [vmem:[%s16699_s4 + $0x13c0] ss:$8 sps:$4 sm:$0xff]  }
 0x370   : > { %11928 = vmatpush1.bf16.msra.mxu1 %v14441_v23  ;;  %v14535_v23 = vld [vmem:[%s16699_s4 + $0x7d4] ss:$8 sps:$4 sm:$0xff]  }
 0x371   : > { %12420 = vmatpush1.bf16.msra.mxu0 %v14444_v24  ;;  %11929 = vmatprep.subr.bf16.mxu1 %v14449_v25  ;;  %v14538_v24 = vld [vmem:[%s16699_s4 + $0x13d4] ss:$8 sps:$4 sm:$0xff]   ;;  %v14533_v25 = vld [vmem:[%s16699_s4 + $0x7d0] ss:$8 sps:$4 sm:$0xff]  }
 0x372   : > { %12421 = vmatprep.subr.bf16.mxu0 %v14452_v26  ;;  %v14536_v26 = vld [vmem:[%s16699_s4 + $0x13d0] ss:$8 sps:$4 sm:$0xff]  }
 0x374   : > { %11930 = vmatpush1.bf16.msra.mxu1 %v14447_v27  ;;  %v14541_v27 = vld [vmem:[%s16699_s4 + $0x7e4] ss:$8 sps:$4 sm:$0xff]  }
 0x375   : > { %12422 = vmatpush1.bf16.msra.mxu0 %v14450_v28  ;;  %11940 = vmatprep.subr.bf16.mxu1 %v14456_v12  ;;  %v14544_v28 = vld [vmem:[%s16699_s4 + $0x13e4] ss:$8 sps:$4 sm:$0xff]   ;;  %v17349_v12 = vld [vmem:[%s16687_s24 + $0x10] sm:$0xff] }
 0x376   : > { %12432 = vmatprep.subr.bf16.mxu0 %v14460_v30  ;;  %v17352_v30 = vld [vmem:[%s16687_s24 + $0x28] sm:$0xff] }
 0x377   : > { %11932 = vmatmul.mubr.bf16.vlgmr.msra.gmra.mrb[0].mxu1 %v17280_v31 }
 0x378   : > { %12424 = vmatmul.mubr.bf16.vlgmr.msra.gmra.mrb[0].mxu0 %v17284_v32  ;;  %11941 = vmatpush1.bf16.msra.mxu1 %v14454_v35  ;;  %v14539_v35 = vld [vmem:[%s16699_s4 + $0x7e0] ss:$8 sps:$4 sm:$0xff]  }
 0x379   : > { %12433 = vmatpush1.bf16.msra.mxu0 %v14458_v36  ;;  %11942 = vmatprep.subr.bf16.mxu1 %v14463_v37  ;;  %v14542_v36 = vld [vmem:[%s16699_s4 + $0x13e0] ss:$8 sps:$4 sm:$0xff]   ;;  %v14547_v37 = vld [vmem:[%s16699_s4 + $0x7f4] ss:$8 sps:$4 sm:$0xff]  }
 0x37a   : > { %12434 = vmatprep.subr.bf16.mxu0 %v14466_v38  ;;  %11972 = vmatprep.mubr.bf16.mxu1 %v7473_v58  ;;  %v14550_v38 = vld [vmem:[%s16699_s4 + $0x13f4] ss:$8 sps:$4 sm:$0xff]   ;;  %v17360_v58 = vrot.slane %v17349_v12, %v16750_v2 }
 0x37b   : > { %12464 = vmatprep.mubr.bf16.mxu0 %v7620_v39  ;;  %v17364_v39 = vrot.slane %v17352_v30, %v16750_v2 }
 0x37c   : > { %11943 = vmatpush1.bf16.msra.mxu1 %v14461_v18  ;;  %v14545_v18 = vld [vmem:[%s16699_s4 + $0x7f0] ss:$8 sps:$4 sm:$0xff]  }
 0x37d   : > { %12435 = vmatpush1.bf16.msra.mxu0 %v14464_v40  ;;  %11944 = vmatprep.subr.bf16.mxu1 %v14469_v29  ;;  %v14548_v40 = vld [vmem:[%s16699_s4 + $0x13f0] ss:$8 sps:$4 sm:$0xff]   ;;  %v14553_v29 = vld [vmem:[%s16699_s4 + $0x804] ss:$8 sps:$4 sm:$0xff]  }
 0x37e   : > { %12436 = vmatprep.subr.bf16.mxu0 %v14472_v5  ;;  %v14556_v5 = vld [vmem:[%s16699_s4 + $0x1404] ss:$8 sps:$4 sm:$0xff]  }
 0x380   : > { %11945 = vmatpush1.bf16.msra.mxu1 %v14467_v11  ;;  %v7489_v11 = vcombine.high %v17360_v58, %v17360_v58 }
 0x381   : > { %12437 = vmatpush1.bf16.msra.mxu0 %v14470_v9  ;;  %11946 = vmatprep.subr.bf16.mxu1 %v14475_v43  ;;  %v7636_v9 = vcombine.high %v17364_v39, %v17364_v39  ;;  %v7471_v43 = vcombine.high %v17280_v31, %v17280_v31 }
 0x382   : > { %12438 = vmatprep.subr.bf16.mxu0 %v14478_v44  ;;  %v7618_v44 = vcombine.high %v17284_v32, %v17284_v32  ;;  %v14557_v32 = vld [vmem:[%s16699_s4 + $0x810] ss:$8 sps:$4 sm:$0xff]  }
 0x383   : > { %v17386_v31 = vrot.slane %v7636_v9, %v16750_v2  ;;  %v14632_v9 = vld [vmem:[%s16699_s4 + $0x14d0] ss:$8 sps:$4 sm:$0xff]  }
 0x384   : > { %11947 = vmatpush1.bf16.msra.mxu1 %v14473_v45  ;;  %v14551_v45 = vld [vmem:[%s16699_s4 + $0x800] ss:$8 sps:$4 sm:$0xff]  }
 0x385   : > { %12439 = vmatpush1.bf16.msra.mxu0 %v14476_v46  ;;  %11948 = vmatprep.subr.bf16.mxu1 %v14481_v47  ;;  %v14554_v46 = vld [vmem:[%s16699_s4 + $0x1400] ss:$8 sps:$4 sm:$0xff]   ;;  %v14559_v47 = vld [vmem:[%s16699_s4 + $0x814] ss:$8 sps:$4 sm:$0xff]  }
 0x386   : > { %12440 = vmatprep.subr.bf16.mxu0 %v14484_v48  ;;  %v14562_v48 = vld [vmem:[%s16699_s4 + $0x1414] ss:$8 sps:$4 sm:$0xff]  }
 0x388   : > { %11949 = vmatpush1.bf16.msra.mxu1 %v14479_v49  ;;  %v17383_v49 = vrot.slane %v7489_v11, %v16750_v2  ;;  %v14629_v11 = vld [vmem:[%s16699_s4 + $0x8d0] ss:$8 sps:$4 sm:$0xff]  }
 0x389   : > { %12441 = vmatpush1.bf16.msra.mxu0 %v14482_v50  ;;  %11950 = vmatprep.subr.bf16.mxu1 %v14487_v51  ;;  %v14560_v50 = vld [vmem:[%s16699_s4 + $0x1410] ss:$8 sps:$4 sm:$0xff]   ;;  %v14565_v51 = vld [vmem:[%s16699_s4 + $0x824] ss:$8 sps:$4 sm:$0xff]  }
 0x38a   : > { %12442 = vmatprep.subr.bf16.mxu0 %v14490_v52  ;;  %v14568_v52 = vld [vmem:[%s16699_s4 + $0x1424] ss:$8 sps:$4 sm:$0xff]  }
 0x38c   : > { %11951 = vmatpush1.bf16.msra.mxu1 %v14485_v34  ;;  %v14563_v34 = vld [vmem:[%s16699_s4 + $0x820] ss:$8 sps:$4 sm:$0xff]  }
 0x38d   : > { %12443 = vmatpush1.bf16.msra.mxu0 %v14488_v54  ;;  %11952 = vmatprep.subr.bf16.mxu1 %v14493_v59  ;;  %v14566_v54 = vld [vmem:[%s16699_s4 + $0x1420] ss:$8 sps:$4 sm:$0xff]   ;;  %v14571_v59 = vld [vmem:[%s16699_s4 + $0x834] ss:$8 sps:$4 sm:$0xff]  }
 0x38e   : > { %12444 = vmatprep.subr.bf16.mxu0 %v14496_v61  ;;  %v14574_v61 = vld [vmem:[%s16699_s4 + $0x1434] ss:$8 sps:$4 sm:$0xff]  }
 0x390   : > { %11953 = vmatpush1.bf16.msra.mxu1 %v14491_v41  ;;  %v14569_v41 = vld [vmem:[%s16699_s4 + $0x830] ss:$8 sps:$4 sm:$0xff]  }
 0x391   : > { %12445 = vmatpush1.bf16.msra.mxu0 %v14494_v62  ;;  %11954 = vmatprep.subr.bf16.mxu1 %v14499_v42  ;;  %v14572_v62 = vld [vmem:[%s16699_s4 + $0x1430] ss:$8 sps:$4 sm:$0xff]   ;;  %v14577_v42 = vld [vmem:[%s16699_s4 + $0x844] ss:$8 sps:$4 sm:$0xff]  }
 0x392   : > { %12446 = vmatprep.subr.bf16.mxu0 %v14502_v63  ;;  %v14580_v63 = vld [vmem:[%s16699_s4 + $0x1444] ss:$8 sps:$4 sm:$0xff]  }
 0x394   : > { %11955 = vmatpush1.bf16.msra.mxu1 %v14497_v53  ;;  %v14575_v53 = vld [vmem:[%s16699_s4 + $0x840] ss:$8 sps:$4 sm:$0xff]  }
 0x395   : > { %12447 = vmatpush1.bf16.msra.mxu0 %v14500_v0  ;;  %11956 = vmatprep.subr.bf16.mxu1 %v14505_v33  ;;  %v14578_v0 = vld [vmem:[%s16699_s4 + $0x1440] ss:$8 sps:$4 sm:$0xff]   ;;  %v14583_v33 = vld [vmem:[%s16699_s4 + $0x854] ss:$8 sps:$4 sm:$0xff]  }
 0x396   : > { %12448 = vmatprep.subr.bf16.mxu0 %v14508_v1  ;;  %v14586_v1 = vld [vmem:[%s16699_s4 + $0x1454] ss:$8 sps:$4 sm:$0xff]  }
 0x398   : > { %11957 = vmatpush1.bf16.msra.mxu1 %v14503_v3  ;;  %v14581_v3 = vld [vmem:[%s16699_s4 + $0x850] ss:$8 sps:$4 sm:$0xff]  }
 0x399   : > { %12449 = vmatpush1.bf16.msra.mxu0 %v14506_v4  ;;  %11958 = vmatprep.subr.bf16.mxu1 %v14511_v6  ;;  %v14584_v4 = vld [vmem:[%s16699_s4 + $0x1450] ss:$8 sps:$4 sm:$0xff]   ;;  %v14589_v6 = vld [vmem:[%s16699_s4 + $0x864] ss:$8 sps:$4 sm:$0xff]  }
 0x39a   : > { %12450 = vmatprep.subr.bf16.mxu0 %v14514_v7  ;;  %v14592_v7 = vld [vmem:[%s16699_s4 + $0x1464] ss:$8 sps:$4 sm:$0xff]  }
 0x39c   : > { %11959 = vmatpush1.bf16.msra.mxu1 %v14509_v55  ;;  %v14587_v55 = vld [vmem:[%s16699_s4 + $0x860] ss:$8 sps:$4 sm:$0xff]  }
 0x39d   : > { %12451 = vmatpush1.bf16.msra.mxu0 %v14512_v56  ;;  %11960 = vmatprep.subr.bf16.mxu1 %v14517_v13  ;;  %v14590_v56 = vld [vmem:[%s16699_s4 + $0x1460] ss:$8 sps:$4 sm:$0xff]   ;;  %v14595_v13 = vld [vmem:[%s16699_s4 + $0x874] ss:$8 sps:$4 sm:$0xff]  }
 0x39e   : > { %12452 = vmatprep.subr.bf16.mxu0 %v14520_v14  ;;  %v14598_v14 = vld [vmem:[%s16699_s4 + $0x1474] ss:$8 sps:$4 sm:$0xff]  }
 0x3a0   : > { %11961 = vmatpush1.bf16.msra.mxu1 %v14515_v15  ;;  %v14593_v15 = vld [vmem:[%s16699_s4 + $0x870] ss:$8 sps:$4 sm:$0xff]  }
 0x3a1   : > { %12453 = vmatpush1.bf16.msra.mxu0 %v14518_v16  ;;  %11962 = vmatprep.subr.bf16.mxu1 %v14523_v57  ;;  %v14596_v16 = vld [vmem:[%s16699_s4 + $0x1470] ss:$8 sps:$4 sm:$0xff]   ;;  %v14601_v57 = vld [vmem:[%s16699_s4 + $0x884] ss:$8 sps:$4 sm:$0xff]  }
 0x3a2   : > { %12454 = vmatprep.subr.bf16.mxu0 %v14526_v17  ;;  %v14604_v17 = vld [vmem:[%s16699_s4 + $0x1484] ss:$8 sps:$4 sm:$0xff]  }
 0x3a4   : > { %11963 = vmatpush1.bf16.msra.mxu1 %v14521_v8  ;;  %v14599_v8 = vld [vmem:[%s16699_s4 + $0x880] ss:$8 sps:$4 sm:$0xff]  }
 0x3a5   : > { %12455 = vmatpush1.bf16.msra.mxu0 %v14524_v19  ;;  %11964 = vmatprep.subr.bf16.mxu1 %v14529_v10  ;;  %v14602_v19 = vld [vmem:[%s16699_s4 + $0x1480] ss:$8 sps:$4 sm:$0xff]   ;;  %v14607_v10 = vld [vmem:[%s16699_s4 + $0x894] ss:$8 sps:$4 sm:$0xff]  }
 0x3a6   : > { %12456 = vmatprep.subr.bf16.mxu0 %v14532_v20  ;;  %v14610_v20 = vld [vmem:[%s16699_s4 + $0x1494] ss:$8 sps:$4 sm:$0xff]  }
 0x3a8   : > { %11965 = vmatpush1.bf16.msra.mxu1 %v14527_v21  ;;  %v14605_v21 = vld [vmem:[%s16699_s4 + $0x890] ss:$8 sps:$4 sm:$0xff]  }
 0x3a9   : > { %12457 = vmatpush1.bf16.msra.mxu0 %v14530_v22  ;;  %11966 = vmatprep.subr.bf16.mxu1 %v14535_v23  ;;  %v14608_v22 = vld [vmem:[%s16699_s4 + $0x1490] ss:$8 sps:$4 sm:$0xff]   ;;  %v14613_v23 = vld [vmem:[%s16699_s4 + $0x8a4] ss:$8 sps:$4 sm:$0xff]  }
 0x3aa   : > { %12458 = vmatprep.subr.bf16.mxu0 %v14538_v24  ;;  %v14616_v24 = vld [vmem:[%s16699_s4 + $0x14a4] ss:$8 sps:$4 sm:$0xff]  }
 0x3ac   : > { %11967 = vmatpush1.bf16.msra.mxu1 %v14533_v25  ;;  %v14611_v25 = vld [vmem:[%s16699_s4 + $0x8a0] ss:$8 sps:$4 sm:$0xff]  }
 0x3ad   : > { %12459 = vmatpush1.bf16.msra.mxu0 %v14536_v26  ;;  %11968 = vmatprep.subr.bf16.mxu1 %v14541_v27  ;;  %v14614_v26 = vld [vmem:[%s16699_s4 + $0x14a0] ss:$8 sps:$4 sm:$0xff]   ;;  %v14619_v27 = vld [vmem:[%s16699_s4 + $0x8b4] ss:$8 sps:$4 sm:$0xff]  }
 0x3ae   : > { %12460 = vmatprep.subr.bf16.mxu0 %v14544_v28  ;;  %v14622_v28 = vld [vmem:[%s16699_s4 + $0x14b4] ss:$8 sps:$4 sm:$0xff]  }
 0x3b0   : > { %11969 = vmatpush1.bf16.msra.mxu1 %v14539_v35  ;;  %v14617_v35 = vld [vmem:[%s16699_s4 + $0x8b0] ss:$8 sps:$4 sm:$0xff]  }
 0x3b1   : > { %12461 = vmatpush1.bf16.msra.mxu0 %v14542_v36  ;;  %11970 = vmatprep.subr.bf16.mxu1 %v14547_v37  ;;  %v14620_v36 = vld [vmem:[%s16699_s4 + $0x14b0] ss:$8 sps:$4 sm:$0xff]   ;;  %v14625_v37 = vld [vmem:[%s16699_s4 + $0x8c4] ss:$8 sps:$4 sm:$0xff]  }
 0x3b2   : > { %12462 = vmatprep.subr.bf16.mxu0 %v14550_v38  ;;  %v14628_v38 = vld [vmem:[%s16699_s4 + $0x14c4] ss:$8 sps:$4 sm:$0xff]  }
 0x3b4   : > { %11971 = vmatpush1.bf16.msra.mxu1 %v14545_v18  ;;  %v14623_v18 = vld [vmem:[%s16699_s4 + $0x8c0] ss:$8 sps:$4 sm:$0xff]  }
 0x3b5   : > { %12463 = vmatpush1.bf16.msra.mxu0 %v14548_v40  ;;  %11981 = vmatprep.subr.bf16.mxu1 %v14553_v29  ;;  %v14626_v40 = vld [vmem:[%s16699_s4 + $0x14c0] ss:$8 sps:$4 sm:$0xff]   ;;  %v14631_v29 = vld [vmem:[%s16699_s4 + $0x8d4] ss:$8 sps:$4 sm:$0xff]  }
 0x3b6   : > { %12473 = vmatprep.subr.bf16.mxu0 %v14556_v5  ;;  %v14634_v5 = vld [vmem:[%s16699_s4 + $0x14d4] ss:$8 sps:$4 sm:$0xff]  }
 0x3b7   : > { %11973 = vmatmul.mubr.bf16.vlgmr.msra.gmra.mrb[0].mxu1 %v7471_v43  ;;  %v14637_v43 = vld [vmem:[%s16699_s4 + $0x8e4] ss:$8 sps:$4 sm:$0xff]  }
 0x3b8   : > { %12465 = vmatmul.mubr.bf16.vlgmr.msra.gmra.mrb[0].mxu0 %v7618_v44  ;;  %11982 = vmatpush1.bf16.msra.mxu1 %v14551_v45  ;;  %v14640_v44 = vld [vmem:[%s16699_s4 + $0x14e4] ss:$8 sps:$4 sm:$0xff]   ;;  %v14635_v45 = vld [vmem:[%s16699_s4 + $0x8e0] ss:$8 sps:$4 sm:$0xff]  }
 0x3b9   : > { %12474 = vmatpush1.bf16.msra.mxu0 %v14554_v46  ;;  %11983 = vmatprep.subr.bf16.mxu1 %v14559_v47  ;;  %v14638_v46 = vld [vmem:[%s16699_s4 + $0x14e0] ss:$8 sps:$4 sm:$0xff]   ;;  %v14643_v47 = vld [vmem:[%s16699_s4 + $0x8f4] ss:$8 sps:$4 sm:$0xff]  }
 0x3ba   : > { %12475 = vmatprep.subr.bf16.mxu0 %v14562_v48  ;;  %12013 = vmatprep.mubr.bf16.mxu1 %v17383_v49  ;;  %v14646_v48 = vld [vmem:[%s16699_s4 + $0x14f4] ss:$8 sps:$4 sm:$0xff]  }
 0x3bb   : > { %12505 = vmatprep.mubr.bf16.mxu0 %v17386_v31 }
 0x3bc   : > { %11984 = vmatpush1.bf16.msra.mxu1 %v14557_v32  ;;  %v14641_v32 = vld [vmem:[%s16699_s4 + $0x8f0] ss:$8 sps:$4 sm:$0xff]  }
 0x3bd   : > { %12476 = vmatpush1.bf16.msra.mxu0 %v14560_v50  ;;  %11985 = vmatprep.subr.bf16.mxu1 %v14565_v51  ;;  %v14644_v50 = vld [vmem:[%s16699_s4 + $0x14f0] ss:$8 sps:$4 sm:$0xff]   ;;  %v14649_v51 = vld [vmem:[%s16699_s4 + $0x904] ss:$8 sps:$4 sm:$0xff]  }
 0x3be   : > { %12477 = vmatprep.subr.bf16.mxu0 %v14568_v52  ;;  %v14652_v52 = vld [vmem:[%s16699_s4 + $0x1504] ss:$8 sps:$4 sm:$0xff]  }
 0x3c0   : > { %11986 = vmatpush1.bf16.msra.mxu1 %v14563_v34  ;;  %v17452_v34 = vrot.slane %v17360_v58, %v16750_v2  ;;  %v7521_v58 = vcombine.high %v17383_v49, %v17383_v49  ;;  %v14661_v49 = vld [vmem:[%s16699_s4 + $0x924] ss:$8 sps:$4 sm:$0xff]  }
 0x3c1   : > { %12478 = vmatpush1.bf16.msra.mxu0 %v14566_v54  ;;  %11987 = vmatprep.subr.bf16.mxu1 %v14571_v59  ;;  %v17456_v54 = vrot.slane %v17364_v39, %v16750_v2  ;;  %v14647_v59 = vld [vmem:[%s16699_s4 + $0x900] ss:$8 sps:$4 sm:$0xff]   ;;  %v14653_v39 = vld [vmem:[%s16699_s4 + $0x910] ss:$8 sps:$4 sm:$0xff]  }
 0x3c2   : > { %12479 = vmatprep.subr.bf16.mxu0 %v14574_v61  ;;  %v14650_v61 = vld [vmem:[%s16699_s4 + $0x1500] ss:$8 sps:$4 sm:$0xff]  }
 0x3c4   : > { %11988 = vmatpush1.bf16.msra.mxu1 %v14569_v41  ;;  %v14655_v41 = vld [vmem:[%s16699_s4 + $0x914] ss:$8 sps:$4 sm:$0xff]  }
 0x3c5   : > { %12480 = vmatpush1.bf16.msra.mxu0 %v14572_v62  ;;  %11989 = vmatprep.subr.bf16.mxu1 %v14577_v42  ;;  %v14658_v62 = vld [vmem:[%s16699_s4 + $0x1514] ss:$8 sps:$4 sm:$0xff]   ;;  %v7668_v42 = vcombine.high %v17386_v31, %v17386_v31  ;;  %v14659_v31 = vld [vmem:[%s16699_s4 + $0x920] ss:$8 sps:$4 sm:$0xff]  }
 0x3c6   : > { %12481 = vmatprep.subr.bf16.mxu0 %v14580_v63  ;;  %v14656_v63 = vld [vmem:[%s16699_s4 + $0x1510] ss:$8 sps:$4 sm:$0xff]  }
 0x3c8   : > { %11990 = vmatpush1.bf16.msra.mxu1 %v14575_v53  ;;  %v14664_v53 = vld [vmem:[%s16699_s4 + $0x1524] ss:$8 sps:$4 sm:$0xff]  }
 0x3c9   : > { %12482 = vmatpush1.bf16.msra.mxu0 %v14578_v0  ;;  %11991 = vmatprep.subr.bf16.mxu1 %v14583_v33  ;;  %v14662_v0 = vld [vmem:[%s16699_s4 + $0x1520] ss:$8 sps:$4 sm:$0xff]   ;;  %v14667_v33 = vld [vmem:[%s16699_s4 + $0x934] ss:$8 sps:$4 sm:$0xff]  }
 0x3ca   : > { %12483 = vmatprep.subr.bf16.mxu0 %v14586_v1  ;;  %v14670_v1 = vld [vmem:[%s16699_s4 + $0x1534] ss:$8 sps:$4 sm:$0xff]  }
 0x3cc   : > { %11992 = vmatpush1.bf16.msra.mxu1 %v14581_v3  ;;  %v14665_v3 = vld [vmem:[%s16699_s4 + $0x930] ss:$8 sps:$4 sm:$0xff]  }
 0x3cd   : > { %12484 = vmatpush1.bf16.msra.mxu0 %v14584_v4  ;;  %11993 = vmatprep.subr.bf16.mxu1 %v14589_v6  ;;  %v14668_v4 = vld [vmem:[%s16699_s4 + $0x1530] ss:$8 sps:$4 sm:$0xff]   ;;  %v14673_v6 = vld [vmem:[%s16699_s4 + $0x944] ss:$8 sps:$4 sm:$0xff]  }
 0x3ce   : > { %12485 = vmatprep.subr.bf16.mxu0 %v14592_v7  ;;  %v14676_v7 = vld [vmem:[%s16699_s4 + $0x1544] ss:$8 sps:$4 sm:$0xff]  }
 0x3d0   : > { %11994 = vmatpush1.bf16.msra.mxu1 %v14587_v55  ;;  %v14671_v55 = vld [vmem:[%s16699_s4 + $0x940] ss:$8 sps:$4 sm:$0xff]  }
 0x3d1   : > { %12486 = vmatpush1.bf16.msra.mxu0 %v14590_v56  ;;  %11995 = vmatprep.subr.bf16.mxu1 %v14595_v13  ;;  %v14674_v56 = vld [vmem:[%s16699_s4 + $0x1540] ss:$8 sps:$4 sm:$0xff]   ;;  %v14679_v13 = vld [vmem:[%s16699_s4 + $0x954] ss:$8 sps:$4 sm:$0xff]  }
 0x3d2   : > { %12487 = vmatprep.subr.bf16.mxu0 %v14598_v14  ;;  %v14682_v14 = vld [vmem:[%s16699_s4 + $0x1554] ss:$8 sps:$4 sm:$0xff]  }
 0x3d4   : > { %11996 = vmatpush1.bf16.msra.mxu1 %v14593_v15  ;;  %v14677_v15 = vld [vmem:[%s16699_s4 + $0x950] ss:$8 sps:$4 sm:$0xff]  }
 0x3d5   : > { %12488 = vmatpush1.bf16.msra.mxu0 %v14596_v16  ;;  %11997 = vmatprep.subr.bf16.mxu1 %v14601_v57  ;;  %v14680_v16 = vld [vmem:[%s16699_s4 + $0x1550] ss:$8 sps:$4 sm:$0xff]   ;;  %v14685_v57 = vld [vmem:[%s16699_s4 + $0x964] ss:$8 sps:$4 sm:$0xff]  }
 0x3d6   : > { %12489 = vmatprep.subr.bf16.mxu0 %v14604_v17  ;;  %v14688_v17 = vld [vmem:[%s16699_s4 + $0x1564] ss:$8 sps:$4 sm:$0xff]  }
 0x3d8   : > { %11998 = vmatpush1.bf16.msra.mxu1 %v14599_v8  ;;  %v14683_v8 = vld [vmem:[%s16699_s4 + $0x960] ss:$8 sps:$4 sm:$0xff]  }
 0x3d9   : > { %12490 = vmatpush1.bf16.msra.mxu0 %v14602_v19  ;;  %11999 = vmatprep.subr.bf16.mxu1 %v14607_v10  ;;  %v14686_v19 = vld [vmem:[%s16699_s4 + $0x1560] ss:$8 sps:$4 sm:$0xff]   ;;  %v14691_v10 = vld [vmem:[%s16699_s4 + $0x974] ss:$8 sps:$4 sm:$0xff]  }
 0x3da   : > { %12491 = vmatprep.subr.bf16.mxu0 %v14610_v20  ;;  %v14694_v20 = vld [vmem:[%s16699_s4 + $0x1574] ss:$8 sps:$4 sm:$0xff]  }
 0x3dc   : > { %12000 = vmatpush1.bf16.msra.mxu1 %v14605_v21  ;;  %v14689_v21 = vld [vmem:[%s16699_s4 + $0x970] ss:$8 sps:$4 sm:$0xff]  }
 0x3dd   : > { %12492 = vmatpush1.bf16.msra.mxu0 %v14608_v22  ;;  %12001 = vmatprep.subr.bf16.mxu1 %v14613_v23  ;;  %v14692_v22 = vld [vmem:[%s16699_s4 + $0x1570] ss:$8 sps:$4 sm:$0xff]   ;;  %v14697_v23 = vld [vmem:[%s16699_s4 + $0x984] ss:$8 sps:$4 sm:$0xff]  }
 0x3de   : > { %12493 = vmatprep.subr.bf16.mxu0 %v14616_v24  ;;  %v14700_v24 = vld [vmem:[%s16699_s4 + $0x1584] ss:$8 sps:$4 sm:$0xff]  }
 0x3e0   : > { %12002 = vmatpush1.bf16.msra.mxu1 %v14611_v25  ;;  %v14695_v25 = vld [vmem:[%s16699_s4 + $0x980] ss:$8 sps:$4 sm:$0xff]  }
 0x3e1   : > { %12494 = vmatpush1.bf16.msra.mxu0 %v14614_v26  ;;  %12003 = vmatprep.subr.bf16.mxu1 %v14619_v27  ;;  %v14698_v26 = vld [vmem:[%s16699_s4 + $0x1580] ss:$8 sps:$4 sm:$0xff]   ;;  %v14703_v27 = vld [vmem:[%s16699_s4 + $0x994] ss:$8 sps:$4 sm:$0xff]  }
 0x3e2   : > { %12495 = vmatprep.subr.bf16.mxu0 %v14622_v28  ;;  %v14706_v28 = vld [vmem:[%s16699_s4 + $0x1594] ss:$8 sps:$4 sm:$0xff]  }
 0x3e4   : > { %12004 = vmatpush1.bf16.msra.mxu1 %v14617_v35  ;;  %v14701_v35 = vld [vmem:[%s16699_s4 + $0x990] ss:$8 sps:$4 sm:$0xff]  }
 0x3e5   : > { %12496 = vmatpush1.bf16.msra.mxu0 %v14620_v36  ;;  %12005 = vmatprep.subr.bf16.mxu1 %v14625_v37  ;;  %v14704_v36 = vld [vmem:[%s16699_s4 + $0x1590] ss:$8 sps:$4 sm:$0xff]   ;;  %v14709_v37 = vld [vmem:[%s16699_s4 + $0x9a4] ss:$8 sps:$4 sm:$0xff]  }
 0x3e6   : > { %12497 = vmatprep.subr.bf16.mxu0 %v14628_v38  ;;  %v14712_v38 = vld [vmem:[%s16699_s4 + $0x15a4] ss:$8 sps:$4 sm:$0xff]  }
 0x3e8   : > { %12006 = vmatpush1.bf16.msra.mxu1 %v14623_v18  ;;  %v14707_v18 = vld [vmem:[%s16699_s4 + $0x9a0] ss:$8 sps:$4 sm:$0xff]  }
 0x3e9   : > { %12498 = vmatpush1.bf16.msra.mxu0 %v14626_v40  ;;  %12007 = vmatprep.subr.bf16.mxu1 %v14631_v29  ;;  %v14710_v40 = vld [vmem:[%s16699_s4 + $0x15a0] ss:$8 sps:$4 sm:$0xff]   ;;  %v14715_v29 = vld [vmem:[%s16699_s4 + $0x9b4] ss:$8 sps:$4 sm:$0xff]  }
 0x3ea   : > { %12499 = vmatprep.subr.bf16.mxu0 %v14634_v5  ;;  %v14718_v5 = vld [vmem:[%s16699_s4 + $0x15b4] ss:$8 sps:$4 sm:$0xff]  }
 0x3ec   : > { %12008 = vmatpush1.bf16.msra.mxu1 %v14629_v11  ;;  %v14713_v11 = vld [vmem:[%s16699_s4 + $0x9b0] ss:$8 sps:$4 sm:$0xff]  }
 0x3ed   : > { %12500 = vmatpush1.bf16.msra.mxu0 %v14632_v9  ;;  %12009 = vmatprep.subr.bf16.mxu1 %v14637_v43  ;;  %v14716_v9 = vld [vmem:[%s16699_s4 + $0x15b0] ss:$8 sps:$4 sm:$0xff]   ;;  %v14721_v43 = vld [vmem:[%s16699_s4 + $0x9c4] ss:$8 sps:$4 sm:$0xff]  }
 0x3ee   : > { %12501 = vmatprep.subr.bf16.mxu0 %v14640_v44  ;;  %v14724_v44 = vld [vmem:[%s16699_s4 + $0x15c4] ss:$8 sps:$4 sm:$0xff]  }
 0x3f0   : > { %12010 = vmatpush1.bf16.msra.mxu1 %v14635_v45  ;;  %v14719_v45 = vld [vmem:[%s16699_s4 + $0x9c0] ss:$8 sps:$4 sm:$0xff]  }
 0x3f1   : > { %12502 = vmatpush1.bf16.msra.mxu0 %v14638_v46  ;;  %12011 = vmatprep.subr.bf16.mxu1 %v14643_v47  ;;  %v14722_v46 = vld [vmem:[%s16699_s4 + $0x15c0] ss:$8 sps:$4 sm:$0xff]   ;;  %v14727_v47 = vld [vmem:[%s16699_s4 + $0x9d4] ss:$8 sps:$4 sm:$0xff]  }
 0x3f2   : > { %12503 = vmatprep.subr.bf16.mxu0 %v14646_v48  ;;  %v14730_v48 = vld [vmem:[%s16699_s4 + $0x15d4] ss:$8 sps:$4 sm:$0xff]  }
 0x3f4   : > { %12012 = vmatpush1.bf16.msra.mxu1 %v14641_v32  ;;  %v14725_v32 = vld [vmem:[%s16699_s4 + $0x9d0] ss:$8 sps:$4 sm:$0xff]  }
 0x3f5   : > { %12504 = vmatpush1.bf16.msra.mxu0 %v14644_v50  ;;  %12022 = vmatprep.subr.bf16.mxu1 %v14649_v51  ;;  %v14728_v50 = vld [vmem:[%s16699_s4 + $0x15d0] ss:$8 sps:$4 sm:$0xff]   ;;  %v14733_v51 = vld [vmem:[%s16699_s4 + $0x9e4] ss:$8 sps:$4 sm:$0xff]  }
 0x3f6   : > { %12514 = vmatprep.subr.bf16.mxu0 %v14652_v52  ;;  %v14736_v52 = vld [vmem:[%s16699_s4 + $0x15e4] ss:$8 sps:$4 sm:$0xff]  }
 0x3f7   : > { %12014 = vmatmul.mubr.bf16.vlgmr.msra.gmra.mrb[0].mxu1 %v17452_v34 }
 0x3f8   : > { %12506 = vmatmul.mubr.bf16.vlgmr.msra.gmra.mrb[0].mxu0 %v17456_v54  ;;  %12023 = vmatpush1.bf16.msra.mxu1 %v14647_v59  ;;  %v7474_v59 = vcombine.high %v17349_v12, %v17349_v12  ;;  %v14737_v12 = vld [vmem:[%s16699_s4 + $0x9f0] ss:$8 sps:$4 sm:$0xff]  }
 0x3f9   : > { %12515 = vmatpush1.bf16.msra.mxu0 %v14650_v61  ;;  %12024 = vmatprep.subr.bf16.mxu1 %v14655_v41  ;;  %v7621_v61 = vcombine.high %v17352_v30, %v17352_v30  ;;  %v14731_v41 = vld [vmem:[%s16699_s4 + $0x9e0] ss:$8 sps:$4 sm:$0xff]   ;;  %v14740_v30 = vld [vmem:[%s16699_s4 + $0x15f0] ss:$8 sps:$4 sm:$0xff]  }
 0x3fa   : > { %12516 = vmatprep.subr.bf16.mxu0 %v14658_v62  ;;  %12054 = vmatprep.mubr.bf16.mxu1 %v7521_v58  ;;  %v14734_v62 = vld [vmem:[%s16699_s4 + $0x15e0] ss:$8 sps:$4 sm:$0xff]   ;;  %v14739_v58 = vld [vmem:[%s16699_s4 + $0x9f4] ss:$8 sps:$4 sm:$0xff]  }
 0x3fb   : > { %12546 = vmatprep.mubr.bf16.mxu0 %v7668_v42  ;;  %v14742_v42 = vld [vmem:[%s16699_s4 + $0x15f4] ss:$8 sps:$4 sm:$0xff]  }
 0x3fc   : > { %12025 = vmatpush1.bf16.msra.mxu1 %v14653_v39  ;;  %v17529_v39 = vrot.slane %v7474_v59, %v16750_v2  ;;  %v14809_v59 = vld [vmem:[%s16699_s4 + $0xab0] ss:$8 sps:$4 sm:$0xff]  }
 0x3fd   : > { %12517 = vmatpush1.bf16.msra.mxu0 %v14656_v63  ;;  %12026 = vmatprep.subr.bf16.mxu1 %v14661_v49  ;;  %v17532_v63 = vrot.slane %v7621_v61, %v16750_v2  ;;  %v14745_v49 = vld [vmem:[%s16699_s4 + $0xa04] ss:$8 sps:$4 sm:$0xff]   ;;  %v14812_v61 = vld [vmem:[%s16699_s4 + $0x16b0] ss:$8 sps:$4 sm:$0xff]  }
 0x3fe   : > { %12518 = vmatprep.subr.bf16.mxu0 %v14664_v53  ;;  %v14748_v53 = vld [vmem:[%s16699_s4 + $0x1604] ss:$8 sps:$4 sm:$0xff]  }
 0x400   : > { %12027 = vmatpush1.bf16.msra.mxu1 %v14659_v31  ;;  %v7490_v31 = vcombine.high %v17529_v39, %v17529_v39 }
 0x401   : > { %12519 = vmatpush1.bf16.msra.mxu0 %v14662_v0  ;;  %12028 = vmatprep.subr.bf16.mxu1 %v14667_v33  ;;  %v7637_v0 = vcombine.high %v17532_v63, %v17532_v63  ;;  %v7519_v33 = vcombine.high %v17452_v34, %v17452_v34 }
 0x402   : > { %12520 = vmatprep.subr.bf16.mxu0 %v14670_v1  ;;  %v7666_v1 = vcombine.high %v17456_v54, %v17456_v54  ;;  %v14749_v54 = vld [vmem:[%s16699_s4 + $0xa10] ss:$8 sps:$4 sm:$0xff]  }
 0x403   : > { %v17554_v34 = vrot.slane %v7637_v0, %v16750_v2  ;;  %v14832_v0 = vld [vmem:[%s16699_s4 + $0x16e4] ss:$8 sps:$4 sm:$0xff]  }
 0x404   : > { %12029 = vmatpush1.bf16.msra.mxu1 %v14665_v3  ;;  %v14743_v3 = vld [vmem:[%s16699_s4 + $0xa00] ss:$8 sps:$4 sm:$0xff]  }
 0x405   : > { %12521 = vmatpush1.bf16.msra.mxu0 %v14668_v4  ;;  %12030 = vmatprep.subr.bf16.mxu1 %v14673_v6  ;;  %v14746_v4 = vld [vmem:[%s16699_s4 + $0x1600] ss:$8 sps:$4 sm:$0xff]   ;;  %v14751_v6 = vld [vmem:[%s16699_s4 + $0xa14] ss:$8 sps:$4 sm:$0xff]  }
 0x406   : > { %12522 = vmatprep.subr.bf16.mxu0 %v14676_v7  ;;  %v14754_v7 = vld [vmem:[%s16699_s4 + $0x1614] ss:$8 sps:$4 sm:$0xff]  }
 0x408   : > { %12031 = vmatpush1.bf16.msra.mxu1 %v14671_v55  ;;  %v17551_v55 = vrot.slane %v7490_v31, %v16750_v2  ;;  %v14829_v31 = vld [vmem:[%s16699_s4 + $0xae4] ss:$8 sps:$4 sm:$0xff]  }
 0x409   : > { %12523 = vmatpush1.bf16.msra.mxu0 %v14674_v56  ;;  %12032 = vmatprep.subr.bf16.mxu1 %v14679_v13  ;;  %v14752_v56 = vld [vmem:[%s16699_s4 + $0x1610] ss:$8 sps:$4 sm:$0xff]   ;;  %v14757_v13 = vld [vmem:[%s16699_s4 + $0xa24] ss:$8 sps:$4 sm:$0xff]  }
 0x40a   : > { %12524 = vmatprep.subr.bf16.mxu0 %v14682_v14  ;;  %v14760_v14 = vld [vmem:[%s16699_s4 + $0x1624] ss:$8 sps:$4 sm:$0xff]  }
 0x40c   : > { %12033 = vmatpush1.bf16.msra.mxu1 %v14677_v15  ;;  %v14755_v15 = vld [vmem:[%s16699_s4 + $0xa20] ss:$8 sps:$4 sm:$0xff]  }
 0x40d   : > { %12525 = vmatpush1.bf16.msra.mxu0 %v14680_v16  ;;  %12034 = vmatprep.subr.bf16.mxu1 %v14685_v57  ;;  %v14758_v16 = vld [vmem:[%s16699_s4 + $0x1620] ss:$8 sps:$4 sm:$0xff]   ;;  %v14763_v57 = vld [vmem:[%s16699_s4 + $0xa34] ss:$8 sps:$4 sm:$0xff]  }
 0x40e   : > { %12526 = vmatprep.subr.bf16.mxu0 %v14688_v17  ;;  %v14766_v17 = vld [vmem:[%s16699_s4 + $0x1634] ss:$8 sps:$4 sm:$0xff]  }
 0x410   : > { %12035 = vmatpush1.bf16.msra.mxu1 %v14683_v8  ;;  %v14761_v8 = vld [vmem:[%s16699_s4 + $0xa30] ss:$8 sps:$4 sm:$0xff]  }
 0x411   : > { %12527 = vmatpush1.bf16.msra.mxu0 %v14686_v19  ;;  %12036 = vmatprep.subr.bf16.mxu1 %v14691_v10  ;;  %v14764_v19 = vld [vmem:[%s16699_s4 + $0x1630] ss:$8 sps:$4 sm:$0xff]   ;;  %v14769_v10 = vld [vmem:[%s16699_s4 + $0xa44] ss:$8 sps:$4 sm:$0xff]  }
 0x412   : > { %12528 = vmatprep.subr.bf16.mxu0 %v14694_v20  ;;  %v14772_v20 = vld [vmem:[%s16699_s4 + $0x1644] ss:$8 sps:$4 sm:$0xff]  }
 0x414   : > { %12037 = vmatpush1.bf16.msra.mxu1 %v14689_v21  ;;  %v14767_v21 = vld [vmem:[%s16699_s4 + $0xa40] ss:$8 sps:$4 sm:$0xff]  }
 0x415   : > { %12529 = vmatpush1.bf16.msra.mxu0 %v14692_v22  ;;  %12038 = vmatprep.subr.bf16.mxu1 %v14697_v23  ;;  %v14770_v22 = vld [vmem:[%s16699_s4 + $0x1640] ss:$8 sps:$4 sm:$0xff]   ;;  %v14775_v23 = vld [vmem:[%s16699_s4 + $0xa54] ss:$8 sps:$4 sm:$0xff]  }
 0x416   : > { %12530 = vmatprep.subr.bf16.mxu0 %v14700_v24  ;;  %v14778_v24 = vld [vmem:[%s16699_s4 + $0x1654] ss:$8 sps:$4 sm:$0xff]  }
 0x418   : > { %12039 = vmatpush1.bf16.msra.mxu1 %v14695_v25  ;;  %v14773_v25 = vld [vmem:[%s16699_s4 + $0xa50] ss:$8 sps:$4 sm:$0xff]  }
 0x419   : > { %12531 = vmatpush1.bf16.msra.mxu0 %v14698_v26  ;;  %12040 = vmatprep.subr.bf16.mxu1 %v14703_v27  ;;  %v14776_v26 = vld [vmem:[%s16699_s4 + $0x1650] ss:$8 sps:$4 sm:$0xff]   ;;  %v14781_v27 = vld [vmem:[%s16699_s4 + $0xa64] ss:$8 sps:$4 sm:$0xff]  }
 0x41a   : > { %12532 = vmatprep.subr.bf16.mxu0 %v14706_v28  ;;  %v14784_v28 = vld [vmem:[%s16699_s4 + $0x1664] ss:$8 sps:$4 sm:$0xff]  }
 0x41c   : > { %12041 = vmatpush1.bf16.msra.mxu1 %v14701_v35  ;;  %v14779_v35 = vld [vmem:[%s16699_s4 + $0xa60] ss:$8 sps:$4 sm:$0xff]  }
 0x41d   : > { %12533 = vmatpush1.bf16.msra.mxu0 %v14704_v36  ;;  %12042 = vmatprep.subr.bf16.mxu1 %v14709_v37  ;;  %v14782_v36 = vld [vmem:[%s16699_s4 + $0x1660] ss:$8 sps:$4 sm:$0xff]   ;;  %v14787_v37 = vld [vmem:[%s16699_s4 + $0xa74] ss:$8 sps:$4 sm:$0xff]  }
 0x41e   : > { %12534 = vmatprep.subr.bf16.mxu0 %v14712_v38  ;;  %v14790_v38 = vld [vmem:[%s16699_s4 + $0x1674] ss:$8 sps:$4 sm:$0xff]  }
 0x420   : > { %12043 = vmatpush1.bf16.msra.mxu1 %v14707_v18  ;;  %v14785_v18 = vld [vmem:[%s16699_s4 + $0xa70] ss:$8 sps:$4 sm:$0xff]  }
 0x421   : > { %12535 = vmatpush1.bf16.msra.mxu0 %v14710_v40  ;;  %12044 = vmatprep.subr.bf16.mxu1 %v14715_v29  ;;  %v14788_v40 = vld [vmem:[%s16699_s4 + $0x1670] ss:$8 sps:$4 sm:$0xff]   ;;  %v14793_v29 = vld [vmem:[%s16699_s4 + $0xa84] ss:$8 sps:$4 sm:$0xff]  }
 0x422   : > { %12536 = vmatprep.subr.bf16.mxu0 %v14718_v5  ;;  %v14796_v5 = vld [vmem:[%s16699_s4 + $0x1684] ss:$8 sps:$4 sm:$0xff]  }
 0x424   : > { %12045 = vmatpush1.bf16.msra.mxu1 %v14713_v11  ;;  %v14791_v11 = vld [vmem:[%s16699_s4 + $0xa80] ss:$8 sps:$4 sm:$0xff]  }
 0x425   : > { %12537 = vmatpush1.bf16.msra.mxu0 %v14716_v9  ;;  %12046 = vmatprep.subr.bf16.mxu1 %v14721_v43  ;;  %v14794_v9 = vld [vmem:[%s16699_s4 + $0x1680] ss:$8 sps:$4 sm:$0xff]   ;;  %v14799_v43 = vld [vmem:[%s16699_s4 + $0xa94] ss:$8 sps:$4 sm:$0xff]  }
 0x426   : > { %12538 = vmatprep.subr.bf16.mxu0 %v14724_v44  ;;  %v14802_v44 = vld [vmem:[%s16699_s4 + $0x1694] ss:$8 sps:$4 sm:$0xff]  }
 0x428   : > { %12047 = vmatpush1.bf16.msra.mxu1 %v14719_v45  ;;  %v14797_v45 = vld [vmem:[%s16699_s4 + $0xa90] ss:$8 sps:$4 sm:$0xff]  }
 0x429   : > { %12539 = vmatpush1.bf16.msra.mxu0 %v14722_v46  ;;  %12048 = vmatprep.subr.bf16.mxu1 %v14727_v47  ;;  %v14800_v46 = vld [vmem:[%s16699_s4 + $0x1690] ss:$8 sps:$4 sm:$0xff]   ;;  %v14805_v47 = vld [vmem:[%s16699_s4 + $0xaa4] ss:$8 sps:$4 sm:$0xff]  }
 0x42a   : > { %12540 = vmatprep.subr.bf16.mxu0 %v14730_v48  ;;  %v14808_v48 = vld [vmem:[%s16699_s4 + $0x16a4] ss:$8 sps:$4 sm:$0xff]  }
 0x42c   : > { %12049 = vmatpush1.bf16.msra.mxu1 %v14725_v32  ;;  %v14803_v32 = vld [vmem:[%s16699_s4 + $0xaa0] ss:$8 sps:$4 sm:$0xff]  }
 0x42d   : > { %12541 = vmatpush1.bf16.msra.mxu0 %v14728_v50  ;;  %12050 = vmatprep.subr.bf16.mxu1 %v14733_v51  ;;  %v14806_v50 = vld [vmem:[%s16699_s4 + $0x16a0] ss:$8 sps:$4 sm:$0xff]   ;;  %v14811_v51 = vld [vmem:[%s16699_s4 + $0xab4] ss:$8 sps:$4 sm:$0xff]  }
 0x42e   : > { %12542 = vmatprep.subr.bf16.mxu0 %v14736_v52  ;;  %v14814_v52 = vld [vmem:[%s16699_s4 + $0x16b4] ss:$8 sps:$4 sm:$0xff]  }
 0x430   : > { %12051 = vmatpush1.bf16.msra.mxu1 %v14731_v41  ;;  %v14817_v41 = vld [vmem:[%s16699_s4 + $0xac4] ss:$8 sps:$4 sm:$0xff]  }
 0x431   : > { %12543 = vmatpush1.bf16.msra.mxu0 %v14734_v62  ;;  %12052 = vmatprep.subr.bf16.mxu1 %v14739_v58  ;;  %v14820_v62 = vld [vmem:[%s16699_s4 + $0x16c4] ss:$8 sps:$4 sm:$0xff]   ;;  %v14815_v58 = vld [vmem:[%s16699_s4 + $0xac0] ss:$8 sps:$4 sm:$0xff]  }
 0x432   : > { %12544 = vmatprep.subr.bf16.mxu0 %v14742_v42  ;;  %v14818_v42 = vld [vmem:[%s16699_s4 + $0x16c0] ss:$8 sps:$4 sm:$0xff]  }
 0x434   : > { %12053 = vmatpush1.bf16.msra.mxu1 %v14737_v12  ;;  %v14823_v12 = vld [vmem:[%s16699_s4 + $0xad4] ss:$8 sps:$4 sm:$0xff]  }
 0x435   : > { %12545 = vmatpush1.bf16.msra.mxu0 %v14740_v30  ;;  %12063 = vmatprep.subr.bf16.mxu1 %v14745_v49  ;;  %v14826_v30 = vld [vmem:[%s16699_s4 + $0x16d4] ss:$8 sps:$4 sm:$0xff]   ;;  %v14821_v49 = vld [vmem:[%s16699_s4 + $0xad0] ss:$8 sps:$4 sm:$0xff]  }
 0x436   : > { %12555 = vmatprep.subr.bf16.mxu0 %v14748_v53  ;;  %v14824_v53 = vld [vmem:[%s16699_s4 + $0x16d0] ss:$8 sps:$4 sm:$0xff]  }
 0x437   : > { %12055 = vmatmul.mubr.bf16.vlgmr.msra.gmra.mrb[0].mxu1 %v7519_v33  ;;  %v14827_v33 = vld [vmem:[%s16699_s4 + $0xae0] ss:$8 sps:$4 sm:$0xff]  }
 0x438   : > { %12547 = vmatmul.mubr.bf16.vlgmr.msra.gmra.mrb[0].mxu0 %v7666_v1  ;;  %12064 = vmatpush1.bf16.msra.mxu1 %v14743_v3  ;;  %v14830_v1 = vld [vmem:[%s16699_s4 + $0x16e0] ss:$8 sps:$4 sm:$0xff]   ;;  %v14835_v3 = vld [vmem:[%s16699_s4 + $0xaf4] ss:$8 sps:$4 sm:$0xff]  }
 0x439   : > { %12556 = vmatpush1.bf16.msra.mxu0 %v14746_v4  ;;  %12065 = vmatprep.subr.bf16.mxu1 %v14751_v6  ;;  %v14838_v4 = vld [vmem:[%s16699_s4 + $0x16f4] ss:$8 sps:$4 sm:$0xff]   ;;  %v14833_v6 = vld [vmem:[%s16699_s4 + $0xaf0] ss:$8 sps:$4 sm:$0xff]  }
 0x43a   : > { %12557 = vmatprep.subr.bf16.mxu0 %v14754_v7  ;;  %12095 = vmatprep.mubr.bf16.mxu1 %v17551_v55  ;;  %v14836_v7 = vld [vmem:[%s16699_s4 + $0x16f0] ss:$8 sps:$4 sm:$0xff]  }
 0x43b   : > { %12587 = vmatprep.mubr.bf16.mxu0 %v17554_v34 }
 0x43c   : > { %12066 = vmatpush1.bf16.msra.mxu1 %v14749_v54  ;;  %v14842_v54 = vld [vmem:[%s16699_s4 + $0xb04] ss:$8 sps:$4 sm:$0xff]  }
 0x43d   : > { %12558 = vmatpush1.bf16.msra.mxu0 %v14752_v56  ;;  %12067 = vmatprep.subr.bf16.mxu1 %v14757_v13  ;;  %v14846_v56 = vld [vmem:[%s16699_s4 + $0x1704] ss:$8 sps:$4 sm:$0xff]   ;;  %v17620_v13 = vrot.slane %v17529_v39, %v16750_v2  ;;  %v7522_v39 = vcombine.high %v17551_v55, %v17551_v55 }
 0x43e   : > { %12559 = vmatprep.subr.bf16.mxu0 %v14760_v14  ;;  %v17624_v14 = vrot.slane %v17532_v63, %v16750_v2  ;;  %v14847_v63 = vld [vmem:[%s16699_s4 + $0xb10] ss:$8 sps:$4 sm:$0xff]   ;;  %v14855_v55 = vld [vmem:[%s16699_s4 + $0xb24] ss:$8 sps:$4 sm:$0xff]  }
 0x440   : > { %12068 = vmatpush1.bf16.msra.mxu1 %v14755_v15  ;;  %v14840_v15 = vld [vmem:[%s16699_s4 + $0xb00] ss:$8 sps:$4 sm:$0xff]  }
 0x441   : > { %12560 = vmatpush1.bf16.msra.mxu0 %v14758_v16  ;;  %12069 = vmatprep.subr.bf16.mxu1 %v14763_v57  ;;  %v14844_v16 = vld [vmem:[%s16699_s4 + $0x1700] ss:$8 sps:$4 sm:$0xff]   ;;  %v14849_v57 = vld [vmem:[%s16699_s4 + $0xb14] ss:$8 sps:$4 sm:$0xff]  }
 0x442   : > { %12561 = vmatprep.subr.bf16.mxu0 %v14766_v17  ;;  %v14852_v17 = vld [vmem:[%s16699_s4 + $0x1714] ss:$8 sps:$4 sm:$0xff]  }
 0x444   : > { %12070 = vmatpush1.bf16.msra.mxu1 %v14761_v8  ;;  %v7669_v8 = vcombine.high %v17554_v34, %v17554_v34  ;;  %v14853_v34 = vld [vmem:[%s16699_s4 + $0xb20] ss:$8 sps:$4 sm:$0xff]  }
 0x445   : > { %12562 = vmatpush1.bf16.msra.mxu0 %v14764_v19  ;;  %12071 = vmatprep.subr.bf16.mxu1 %v14769_v10  ;;  %v14850_v19 = vld [vmem:[%s16699_s4 + $0x1710] ss:$8 sps:$4 sm:$0xff]   ;;  %v14858_v10 = vld [vmem:[%s16699_s4 + $0x1724] ss:$8 sps:$4 sm:$0xff]  }
 0x446   : > { %12563 = vmatprep.subr.bf16.mxu0 %v14772_v20  ;;  %v14856_v20 = vld [vmem:[%s16699_s4 + $0x1720] ss:$8 sps:$4 sm:$0xff]  }
 0x448   : > { %12072 = vmatpush1.bf16.msra.mxu1 %v14767_v21  ;;  %v14861_v21 = vld [vmem:[%s16699_s4 + $0xb34] ss:$8 sps:$4 sm:$0xff]  }
 0x449   : > { %12564 = vmatpush1.bf16.msra.mxu0 %v14770_v22  ;;  %12073 = vmatprep.subr.bf16.mxu1 %v14775_v23  ;;  %v14864_v22 = vld [vmem:[%s16699_s4 + $0x1734] ss:$8 sps:$4 sm:$0xff]   ;;  %v14859_v23 = vld [vmem:[%s16699_s4 + $0xb30] ss:$8 sps:$4 sm:$0xff]  }
 0x44a   : > { %12565 = vmatprep.subr.bf16.mxu0 %v14778_v24  ;;  %v14862_v24 = vld [vmem:[%s16699_s4 + $0x1730] ss:$8 sps:$4 sm:$0xff]  }
 0x44c   : > { %12074 = vmatpush1.bf16.msra.mxu1 %v14773_v25  ;;  %v14867_v25 = vld [vmem:[%s16699_s4 + $0xb44] ss:$8 sps:$4 sm:$0xff]  }
 0x44d   : > { %12566 = vmatpush1.bf16.msra.mxu0 %v14776_v26  ;;  %12075 = vmatprep.subr.bf16.mxu1 %v14781_v27  ;;  %v14870_v26 = vld [vmem:[%s16699_s4 + $0x1744] ss:$8 sps:$4 sm:$0xff]   ;;  %v14865_v27 = vld [vmem:[%s16699_s4 + $0xb40] ss:$8 sps:$4 sm:$0xff]  }
 0x44e   : > { %12567 = vmatprep.subr.bf16.mxu0 %v14784_v28  ;;  %v14868_v28 = vld [vmem:[%s16699_s4 + $0x1740] ss:$8 sps:$4 sm:$0xff]  }
 0x450   : > { %12076 = vmatpush1.bf16.msra.mxu1 %v14779_v35  ;;  %v14873_v35 = vld [vmem:[%s16699_s4 + $0xb54] ss:$8 sps:$4 sm:$0xff]  }
 0x451   : > { %12568 = vmatpush1.bf16.msra.mxu0 %v14782_v36  ;;  %12077 = vmatprep.subr.bf16.mxu1 %v14787_v37  ;;  %v14876_v36 = vld [vmem:[%s16699_s4 + $0x1754] ss:$8 sps:$4 sm:$0xff]   ;;  %v14871_v37 = vld [vmem:[%s16699_s4 + $0xb50] ss:$8 sps:$4 sm:$0xff]  }
 0x452   : > { %12569 = vmatprep.subr.bf16.mxu0 %v14790_v38  ;;  %v14874_v38 = vld [vmem:[%s16699_s4 + $0x1750] ss:$8 sps:$4 sm:$0xff]  }
 0x454   : > { %12078 = vmatpush1.bf16.msra.mxu1 %v14785_v18  ;;  %v14879_v18 = vld [vmem:[%s16699_s4 + $0xb64] ss:$8 sps:$4 sm:$0xff]  }
 0x455   : > { %12570 = vmatpush1.bf16.msra.mxu0 %v14788_v40  ;;  %12079 = vmatprep.subr.bf16.mxu1 %v14793_v29  ;;  %v14882_v40 = vld [vmem:[%s16699_s4 + $0x1764] ss:$8 sps:$4 sm:$0xff]   ;;  %v14877_v29 = vld [vmem:[%s16699_s4 + $0xb60] ss:$8 sps:$4 sm:$0xff]  }
 0x456   : > { %12571 = vmatprep.subr.bf16.mxu0 %v14796_v5  ;;  %v14880_v5 = vld [vmem:[%s16699_s4 + $0x1760] ss:$8 sps:$4 sm:$0xff]  }
 0x458   : > { %12080 = vmatpush1.bf16.msra.mxu1 %v14791_v11  ;;  %v14885_v11 = vld [vmem:[%s16699_s4 + $0xb74] ss:$8 sps:$4 sm:$0xff]  }
 0x459   : > { %12572 = vmatpush1.bf16.msra.mxu0 %v14794_v9  ;;  %12081 = vmatprep.subr.bf16.mxu1 %v14799_v43  ;;  %v14888_v9 = vld [vmem:[%s16699_s4 + $0x1774] ss:$8 sps:$4 sm:$0xff]   ;;  %v14883_v43 = vld [vmem:[%s16699_s4 + $0xb70] ss:$8 sps:$4 sm:$0xff]  }
 0x45a   : > { %12573 = vmatprep.subr.bf16.mxu0 %v14802_v44  ;;  %v14886_v44 = vld [vmem:[%s16699_s4 + $0x1770] ss:$8 sps:$4 sm:$0xff]  }
 0x45c   : > { %12082 = vmatpush1.bf16.msra.mxu1 %v14797_v45  ;;  %v14891_v45 = vld [vmem:[%s16699_s4 + $0xb84] ss:$8 sps:$4 sm:$0xff]  }
 0x45d   : > { %12574 = vmatpush1.bf16.msra.mxu0 %v14800_v46  ;;  %12083 = vmatprep.subr.bf16.mxu1 %v14805_v47  ;;  %v14894_v46 = vld [vmem:[%s16699_s4 + $0x1784] ss:$8 sps:$4 sm:$0xff]   ;;  %v14889_v47 = vld [vmem:[%s16699_s4 + $0xb80] ss:$8 sps:$4 sm:$0xff]  }
 0x45e   : > { %12575 = vmatprep.subr.bf16.mxu0 %v14808_v48  ;;  %v14892_v48 = vld [vmem:[%s16699_s4 + $0x1780] ss:$8 sps:$4 sm:$0xff]  }
 0x460   : > { %12084 = vmatpush1.bf16.msra.mxu1 %v14803_v32  ;;  %v14897_v32 = vld [vmem:[%s16699_s4 + $0xb94] ss:$8 sps:$4 sm:$0xff]  }
 0x461   : > { %12576 = vmatpush1.bf16.msra.mxu0 %v14806_v50  ;;  %12085 = vmatprep.subr.bf16.mxu1 %v14811_v51  ;;  %v14900_v50 = vld [vmem:[%s16699_s4 + $0x1794] ss:$8 sps:$4 sm:$0xff]   ;;  %v14895_v51 = vld [vmem:[%s16699_s4 + $0xb90] ss:$8 sps:$4 sm:$0xff]  }
 0x462   : > { %12577 = vmatprep.subr.bf16.mxu0 %v14814_v52  ;;  %v14898_v52 = vld [vmem:[%s16699_s4 + $0x1790] ss:$8 sps:$4 sm:$0xff]  }
 0x464   : > { %12086 = vmatpush1.bf16.msra.mxu1 %v14809_v59  ;;  %v14903_v59 = vld [vmem:[%s16699_s4 + $0xba4] ss:$8 sps:$4 sm:$0xff]  }
 0x465   : > { %12578 = vmatpush1.bf16.msra.mxu0 %v14812_v61  ;;  %12087 = vmatprep.subr.bf16.mxu1 %v14817_v41  ;;  %v14906_v61 = vld [vmem:[%s16699_s4 + $0x17a4] ss:$8 sps:$4 sm:$0xff]   ;;  %v14901_v41 = vld [vmem:[%s16699_s4 + $0xba0] ss:$8 sps:$4 sm:$0xff]  }
 0x466   : > { %12579 = vmatprep.subr.bf16.mxu0 %v14820_v62  ;;  %v14904_v62 = vld [vmem:[%s16699_s4 + $0x17a0] ss:$8 sps:$4 sm:$0xff]  }
 0x468   : > { %12088 = vmatpush1.bf16.msra.mxu1 %v14815_v58  ;;  %v14909_v58 = vld [vmem:[%s16699_s4 + $0xbb4] ss:$8 sps:$4 sm:$0xff]  }
 0x469   : > { %12580 = vmatpush1.bf16.msra.mxu0 %v14818_v42  ;;  %12089 = vmatprep.subr.bf16.mxu1 %v14823_v12  ;;  %v14912_v42 = vld [vmem:[%s16699_s4 + $0x17b4] ss:$8 sps:$4 sm:$0xff]   ;;  %v14907_v12 = vld [vmem:[%s16699_s4 + $0xbb0] ss:$8 sps:$4 sm:$0xff]  }
 0x46a   : > { %12581 = vmatprep.subr.bf16.mxu0 %v14826_v30  ;;  %v14910_v30 = vld [vmem:[%s16699_s4 + $0x17b0] ss:$8 sps:$4 sm:$0xff]  }
 0x46c   : > { %12090 = vmatpush1.bf16.msra.mxu1 %v14821_v49  ;;  %v14915_v49 = vld [vmem:[%s16699_s4 + $0xbc4] ss:$8 sps:$4 sm:$0xff]  }
 0x46d   : > { %12582 = vmatpush1.bf16.msra.mxu0 %v14824_v53  ;;  %12091 = vmatprep.subr.bf16.mxu1 %v14829_v31  ;;  %v14918_v53 = vld [vmem:[%s16699_s4 + $0x17c4] ss:$8 sps:$4 sm:$0xff]   ;;  %v14913_v31 = vld [vmem:[%s16699_s4 + $0xbc0] ss:$8 sps:$4 sm:$0xff]  }
 0x46e   : > { %12583 = vmatprep.subr.bf16.mxu0 %v14832_v0  ;;  %v14916_v0 = vld [vmem:[%s16699_s4 + $0x17c0] ss:$8 sps:$4 sm:$0xff]  }
 0x470   : > { %12092 = vmatpush1.bf16.msra.mxu1 %v14827_v33  ;;  %v14921_v33 = vld [vmem:[%s16699_s4 + $0xbd4] ss:$8 sps:$4 sm:$0xff]  }
 0x471   : > { %12584 = vmatpush1.bf16.msra.mxu0 %v14830_v1  ;;  %12093 = vmatprep.subr.bf16.mxu1 %v14835_v3  ;;  %v14924_v1 = vld [vmem:[%s16699_s4 + $0x17d4] ss:$8 sps:$4 sm:$0xff]   ;;  %v14919_v3 = vld [vmem:[%s16699_s4 + $0xbd0] ss:$8 sps:$4 sm:$0xff]  }
 0x472   : > { %12585 = vmatprep.subr.bf16.mxu0 %v14838_v4  ;;  %v14922_v4 = vld [vmem:[%s16699_s4 + $0x17d0] ss:$8 sps:$4 sm:$0xff]  }
 0x474   : > { %12094 = vmatpush1.bf16.msra.mxu1 %v14833_v6  ;;  %v14927_v6 = vld [vmem:[%s16699_s4 + $0xbe4] ss:$8 sps:$4 sm:$0xff]  }
 0x475   : > { %12586 = vmatpush1.bf16.msra.mxu0 %v14836_v7  ;;  %12104 = vmatprep.subr.bf16.mxu1 %v14842_v54  ;;  %v14930_v7 = vld [vmem:[%s16699_s4 + $0x17e4] ss:$8 sps:$4 sm:$0xff]   ;;  %v14925_v54 = vld [vmem:[%s16699_s4 + $0xbe0] ss:$8 sps:$4 sm:$0xff]  }
 0x476   : > { %12596 = vmatprep.subr.bf16.mxu0 %v14846_v56  ;;  %v14928_v56 = vld [vmem:[%s16699_s4 + $0x17e0] ss:$8 sps:$4 sm:$0xff]  }
 0x477   : > { %12096 = vmatmul.mubr.bf16.vlgmr.msra.gmra.mrb[0].mxu1 %v17620_v13 }
 0x478   : > { %12588 = vmatmul.mubr.bf16.vlgmr.msra.gmra.mrb[0].mxu0 %v17624_v14  ;;  %12105 = vmatpush1.bf16.msra.mxu1 %v14840_v15  ;;  %v14933_v15 = vld [vmem:[%s16699_s4 + $0xbf4] ss:$8 sps:$4 sm:$0xff]  }
 0x479   : > { %12597 = vmatpush1.bf16.msra.mxu0 %v14844_v16  ;;  %12106 = vmatprep.subr.bf16.mxu1 %v14849_v57  ;;  %v14936_v16 = vld [vmem:[%s16699_s4 + $0x17f4] ss:$8 sps:$4 sm:$0xff]   ;;  %v14931_v57 = vld [vmem:[%s16699_s4 + $0xbf0] ss:$8 sps:$4 sm:$0xff]  }
 0x47a   : > { %12598 = vmatprep.subr.bf16.mxu0 %v14852_v17  ;;  %12136 = vmatprep.mubr.bf16.mxu1 %v7522_v39  ;;  %v14934_v17 = vld [vmem:[%s16699_s4 + $0x17f0] ss:$8 sps:$4 sm:$0xff]   ;;  %v14939_v39 = vld [vmem:[%s16699_s4 + $0x1804] ss:$8 sps:$4 sm:$0xff]  }
 0x47b   : > { %12628 = vmatprep.mubr.bf16.mxu0 %v7669_v8  ;;  %v7520_v8 = vcombine.high %v17620_v13, %v17620_v13  ;;  %v14945_v13 = vld [vmem:[%s16699_s4 + $0x1824] ss:$8 sps:$4 sm:$0xff]  }
 0x47c   : > { %12107 = vmatpush1.bf16.msra.mxu1 %v14847_v63  ;;  %v7667_v63 = vcombine.high %v17624_v14, %v17624_v14  ;;  %v14943_v14 = vld [vmem:[%s16699_s4 + $0x1820] ss:$8 sps:$4 sm:$0xff]  }
 0x47d   : > { %12599 = vmatpush1.bf16.msra.mxu0 %v14850_v19  ;;  %12108 = vmatprep.subr.bf16.mxu1 %v14855_v55  ;;  %v14937_v19 = vld [vmem:[%s16699_s4 + $0x1800] ss:$8 sps:$4 sm:$0xff]   ;;  %v14942_v55 = vld [vmem:[%s16699_s4 + $0x1814] ss:$8 sps:$4 sm:$0xff]  }
 0x47e   : > { %12600 = vmatprep.subr.bf16.mxu0 %v14858_v10  ;;  %v14940_v10 = vld [vmem:[%s16699_s4 + $0x1810] ss:$8 sps:$4 sm:$0xff]  }
 0x480   : > { %12109 = vmatpush1.bf16.msra.mxu1 %v14853_v34  ;;  %v15023_v34 = vmov 0  }
 0x481   : > { %12601 = vmatpush1.bf16.msra.mxu0 %v14856_v20  ;;  %12110 = vmatprep.subr.bf16.mxu1 %v14861_v21  ;;  %v14948_v20 = vld [vmem:[%s16699_s4 + $0x1834] ss:$8 sps:$4 sm:$0xff]   ;;  %v14946_v21 = vld [vmem:[%s16699_s4 + $0x1830] ss:$8 sps:$4 sm:$0xff]  }
 0x482   : > { %12602 = vmatprep.subr.bf16.mxu0 %v14864_v22  ;;  %v14951_v22 = vld [vmem:[%s16699_s4 + $0x1844] ss:$8 sps:$4 sm:$0xff]  }
 0x484   : > { %12111 = vmatpush1.bf16.msra.mxu1 %v14859_v23  ;;  %v14949_v23 = vld [vmem:[%s16699_s4 + $0x1840] ss:$8 sps:$4 sm:$0xff]  }
 0x485   : > { %12603 = vmatpush1.bf16.msra.mxu0 %v14862_v24  ;;  %12112 = vmatprep.subr.bf16.mxu1 %v14867_v25  ;;  %v14954_v24 = vld [vmem:[%s16699_s4 + $0x1854] ss:$8 sps:$4 sm:$0xff]   ;;  %v14952_v25 = vld [vmem:[%s16699_s4 + $0x1850] ss:$8 sps:$4 sm:$0xff]  }
 0x486   : > { %12604 = vmatprep.subr.bf16.mxu0 %v14870_v26  ;;  %v14957_v26 = vld [vmem:[%s16699_s4 + $0x1864] ss:$8 sps:$4 sm:$0xff]  }
 0x488   : > { %12113 = vmatpush1.bf16.msra.mxu1 %v14865_v27  ;;  %v14955_v27 = vld [vmem:[%s16699_s4 + $0x1860] ss:$8 sps:$4 sm:$0xff]  }
 0x489   : > { %12605 = vmatpush1.bf16.msra.mxu0 %v14868_v28  ;;  %12114 = vmatprep.subr.bf16.mxu1 %v14873_v35  ;;  %v14960_v28 = vld [vmem:[%s16699_s4 + $0x1874] ss:$8 sps:$4 sm:$0xff]   ;;  %v14958_v35 = vld [vmem:[%s16699_s4 + $0x1870] ss:$8 sps:$4 sm:$0xff]  }
 0x48a   : > { %12606 = vmatprep.subr.bf16.mxu0 %v14876_v36  ;;  %v12834_v36 = vld.sshfl [vmem:[%s16687_s24 + $0x30] sm:$0x1 pattern:$0x75316420] }
 0x48c   : > { %12115 = vmatpush1.bf16.msra.mxu1 %v14871_v37  ;;  %v7683_v37 = vrot.slane %v12834_v36, %v16750_v2 }
 0x48d   : > { %12607 = vmatpush1.bf16.msra.mxu0 %v14874_v38  ;;  %12116 = vmatprep.subr.bf16.mxu1 %v14879_v18 }
 0x48e   : > { %12608 = vmatprep.subr.bf16.mxu0 %v14882_v40 }
 0x490   : > { %12117 = vmatpush1.bf16.msra.mxu1 %v14877_v29 }
 0x491   : > { %12609 = vmatpush1.bf16.msra.mxu0 %v14880_v5  ;;  %12118 = vmatprep.subr.bf16.mxu1 %v14885_v11  ;;  %v15024_v5 = vmov 1983009808  }
 0x492   : > { %12610 = vmatprep.subr.bf16.mxu0 %v14888_v9  ;;  %v12682_v11 = vunpack.c.l.s4 %v15024_v5 }
 0x494   : > { %12119 = vmatpush1.bf16.msra.mxu1 %v14883_v43  ;;  %v12683_v9 = vunpack.c.0.s8 %v12682_v11 }
 0x495   : > { %12611 = vmatpush1.bf16.msra.mxu0 %v14886_v44  ;;  %12120 = vmatprep.subr.bf16.mxu1 %v14891_v45 }
 0x496   : > { %12612 = vmatprep.subr.bf16.mxu0 %v14894_v46 }
 0x498   : > { %12121 = vmatpush1.bf16.msra.mxu1 %v14889_v47  ;;  %v12686_v47 = vsub.s32 %v12683_v9, %v16742_v60 }
 0x499   : > { %12613 = vmatpush1.bf16.msra.mxu0 %v14892_v48  ;;  %12122 = vmatprep.subr.bf16.mxu1 %v14897_v32 }
 0x49a   : > { %12614 = vmatprep.subr.bf16.mxu0 %v14900_v50  ;;  %v6577_v50 = vld [vmem:[%s16697_s15] sm:$0xf] }
 0x49c   : > { %12123 = vmatpush1.bf16.msra.mxu1 %v14895_v51 }
 0x49d   : > { %12615 = vmatpush1.bf16.msra.mxu0 %v14898_v52  ;;  %12124 = vmatprep.subr.bf16.mxu1 %v14903_v59  ;;  %v12696_v59 = vld [vmem:[%s6563_s28] sm:$0x3] (!%p13619_p13) }
 0x49e   : > { %12616 = vmatprep.subr.bf16.mxu0 %v14906_v61  ;;  %v12700_v61 = vsub.s32 (!%p13619_p13), 0, %v16742_v60 }
 0x4a0   : > { %12125 = vmatpush1.bf16.msra.mxu1 %v14901_v41  ;;  %v12704_v41 = vsub.s32 (!%p13619_p13), 1, %v16742_v60 }
 0x4a1   : > { %12617 = vmatpush1.bf16.msra.mxu0 %v14904_v62  ;;  %12126 = vmatprep.subr.bf16.mxu1 %v14909_v58  ;;  %v12701_v62 = vrot.slane (!%p13619_p13), %v12696_v59, %v12700_v61 }
 0x4a2   : > { %12618 = vmatprep.subr.bf16.mxu0 %v14912_v42  ;;  %v12705_v58 = vrot.slane (!%p13619_p13), %v12696_v59, %v12704_v41 }
 0x4a4   : > { %12127 = vmatpush1.bf16.msra.mxu1 %v14907_v12  ;;  %v12706_v42 = vcombine.low (!%p13619_p13), %v12701_v62, %v12705_v58 }
 0x4a5   : > { %12619 = vmatpush1.bf16.msra.mxu0 %v14910_v30  ;;  %12128 = vmatprep.subr.bf16.mxu1 %v14915_v49 }
 0x4a6   : > { %12620 = vmatprep.subr.bf16.mxu0 %v14918_v53  ;;  %v12713_v30 = vrot.slane (!%p13619_p13), %v12706_v42, %v12686_v47 }
 0x4a8   : > { %12129 = vmatpush1.bf16.msra.mxu1 %v14913_v31 }
 0x4a9   : > { %12621 = vmatpush1.bf16.msra.mxu0 %v14916_v0  ;;  %12130 = vmatprep.subr.bf16.mxu1 %v14921_v33 }
 0x4aa   : > { %12622 = vmatprep.subr.bf16.mxu0 %v14924_v1 }
 0x4ac   : > { %12131 = vmatpush1.bf16.msra.mxu1 %v14919_v3 }
 0x4ad   : > { %12623 = vmatpush1.bf16.msra.mxu0 %v14922_v4  ;;  %12132 = vmatprep.subr.bf16.mxu1 %v14927_v6 }
 0x4ae   : > { %12624 = vmatprep.subr.bf16.mxu0 %v14930_v7 }
 0x4b0   : > { %12133 = vmatpush1.bf16.msra.mxu1 %v14925_v54 }
 0x4b1   : > { %12625 = vmatpush1.bf16.msra.mxu0 %v14928_v56  ;;  %12134 = vmatprep.subr.bf16.mxu1 %v14933_v15 }
 0x4b2   : > { %12626 = vmatprep.subr.bf16.mxu0 %v14936_v16 }
 0x4b4   : > { %12135 = vmatpush1.bf16.msra.mxu1 %v14931_v57 }
 0x4b5   : > { %12627 = vmatpush1.bf16.msra.mxu0 %v14934_v17 }
 0x4b6   : > { %12637 = vmatprep.subr.bf16.mxu0 %v14939_v39 }
 0x4b7   : > { %12137 = vmatmul.mubr.bf16.vlgmr.msra.gmra.mrb[0].mxu1 %v7520_v8 }
 0x4b8   : > { %12629 = vmatmul.mubr.bf16.vlgmr.msra.gmra.mrb[0].mxu0 %v7667_v63 }
 0x4b9   : > { %12638 = vmatpush1.bf16.msra.mxu0 %v14937_v19  ;;  %12669 = vmatprep.mubr.bf16.mxu0 %v15023_v34 }
 0x4ba   : > { %12639 = vmatprep.subr.bf16.mxu0 %v14942_v55 }
 0x4bd   : > { %12640 = vmatpush1.bf16.msra.mxu0 %v14940_v10 }
 0x4be   : > { %12641 = vmatprep.subr.bf16.mxu0 %v14945_v13 }
 0x4c1   : > { %12642 = vmatpush1.bf16.msra.mxu0 %v14943_v14 }
 0x4c2   : > { %12643 = vmatprep.subr.bf16.mxu0 %v14948_v20 }
 0x4c5   : > { %12644 = vmatpush1.bf16.msra.mxu0 %v14946_v21 }
 0x4c6   : > { %12645 = vmatprep.subr.bf16.mxu0 %v14951_v22 }
 0x4c9   : > { %12646 = vmatpush1.bf16.msra.mxu0 %v14949_v23 }
 0x4ca   : > { %12647 = vmatprep.subr.bf16.mxu0 %v14954_v24 }
 0x4cd   : > { %12648 = vmatpush1.bf16.msra.mxu0 %v14952_v25 }
 0x4ce   : > { %12649 = vmatprep.subr.bf16.mxu0 %v14957_v26 }
 0x4d1   : > { %12650 = vmatpush1.bf16.msra.mxu0 %v14955_v27 }
 0x4d2   : > { %12651 = vmatprep.subr.bf16.mxu0 %v14960_v28 }
 0x4d5   : > { %12652 = vmatpush1.bf16.msra.mxu0 %v14958_v35 }
 0x4d8   : > { %12670 = vmatmul.mubr.bf16.vlgmr.msra.gmra.mrb[0].mxu0 %v7683_v37 }
 0x58a   : > { %v12138_v38 = vpop.f32.mrb[0].mxu1 }
 0x58b   : > { %v12140_v18 = vpop.f32.mrb[1].mxu1 }
 0x58c   : > { %v12142_v40 = vpop.f32.mrb[2].mxu1 }
 0x58d   : > { %v12143_v29 = vpop.f32.mrb[3].mxu1 }
 0x5ab   : > { %v12671_v43 = vpop.f32.mrb[0].mxu0 }
 0x5ac   : > { %v13623_v44 = vadd.f32 %v12671_v43, %v12138_v38  ;;  %v12673_v45 = vpop.f32.mrb[1].mxu0 }
 0x5ad   : > { %v13624_v46 = vadd.f32 %v12673_v45, %v12140_v18  ;;  %v12675_v48 = vpop.f32.mrb[2].mxu0 }
 0x5ae   : > { %v12676_v32 = vpop.f32.mrb[3].mxu0 }
 0x5af   : > { %v12680_v2 = vcombine.low %v13623_v44, %v13624_v46  ;;  %12694 = sbr.rel (%p13619_p13) target bundleno = 1474 (0x5c2), region = 92 }
 0x5b1   : > { %v12687_v51 = vrot.slane %v12680_v2, %v12686_v47 }
 0x5b3   : > { %v12689_v52 = vadd.f32 %v12687_v51, %v6577_v50 }
 0x5b5   : > { %12690 = vst [vmem:[%s16697_s15] sm:$0xf] %v12689_v52 }
 0x5bc   : > { %v12695_v12 = vld [vmem:[%s16697_s15] sm:$0xf] }
 0x5bd   : > { %v12715_v49 = vadd.f32 %v12713_v30, %v12695_v12 }
 0x5bf   : > { %v12716_v53 = vmax.f32 %v12715_v49, 0.0 }
 0x5c1   : > { %12717 = vst [vmem:[%s16697_s15] sm:$0xf] %v12716_v53 }
 0x5c2 PF: > { %s13_s18 = sadd.s32 1, %s15019_s18   ;;  %s17754_s12 = smov %s14999_s13 }
 0x5c3   : > { %p10_p0 = scmp.ge.s32.totalorder %s13_s18, 10   ;;  %s17755_s13 = smov %s15096_s25 }
 0x5c4   : > { %s17756_s14 = smov %s15011_s16  ;;  %s17757_s15 = smov %s15015_s17 }
 0x5c5   : > { %s17758_s16 = smov %s17761_s19  ;;  %s17759_s17 = smov %s17765_s20 }
 0x5c6   :  { %12 = sbr.rel (!%p10_p0) target bundleno = 4 (0x4), region = 139 }

</bundles_post_ra>
